<compile_context>
chip_gen: v5e
topology: v5e:2x2
jax: 0.10.0
libtpu: 0.0.40
codegen_flags: <defaults>
</compile_context>

<pallas_src>
import functools

import jax
import jax.numpy as jnp
from jax.experimental import pallas as pl
from jax.experimental.pallas import tpu as pltpu

_VMEM = pl.BlockSpec(memory_space=pltpu.MemorySpace.VMEM)
_ANY = pl.BlockSpec(memory_space=pl.ANY)


def _round_up(n, m):
    return ((n + m - 1) // m) * m


# ------------------------------------------------------------------
# wrapper-side pool-phase im2col (transposed), lane-padded, bf16
# ------------------------------------------------------------------
def _phase_patches(x_cfirst, kh, kw, n_pad):
    """x_cfirst: (Cin, B, H, W).  Returns (kh*kw*Cin, 4*n_pad) bf16.

    Column block p = 2*dh+dw holds, for every pooled output position
    (b, hp, wp) (row-major, zero-padded up to n_pad columns), the im2col patch
    of conv-output position (2*hp+dh, 2*wp+dw); rows are ordered (ki, kj, ci)
    to match the packed conv weight matrix.
    """
    Cin, B, H, W = x_cfirst.shape
    Hp, Wp = (H - kh + 1) // 2, (W - kw + 1) // 2
    N = B * Hp * Wp
    phase_mats = []
    for dh in range(2):
        for dw in range(2):
            taps = []
            for ki in range(kh):
                for kj in range(kw):
                    sh, sw = dh + ki, dw + kj
                    sl = jax.lax.slice(
                        x_cfirst,
                        (0, 0, sh, sw),
                        (Cin, B, sh + 2 * (Hp - 1) + 1, sw + 2 * (Wp - 1) + 1),
                        (1, 1, 2, 2))                      # (Cin, B, Hp, Wp)
                    taps.append(sl.reshape(Cin, N))
            m = jnp.concatenate(taps, axis=0)              # (K, N)
            phase_mats.append(jnp.pad(m, ((0, 0), (0, n_pad - N))))
    return jnp.concatenate(phase_mats, axis=1).astype(jnp.bfloat16)


# ------------------------------------------------------------------
# fused conv (single lane-padded 4-phase dot) + bias + 2x2 max-pool
# ------------------------------------------------------------------
def _conv_pool_kernel(p_ref, w_ref, b_ref, o_ref):
    # p_ref: (K, 4*Np) bf16, w_ref: (Cout, K) bf16, b_ref: (Cout, 1) f32,
    # o_ref: (Cout, Np) bf16 with Np a multiple of 128 (lane-aligned stores).
    np_ = o_ref.shape[1]
    y = jnp.dot(w_ref[...], p_ref[...], preferred_element_type=jnp.float32)
    m = jnp.maximum(jnp.maximum(y[:, 0 * np_:1 * np_], y[:, 1 * np_:2 * np_]),
                    jnp.maximum(y[:, 2 * np_:3 * np_], y[:, 3 * np_:4 * np_]))
    o_ref[...] = (m + b_ref[...]).astype(o_ref.dtype)      # pool(conv)+b == pool(conv+b)


def _conv_pool_stage(x_cfirst, w_mat, b_col):
    """x_cfirst: (Cin, B, H, W) bf16.  Returns (Cout, B, Hp, Wp) bf16."""
    Cout, K = w_mat.shape
    Cin, B, H, W = x_cfirst.shape
    k = int(round((K // Cin) ** 0.5))                      # 6 for both conv stages
    Hp, Wp = (H - k + 1) // 2, (W - k + 1) // 2
    N = B * Hp * Wp
    Np = _round_up(N, 128)
    patches = _phase_patches(x_cfirst, k, k, Np)           # (K, 4*Np) bf16
    out = pl.pallas_call(
        _conv_pool_kernel,
        out_shape=jax.ShapeDtypeStruct((Cout, Np), jnp.bfloat16),
        in_specs=[_VMEM, _VMEM, _VMEM],
        out_specs=_VMEM,
    )(patches, w_mat, b_col)
    return out[:, :N].reshape(Cout, B, Hp, Wp)


# ------------------------------------------------------------------
# fused conv2 + pool + NCHW flatten + both Q heads
# ------------------------------------------------------------------
def _conv2_heads_kernel(p2_ref, w2c_ref, b2c_ref, a_ref, w1x_hbm, w1a_ref,
                        b1_ref, w2_ref, b2_ref, w3_ref, b3_ref, w4_ref, b4_ref,
                        q1_ref, q2_ref, w1x_vmem, xf_ref, dma_sem, *, hw):
    # Kick off the dominant fc1 weight transfer (HBM -> VMEM) immediately so it
    # overlaps the conv2 matmul + flatten below.
    w1x_copy = pltpu.make_async_copy(w1x_hbm, w1x_vmem, dma_sem)
    w1x_copy.start()

    # --- conv2 + bias + 2x2 max-pool (single lane-padded 4-phase dot) -------
    np_ = p2_ref.shape[1] // 4
    c2 = w2c_ref.shape[0]                                  # 16 output channels
    y = jnp.dot(w2c_ref[...], p2_ref[...], preferred_element_type=jnp.float32)
    m = jnp.maximum(jnp.maximum(y[:, 0 * np_:1 * np_], y[:, 1 * np_:2 * np_]),
                    jnp.maximum(y[:, 2 * np_:3 * np_], y[:, 3 * np_:4 * np_]))
    m = (m + b2c_ref[...]).astype(jnp.bfloat16)            # (16, Np2)

    # --- torch NCHW flatten into the (B, 16*128) zero-padded feature scratch.
    # Channel c's hw=112 features sit at lane offset c*128 (aligned stores);
    # the fc1 weight rows were padded identically at pack time, so the padded
    # lanes (kept zero) contribute nothing.
    b_sz = q1_ref.shape[0]
    xf_ref[...] = jnp.zeros_like(xf_ref)
    for b in range(b_sz):
        for c in range(c2):
            xf_ref[pl.ds(b, 1), pl.ds(c * 128, hw)] = m[c:c + 1, b * hw:(b + 1) * hw]

    # --- both Q heads; fc1/fc11 concatenated along the output axis ----------
    w1x_copy.wait()
    h = jnp.dot(xf_ref[...], w1x_vmem[...], preferred_element_type=jnp.float32)
    h = h + jnp.dot(a_ref[...], w1a_ref[...], preferred_element_type=jnp.float32)
    h = jnp.maximum(h + b1_ref[...], 0.0)                  # (B, 512) = [head1 | head2]

    def tail(hh, g):
        z = jnp.maximum(
            jnp.dot(hh, w2_ref[g], preferred_element_type=jnp.float32) + b2_ref[g], 0.0)
        z = jnp.maximum(
            jnp.dot(z, w3_ref[g], preferred_element_type=jnp.float32) + b3_ref[g], 0.0)
        return jnp.dot(z, w4_ref[g], preferred_element_type=jnp.float32) + b4_ref[g]

    h1 = w2_ref.shape[1]                                   # 256
    q1_ref[...] = tail(h[:, :h1], 0)
    q2_ref[...] = tail(h[:, h1:], 1)


# ------------------------------------------------------------------
# one-time weight packing (runs at parameter-load time, NOT per forward)
# ------------------------------------------------------------------
def pack_params(params):
    nA = params["fc4_b"].shape[0]

    def conv_pack(w, b):
        Cout, Cin, kh, kw = w.shape
        w_mat = jnp.transpose(w, (0, 2, 3, 1)).reshape(Cout, kh * kw * Cin)
        return w_mat.astype(jnp.bfloat16), b.reshape(Cout, 1).astype(jnp.float32)

    c1w, c1b = conv_pack(params["conv1_w"], params["conv1_b"])
    c2w, c2b = conv_pack(params["conv2_w"], params["conv2_b"])

    C2 = params["conv2_w"].shape[0]                        # 16
    nX = params["fc1_w"].shape[1] - nA                     # 16*16*7 = 1792
    HW = nX // C2                                          # 112

    t = lambda n: jnp.transpose(params[n + "_w"]).astype(jnp.float32)   # (in, out)
    w1_t, w11_t = t("fc1"), t("fc11")
    # Feature part of fc1/fc11 (both heads concatenated), rows re-laid-out into
    # 128-lane-aligned blocks per conv2 channel (pad rows are zero).
    w1x = jnp.concatenate([w1_t[:nX], w11_t[:nX]], axis=1)               # (1792, 512)
    w1x = w1x.reshape(C2, HW, w1x.shape[1])
    w1x = jnp.pad(w1x, ((0, 0), (0, 128 - HW), (0, 0)))
    w1x = w1x.reshape(C2 * 128, -1).astype(jnp.bfloat16)                 # (2048, 512)
    w1a = jnp.concatenate([w1_t[nX:], w11_t[nX:]], axis=1)               # (nA, 512) f32
    b1 = jnp.concatenate([params["fc1_b"], params["fc11_b"]]).reshape(1, -1)

    def stack(n):
        w = jnp.stack([t(n), t(n + "1")], axis=0)                        # (2, in, out)
        b = jnp.stack([params[n + "_b"], params[n + "1_b"]], axis=0)[:, None, :]
        return w, b

    w2, b2 = stack("fc2")
    w3, b3 = stack("fc3")
    w4, b4 = stack("fc4")
    return dict(conv1_w=c1w, conv1_b=c1b, conv2_w=c2w, conv2_b=c2b,
                w1x=w1x, w1a=w1a, b1=b1, w2=w2, b2=b2, w3=w3, b3=b3,
                w4=w4, b4=b4)


# ------------------------------------------------------------------
# full forward (2 pallas_calls)
# ------------------------------------------------------------------
def critic_forward(packed, x_nchw, a):
    if x_nchw.ndim == 3:                                   # torch: unsqueeze(0) if 3-D
        x_nchw = x_nchw[None]
    # channel-first working layout (Cin, B, H, W); bf16 activations, f32 accum.
    x = jnp.transpose(x_nchw, (1, 0, 2, 3)).astype(jnp.bfloat16)

    y1 = _conv_pool_stage(x, packed["conv1_w"], packed["conv1_b"])   # (6, B, 37, 19)

    _, B, H1, W1 = y1.shape
    k = 6
    Hp2, Wp2 = (H1 - k + 1) // 2, (W1 - k + 1) // 2                  # 16, 7
    HW = Hp2 * Wp2                                                   # 112
    N2 = B * HW
    Np2 = _round_up(N2, 128)
    p2 = _phase_patches(y1, k, k, Np2)                               # (216, 4*Np2) bf16

    a = a.astype(jnp.float32)
    nA = a.shape[1]
    kernel = functools.partial(_conv2_heads_kernel, hw=HW)
    q1, q2 = pl.pallas_call(
        kernel,
        out_shape=(jax.ShapeDtypeStruct((B, nA), jnp.float32),
                   jax.ShapeDtypeStruct((B, nA), jnp.float32)),
        in_specs=[_VMEM, _VMEM, _VMEM, _VMEM, _ANY,
                  _VMEM, _VMEM, _VMEM, _VMEM, _VMEM, _VMEM, _VMEM, _VMEM],
        out_specs=(_VMEM, _VMEM),
        scratch_shapes=[
            pltpu.VMEM(packed["w1x"].shape, jnp.bfloat16),           # fc1 weight landing pad
            pltpu.VMEM((B, packed["w1x"].shape[0]), jnp.bfloat16),   # flattened features
            pltpu.SemaphoreType.DMA,
        ],
    )(p2, packed["conv2_w"], packed["conv2_b"], a, packed["w1x"], packed["w1a"],
      packed["b1"], packed["w2"], packed["b2"], packed["w3"], packed["b3"],
      packed["w4"], packed["b4"])
    return q1, q2


# ------------------------------------------------------------------
# pure-XLA f32 reference (same math) for a correctness cross-check
# ------------------------------------------------------------------
def _critic_reference(params, x_nchw, a):
    if x_nchw.ndim == 3:
        x_nchw = x_nchw[None]
    x = x_nchw.astype(jnp.float32)

    def conv(x, w, b):
        y = jax.lax.conv_general_dilated(
            x, w, window_strides=(1, 1), padding="VALID",
            dimension_numbers=("NCHW", "OIHW", "NCHW"))
        return y + b.reshape(1, -1, 1, 1)

    def pool(x):
        return jax.lax.reduce_window(
            x, -jnp.inf, jax.lax.max, (1, 1, 2, 2), (1, 1, 2, 2), "VALID")

    x = pool(conv(x, params["conv1_w"], params["conv1_b"]))
    x = pool(conv(x, params["conv2_w"], params["conv2_b"]))
    B = x.shape[0]
    feat = jnp.concatenate([x.reshape(B, -1), a.astype(jnp.float32)], axis=1)

    def lin(h, n):
        return h @ params[n + "_w"].T + params[n + "_b"]

    def head(sfx):
        h = jax.nn.relu(lin(feat, "fc1" + sfx))
        h = jax.nn.relu(lin(h, "fc2" + sfx))
        h = jax.nn.relu(lin(h, "fc3" + sfx))
        return lin(h, "fc4" + sfx)

    return head(""), head("1")


# ------------------------------------------------------------------
# synthetic params matching the torch module's shapes
# ------------------------------------------------------------------
def init_params(key, nb_actions):
    ks = iter(jax.random.split(key, 24))

    def u(k, shape, scale):
        return jax.random.uniform(k, shape, jnp.float32, -scale, scale)

    p = {
        "conv1_w": u(next(ks), (6, 3, 6, 6), 0.1),
        "conv1_b": u(next(ks), (6,), 0.1),
        "conv2_w": u(next(ks), (16, 6, 6, 6), 0.1),
        "conv2_b": u(next(ks), (16,), 0.1),
    }
    feat_dim = 16 * 16 * 7 + nb_actions
    dims = [(feat_dim, 256), (256, 128), (128, 64), (64, nb_actions)]
    for i, (din, dout) in enumerate(dims, start=1):
        for suffix in ("", "1"):                       # fc{i} and fc{i}1 (second head)
            name = f"fc{i}{suffix}"
            w_scale = (2.0 / din) ** 0.5 if i < 4 else 0.3
            p[name + "_w"] = u(next(ks), (dout, din), w_scale)
            p[name + "_b"] = u(next(ks), (dout,), 1.0 / (din ** 0.5))
    return p


if __name__ == "__main__":
    nb_actions = 4
    key = jax.random.PRNGKey(0)
    kp, kx, ka = jax.random.split(key, 3)
    params = init_params(kp, nb_actions)
    packed = pack_params(params)          # one-time weight packing, not per forward

    # Spatial size must reduce to (16, 7) after conv6/pool2/conv6/pool2 so the
    # flatten is 16*16*7 = 1792 as the module's fc1 requires.
    x = jax.random.normal(kx, (2, 3, 79, 43), jnp.float32)   # NCHW (torch layout)
    a = jax.random.normal(ka, (2, nb_actions), jnp.float32)

    fwd = jax.jit(critic_forward)
    q1, q2 = fwd(packed, x, a)
    jax.block_until_ready((q1, q2))

    assert q1.shape == (2, nb_actions) and q2.shape == (2, nb_actions)
    assert bool(jnp.all(jnp.isfinite(q1))) and bool(jnp.all(jnp.isfinite(q2)))

    # correctness cross-check vs a pure-XLA f32 reference (tolerance covers the
    # bf16 weight/patch storage and MXU default-precision matmuls).
    r1, r2 = jax.jit(_critic_reference)(params, x, a)
    scale = float(jnp.maximum(jnp.max(jnp.abs(r1)), jnp.max(jnp.abs(r2)))) + 1.0
    err = float(jnp.maximum(jnp.max(jnp.abs(q1 - r1)), jnp.max(jnp.abs(q2 - r2))))
    assert err < 8e-2 * scale, f"mismatch vs reference: err={err}, scale={scale}"

    print("KERNEL_OK")
</pallas_src>

<mosaic_0001>
module attributes {stable_mosaic.version = 11 : i64} {
  func.func @_conv_pool_kernel(%arg0: memref<108x5632xbf16, #tpu.memory_space<vmem>>, %arg1: memref<6x108xbf16, #tpu.memory_space<vmem>>, %arg2: memref<6x1xf32, #tpu.memory_space<vmem>>, %arg3: memref<6x1408xbf16, #tpu.memory_space<vmem>>) attributes {dimension_semantics = [], scalar_prefetch = 0 : i64, scratch_operands = 0 : i64, tpu.core_type = #tpu.core_type<tc>} {
    %c0 = arith.constant 0 : index
    %c0_0 = arith.constant 0 : index
    %0 = vector.load %arg1[%c0, %c0_0] : memref<6x108xbf16, #tpu.memory_space<vmem>>, vector<6x108xbf16>
    %c0_1 = arith.constant 0 : index
    %c0_2 = arith.constant 0 : index
    %1 = vector.load %arg0[%c0_1, %c0_2] : memref<108x5632xbf16, #tpu.memory_space<vmem>>, vector<108x5632xbf16>
    %cst = arith.constant dense<0.000000e+00> : vector<6x5632xf32>
    %2 = tpu.matmul %0, %1, %cst {dimension_numbers = #tpu.dot_dimension_numbers<[1], [0], [0], [1], [0, 0, 1, 1], [], []>} : vector<6x108xbf16>, vector<108x5632xbf16>, vector<6x5632xf32> -> vector<6x5632xf32>
    %3 = vector.extract_strided_slice %2 {offsets = [0, 0], sizes = [6, 1408], strides = [1, 1]} : vector<6x5632xf32> to vector<6x1408xf32>
    %4 = vector.extract_strided_slice %2 {offsets = [0, 1408], sizes = [6, 1408], strides = [1, 1]} : vector<6x5632xf32> to vector<6x1408xf32>
    %5 = arith.maximumf %3, %4 : vector<6x1408xf32>
    %6 = vector.extract_strided_slice %2 {offsets = [0, 2816], sizes = [6, 1408], strides = [1, 1]} : vector<6x5632xf32> to vector<6x1408xf32>
    %7 = vector.extract_strided_slice %2 {offsets = [0, 4224], sizes = [6, 1408], strides = [1, 1]} : vector<6x5632xf32> to vector<6x1408xf32>
    %8 = arith.maximumf %6, %7 : vector<6x1408xf32>
    %9 = arith.maximumf %5, %8 : vector<6x1408xf32>
    %c0_3 = arith.constant 0 : index
    %c0_4 = arith.constant 0 : index
    %10 = vector.load %arg2[%c0_3, %c0_4] : memref<6x1xf32, #tpu.memory_space<vmem>>, vector<6x1xf32>
    %11 = vector.broadcast %10 : vector<6x1xf32> to vector<6x1408xf32>
    %12 = arith.addf %9, %11 : vector<6x1408xf32>
    %13 = arith.truncf %12 : vector<6x1408xf32> to vector<6x1408xbf16>
    %c0_5 = arith.constant 0 : index
    %c0_6 = arith.constant 0 : index
    %14 = vector.load %arg3[%c0_5, %c0_6] : memref<6x1408xbf16, #tpu.memory_space<vmem>>, vector<6x1408xbf16>
    tpu.vector_store %arg3[%c0_5, %c0_6], %13 {strides = array<i32>} : memref<6x1408xbf16, #tpu.memory_space<vmem>>, vector<6x1408xbf16>,
    return
  }
}

module attributes {stable_mosaic.version = 11 : i64} {
  func.func @_conv2_heads_kernel(%arg0: memref<216x1024xbf16, #tpu.memory_space<vmem>>, %arg1: memref<16x216xbf16, #tpu.memory_space<vmem>>, %arg2: memref<16x1xf32, #tpu.memory_space<vmem>>, %arg3: memref<2x4xf32, #tpu.memory_space<vmem>>, %arg4: memref<2048x512xbf16, #tpu.memory_space<any>>, %arg5: memref<4x512xf32, #tpu.memory_space<vmem>>, %arg6: memref<1x512xf32, #tpu.memory_space<vmem>>, %arg7: memref<2x256x128xf32, #tpu.memory_space<vmem>>, %arg8: memref<2x1x128xf32, #tpu.memory_space<vmem>>, %arg9: memref<2x128x64xf32, #tpu.memory_space<vmem>>, %arg10: memref<2x1x64xf32, #tpu.memory_space<vmem>>, %arg11: memref<2x64x4xf32, #tpu.memory_space<vmem>>, %arg12: memref<2x1x4xf32, #tpu.memory_space<vmem>>, %arg13: memref<2x4xf32, #tpu.memory_space<vmem>>, %arg14: memref<2x4xf32, #tpu.memory_space<vmem>>, %arg15: memref<2048x512xbf16, #tpu.memory_space<vmem>>, %arg16: memref<2x2048xbf16, #tpu.memory_space<vmem>>, %arg17: memref<!tpu.dma_semaphore, #tpu.memory_space<semaphore_mem>>) attributes {dimension_semantics = [], scalar_prefetch = 0 : i64, scratch_operands = 3 : i64, tpu.core_type = #tpu.core_type<tc>} {
    tpu.enqueue_dma source(%arg4 : memref<2048x512xbf16, #tpu.memory_space<any>>) target(%arg15 : memref<2048x512xbf16, #tpu.memory_space<vmem>>) target_semaphore(%arg17 : memref<!tpu.dma_semaphore, #tpu.memory_space<semaphore_mem>>)
    %c0 = arith.constant 0 : index
    %c0_0 = arith.constant 0 : index
    %0 = vector.load %arg1[%c0, %c0_0] : memref<16x216xbf16, #tpu.memory_space<vmem>>, vector<16x216xbf16>
    %c0_1 = arith.constant 0 : index
    %c0_2 = arith.constant 0 : index
    %1 = vector.load %arg0[%c0_1, %c0_2] : memref<216x1024xbf16, #tpu.memory_space<vmem>>, vector<216x1024xbf16>
    %cst = arith.constant dense<0.000000e+00> : vector<16x1024xf32>
    %2 = tpu.matmul %0, %1, %cst {dimension_numbers = #tpu.dot_dimension_numbers<[1], [0], [0], [1], [0, 0, 1, 1], [], []>} : vector<16x216xbf16>, vector<216x1024xbf16>, vector<16x1024xf32> -> vector<16x1024xf32>
    %3 = vector.extract_strided_slice %2 {offsets = [0, 0], sizes = [16, 256], strides = [1, 1]} : vector<16x1024xf32> to vector<16x256xf32>
    %4 = vector.extract_strided_slice %2 {offsets = [0, 256], sizes = [16, 256], strides = [1, 1]} : vector<16x1024xf32> to vector<16x256xf32>
    %5 = arith.maximumf %3, %4 : vector<16x256xf32>
    %6 = vector.extract_strided_slice %2 {offsets = [0, 512], sizes = [16, 256], strides = [1, 1]} : vector<16x1024xf32> to vector<16x256xf32>
    %7 = vector.extract_strided_slice %2 {offsets = [0, 768], sizes = [16, 256], strides = [1, 1]} : vector<16x1024xf32> to vector<16x256xf32>
    %8 = arith.maximumf %6, %7 : vector<16x256xf32>
    %9 = arith.maximumf %5, %8 : vector<16x256xf32>
    %c0_3 = arith.constant 0 : index
    %c0_4 = arith.constant 0 : index
    %10 = vector.load %arg2[%c0_3, %c0_4] : memref<16x1xf32, #tpu.memory_space<vmem>>, vector<16x1xf32>
    %11 = vector.broadcast %10 : vector<16x1xf32> to vector<16x256xf32>
    %12 = arith.addf %9, %11 : vector<16x256xf32>
    %13 = arith.truncf %12 : vector<16x256xf32> to vector<16x256xbf16>
    %cst_5 = arith.constant 0.000000e+00 : bf16
    %14 = vector.broadcast %cst_5 : bf16 to vector<2x2048xbf16>
    %c0_6 = arith.constant 0 : index
    %c0_7 = arith.constant 0 : index
    %15 = vector.load %arg16[%c0_6, %c0_7] : memref<2x2048xbf16, #tpu.memory_space<vmem>>, vector<2x2048xbf16>
    tpu.vector_store %arg16[%c0_6, %c0_7], %14 {strides = array<i32>} : memref<2x2048xbf16, #tpu.memory_space<vmem>>, vector<2x2048xbf16>,
    %16 = vector.extract_strided_slice %13 {offsets = [0, 0], sizes = [1, 112], strides = [1, 1]} : vector<16x256xbf16> to vector<1x112xbf16>
    %c0_8 = arith.constant 0 : index
    %c0_9 = arith.constant 0 : index
    %17 = vector.load %arg16[%c0_8, %c0_9] : memref<2x2048xbf16, #tpu.memory_space<vmem>>, vector<1x112xbf16>
    tpu.vector_store %arg16[%c0_8, %c0_9], %16 {strides = array<i32>} : memref<2x2048xbf16, #tpu.memory_space<vmem>>, vector<1x112xbf16>,
    %18 = vector.extract_strided_slice %13 {offsets = [1, 0], sizes = [1, 112], strides = [1, 1]} : vector<16x256xbf16> to vector<1x112xbf16>
    %c0_10 = arith.constant 0 : index
    %c128 = arith.constant 128 : index
    %19 = vector.load %arg16[%c0_10, %c128] : memref<2x2048xbf16, #tpu.memory_space<vmem>>, vector<1x112xbf16>
    tpu.vector_store %arg16[%c0_10, %c128], %18 {strides = array<i32>} : memref<2x2048xbf16, #tpu.memory_space<vmem>>, vector<1x112xbf16>,
    %20 = vector.extract_strided_slice %13 {offsets = [2, 0], sizes = [1, 112], strides = [1, 1]} : vector<16x256xbf16> to vector<1x112xbf16>
    %c0_11 = arith.constant 0 : index
    %c256 = arith.constant 256 : index
    %21 = vector.load %arg16[%c0_11, %c256] : memref<2x2048xbf16, #tpu.memory_space<vmem>>, vector<1x112xbf16>
    tpu.vector_store %arg16[%c0_11, %c256], %20 {strides = array<i32>} : memref<2x2048xbf16, #tpu.memory_space<vmem>>, vector<1x112xbf16>,
    %22 = vector.extract_strided_slice %13 {offsets = [3, 0], sizes = [1, 112], strides = [1, 1]} : vector<16x256xbf16> to vector<1x112xbf16>
    %c0_12 = arith.constant 0 : index
    %c384 = arith.constant 384 : index
    %23 = vector.load %arg16[%c0_12, %c384] : memref<2x2048xbf16, #tpu.memory_space<vmem>>, vector<1x112xbf16>
    tpu.vector_store %arg16[%c0_12, %c384], %22 {strides = array<i32>} : memref<2x2048xbf16, #tpu.memory_space<vmem>>, vector<1x112xbf16>,
    %24 = vector.extract_strided_slice %13 {offsets = [4, 0], sizes = [1, 112], strides = [1, 1]} : vector<16x256xbf16> to vector<1x112xbf16>
    %c0_13 = arith.constant 0 : index
    %c512 = arith.constant 512 : index
    %25 = vector.load %arg16[%c0_13, %c512] : memref<2x2048xbf16, #tpu.memory_space<vmem>>, vector<1x112xbf16>
    tpu.vector_store %arg16[%c0_13, %c512], %24 {strides = array<i32>} : memref<2x2048xbf16, #tpu.memory_space<vmem>>, vector<1x112xbf16>,
    %26 = vector.extract_strided_slice %13 {offsets = [5, 0], sizes = [1, 112], strides = [1, 1]} : vector<16x256xbf16> to vector<1x112xbf16>
    %c0_14 = arith.constant 0 : index
    %c640 = arith.constant 640 : index
    %27 = vector.load %arg16[%c0_14, %c640] : memref<2x2048xbf16, #tpu.memory_space<vmem>>, vector<1x112xbf16>
    tpu.vector_store %arg16[%c0_14, %c640], %26 {strides = array<i32>} : memref<2x2048xbf16, #tpu.memory_space<vmem>>, vector<1x112xbf16>,
    %28 = vector.extract_strided_slice %13 {offsets = [6, 0], sizes = [1, 112], strides = [1, 1]} : vector<16x256xbf16> to vector<1x112xbf16>
    %c0_15 = arith.constant 0 : index
    %c768 = arith.constant 768 : index
    %29 = vector.load %arg16[%c0_15, %c768] : memref<2x2048xbf16, #tpu.memory_space<vmem>>, vector<1x112xbf16>
    tpu.vector_store %arg16[%c0_15, %c768], %28 {strides = array<i32>} : memref<2x2048xbf16, #tpu.memory_space<vmem>>, vector<1x112xbf16>,
    %30 = vector.extract_strided_slice %13 {offsets = [7, 0], sizes = [1, 112], strides = [1, 1]} : vector<16x256xbf16> to vector<1x112xbf16>
    %c0_16 = arith.constant 0 : index
    %c896 = arith.constant 896 : index
    %31 = vector.load %arg16[%c0_16, %c896] : memref<2x2048xbf16, #tpu.memory_space<vmem>>, vector<1x112xbf16>
    tpu.vector_store %arg16[%c0_16, %c896], %30 {strides = array<i32>} : memref<2x2048xbf16, #tpu.memory_space<vmem>>, vector<1x112xbf16>,
    %32 = vector.extract_strided_slice %13 {offsets = [8, 0], sizes = [1, 112], strides = [1, 1]} : vector<16x256xbf16> to vector<1x112xbf16>
    %c0_17 = arith.constant 0 : index
    %c1024 = arith.constant 1024 : index
    %33 = vector.load %arg16[%c0_17, %c1024] : memref<2x2048xbf16, #tpu.memory_space<vmem>>, vector<1x112xbf16>
    tpu.vector_store %arg16[%c0_17, %c1024], %32 {strides = array<i32>} : memref<2x2048xbf16, #tpu.memory_space<vmem>>, vector<1x112xbf16>,
    %34 = vector.extract_strided_slice %13 {offsets = [9, 0], sizes = [1, 112], strides = [1, 1]} : vector<16x256xbf16> to vector<1x112xbf16>
    %c0_18 = arith.constant 0 : index
    %c1152 = arith.constant 1152 : index
    %35 = vector.load %arg16[%c0_18, %c1152] : memref<2x2048xbf16, #tpu.memory_space<vmem>>, vector<1x112xbf16>
    tpu.vector_store %arg16[%c0_18, %c1152], %34 {strides = array<i32>} : memref<2x2048xbf16, #tpu.memory_space<vmem>>, vector<1x112xbf16>,
    %36 = vector.extract_strided_slice %13 {offsets = [10, 0], sizes = [1, 112], strides = [1, 1]} : vector<16x256xbf16> to vector<1x112xbf16>
    %c0_19 = arith.constant 0 : index
    %c1280 = arith.constant 1280 : index
    %37 = vector.load %arg16[%c0_19, %c1280] : memref<2x2048xbf16, #tpu.memory_space<vmem>>, vector<1x112xbf16>
    tpu.vector_store %arg16[%c0_19, %c1280], %36 {strides = array<i32>} : memref<2x2048xbf16, #tpu.memory_space<vmem>>, vector<1x112xbf16>,
    %38 = vector.extract_strided_slice %13 {offsets = [11, 0], sizes = [1, 112], strides = [1, 1]} : vector<16x256xbf16> to vector<1x112xbf16>
    %c0_20 = arith.constant 0 : index
    %c1408 = arith.constant 1408 : index
    %39 = vector.load %arg16[%c0_20, %c1408] : memref<2x2048xbf16, #tpu.memory_space<vmem>>, vector<1x112xbf16>
    tpu.vector_store %arg16[%c0_20, %c1408], %38 {strides = array<i32>} : memref<2x2048xbf16, #tpu.memory_space<vmem>>, vector<1x112xbf16>,
    %40 = vector.extract_strided_slice %13 {offsets = [12, 0], sizes = [1, 112], strides = [1, 1]} : vector<16x256xbf16> to vector<1x112xbf16>
    %c0_21 = arith.constant 0 : index
    %c1536 = arith.constant 1536 : index
    %41 = vector.load %arg16[%c0_21, %c1536] : memref<2x2048xbf16, #tpu.memory_space<vmem>>, vector<1x112xbf16>
    tpu.vector_store %arg16[%c0_21, %c1536], %40 {strides = array<i32>} : memref<2x2048xbf16, #tpu.memory_space<vmem>>, vector<1x112xbf16>,
    %42 = vector.extract_strided_slice %13 {offsets = [13, 0], sizes = [1, 112], strides = [1, 1]} : vector<16x256xbf16> to vector<1x112xbf16>
    %c0_22 = arith.constant 0 : index
    %c1664 = arith.constant 1664 : index
    %43 = vector.load %arg16[%c0_22, %c1664] : memref<2x2048xbf16, #tpu.memory_space<vmem>>, vector<1x112xbf16>
    tpu.vector_store %arg16[%c0_22, %c1664], %42 {strides = array<i32>} : memref<2x2048xbf16, #tpu.memory_space<vmem>>, vector<1x112xbf16>,
    %44 = vector.extract_strided_slice %13 {offsets = [14, 0], sizes = [1, 112], strides = [1, 1]} : vector<16x256xbf16> to vector<1x112xbf16>
    %c0_23 = arith.constant 0 : index
    %c1792 = arith.constant 1792 : index
    %45 = vector.load %arg16[%c0_23, %c1792] : memref<2x2048xbf16, #tpu.memory_space<vmem>>, vector<1x112xbf16>
    tpu.vector_store %arg16[%c0_23, %c1792], %44 {strides = array<i32>} : memref<2x2048xbf16, #tpu.memory_space<vmem>>, vector<1x112xbf16>,
    %46 = vector.extract_strided_slice %13 {offsets = [15, 0], sizes = [1, 112], strides = [1, 1]} : vector<16x256xbf16> to vector<1x112xbf16>
    %c0_24 = arith.constant 0 : index
    %c1920 = arith.constant 1920 : index
    %47 = vector.load %arg16[%c0_24, %c1920] : memref<2x2048xbf16, #tpu.memory_space<vmem>>, vector<1x112xbf16>
    tpu.vector_store %arg16[%c0_24, %c1920], %46 {strides = array<i32>} : memref<2x2048xbf16, #tpu.memory_space<vmem>>, vector<1x112xbf16>,
    %48 = vector.extract_strided_slice %13 {offsets = [0, 112], sizes = [1, 112], strides = [1, 1]} : vector<16x256xbf16> to vector<1x112xbf16>
    %c1 = arith.constant 1 : index
    %c0_25 = arith.constant 0 : index
    %49 = vector.load %arg16[%c1, %c0_25] : memref<2x2048xbf16, #tpu.memory_space<vmem>>, vector<1x112xbf16>
    tpu.vector_store %arg16[%c1, %c0_25], %48 {strides = array<i32>} : memref<2x2048xbf16, #tpu.memory_space<vmem>>, vector<1x112xbf16>,
    %50 = vector.extract_strided_slice %13 {offsets = [1, 112], sizes = [1, 112], strides = [1, 1]} : vector<16x256xbf16> to vector<1x112xbf16>
    %c1_26 = arith.constant 1 : index
    %c128_27 = arith.constant 128 : index
    %51 = vector.load %arg16[%c1_26, %c128_27] : memref<2x2048xbf16, #tpu.memory_space<vmem>>, vector<1x112xbf16>
    tpu.vector_store %arg16[%c1_26, %c128_27], %50 {strides = array<i32>} : memref<2x2048xbf16, #tpu.memory_space<vmem>>, vector<1x112xbf16>,
    %52 = vector.extract_strided_slice %13 {offsets = [2, 112], sizes = [1, 112], strides = [1, 1]} : vector<16x256xbf16> to vector<1x112xbf16>
    %c1_28 = arith.constant 1 : index
    %c256_29 = arith.constant 256 : index
    %53 = vector.load %arg16[%c1_28, %c256_29] : memref<2x2048xbf16, #tpu.memory_space<vmem>>, vector<1x112xbf16>
    tpu.vector_store %arg16[%c1_28, %c256_29], %52 {strides = array<i32>} : memref<2x2048xbf16, #tpu.memory_space<vmem>>, vector<1x112xbf16>,
    %54 = vector.extract_strided_slice %13 {offsets = [3, 112], sizes = [1, 112], strides = [1, 1]} : vector<16x256xbf16> to vector<1x112xbf16>
    %c1_30 = arith.constant 1 : index
    %c384_31 = arith.constant 384 : index
    %55 = vector.load %arg16[%c1_30, %c384_31] : memref<2x2048xbf16, #tpu.memory_space<vmem>>, vector<1x112xbf16>
    tpu.vector_store %arg16[%c1_30, %c384_31], %54 {strides = array<i32>} : memref<2x2048xbf16, #tpu.memory_space<vmem>>, vector<1x112xbf16>,
    %56 = vector.extract_strided_slice %13 {offsets = [4, 112], sizes = [1, 112], strides = [1, 1]} : vector<16x256xbf16> to vector<1x112xbf16>
    %c1_32 = arith.constant 1 : index
    %c512_33 = arith.constant 512 : index
    %57 = vector.load %arg16[%c1_32, %c512_33] : memref<2x2048xbf16, #tpu.memory_space<vmem>>, vector<1x112xbf16>
    tpu.vector_store %arg16[%c1_32, %c512_33], %56 {strides = array<i32>} : memref<2x2048xbf16, #tpu.memory_space<vmem>>, vector<1x112xbf16>,
    %58 = vector.extract_strided_slice %13 {offsets = [5, 112], sizes = [1, 112], strides = [1, 1]} : vector<16x256xbf16> to vector<1x112xbf16>
    %c1_34 = arith.constant 1 : index
    %c640_35 = arith.constant 640 : index
    %59 = vector.load %arg16[%c1_34, %c640_35] : memref<2x2048xbf16, #tpu.memory_space<vmem>>, vector<1x112xbf16>
    tpu.vector_store %arg16[%c1_34, %c640_35], %58 {strides = array<i32>} : memref<2x2048xbf16, #tpu.memory_space<vmem>>, vector<1x112xbf16>,
    %60 = vector.extract_strided_slice %13 {offsets = [6, 112], sizes = [1, 112], strides = [1, 1]} : vector<16x256xbf16> to vector<1x112xbf16>
    %c1_36 = arith.constant 1 : index
    %c768_37 = arith.constant 768 : index
    %61 = vector.load %arg16[%c1_36, %c768_37] : memref<2x2048xbf16, #tpu.memory_space<vmem>>, vector<1x112xbf16>
    tpu.vector_store %arg16[%c1_36, %c768_37], %60 {strides = array<i32>} : memref<2x2048xbf16, #tpu.memory_space<vmem>>, vector<1x112xbf16>,
    %62 = vector.extract_strided_slice %13 {offsets = [7, 112], sizes = [1, 112], strides = [1, 1]} : vector<16x256xbf16> to vector<1x112xbf16>
    %c1_38 = arith.constant 1 : index
    %c896_39 = arith.constant 896 : index
    %63 = vector.load %arg16[%c1_38, %c896_39] : memref<2x2048xbf16, #tpu.memory_space<vmem>>, vector<1x112xbf16>
    tpu.vector_store %arg16[%c1_38, %c896_39], %62 {strides = array<i32>} : memref<2x2048xbf16, #tpu.memory_space<vmem>>, vector<1x112xbf16>,
    %64 = vector.extract_strided_slice %13 {offsets = [8, 112], sizes = [1, 112], strides = [1, 1]} : vector<16x256xbf16> to vector<1x112xbf16>
    %c1_40 = arith.constant 1 : index
    %c1024_41 = arith.constant 1024 : index
    %65 = vector.load %arg16[%c1_40, %c1024_41] : memref<2x2048xbf16, #tpu.memory_space<vmem>>, vector<1x112xbf16>
    tpu.vector_store %arg16[%c1_40, %c1024_41], %64 {strides = array<i32>} : memref<2x2048xbf16, #tpu.memory_space<vmem>>, vector<1x112xbf16>,
    %66 = vector.extract_strided_slice %13 {offsets = [9, 112], sizes = [1, 112], strides = [1, 1]} : vector<16x256xbf16> to vector<1x112xbf16>
    %c1_42 = arith.constant 1 : index
    %c1152_43 = arith.constant 1152 : index
    %67 = vector.load %arg16[%c1_42, %c1152_43] : memref<2x2048xbf16, #tpu.memory_space<vmem>>, vector<1x112xbf16>
    tpu.vector_store %arg16[%c1_42, %c1152_43], %66 {strides = array<i32>} : memref<2x2048xbf16, #tpu.memory_space<vmem>>, vector<1x112xbf16>,
    %68 = vector.extract_strided_slice %13 {offsets = [10, 112], sizes = [1, 112], strides = [1, 1]} : vector<16x256xbf16> to vector<1x112xbf16>
    %c1_44 = arith.constant 1 : index
    %c1280_45 = arith.constant 1280 : index
    %69 = vector.load %arg16[%c1_44, %c1280_45] : memref<2x2048xbf16, #tpu.memory_space<vmem>>, vector<1x112xbf16>
    tpu.vector_store %arg16[%c1_44, %c1280_45], %68 {strides = array<i32>} : memref<2x2048xbf16, #tpu.memory_space<vmem>>, vector<1x112xbf16>,
    %70 = vector.extract_strided_slice %13 {offsets = [11, 112], sizes = [1, 112], strides = [1, 1]} : vector<16x256xbf16> to vector<1x112xbf16>
    %c1_46 = arith.constant 1 : index
    %c1408_47 = arith.constant 1408 : index
    %71 = vector.load %arg16[%c1_46, %c1408_47] : memref<2x2048xbf16, #tpu.memory_space<vmem>>, vector<1x112xbf16>
    tpu.vector_store %arg16[%c1_46, %c1408_47], %70 {strides = array<i32>} : memref<2x2048xbf16, #tpu.memory_space<vmem>>, vector<1x112xbf16>,
    %72 = vector.extract_strided_slice %13 {offsets = [12, 112], sizes = [1, 112], strides = [1, 1]} : vector<16x256xbf16> to vector<1x112xbf16>
    %c1_48 = arith.constant 1 : index
    %c1536_49 = arith.constant 1536 : index
    %73 = vector.load %arg16[%c1_48, %c1536_49] : memref<2x2048xbf16, #tpu.memory_space<vmem>>, vector<1x112xbf16>
    tpu.vector_store %arg16[%c1_48, %c1536_49], %72 {strides = array<i32>} : memref<2x2048xbf16, #tpu.memory_space<vmem>>, vector<1x112xbf16>,
    %74 = vector.extract_strided_slice %13 {offsets = [13, 112], sizes = [1, 112], strides = [1, 1]} : vector<16x256xbf16> to vector<1x112xbf16>
    %c1_50 = arith.constant 1 : index
    %c1664_51 = arith.constant 1664 : index
    %75 = vector.load %arg16[%c1_50, %c1664_51] : memref<2x2048xbf16, #tpu.memory_space<vmem>>, vector<1x112xbf16>
    tpu.vector_store %arg16[%c1_50, %c1664_51], %74 {strides = array<i32>} : memref<2x2048xbf16, #tpu.memory_space<vmem>>, vector<1x112xbf16>,
    %76 = vector.extract_strided_slice %13 {offsets = [14, 112], sizes = [1, 112], strides = [1, 1]} : vector<16x256xbf16> to vector<1x112xbf16>
    %c1_52 = arith.constant 1 : index
    %c1792_53 = arith.constant 1792 : index
    %77 = vector.load %arg16[%c1_52, %c1792_53] : memref<2x2048xbf16, #tpu.memory_space<vmem>>, vector<1x112xbf16>
    tpu.vector_store %arg16[%c1_52, %c1792_53], %76 {strides = array<i32>} : memref<2x2048xbf16, #tpu.memory_space<vmem>>, vector<1x112xbf16>,
    %78 = vector.extract_strided_slice %13 {offsets = [15, 112], sizes = [1, 112], strides = [1, 1]} : vector<16x256xbf16> to vector<1x112xbf16>
    %c1_54 = arith.constant 1 : index
    %c1920_55 = arith.constant 1920 : index
    %79 = vector.load %arg16[%c1_54, %c1920_55] : memref<2x2048xbf16, #tpu.memory_space<vmem>>, vector<1x112xbf16>
    tpu.vector_store %arg16[%c1_54, %c1920_55], %78 {strides = array<i32>} : memref<2x2048xbf16, #tpu.memory_space<vmem>>, vector<1x112xbf16>,
    tpu.wait_dma2 semaphore(%arg17 : memref<!tpu.dma_semaphore, #tpu.memory_space<semaphore_mem>>) src(%arg4 : memref<2048x512xbf16, #tpu.memory_space<any>>) dst(%arg15 : memref<2048x512xbf16, #tpu.memory_space<vmem>>)
    %c0_56 = arith.constant 0 : index
    %c0_57 = arith.constant 0 : index
    %80 = vector.load %arg16[%c0_56, %c0_57] : memref<2x2048xbf16, #tpu.memory_space<vmem>>, vector<2x2048xbf16>
    %c0_58 = arith.constant 0 : index
    %c0_59 = arith.constant 0 : index
    %81 = vector.load %arg15[%c0_58, %c0_59] : memref<2048x512xbf16, #tpu.memory_space<vmem>>, vector<2048x512xbf16>
    %cst_60 = arith.constant dense<0.000000e+00> : vector<2x512xf32>
    %82 = tpu.matmul %80, %81, %cst_60 {dimension_numbers = #tpu.dot_dimension_numbers<[1], [0], [0], [1], [0, 0, 1, 1], [], []>} : vector<2x2048xbf16>, vector<2048x512xbf16>, vector<2x512xf32> -> vector<2x512xf32>
    %c0_61 = arith.constant 0 : index
    %c0_62 = arith.constant 0 : index
    %83 = vector.load %arg3[%c0_61, %c0_62] : memref<2x4xf32, #tpu.memory_space<vmem>>, vector<2x4xf32>
    %c0_63 = arith.constant 0 : index
    %c0_64 = arith.constant 0 : index
    %84 = vector.load %arg5[%c0_63, %c0_64] : memref<4x512xf32, #tpu.memory_space<vmem>>, vector<4x512xf32>
    %cst_65 = arith.constant dense<0.000000e+00> : vector<2x512xf32>
    %85 = tpu.matmul %83, %84, %cst_65 {dimension_numbers = #tpu.dot_dimension_numbers<[1], [0], [0], [1], [0, 0, 1, 1], [], []>} : vector<2x4xf32>, vector<4x512xf32>, vector<2x512xf32> -> vector<2x512xf32>
    %86 = arith.addf %82, %85 : vector<2x512xf32>
    %c0_66 = arith.constant 0 : index
    %c0_67 = arith.constant 0 : index
    %87 = vector.load %arg6[%c0_66, %c0_67] : memref<1x512xf32, #tpu.memory_space<vmem>>, vector<1x512xf32>
    %88 = vector.broadcast %87 : vector<1x512xf32> to vector<2x512xf32>
    %89 = arith.addf %86, %88 : vector<2x512xf32>
    %cst_68 = arith.constant 0.000000e+00 : f32
    %90 = vector.broadcast %cst_68 : f32 to vector<2x512xf32>
    %91 = arith.maximumf %89, %90 : vector<2x512xf32>
    %92 = vector.extract_strided_slice %91 {offsets = [0, 0], sizes = [2, 256], strides = [1, 1]} : vector<2x512xf32> to vector<2x256xf32>
    %c0_69 = arith.constant 0 : index
    %c0_70 = arith.constant 0 : index
    %c0_71 = arith.constant 0 : index
    %93 = vector.load %arg7[%c0_69, %c0_70, %c0_71] : memref<2x256x128xf32, #tpu.memory_space<vmem>>, vector<1x256x128xf32>
    %94 = vector.shape_cast %93 : vector<1x256x128xf32> to vector<256x128xf32>
    %cst_72 = arith.constant dense<0.000000e+00> : vector<2x128xf32>
    %95 = tpu.matmul %92, %94, %cst_72 {dimension_numbers = #tpu.dot_dimension_numbers<[1], [0], [0], [1], [0, 0, 1, 1], [], []>} : vector<2x256xf32>, vector<256x128xf32>, vector<2x128xf32> -> vector<2x128xf32>
    %c0_73 = arith.constant 0 : index
    %c0_74 = arith.constant 0 : index
    %c0_75 = arith.constant 0 : index
    %96 = vector.load %arg8[%c0_73, %c0_74, %c0_75] : memref<2x1x128xf32, #tpu.memory_space<vmem>>, vector<1x1x128xf32>
    %97 = vector.shape_cast %96 : vector<1x1x128xf32> to vector<1x128xf32>
    %98 = vector.broadcast %97 : vector<1x128xf32> to vector<2x128xf32>
    %99 = arith.addf %95, %98 : vector<2x128xf32>
    %cst_76 = arith.constant 0.000000e+00 : f32
    %100 = vector.broadcast %cst_76 : f32 to vector<2x128xf32>
    %101 = arith.maximumf %99, %100 : vector<2x128xf32>
    %c0_77 = arith.constant 0 : index
    %c0_78 = arith.constant 0 : index
    %c0_79 = arith.constant 0 : index
    %102 = vector.load %arg9[%c0_77, %c0_78, %c0_79] : memref<2x128x64xf32, #tpu.memory_space<vmem>>, vector<1x128x64xf32>
    %103 = vector.shape_cast %102 : vector<1x128x64xf32> to vector<128x64xf32>
    %cst_80 = arith.constant dense<0.000000e+00> : vector<2x64xf32>
    %104 = tpu.matmul %101, %103, %cst_80 {dimension_numbers = #tpu.dot_dimension_numbers<[1], [0], [0], [1], [0, 0, 1, 1], [], []>} : vector<2x128xf32>, vector<128x64xf32>, vector<2x64xf32> -> vector<2x64xf32>
    %c0_81 = arith.constant 0 : index
    %c0_82 = arith.constant 0 : index
    %c0_83 = arith.constant 0 : index
    %105 = vector.load %arg10[%c0_81, %c0_82, %c0_83] : memref<2x1x64xf32, #tpu.memory_space<vmem>>, vector<1x1x64xf32>
    %106 = vector.shape_cast %105 : vector<1x1x64xf32> to vector<1x64xf32>
    %107 = vector.broadcast %106 : vector<1x64xf32> to vector<2x64xf32>
    %108 = arith.addf %104, %107 : vector<2x64xf32>
    %cst_84 = arith.constant 0.000000e+00 : f32
    %109 = vector.broadcast %cst_84 : f32 to vector<2x64xf32>
    %110 = arith.maximumf %108, %109 : vector<2x64xf32>
    %c0_85 = arith.constant 0 : index
    %c0_86 = arith.constant 0 : index
    %c0_87 = arith.constant 0 : index
    %111 = vector.load %arg11[%c0_85, %c0_86, %c0_87] : memref<2x64x4xf32, #tpu.memory_space<vmem>>, vector<1x64x4xf32>
    %112 = vector.shape_cast %111 : vector<1x64x4xf32> to vector<64x4xf32>
    %cst_88 = arith.constant dense<0.000000e+00> : vector<2x4xf32>
    %113 = tpu.matmul %110, %112, %cst_88 {dimension_numbers = #tpu.dot_dimension_numbers<[1], [0], [0], [1], [0, 0, 1, 1], [], []>} : vector<2x64xf32>, vector<64x4xf32>, vector<2x4xf32> -> vector<2x4xf32>
    %c0_89 = arith.constant 0 : index
    %c0_90 = arith.constant 0 : index
    %c0_91 = arith.constant 0 : index
    %114 = vector.load %arg12[%c0_89, %c0_90, %c0_91] : memref<2x1x4xf32, #tpu.memory_space<vmem>>, vector<1x1x4xf32>
    %115 = vector.shape_cast %114 : vector<1x1x4xf32> to vector<1x4xf32>
    %116 = vector.broadcast %115 : vector<1x4xf32> to vector<2x4xf32>
    %117 = arith.addf %113, %116 : vector<2x4xf32>
    %c0_92 = arith.constant 0 : index
    %c0_93 = arith.constant 0 : index
    %118 = vector.load %arg13[%c0_92, %c0_93] : memref<2x4xf32, #tpu.memory_space<vmem>>, vector<2x4xf32>
    tpu.vector_store %arg13[%c0_92, %c0_93], %117 {strides = array<i32>} : memref<2x4xf32, #tpu.memory_space<vmem>>, vector<2x4xf32>,
    %119 = vector.extract_strided_slice %91 {offsets = [0, 256], sizes = [2, 256], strides = [1, 1]} : vector<2x512xf32> to vector<2x256xf32>
    %c1_94 = arith.constant 1 : index
    %c0_95 = arith.constant 0 : index
    %c0_96 = arith.constant 0 : index
    %120 = vector.load %arg7[%c1_94, %c0_95, %c0_96] : memref<2x256x128xf32, #tpu.memory_space<vmem>>, vector<1x256x128xf32>
    %121 = vector.shape_cast %120 : vector<1x256x128xf32> to vector<256x128xf32>
    %cst_97 = arith.constant dense<0.000000e+00> : vector<2x128xf32>
    %122 = tpu.matmul %119, %121, %cst_97 {dimension_numbers = #tpu.dot_dimension_numbers<[1], [0], [0], [1], [0, 0, 1, 1], [], []>} : vector<2x256xf32>, vector<256x128xf32>, vector<2x128xf32> -> vector<2x128xf32>
    %c1_98 = arith.constant 1 : index
    %c0_99 = arith.constant 0 : index
    %c0_100 = arith.constant 0 : index
    %123 = vector.load %arg8[%c1_98, %c0_99, %c0_100] : memref<2x1x128xf32, #tpu.memory_space<vmem>>, vector<1x1x128xf32>
    %124 = vector.shape_cast %123 : vector<1x1x128xf32> to vector<1x128xf32>
    %125 = vector.broadcast %124 : vector<1x128xf32> to vector<2x128xf32>
    %126 = arith.addf %122, %125 : vector<2x128xf32>
    %cst_101 = arith.constant 0.000000e+00 : f32
    %127 = vector.broadcast %cst_101 : f32 to vector<2x128xf32>
    %128 = arith.maximumf %126, %127 : vector<2x128xf32>
    %c1_102 = arith.constant 1 : index
    %c0_103 = arith.constant 0 : index
    %c0_104 = arith.constant 0 : index
    %129 = vector.load %arg9[%c1_102, %c0_103, %c0_104] : memref<2x128x64xf32, #tpu.memory_space<vmem>>, vector<1x128x64xf32>
    %130 = vector.shape_cast %129 : vector<1x128x64xf32> to vector<128x64xf32>
    %cst_105 = arith.constant dense<0.000000e+00> : vector<2x64xf32>
    %131 = tpu.matmul %128, %130, %cst_105 {dimension_numbers = #tpu.dot_dimension_numbers<[1], [0], [0], [1], [0, 0, 1, 1], [], []>} : vector<2x128xf32>, vector<128x64xf32>, vector<2x64xf32> -> vector<2x64xf32>
    %c1_106 = arith.constant 1 : index
    %c0_107 = arith.constant 0 : index
    %c0_108 = arith.constant 0 : index
    %132 = vector.load %arg10[%c1_106, %c0_107, %c0_108] : memref<2x1x64xf32, #tpu.memory_space<vmem>>, vector<1x1x64xf32>
    %133 = vector.shape_cast %132 : vector<1x1x64xf32> to vector<1x64xf32>
    %134 = vector.broadcast %133 : vector<1x64xf32> to vector<2x64xf32>
    %135 = arith.addf %131, %134 : vector<2x64xf32>
    %cst_109 = arith.constant 0.000000e+00 : f32
    %136 = vector.broadcast %cst_109 : f32 to vector<2x64xf32>
    %137 = arith.maximumf %135, %136 : vector<2x64xf32>
    %c1_110 = arith.constant 1 : index
    %c0_111 = arith.constant 0 : index
    %c0_112 = arith.constant 0 : index
    %138 = vector.load %arg11[%c1_110, %c0_111, %c0_112] : memref<2x64x4xf32, #tpu.memory_space<vmem>>, vector<1x64x4xf32>
    %139 = vector.shape_cast %138 : vector<1x64x4xf32> to vector<64x4xf32>
    %cst_113 = arith.constant dense<0.000000e+00> : vector<2x4xf32>
    %140 = tpu.matmul %137, %139, %cst_113 {dimension_numbers = #tpu.dot_dimension_numbers<[1], [0], [0], [1], [0, 0, 1, 1], [], []>} : vector<2x64xf32>, vector<64x4xf32>, vector<2x4xf32> -> vector<2x4xf32>
    %c1_114 = arith.constant 1 : index
    %c0_115 = arith.constant 0 : index
    %c0_116 = arith.constant 0 : index
    %141 = vector.load %arg12[%c1_114, %c0_115, %c0_116] : memref<2x1x4xf32, #tpu.memory_space<vmem>>, vector<1x1x4xf32>
    %142 = vector.shape_cast %141 : vector<1x1x4xf32> to vector<1x4xf32>
    %143 = vector.broadcast %142 : vector<1x4xf32> to vector<2x4xf32>
    %144 = arith.addf %140, %143 : vector<2x4xf32>
    %c0_117 = arith.constant 0 : index
    %c0_118 = arith.constant 0 : index
    %145 = vector.load %arg14[%c0_117, %c0_118] : memref<2x4xf32, #tpu.memory_space<vmem>>, vector<2x4xf32>
    tpu.vector_store %arg14[%c0_117, %c0_118], %144 {strides = array<i32>} : memref<2x4xf32, #tpu.memory_space<vmem>>, vector<2x4xf32>,
    return
  }
}

</mosaic_0001>

<bundles_post_ra>
// kernel: critic_forward.2
= control target key start
LH: loop header
LB: loop body
LE: loop exit
PB: predicated region body
PF: predicated region fallthrough
CT: control target
= control target key end

     0   :  { %vm1824_vm0 = vcmask 1045504   ;;  %vm1820_vm1 = vcmask 883712   ;;  %s6307_s0 = inlined_call_operand.vmem [shape: bf16[108,5632], index: 0, kind: input, shape index: {}]   ;;  %s6308_s1 = inlined_call_operand.vmem [shape: bf16[6,108], index: 1, kind: input, shape index: {}]   ;;  %s6309_s2 = inlined_call_operand.vmem [shape: f32[6,1], index: 2, kind: input, shape index: {}]   ;;  %s6310_s3 = inlined_call_operand.vmem [shape: bf16[6,1408], index: 3, kind: output, shape index: {}]  }
   0x1   :  { %v3653_v0 = vld [vmem:[%s6307_s0 + $0x840] sm:$0xf]  ;;  %v4157_v1 = vld [vmem:[%s6307_s0 + $0x8ec] sm:$0x30]  ;;  %v4135_v2 = vld [vmem:[%s6307_s0 + $0x844] sm:$0xf] }
   0x2   :  { %v3654_v3 = vor.u32 %v4157_v1, %v3653_v0  ;;  %v3655_v4 = vld [vmem:[%s6307_s0 + $0x8f0] sm:$0x30]  ;;  %v3661_v5 = vld [vmem:[%s6307_s0 + $0x848] sm:$0xf]  ;;  %v4158_v6 = vld [vmem:[%s6307_s0 + $0x8f4] sm:$0x30] }
   0x3   :  { %v3658_v7 = vor.u32 %v4135_v2, %v3655_v4  ;;  %v3662_v8 = vor.u32 %v4158_v6, %v3661_v5  ;;  %v4136_v9 = vld [vmem:[%s6307_s0 + $0x84c] sm:$0xf]  ;;  %v3663_v10 = vld [vmem:[%s6307_s0 + $0x8f8] sm:$0x30]  ;;  %v3477_v11 = vld [vmem:[%s6307_s0 + $0x6e0] sm:$0xf] }
   0x4   :  { %v1826_v12 = vsel %vm1824_vm0, %v3654_v3, 0  ;;  %v3666_v13 = vor.u32 %v4136_v9, %v3663_v10  ;;  %v4113_v14 = vld [vmem:[%s6307_s0 + $0x78c] sm:$0xf0]  ;;  %v4091_v15 = vld [vmem:[%s6307_s0 + $0x6e4] sm:$0xf] }
   0x5   :  { %1958 = vmatpush.bf16.msra.mxu0 %v1826_v12  ;;  %v1829_v16 = vsel %vm1824_vm0, %v3658_v7, 0  ;;  %v1832_v17 = vsel %vm1824_vm0, %v3662_v8, 0  ;;  %v3478_v18 = vor.u32 %v4113_v14, %v3477_v11  ;;  %v3479_v19 = vld [vmem:[%s6307_s0 + $0x790] sm:$0xf0]  ;;  %v3485_v20 = vld [vmem:[%s6307_s0 + $0x6e8] sm:$0xf] }
   0x6   :  { %1971 = vmatpush.bf16.msra.mxu1 %v1829_v16  ;;  %1984 = vmatpush.bf16.msra.mxu2 %v1832_v17  ;;  %v1835_v21 = vsel %vm1824_vm0, %v3666_v13, 0  ;;  %v3482_v22 = vor.u32 %v4091_v15, %v3479_v19  ;;  %v4114_v23 = vld [vmem:[%s6307_s0 + $0x794] sm:$0xf0]  ;;  %v4092_v24 = vld [vmem:[%s6307_s0 + $0x6ec] sm:$0xf] }
   0x7   :  { %1997 = vmatpush.bf16.msra.mxu3 %v1835_v21  ;;  %v3486_v25 = vor.u32 %v4114_v23, %v3485_v20  ;;  %v3487_v26 = vld [vmem:[%s6307_s0 + $0x798] sm:$0xf0]  ;;  %v3301_v27 = vld [vmem:[%s6307_s0 + $0x580] sm:$0xf]  ;;  %v4069_v28 = vld [vmem:[%s6307_s0 + $0x62c] sm:$0xf0] }
   0x8   :  { %v3490_v29 = vor.u32 %v4092_v24, %v3487_v26  ;;  %v4047_v30 = vld [vmem:[%s6307_s0 + $0x584] sm:$0xf]  ;;  %v3303_v31 = vld [vmem:[%s6307_s0 + $0x630] sm:$0xf0]  ;;  %v3309_v32 = vld [vmem:[%s6307_s0 + $0x588] sm:$0xf]  ;;  %v3302_v33 = vor.u32 %v4069_v28, %v3301_v27 }
   0x9   :  { %1959 = vmatpush.bf16.msra.mxu0 %v3478_v18  ;;  %v4070_v34 = vld [vmem:[%s6307_s0 + $0x634] sm:$0xf0]  ;;  %v4048_v35 = vld [vmem:[%s6307_s0 + $0x58c] sm:$0xf]  ;;  %v3311_v36 = vld [vmem:[%s6307_s0 + $0x638] sm:$0xf0]  ;;  %v3306_v37 = vor.u32 %v4047_v30, %v3303_v31 }
   0xa   :  { %1972 = vmatpush.bf16.msra.mxu1 %v3482_v22  ;;  %1985 = vmatpush.bf16.msra.mxu2 %v3486_v25  ;;  %v3310_v38 = vor.u32 %v4070_v34, %v3309_v32  ;;  %v3125_v39 = vld [vmem:[%s6307_s0 + $0x420] sm:$0xf]  ;;  %v4025_v40 = vld [vmem:[%s6307_s0 + $0x4cc] sm:$0xf0]  ;;  %v4003_v41 = vld [vmem:[%s6307_s0 + $0x424] sm:$0xf]  ;;  %v3314_v42 = vor.u32 %v4048_v35, %v3311_v36 }
   0xb   :  { %1998 = vmatpush.bf16.msra.mxu3 %v3490_v29  ;;  %v3127_v43 = vld [vmem:[%s6307_s0 + $0x4d0] sm:$0xf0]  ;;  %v3133_v44 = vld [vmem:[%s6307_s0 + $0x428] sm:$0xf]  ;;  %v4026_v45 = vld [vmem:[%s6307_s0 + $0x4d4] sm:$0xf0]  ;;  %v3126_v48 = vor.u32 %v4025_v40, %v3125_v39 }
   0xc   :  { %v4004_v46 = vld [vmem:[%s6307_s0 + $0x42c] sm:$0xf]  ;;  %v3135_v47 = vld [vmem:[%s6307_s0 + $0x4d8] sm:$0xf0]  ;;  %v3130_v49 = vor.u32 %v4003_v41, %v3127_v43  ;;  %v3134_v50 = vor.u32 %v4026_v45, %v3133_v44  ;;  %v2949_v51 = vld [vmem:[%s6307_s0 + $0x2c0] sm:$0xf] }
   0xd   :  { %1960 = vmatpush.bf16.msra.mxu0 %v3302_v33  ;;  %v3981_v52 = vld [vmem:[%s6307_s0 + $0x36c] sm:$0xf0]  ;;  %v3959_v53 = vld [vmem:[%s6307_s0 + $0x2c4] sm:$0xf]  ;;  %v3138_v54 = vor.u32 %v4004_v46, %v3135_v47  ;;  %v2951_v55 = vld [vmem:[%s6307_s0 + $0x370] sm:$0xf0] }
   0xe   :  { %1973 = vmatpush.bf16.msra.mxu1 %v3306_v37  ;;  %1986 = vmatpush.bf16.msra.mxu2 %v3310_v38  ;;  %v2957_v56 = vld [vmem:[%s6307_s0 + $0x2c8] sm:$0xf]  ;;  %v3982_v57 = vld [vmem:[%s6307_s0 + $0x374] sm:$0xf0]  ;;  %v3960_v58 = vld [vmem:[%s6307_s0 + $0x2cc] sm:$0xf]  ;;  %v2950_v60 = vor.u32 %v3981_v52, %v2949_v51  ;;  %v2954_v62 = vor.u32 %v3959_v53, %v2951_v55 }
   0xf   :  { %1999 = vmatpush.bf16.msra.mxu3 %v3314_v42  ;;  %v2959_v59 = vld [vmem:[%s6307_s0 + $0x378] sm:$0xf0]  ;;  %v2773_v61 = vld [vmem:[%s6307_s0 + $0x160] sm:$0xf]  ;;  %v2958_v63 = vor.u32 %v3982_v57, %v2957_v56  ;;  %v3937_v0 = vld [vmem:[%s6307_s0 + $0x20c] sm:$0xf0] }
  0x10   :  { %v3915_v1 = vld [vmem:[%s6307_s0 + $0x164] sm:$0xf]  ;;  %v2775_v2 = vld [vmem:[%s6307_s0 + $0x210] sm:$0xf0]  ;;  %v2962_v3 = vor.u32 %v3960_v58, %v2959_v59  ;;  %v2781_v4 = vld [vmem:[%s6307_s0 + $0x168] sm:$0xf]  ;;  %v2774_v10 = vor.u32 %v3937_v0, %v2773_v61 }
  0x11   :  { %1961 = vmatpush.bf16.msra.mxu0 %v3126_v48  ;;  %v3938_v5 = vld [vmem:[%s6307_s0 + $0x214] sm:$0xf0]  ;;  %v3916_v6 = vld [vmem:[%s6307_s0 + $0x16c] sm:$0xf]  ;;  %v2783_v7 = vld [vmem:[%s6307_s0 + $0x218] sm:$0xf0]  ;;  %v2778_v17 = vor.u32 %v3915_v1, %v2775_v2 }
  0x12   :  { %1974 = vmatpush.bf16.msra.mxu1 %v3130_v49  ;;  %1987 = vmatpush.bf16.msra.mxu2 %v3134_v50  ;;  %v2597_v8 = vld [vmem:[%s6307_s0] sm:$0xf]  ;;  %v3893_v9 = vld [vmem:[%s6307_s0 + $0xac] sm:$0xf0]  ;;  %v3871_v11 = vld [vmem:[%s6307_s0 + $0x4] sm:$0xf]  ;;  %v2782_v18 = vor.u32 %v3938_v5, %v2781_v4  ;;  %v2786_v22 = vor.u32 %v3916_v6, %v2783_v7 }
  0x13   :  { %2000 = vmatpush.bf16.msra.mxu3 %v3138_v54  ;;  %v2599_v12 = vld [vmem:[%s6307_s0 + $0xb0] sm:$0xf0]  ;;  %v2605_v13 = vld [vmem:[%s6307_s0 + $0x8] sm:$0xf]  ;;  %v3669_v14 = vld [vmem:[%s6307_s0 + $0x850] sm:$0xf]  ;;  %v2598_v29 = vor.u32 %v3893_v9, %v2597_v8 }
  0x14   :  { %v4159_v15 = vld [vmem:[%s6307_s0 + $0x8fc] sm:$0x30]  ;;  %v4137_v16 = vld [vmem:[%s6307_s0 + $0x854] sm:$0xf]  ;;  %v3671_v19 = vld [vmem:[%s6307_s0 + $0x900] sm:$0x30]  ;;  %v2602_v32 = vor.u32 %v3871_v11, %v2599_v12 }
  0x15   :  { %1962 = vmatpush.bf16.msra.mxu0 %v2950_v60  ;;  %v3677_v20 = vld [vmem:[%s6307_s0 + $0x858] sm:$0xf]  ;;  %v4160_v21 = vld [vmem:[%s6307_s0 + $0x904] sm:$0x30]  ;;  %v4138_v24 = vld [vmem:[%s6307_s0 + $0x85c] sm:$0xf]  ;;  %v3670_v28 = vor.u32 %v4159_v15, %v3669_v14  ;;  %v3674_v30 = vor.u32 %v4137_v16, %v3671_v19 }
  0x16   :  { %1975 = vmatpush.bf16.msra.mxu1 %v2954_v62  ;;  %1988 = vmatpush.bf16.msra.mxu2 %v2958_v63  ;;  %v3894_v23 = vld [vmem:[%s6307_s0 + $0xb4] sm:$0xf0]  ;;  %v3679_v25 = vld [vmem:[%s6307_s0 + $0x908] sm:$0x30]  ;;  %v2607_v27 = vld [vmem:[%s6307_s0 + $0xb8] sm:$0xf0]  ;;  %v3678_v31 = vor.u32 %v4160_v21, %v3677_v20 }
  0x17   :  { %2001 = vmatpush.bf16.msra.mxu3 %v2962_v3  ;;  %v3872_v26 = vld [vmem:[%s6307_s0 + $0xc] sm:$0xf]  ;;  %v2606_v33 = vor.u32 %v3894_v23, %v2605_v13  ;;  %v3682_v34 = vor.u32 %v4138_v24, %v3679_v25  ;;  %v3493_v36 = vld [vmem:[%s6307_s0 + $0x6f0] sm:$0xf]  ;;  %v4115_v37 = vld [vmem:[%s6307_s0 + $0x79c] sm:$0xf0] }
  0x18   :  { %v2610_v35 = vor.u32 %v3872_v26, %v2607_v27  ;;  %v1838_v38 = vsel %vm1824_vm0, %v3670_v28, 0  ;;  %v4093_v39 = vld [vmem:[%s6307_s0 + $0x6f4] sm:$0xf]  ;;  %v3495_v40 = vld [vmem:[%s6307_s0 + $0x7a0] sm:$0xf0]  ;;  %v1841_v41 = vsel %vm1824_vm0, %v3674_v30, 0  ;;  %v3494_v48 = vor.u32 %v4115_v37, %v3493_v36 }
  0x19   :  { %1963 = vmatpush.bf16.msra.mxu0 %v2774_v10  ;;  %v1844_v42 = vsel %vm1824_vm0, %v3678_v31, 0  ;;  %v3501_v43 = vld [vmem:[%s6307_s0 + $0x6f8] sm:$0xf]  ;;  %v4116_v44 = vld [vmem:[%s6307_s0 + $0x7a4] sm:$0xf0]  ;;  %v1847_v45 = vsel %vm1824_vm0, %v3682_v34, 0  ;;  %v3498_v49 = vor.u32 %v4093_v39, %v3495_v40 }
  0x1a   :  { %1976 = vmatpush.bf16.msra.mxu1 %v2778_v17  ;;  %1989 = vmatpush.bf16.msra.mxu2 %v2782_v18  ;;  %v4094_v46 = vld [vmem:[%s6307_s0 + $0x6fc] sm:$0xf]  ;;  %v3503_v47 = vld [vmem:[%s6307_s0 + $0x7a8] sm:$0xf0]  ;;  %v3502_v50 = vor.u32 %v4116_v44, %v3501_v43  ;;  %v3317_v51 = vld [vmem:[%s6307_s0 + $0x590] sm:$0xf] }
  0x1b   :  { %2002 = vmatpush.bf16.msra.mxu3 %v2786_v22  ;;  %v4071_v52 = vld [vmem:[%s6307_s0 + $0x63c] sm:$0xf0]  ;;  %v4049_v53 = vld [vmem:[%s6307_s0 + $0x594] sm:$0xf]  ;;  %v3506_v54 = vor.u32 %v4094_v46, %v3503_v47  ;;  %v3319_v55 = vld [vmem:[%s6307_s0 + $0x640] sm:$0xf0] }
  0x1c   :  { %v3325_v56 = vld [vmem:[%s6307_s0 + $0x598] sm:$0xf]  ;;  %v4072_v57 = vld [vmem:[%s6307_s0 + $0x644] sm:$0xf0]  ;;  %v4050_v58 = vld [vmem:[%s6307_s0 + $0x59c] sm:$0xf]  ;;  %v3318_v60 = vor.u32 %v4071_v52, %v3317_v51  ;;  %v3322_v62 = vor.u32 %v4049_v53, %v3319_v55 }
  0x1d   :  { %1964 = vmatpush.bf16.msra.mxu0 %v2598_v29  ;;  %v3327_v59 = vld [vmem:[%s6307_s0 + $0x648] sm:$0xf0]  ;;  %v4455_v61 = vld [vmem:[%s6308_s1] sm:$0x7]  ;;  %v3326_v63 = vor.u32 %v4072_v57, %v3325_v56  ;;  %v3141_v0 = vld [vmem:[%s6307_s0 + $0x430] sm:$0xf] }
  0x1e   :  { %1977 = vmatpush.bf16.msra.mxu1 %v2602_v32  ;;  %1990 = vmatpush.bf16.msra.mxu2 %v2606_v33  ;;  %v4027_v1 = vld [vmem:[%s6307_s0 + $0x4dc] sm:$0xf0]  ;;  %v4005_v2 = vld [vmem:[%s6307_s0 + $0x434] sm:$0xf]  ;;  %v3330_v3 = vor.u32 %v4050_v58, %v3327_v59  ;;  %v3143_v4 = vld [vmem:[%s6307_s0 + $0x4e0] sm:$0xf0] }
  0x1f   :  { %2003 = vmatpush.bf16.msra.mxu3 %v2610_v35  ;;  %v3149_v5 = vld [vmem:[%s6307_s0 + $0x438] sm:$0xf]  ;;  %v4028_v6 = vld [vmem:[%s6307_s0 + $0x4e4] sm:$0xf0]  ;;  %v4006_v7 = vld [vmem:[%s6307_s0 + $0x43c] sm:$0xf]  ;;  %v3142_v9 = vor.u32 %v4027_v1, %v3141_v0  ;;  %v3146_v10 = vor.u32 %v4005_v2, %v3143_v4 }
  0x20   :  { %v3151_v8 = vld [vmem:[%s6307_s0 + $0x4e8] sm:$0xf0]  ;;  %3827 = vmatmul.msk.bf16.vlgmr.msra.gmra.mxu0 %vm1820_vm1, %v4455_v61  ;;  %v3150_v11 = vor.u32 %v4028_v6, %v3149_v5  ;;  %v2965_v12 = vld [vmem:[%s6307_s0 + $0x2d0] sm:$0xf]  ;;  %v3983_v13 = vld [vmem:[%s6307_s0 + $0x37c] sm:$0xf0] }
  0x21   :  { %2010 = vmatpush.bf16.msrb.mxu0 %v1838_v38  ;;  %3829 = vmatmul.msk.bf16.vlgmr.msra.gmra.mxu2 %vm1820_vm1, %v4455_v61  ;;  %v3961_v14 = vld [vmem:[%s6307_s0 + $0x2d4] sm:$0xf]  ;;  %v3154_v15 = vor.u32 %v4006_v7, %v3151_v8  ;;  %v2967_v16 = vld [vmem:[%s6307_s0 + $0x380] sm:$0xf0]  ;;  %v2973_v17 = vld [vmem:[%s6307_s0 + $0x2d8] sm:$0xf]  ;;  %v2966_v21 = vor.u32 %v3983_v13, %v2965_v12 }
  0x22   :  { %2023 = vmatpush.bf16.msrb.mxu1 %v1841_v41  ;;  %2036 = vmatpush.bf16.msrb.mxu2 %v1844_v42  ;;  %v3984_v18 = vld [vmem:[%s6307_s0 + $0x384] sm:$0xf0]  ;;  %v3962_v19 = vld [vmem:[%s6307_s0 + $0x2dc] sm:$0xf]  ;;  %v2975_v20 = vld [vmem:[%s6307_s0 + $0x388] sm:$0xf0]  ;;  %v2970_v23 = vor.u32 %v3961_v14, %v2967_v16 }
  0x23   :  { %2049 = vmatpush.bf16.msrb.mxu3 %v1847_v45  ;;  %3828 = vmatmul.msk.bf16.vlgmr.msra.gmra.mxu1 %vm1820_vm1, %v4455_v61  ;;  %v2789_v22 = vld [vmem:[%s6307_s0 + $0x170] sm:$0xf]  ;;  %v2974_v24 = vor.u32 %v3984_v18, %v2973_v17  ;;  %v3939_v25 = vld [vmem:[%s6307_s0 + $0x21c] sm:$0xf0]  ;;  %v3917_v26 = vld [vmem:[%s6307_s0 + $0x174] sm:$0xf]  ;;  %v2978_v28 = vor.u32 %v3962_v19, %v2975_v20 }
  0x24   :  { %3830 = vmatmul.msk.bf16.vlgmr.msra.gmra.mxu3 %vm1820_vm1, %v4455_v61  ;;  %v2791_v27 = vld [vmem:[%s6307_s0 + $0x220] sm:$0xf0]  ;;  %v2797_v29 = vld [vmem:[%s6307_s0 + $0x178] sm:$0xf]  ;;  %v3940_v30 = vld [vmem:[%s6307_s0 + $0x224] sm:$0xf0]  ;;  %v2790_v35 = vor.u32 %v3939_v25, %v2789_v22 }
  0x25   :  { %2011 = vmatpush.bf16.msrb.mxu0 %v3494_v48  ;;  %v3918_v31 = vld [vmem:[%s6307_s0 + $0x17c] sm:$0xf]  ;;  %v2799_v32 = vld [vmem:[%s6307_s0 + $0x228] sm:$0xf0]  ;;  %v2613_v33 = vld [vmem:[%s6307_s0 + $0x10] sm:$0xf]  ;;  %v2794_v42 = vor.u32 %v3917_v26, %v2791_v27  ;;  %v2798_v43 = vor.u32 %v3940_v30, %v2797_v29 }
  0x26   :  { %2024 = vmatpush.bf16.msrb.mxu1 %v3498_v49  ;;  %2037 = vmatpush.bf16.msrb.mxu2 %v3502_v50  ;;  %v3895_v34 = vld [vmem:[%s6307_s0 + $0xbc] sm:$0xf0]  ;;  %v3873_v36 = vld [vmem:[%s6307_s0 + $0x14] sm:$0xf]  ;;  %v2615_v37 = vld [vmem:[%s6307_s0 + $0xc0] sm:$0xf0]  ;;  %v2802_v47 = vor.u32 %v3918_v31, %v2799_v32 }
  0x27   :  { %2050 = vmatpush.bf16.msrb.mxu3 %v3506_v54  ;;  %v2621_v38 = vld [vmem:[%s6307_s0 + $0x18] sm:$0xf]  ;;  %v3685_v39 = vld [vmem:[%s6307_s0 + $0x860] sm:$0xf]  ;;  %v4161_v40 = vld [vmem:[%s6307_s0 + $0x90c] sm:$0x30]  ;;  %v2614_v54 = vor.u32 %v3895_v34, %v2613_v33  ;;  %v2618_v57 = vor.u32 %v3873_v36, %v2615_v37 }
  0x28   :  { %v4139_v41 = vld [vmem:[%s6307_s0 + $0x864] sm:$0xf]  ;;  %v3687_v44 = vld [vmem:[%s6307_s0 + $0x910] sm:$0x30]  ;;  %v3693_v45 = vld [vmem:[%s6307_s0 + $0x868] sm:$0xf]  ;;  %v3686_v53 = vor.u32 %v4161_v40, %v3685_v39 }
  0x29   :  { %2012 = vmatpush.bf16.msrb.mxu0 %v3318_v60  ;;  %v4162_v46 = vld [vmem:[%s6307_s0 + $0x914] sm:$0x30]  ;;  %v3896_v48 = vld [vmem:[%s6307_s0 + $0xc4] sm:$0xf0]  ;;  %v4140_v49 = vld [vmem:[%s6307_s0 + $0x86c] sm:$0xf]  ;;  %v3690_v55 = vor.u32 %v4139_v41, %v3687_v44 }
  0x2a   :  { %2025 = vmatpush.bf16.msrb.mxu1 %v3322_v62  ;;  %2038 = vmatpush.bf16.msrb.mxu2 %v3326_v63  ;;  %v3695_v50 = vld [vmem:[%s6307_s0 + $0x918] sm:$0x30]  ;;  %v2623_v52 = vld [vmem:[%s6307_s0 + $0xc8] sm:$0xf0]  ;;  %v3694_v56 = vor.u32 %v4162_v46, %v3693_v45  ;;  %v2622_v58 = vor.u32 %v3896_v48, %v2621_v38  ;;  %v3509_v62 = vld [vmem:[%s6307_s0 + $0x700] sm:$0xf] }
  0x2b   :  { %2051 = vmatpush.bf16.msrb.mxu3 %v3330_v3  ;;  %v3874_v51 = vld [vmem:[%s6307_s0 + $0x1c] sm:$0xf]  ;;  %v3698_v59 = vor.u32 %v4140_v49, %v3695_v50  ;;  %v4117_v63 = vld [vmem:[%s6307_s0 + $0x7ac] sm:$0xf0]  ;;  %v1850_v0 = vsel %vm1824_vm0, %v3686_v53, 0  ;;  %v1853_v3 = vsel %vm1824_vm0, %v3690_v55, 0 }
  0x2c   :  { %v2626_v60 = vor.u32 %v3874_v51, %v2623_v52  ;;  %v4095_v1 = vld [vmem:[%s6307_s0 + $0x704] sm:$0xf]  ;;  %v3511_v2 = vld [vmem:[%s6307_s0 + $0x7b0] sm:$0xf0]  ;;  %v1856_v4 = vsel %vm1824_vm0, %v3694_v56, 0 }
  0x2d   :  { %2013 = vmatpush.bf16.msrb.mxu0 %v3142_v9  ;;  %v3517_v5 = vld [vmem:[%s6307_s0 + $0x708] sm:$0xf]  ;;  %v4118_v6 = vld [vmem:[%s6307_s0 + $0x7b4] sm:$0xf0]  ;;  %v1859_v7 = vsel %vm1824_vm0, %v3698_v59, 0 }
  0x2e   :  { %2026 = vmatpush.bf16.msrb.mxu1 %v3146_v10  ;;  %2039 = vmatpush.bf16.msrb.mxu2 %v3150_v11  ;;  %v4096_v8 = vld [vmem:[%s6307_s0 + $0x70c] sm:$0xf]  ;;  %v3519_v9 = vld [vmem:[%s6307_s0 + $0x7b8] sm:$0xf0]  ;;  %v3510_v10 = vor.u32 %v4117_v63, %v3509_v62  ;;  %v3514_v11 = vor.u32 %v4095_v1, %v3511_v2  ;;  %v3518_v12 = vor.u32 %v4118_v6, %v3517_v5  ;;  %v3333_v13 = vld [vmem:[%s6307_s0 + $0x5a0] sm:$0xf] }
  0x2f   :  { %2052 = vmatpush.bf16.msrb.mxu3 %v3154_v15  ;;  %v4073_v14 = vld [vmem:[%s6307_s0 + $0x64c] sm:$0xf0]  ;;  %v4051_v15 = vld [vmem:[%s6307_s0 + $0x5a4] sm:$0xf]  ;;  %v3522_v16 = vor.u32 %v4096_v8, %v3519_v9  ;;  %v3335_v17 = vld [vmem:[%s6307_s0 + $0x650] sm:$0xf0] }
  0x30   :  { %v3341_v18 = vld [vmem:[%s6307_s0 + $0x5a8] sm:$0xf]  ;;  %v4074_v19 = vld [vmem:[%s6307_s0 + $0x654] sm:$0xf0]  ;;  %v4052_v20 = vld [vmem:[%s6307_s0 + $0x5ac] sm:$0xf]  ;;  %v3334_v22 = vor.u32 %v4073_v14, %v3333_v13 }
  0x31   :  { %2014 = vmatpush.bf16.msrb.mxu0 %v2966_v21  ;;  %v3343_v21 = vld [vmem:[%s6307_s0 + $0x658] sm:$0xf0]  ;;  %v3157_v25 = vld [vmem:[%s6307_s0 + $0x440] sm:$0xf]  ;;  %v4029_v26 = vld [vmem:[%s6307_s0 + $0x4ec] sm:$0xf0] }
  0x32   :  { %2027 = vmatpush.bf16.msrb.mxu1 %v2970_v23  ;;  %2040 = vmatpush.bf16.msrb.mxu2 %v2974_v24  ;;  %v3338_v23 = vor.u32 %v4051_v15, %v3335_v17  ;;  %v3342_v24 = vor.u32 %v4074_v19, %v3341_v18  ;;  %v4007_v27 = vld [vmem:[%s6307_s0 + $0x444] sm:$0xf]  ;;  %v3159_v29 = vld [vmem:[%s6307_s0 + $0x4f0] sm:$0xf0]  ;;  %v3165_v30 = vld [vmem:[%s6307_s0 + $0x448] sm:$0xf]  ;;  %v3158_v34 = vor.u32 %v4029_v26, %v3157_v25 }
  0x33   :  { %2053 = vmatpush.bf16.msrb.mxu3 %v2978_v28  ;;  %v3346_v28 = vor.u32 %v4052_v20, %v3343_v21  ;;  %v4030_v31 = vld [vmem:[%s6307_s0 + $0x4f4] sm:$0xf0]  ;;  %v4008_v32 = vld [vmem:[%s6307_s0 + $0x44c] sm:$0xf]  ;;  %v3167_v33 = vld [vmem:[%s6307_s0 + $0x4f8] sm:$0xf0] }
  0x34   :  { %v3166_v36 = vor.u32 %v4030_v31, %v3165_v30  ;;  %v2981_v37 = vld [vmem:[%s6307_s0 + $0x2e0] sm:$0xf]  ;;  %v3985_v38 = vld [vmem:[%s6307_s0 + $0x38c] sm:$0xf0]  ;;  %v3963_v39 = vld [vmem:[%s6307_s0 + $0x2e4] sm:$0xf]  ;;  %v3170_v40 = vor.u32 %v4008_v32, %v3167_v33 }
  0x35   :  { %2015 = vmatpush.bf16.msrb.mxu0 %v2790_v35  ;;  %v3162_v35 = vor.u32 %v4007_v27, %v3159_v29  ;;  %v2983_v41 = vld [vmem:[%s6307_s0 + $0x390] sm:$0xf0]  ;;  %v3964_v44 = vld [vmem:[%s6307_s0 + $0x2ec] sm:$0xf]  ;;  %v2991_v45 = vld [vmem:[%s6307_s0 + $0x398] sm:$0xf0]  ;;  %v2982_v46 = vor.u32 %v3985_v38, %v2981_v37 }
  0x36   :  { %2028 = vmatpush.bf16.msrb.mxu1 %v2794_v42  ;;  %2041 = vmatpush.bf16.msrb.mxu2 %v2798_v43  ;;  %v2989_v42 = vld [vmem:[%s6307_s0 + $0x2e8] sm:$0xf]  ;;  %v3986_v43 = vld [vmem:[%s6307_s0 + $0x394] sm:$0xf0]  ;;  %v3941_v48 = vld [vmem:[%s6307_s0 + $0x22c] sm:$0xf0]  ;;  %v2986_v49 = vor.u32 %v3963_v39, %v2983_v41 }
  0x37   :  { %2054 = vmatpush.bf16.msrb.mxu3 %v2802_v47  ;;  %v2805_v47 = vld [vmem:[%s6307_s0 + $0x180] sm:$0xf]  ;;  %v2990_v50 = vor.u32 %v3986_v43, %v2989_v42  ;;  %v3919_v51 = vld [vmem:[%s6307_s0 + $0x184] sm:$0xf]  ;;  %v2807_v52 = vld [vmem:[%s6307_s0 + $0x230] sm:$0xf0] }
  0x38   :  { %v2813_v53 = vld [vmem:[%s6307_s0 + $0x188] sm:$0xf]  ;;  %v3942_v55 = vld [vmem:[%s6307_s0 + $0x234] sm:$0xf0]  ;;  %v3920_v56 = vld [vmem:[%s6307_s0 + $0x18c] sm:$0xf]  ;;  %v2806_v63 = vor.u32 %v3941_v48, %v2805_v47 }
  0x39   :  { %2016 = vmatpush.bf16.msrb.mxu0 %v2614_v54  ;;  %v2994_v54 = vor.u32 %v3964_v44, %v2991_v45  ;;  %v3897_v59 = vld [vmem:[%s6307_s0 + $0xcc] sm:$0xf0]  ;;  %v4163_v62 = vld [vmem:[%s6307_s0 + $0x91c] sm:$0x30]  ;;  %v2631_v1 = vld [vmem:[%s6307_s0 + $0xd0] sm:$0xf0]  ;;  %v2814_v5 = vor.u32 %v3942_v55, %v2813_v53 }
  0x3a   :  { %2029 = vmatpush.bf16.msrb.mxu1 %v2618_v57  ;;  %2042 = vmatpush.bf16.msrb.mxu2 %v2622_v58  ;;  %v2815_v57 = vld [vmem:[%s6307_s0 + $0x238] sm:$0xf0]  ;;  %v2629_v58 = vld [vmem:[%s6307_s0 + $0x20] sm:$0xf]  ;;  %v2637_v2 = vld [vmem:[%s6307_s0 + $0x28] sm:$0xf] }
  0x3b   :  { %2055 = vmatpush.bf16.msrb.mxu3 %v2626_v60  ;;  %v3701_v60 = vld [vmem:[%s6307_s0 + $0x870] sm:$0xf]  ;;  %v3703_v6 = vld [vmem:[%s6307_s0 + $0x920] sm:$0x30]  ;;  %v4164_v8 = vld [vmem:[%s6307_s0 + $0x924] sm:$0x30]  ;;  %v2818_v9 = vor.u32 %v3920_v56, %v2815_v57 }
  0x3c   :  { %3831 = vmatmul.msk.bf16.vlgmr.msrb.gmra.mxu0 %vm1820_vm1, %v4455_v61  ;;  %v3711_v13 = vld [vmem:[%s6307_s0 + $0x928] sm:$0x30]  ;;  %v2639_v15 = vld [vmem:[%s6307_s0 + $0xd8] sm:$0xf0]  ;;  %v4119_v25 = vld [vmem:[%s6307_s0 + $0x7bc] sm:$0xf0] }
  0x3d   :  { %2062 = vmatpush.bf16.msra.mxu0 %v1850_v0  ;;  %3833 = vmatmul.msk.bf16.vlgmr.msrb.gmra.mxu2 %vm1820_vm1, %v4455_v61  ;;  %v3875_v0 = vld [vmem:[%s6307_s0 + $0x24] sm:$0xf]  ;;  %v3876_v14 = vld [vmem:[%s6307_s0 + $0x2c] sm:$0xf]  ;;  %v4097_v26 = vld [vmem:[%s6307_s0 + $0x714] sm:$0xf] }
  0x3e   :  { %2075 = vmatpush.bf16.msra.mxu1 %v1853_v3  ;;  %2088 = vmatpush.bf16.msra.mxu2 %v1856_v4  ;;  %v4141_v3 = vld [vmem:[%s6307_s0 + $0x874] sm:$0xf]  ;;  %v2810_v4 = vor.u32 %v3919_v51, %v2807_v52  ;;  %v2634_v19 = vor.u32 %v3875_v0, %v2631_v1  ;;  %v3527_v27 = vld [vmem:[%s6307_s0 + $0x7c0] sm:$0xf0]  ;;  %v3533_v30 = vld [vmem:[%s6307_s0 + $0x718] sm:$0xf] }
  0x3f   :  { %2101 = vmatpush.bf16.msra.mxu3 %v1859_v7  ;;  %3832 = vmatmul.msk.bf16.vlgmr.msrb.gmra.mxu1 %vm1820_vm1, %v4455_v61  ;;  %v3709_v7 = vld [vmem:[%s6307_s0 + $0x878] sm:$0xf]  ;;  %v3706_v17 = vor.u32 %v4141_v3, %v3703_v6  ;;  %v4120_v31 = vld [vmem:[%s6307_s0 + $0x7c4] sm:$0xf0]  ;;  %v4098_v33 = vld [vmem:[%s6307_s0 + $0x71c] sm:$0xf] }
  0x40   :  { %3834 = vmatmul.msk.bf16.vlgmr.msrb.gmra.mxu3 %vm1820_vm1, %v4455_v61  ;;  %v3710_v18 = vor.u32 %v4164_v8, %v3709_v7  ;;  %v3534_v37 = vor.u32 %v4120_v31, %v3533_v30  ;;  %v3349_v38 = vld [vmem:[%s6307_s0 + $0x5b0] sm:$0xf]  ;;  %v4075_v39 = vld [vmem:[%s6307_s0 + $0x65c] sm:$0xf0]  ;;  %v3351_v42 = vld [vmem:[%s6307_s0 + $0x660] sm:$0xf0] }
  0x41   :  { %2063 = vmatpush.bf16.msra.mxu0 %v3510_v10  ;;  %v3898_v10 = vld [vmem:[%s6307_s0 + $0xd4] sm:$0xf0]  ;;  %v4076_v44 = vld [vmem:[%s6307_s0 + $0x664] sm:$0xf0]  ;;  %v4054_v45 = vld [vmem:[%s6307_s0 + $0x5bc] sm:$0xf]  ;;  %v3350_v47 = vor.u32 %v4075_v39, %v3349_v38 }
  0x42   :  { %2076 = vmatpush.bf16.msra.mxu1 %v3514_v11  ;;  %2089 = vmatpush.bf16.msra.mxu2 %v3518_v12  ;;  %v3702_v11 = vor.u32 %v4163_v62, %v3701_v60  ;;  %v4142_v12 = vld [vmem:[%s6307_s0 + $0x87c] sm:$0xf]  ;;  %v2638_v20 = vor.u32 %v3898_v10, %v2637_v2  ;;  %v1868_v29 = vsel %vm1824_vm0, %v3710_v18, 0  ;;  %v3357_v43 = vld [vmem:[%s6307_s0 + $0x5b8] sm:$0xf] }
  0x43   :  { %2102 = vmatpush.bf16.msra.mxu3 %v3522_v16  ;;  %v2630_v16 = vor.u32 %v3897_v59, %v2629_v58  ;;  %v3714_v21 = vor.u32 %v4142_v12, %v3711_v13  ;;  %v4031_v51 = vld [vmem:[%s6307_s0 + $0x4fc] sm:$0xf0]  ;;  %v4009_v52 = vld [vmem:[%s6307_s0 + $0x454] sm:$0xf]  ;;  %v3181_v55 = vld [vmem:[%s6307_s0 + $0x458] sm:$0xf] }
  0x44   :  { %v4032_v56 = vld [vmem:[%s6307_s0 + $0x504] sm:$0xf0]  ;;  %v4010_v57 = vld [vmem:[%s6307_s0 + $0x45c] sm:$0xf]  ;;  %v3183_v58 = vld [vmem:[%s6307_s0 + $0x508] sm:$0xf0] }
  0x45   :  { %2064 = vmatpush.bf16.msra.mxu0 %v3334_v22  ;;  %v2642_v22 = vor.u32 %v3876_v14, %v2639_v15  ;;  %v1871_v32 = vsel %vm1824_vm0, %v3714_v21, 0  ;;  %v3182_v62 = vor.u32 %v4032_v56, %v3181_v55  ;;  %v3987_v0 = vld [vmem:[%s6307_s0 + $0x39c] sm:$0xf0]  ;;  %v3965_v1 = vld [vmem:[%s6307_s0 + $0x2f4] sm:$0xf]  ;;  %v3186_v2 = vor.u32 %v4010_v57, %v3183_v58 }
  0x46   :  { %2077 = vmatpush.bf16.msra.mxu1 %v3338_v23  ;;  %2090 = vmatpush.bf16.msra.mxu2 %v3342_v24  ;;  %v1862_v23 = vsel %vm1824_vm0, %v3702_v11, 0  ;;  %v3525_v24 = vld [vmem:[%s6307_s0 + $0x710] sm:$0xf]  ;;  %v2999_v3 = vld [vmem:[%s6307_s0 + $0x3a0] sm:$0xf0] }
  0x47   :  { %2103 = vmatpush.bf16.msra.mxu3 %v3346_v28  ;;  %v1865_v28 = vsel %vm1824_vm0, %v3706_v17, 0  ;;  %v3966_v6 = vld [vmem:[%s6307_s0 + $0x2fc] sm:$0xf]  ;;  %v3007_v7 = vld [vmem:[%s6307_s0 + $0x3a8] sm:$0xf0]  ;;  %v3002_v11 = vor.u32 %v3965_v1, %v2999_v3 }
  0x48   :  { %v3943_v10 = vld [vmem:[%s6307_s0 + $0x23c] sm:$0xf0]  ;;  %v3921_v13 = vld [vmem:[%s6307_s0 + $0x194] sm:$0xf]  ;;  %v2823_v14 = vld [vmem:[%s6307_s0 + $0x240] sm:$0xf0] }
  0x49   :  { %2065 = vmatpush.bf16.msra.mxu0 %v3158_v34  ;;  %v3535_v34 = vld [vmem:[%s6307_s0 + $0x7c8] sm:$0xf0]  ;;  %v2829_v15 = vld [vmem:[%s6307_s0 + $0x198] sm:$0xf]  ;;  %v3944_v17 = vld [vmem:[%s6307_s0 + $0x244] sm:$0xf0] }
  0x4a   :  { %2078 = vmatpush.bf16.msra.mxu1 %v3162_v35  ;;  %2091 = vmatpush.bf16.msra.mxu2 %v3166_v36  ;;  %v3526_v35 = vor.u32 %v4119_v25, %v3525_v24  ;;  %v3530_v36 = vor.u32 %v4097_v26, %v3527_v27  ;;  %v3538_v41 = vor.u32 %v4098_v33, %v3535_v34  ;;  %v3922_v18 = vld [vmem:[%s6307_s0 + $0x19c] sm:$0xf]  ;;  %v3899_v21 = vld [vmem:[%s6307_s0 + $0xdc] sm:$0xf0]  ;;  %v4143_v24 = vld [vmem:[%s6307_s0 + $0x884] sm:$0xf] }
  0x4b   :  { %2104 = vmatpush.bf16.msra.mxu3 %v3170_v40  ;;  %v4053_v40 = vld [vmem:[%s6307_s0 + $0x5b4] sm:$0xf]  ;;  %v3725_v27 = vld [vmem:[%s6307_s0 + $0x888] sm:$0xf]  ;;  %v2830_v30 = vor.u32 %v3944_v17, %v2829_v15  ;;  %v2653_v33 = vld [vmem:[%s6307_s0 + $0x38] sm:$0xf] }
  0x4c   :  { %v3354_v48 = vor.u32 %v4053_v40, %v3351_v42  ;;  %v3719_v26 = vld [vmem:[%s6307_s0 + $0x930] sm:$0x30]  ;;  %v3727_v38 = vld [vmem:[%s6307_s0 + $0x938] sm:$0x30]  ;;  %v2655_v40 = vld [vmem:[%s6307_s0 + $0xe8] sm:$0xf0] }
  0x4d   :  { %2066 = vmatpush.bf16.msra.mxu0 %v2982_v46  ;;  %v3359_v46 = vld [vmem:[%s6307_s0 + $0x668] sm:$0xf0]  ;;  %v3877_v31 = vld [vmem:[%s6307_s0 + $0x34] sm:$0xf]  ;;  %v3878_v39 = vld [vmem:[%s6307_s0 + $0x3c] sm:$0xf] }
  0x4e   :  { %2079 = vmatpush.bf16.msra.mxu1 %v2986_v49  ;;  %2092 = vmatpush.bf16.msra.mxu2 %v2990_v50  ;;  %v3358_v49 = vor.u32 %v4076_v44, %v3357_v43  ;;  %v3173_v50 = vld [vmem:[%s6307_s0 + $0x450] sm:$0xf]  ;;  %v3362_v53 = vor.u32 %v4054_v45, %v3359_v46  ;;  %v3549_v55 = vld [vmem:[%s6307_s0 + $0x728] sm:$0xf]  ;;  %v4122_v56 = vld [vmem:[%s6307_s0 + $0x7d4] sm:$0xf0] }
  0x4f   :  { %2105 = vmatpush.bf16.msra.mxu3 %v2994_v54  ;;  %v3175_v54 = vld [vmem:[%s6307_s0 + $0x500] sm:$0xf0]  ;;  %v3174_v59 = vor.u32 %v4031_v51, %v3173_v50  ;;  %v4100_v58 = vld [vmem:[%s6307_s0 + $0x72c] sm:$0xf]  ;;  %v4077_v1 = vld [vmem:[%s6307_s0 + $0x66c] sm:$0xf0] }
  0x50   :  { %v3178_v60 = vor.u32 %v4009_v52, %v3175_v54  ;;  %v4121_v52 = vld [vmem:[%s6307_s0 + $0x7cc] sm:$0xf0]  ;;  %v3543_v54 = vld [vmem:[%s6307_s0 + $0x7d0] sm:$0xf0]  ;;  %v3197_v17 = vld [vmem:[%s6307_s0 + $0x468] sm:$0xf] }
  0x51   :  { %2067 = vmatpush.bf16.msra.mxu0 %v2806_v63  ;;  %v2997_v63 = vld [vmem:[%s6307_s0 + $0x2f0] sm:$0xf] }
  0x52   :  { %2080 = vmatpush.bf16.msra.mxu1 %v2810_v4  ;;  %2093 = vmatpush.bf16.msra.mxu2 %v2814_v5  ;;  %v3005_v4 = vld [vmem:[%s6307_s0 + $0x2f8] sm:$0xf]  ;;  %v3988_v5 = vld [vmem:[%s6307_s0 + $0x3a4] sm:$0xf0]  ;;  %v2998_v8 = vor.u32 %v3987_v0, %v2997_v63  ;;  %v3550_v63 = vor.u32 %v4122_v56, %v3549_v55  ;;  %v3365_v0 = vld [vmem:[%s6307_s0 + $0x5c0] sm:$0xf] }
  0x53   :  { %2106 = vmatpush.bf16.msra.mxu3 %v2818_v9  ;;  %v2821_v9 = vld [vmem:[%s6307_s0 + $0x190] sm:$0xf]  ;;  %v3006_v12 = vor.u32 %v3988_v5, %v3005_v4  ;;  %v3367_v4 = vld [vmem:[%s6307_s0 + $0x670] sm:$0xf0]  ;;  %v3373_v5 = vld [vmem:[%s6307_s0 + $0x5c8] sm:$0xf] }
  0x54   :  { %v2822_v25 = vor.u32 %v3943_v10, %v2821_v9  ;;  %v3366_v9 = vor.u32 %v4077_v1, %v3365_v0  ;;  %v3879_v56 = vld [vmem:[%s6307_s0 + $0x44] sm:$0xf]  ;;  %v4146_v1 = vld [vmem:[%s6307_s0 + $0x89c] sm:$0xf] }
  0x55   :  { %2068 = vmatpush.bf16.msra.mxu0 %v2630_v16  ;;  %v3010_v16 = vor.u32 %v3966_v6, %v3007_v7  ;;  %v4078_v6 = vld [vmem:[%s6307_s0 + $0x674] sm:$0xf0]  ;;  %v4056_v7 = vld [vmem:[%s6307_s0 + $0x5cc] sm:$0xf] }
  0x56   :  { %2081 = vmatpush.bf16.msra.mxu1 %v2634_v19  ;;  %2094 = vmatpush.bf16.msra.mxu2 %v2638_v20  ;;  %v2831_v19 = vld [vmem:[%s6307_s0 + $0x248] sm:$0xf0]  ;;  %v2645_v20 = vld [vmem:[%s6307_s0 + $0x30] sm:$0xf] }
  0x57   :  { %2107 = vmatpush.bf16.msra.mxu3 %v2642_v22  ;;  %v3717_v22 = vld [vmem:[%s6307_s0 + $0x880] sm:$0xf]  ;;  %v2834_v34 = vor.u32 %v3922_v18, %v2831_v19  ;;  %v2646_v43 = vor.u32 %v3899_v21, %v2645_v20  ;;  %v4034_v18 = vld [vmem:[%s6307_s0 + $0x514] sm:$0xf0]  ;;  %v4012_v19 = vld [vmem:[%s6307_s0 + $0x46c] sm:$0xf] }
  0x58   :  { %3835 = vmatmul.msk.bf16.vlgmr.msra.gmra.mxu0 %vm1820_vm1, %v4455_v61  ;;  %v3199_v20 = vld [vmem:[%s6307_s0 + $0x518] sm:$0xf0] }
  0x59   :  { %2114 = vmatpush.bf16.msrb.mxu0 %v1862_v23  ;;  %3836 = vmatmul.msk.bf16.vlgmr.msra.gmra.mxu1 %vm1820_vm1, %v4455_v61  ;;  %v4165_v23 = vld [vmem:[%s6307_s0 + $0x92c] sm:$0x30] }
  0x5a   :  { %2127 = vmatpush.bf16.msrb.mxu1 %v1865_v28  ;;  %2140 = vmatpush.bf16.msrb.mxu2 %v1868_v29  ;;  %v4166_v28 = vld [vmem:[%s6307_s0 + $0x934] sm:$0x30]  ;;  %v2826_v29 = vor.u32 %v3921_v13, %v2823_v14  ;;  %v4033_v13 = vld [vmem:[%s6307_s0 + $0x50c] sm:$0xf0]  ;;  %v4011_v14 = vld [vmem:[%s6307_s0 + $0x464] sm:$0xf] }
  0x5b   :  { %2153 = vmatpush.bf16.msrb.mxu3 %v1871_v32  ;;  %3837 = vmatmul.msk.bf16.vlgmr.msra.gmra.mxu2 %vm1820_vm1, %v4455_v61  ;;  %v2647_v32 = vld [vmem:[%s6307_s0 + $0xe0] sm:$0xf0]  ;;  %v3726_v42 = vor.u32 %v4166_v28, %v3725_v27  ;;  %v3015_v27 = vld [vmem:[%s6307_s0 + $0x3b0] sm:$0xf0]  ;;  %v3202_v28 = vor.u32 %v4012_v19, %v3199_v20  ;;  %v4102_v20 = vld [vmem:[%s6307_s0 + $0x73c] sm:$0xf] }
  0x5c   :  { %3838 = vmatmul.msk.bf16.vlgmr.msra.gmra.mxu3 %vm1820_vm1, %v4455_v61  ;;  %v2650_v44 = vor.u32 %v3877_v31, %v2647_v32  ;;  %v3968_v31 = vld [vmem:[%s6307_s0 + $0x30c] sm:$0xf]  ;;  %v3023_v32 = vld [vmem:[%s6307_s0 + $0x3b8] sm:$0xf0] }
  0x5d   :  { %2115 = vmatpush.bf16.msrb.mxu0 %v3526_v35  ;;  %v3900_v35 = vld [vmem:[%s6307_s0 + $0xe4] sm:$0xf0]  ;;  %v1880_v51 = vsel %vm1824_vm0, %v3726_v42, 0  ;;  %v3924_v42 = vld [vmem:[%s6307_s0 + $0x1ac] sm:$0xf] }
  0x5e   :  { %2128 = vmatpush.bf16.msrb.mxu1 %v3530_v36  ;;  %2141 = vmatpush.bf16.msrb.mxu2 %v3534_v37  ;;  %v3718_v36 = vor.u32 %v4165_v23, %v3717_v22  ;;  %v4144_v37 = vld [vmem:[%s6307_s0 + $0x88c] sm:$0xf]  ;;  %v2654_v45 = vor.u32 %v3900_v35, %v2653_v33  ;;  %v3013_v22 = vld [vmem:[%s6307_s0 + $0x300] sm:$0xf] }
  0x5f   :  { %2154 = vmatpush.bf16.msrb.mxu3 %v3538_v41  ;;  %v3722_v41 = vor.u32 %v4143_v24, %v3719_v26  ;;  %v3730_v46 = vor.u32 %v4144_v37, %v3727_v38  ;;  %v3198_v24 = vor.u32 %v4034_v18, %v3197_v17  ;;  %v3967_v26 = vld [vmem:[%s6307_s0 + $0x304] sm:$0xf]  ;;  %v2837_v33 = vld [vmem:[%s6307_s0 + $0x1a0] sm:$0xf]  ;;  %v2839_v37 = vld [vmem:[%s6307_s0 + $0x250] sm:$0xf0] }
  0x60   :  { %v2845_v38 = vld [vmem:[%s6307_s0 + $0x1a8] sm:$0xf]  ;;  %v3565_v17 = vld [vmem:[%s6307_s0 + $0x738] sm:$0xf] }
  0x61   :  { %2116 = vmatpush.bf16.msrb.mxu0 %v3350_v47  ;;  %v2658_v47 = vor.u32 %v3878_v39, %v2655_v40  ;;  %v1877_v50 = vsel %vm1824_vm0, %v3722_v41, 0  ;;  %v1883_v57 = vsel %vm1824_vm0, %v3730_v46, 0  ;;  %v3018_v39 = vor.u32 %v3967_v26, %v3015_v27  ;;  %v3946_v41 = vld [vmem:[%s6307_s0 + $0x254] sm:$0xf0]  ;;  %v4167_v46 = vld [vmem:[%s6307_s0 + $0x93c] sm:$0x30] }
  0x62   :  { %2129 = vmatpush.bf16.msrb.mxu1 %v3354_v48  ;;  %2142 = vmatpush.bf16.msrb.mxu2 %v3358_v49  ;;  %v1874_v48 = vsel %vm1824_vm0, %v3718_v36, 0  ;;  %v3541_v49 = vld [vmem:[%s6307_s0 + $0x720] sm:$0xf]  ;;  %v3923_v36 = vld [vmem:[%s6307_s0 + $0x1a4] sm:$0xf]  ;;  %v2846_v55 = vor.u32 %v3946_v41, %v2845_v38 }
  0x63   :  { %2155 = vmatpush.bf16.msrb.mxu3 %v3362_v53  ;;  %v4099_v53 = vld [vmem:[%s6307_s0 + $0x724] sm:$0xf]  ;;  %v4124_v18 = vld [vmem:[%s6307_s0 + $0x7e4] sm:$0xf0]  ;;  %v4079_v26 = vld [vmem:[%s6307_s0 + $0x67c] sm:$0xf0] }
  0x64   :  { %v4057_v27 = vld [vmem:[%s6307_s0 + $0x5d4] sm:$0xf]  ;;  %v4035_v38 = vld [vmem:[%s6307_s0 + $0x51c] sm:$0xf0]  ;;  %v3213_v41 = vld [vmem:[%s6307_s0 + $0x478] sm:$0xf] }
  0x65   :  { %2117 = vmatpush.bf16.msrb.mxu0 %v3174_v59  ;;  %v3551_v59 = vld [vmem:[%s6307_s0 + $0x7d8] sm:$0xf0] }
  0x66   :  { %2130 = vmatpush.bf16.msrb.mxu1 %v3178_v60  ;;  %2143 = vmatpush.bf16.msrb.mxu2 %v3182_v62  ;;  %v3542_v60 = vor.u32 %v4121_v52, %v3541_v49  ;;  %v3546_v62 = vor.u32 %v4099_v53, %v3543_v54  ;;  %v3554_v3 = vor.u32 %v4100_v58, %v3551_v59  ;;  %v3741_v49 = vld [vmem:[%s6307_s0 + $0x898] sm:$0xf]  ;;  %v2661_v52 = vld [vmem:[%s6307_s0 + $0x40] sm:$0xf]  ;;  %v3901_v53 = vld [vmem:[%s6307_s0 + $0xec] sm:$0xf0] }
  0x67   :  { %2156 = vmatpush.bf16.msrb.mxu3 %v3186_v2  ;;  %v4055_v2 = vld [vmem:[%s6307_s0 + $0x5c4] sm:$0xf]  ;;  %v2842_v54 = vor.u32 %v3923_v36, %v2839_v37  ;;  %v2669_v58 = vld [vmem:[%s6307_s0 + $0x48] sm:$0xf]  ;;  %v3205_v37 = vld [vmem:[%s6307_s0 + $0x470] sm:$0xf] }
  0x68   :  { %v3370_v10 = vor.u32 %v4055_v2, %v3367_v4  ;;  %v3743_v2 = vld [vmem:[%s6307_s0 + $0x948] sm:$0x30]  ;;  %v2671_v4 = vld [vmem:[%s6307_s0 + $0xf8] sm:$0xf0] }
  0x69   :  { %2118 = vmatpush.bf16.msrb.mxu0 %v2998_v8  ;;  %v3375_v8 = vld [vmem:[%s6307_s0 + $0x678] sm:$0xf0] }
  0x6a   :  { %2131 = vmatpush.bf16.msrb.mxu1 %v3002_v11  ;;  %2144 = vmatpush.bf16.msrb.mxu2 %v3006_v12  ;;  %v3374_v11 = vor.u32 %v4078_v6, %v3373_v5  ;;  %v3189_v12 = vld [vmem:[%s6307_s0 + $0x460] sm:$0xf]  ;;  %v3378_v15 = vor.u32 %v4056_v7, %v3375_v8  ;;  %v2662_v5 = vor.u32 %v3901_v53, %v2661_v52  ;;  %v3037_v53 = vld [vmem:[%s6307_s0 + $0x318] sm:$0xf] }
  0x6b   :  { %2157 = vmatpush.bf16.msrb.mxu3 %v3010_v16  ;;  %v3191_v16 = vld [vmem:[%s6307_s0 + $0x510] sm:$0xf0]  ;;  %v3190_v21 = vor.u32 %v4033_v13, %v3189_v12  ;;  %v3746_v8 = vor.u32 %v4146_v1, %v3743_v2  ;;  %v3557_v13 = vld [vmem:[%s6307_s0 + $0x730] sm:$0xf]  ;;  %v3948_v2 = vld [vmem:[%s6307_s0 + $0x264] sm:$0xf0] }
  0x6c   :  { %v3194_v23 = vor.u32 %v4011_v14, %v3191_v16  ;;  %v4123_v14 = vld [vmem:[%s6307_s0 + $0x7dc] sm:$0xf0]  ;;  %v3559_v16 = vld [vmem:[%s6307_s0 + $0x7e0] sm:$0xf0] }
  0x6d   :  { %2119 = vmatpush.bf16.msrb.mxu0 %v2822_v25  ;;  %v3989_v25 = vld [vmem:[%s6307_s0 + $0x3ac] sm:$0xf0]  ;;  %v1895_v19 = vsel %vm1824_vm0, %v3746_v8, 0  ;;  %v4147_v8 = vld [vmem:[%s6307_s0 + $0x8a4] sm:$0xf] }
  0x6e   :  { %2132 = vmatpush.bf16.msrb.mxu1 %v2826_v29  ;;  %2145 = vmatpush.bf16.msrb.mxu2 %v2830_v30  ;;  %v3021_v29 = vld [vmem:[%s6307_s0 + $0x308] sm:$0xf]  ;;  %v3990_v30 = vld [vmem:[%s6307_s0 + $0x3b4] sm:$0xf0]  ;;  %v3014_v35 = vor.u32 %v3989_v25, %v3013_v22  ;;  %v3558_v22 = vor.u32 %v4123_v14, %v3557_v13  ;;  %v3381_v25 = vld [vmem:[%s6307_s0 + $0x5d0] sm:$0xf] }
  0x6f   :  { %2158 = vmatpush.bf16.msrb.mxu3 %v2834_v34  ;;  %v3945_v34 = vld [vmem:[%s6307_s0 + $0x24c] sm:$0xf0]  ;;  %v3022_v40 = vor.u32 %v3990_v30, %v3021_v29  ;;  %v3383_v29 = vld [vmem:[%s6307_s0 + $0x680] sm:$0xf0]  ;;  %v3389_v30 = vld [vmem:[%s6307_s0 + $0x5d8] sm:$0xf] }
  0x70   :  { %v2677_v13 = vld [vmem:[%s6307_s0 + $0x50] sm:$0xf]  ;;  %v3903_v14 = vld [vmem:[%s6307_s0 + $0xfc] sm:$0xf0] }
  0x71   :  { %2120 = vmatpush.bf16.msrb.mxu0 %v2646_v43  ;;  %v2847_v43 = vld [vmem:[%s6307_s0 + $0x258] sm:$0xf0] }
  0x72   :  { %2133 = vmatpush.bf16.msrb.mxu1 %v2650_v44  ;;  %2146 = vmatpush.bf16.msrb.mxu2 %v2654_v45  ;;  %v3026_v44 = vor.u32 %v3968_v31, %v3023_v32  ;;  %v3733_v45 = vld [vmem:[%s6307_s0 + $0x890] sm:$0xf]  ;;  %v2850_v59 = vor.u32 %v3924_v42, %v2847_v43  ;;  %v4080_v31 = vld [vmem:[%s6307_s0 + $0x684] sm:$0xf0]  ;;  %v4058_v32 = vld [vmem:[%s6307_s0 + $0x5dc] sm:$0xf] }
  0x73   :  { %2159 = vmatpush.bf16.msrb.mxu3 %v2658_v47  ;;  %v4145_v47 = vld [vmem:[%s6307_s0 + $0x894] sm:$0xf]  ;;  %v3390_v36 = vor.u32 %v4080_v31, %v3389_v30  ;;  %v4036_v42 = vld [vmem:[%s6307_s0 + $0x524] sm:$0xf0]  ;;  %v4014_v43 = vld [vmem:[%s6307_s0 + $0x47c] sm:$0xf] }
  0x74   :  { %3839 = vmatmul.msk.bf16.vlgmr.msrb.gmra.mxu0 %vm1820_vm1, %v4455_v61 }
  0x75   :  { %2166 = vmatpush.bf16.msra.mxu0 %v1874_v48  ;;  %3840 = vmatmul.msk.bf16.vlgmr.msrb.gmra.mxu1 %vm1820_vm1, %v4455_v61  ;;  %v3735_v48 = vld [vmem:[%s6307_s0 + $0x940] sm:$0x30] }
  0x76   :  { %2179 = vmatpush.bf16.msra.mxu1 %v1877_v50  ;;  %2192 = vmatpush.bf16.msra.mxu2 %v1880_v51  ;;  %v4168_v50 = vld [vmem:[%s6307_s0 + $0x944] sm:$0x30]  ;;  %v2838_v51 = vor.u32 %v3945_v34, %v2837_v33  ;;  %v3391_v33 = vld [vmem:[%s6307_s0 + $0x688] sm:$0xf0]  ;;  %v3382_v34 = vor.u32 %v4079_v26, %v3381_v25  ;;  %v3759_v26 = vld [vmem:[%s6307_s0 + $0x958] sm:$0x30] }
  0x77   :  { %2205 = vmatpush.bf16.msra.mxu3 %v1883_v57  ;;  %3841 = vmatmul.msk.bf16.vlgmr.msrb.gmra.mxu2 %vm1820_vm1, %v4455_v61  ;;  %v2663_v57 = vld [vmem:[%s6307_s0 + $0xf0] sm:$0xf0]  ;;  %v3742_v0 = vor.u32 %v4168_v50, %v3741_v49  ;;  %v3991_v49 = vld [vmem:[%s6307_s0 + $0x3bc] sm:$0xf0]  ;;  %v4148_v25 = vld [vmem:[%s6307_s0 + $0x8ac] sm:$0xf] }
  0x78   :  { %3842 = vmatmul.msk.bf16.vlgmr.msrb.gmra.mxu3 %vm1820_vm1, %v4455_v61  ;;  %v2666_v6 = vor.u32 %v3879_v56, %v2663_v57  ;;  %v3969_v50 = vld [vmem:[%s6307_s0 + $0x314] sm:$0xf]  ;;  %v3039_v56 = vld [vmem:[%s6307_s0 + $0x3c8] sm:$0xf0]  ;;  %v2853_v57 = vld [vmem:[%s6307_s0 + $0x1b0] sm:$0xf] }
  0x79   :  { %2167 = vmatpush.bf16.msra.mxu0 %v3542_v60  ;;  %v3902_v60 = vld [vmem:[%s6307_s0 + $0xf4] sm:$0xf0]  ;;  %v1892_v12 = vsel %vm1824_vm0, %v3742_v0, 0 }
  0x7a   :  { %2180 = vmatpush.bf16.msra.mxu1 %v3546_v62  ;;  %2193 = vmatpush.bf16.msra.mxu2 %v3550_v63  ;;  %v3734_v62 = vor.u32 %v4167_v46, %v3733_v45  ;;  %v3738_v63 = vor.u32 %v4145_v47, %v3735_v48  ;;  %v2670_v7 = vor.u32 %v3902_v60, %v2669_v58  ;;  %v3029_v46 = vld [vmem:[%s6307_s0 + $0x310] sm:$0xf]  ;;  %v3947_v58 = vld [vmem:[%s6307_s0 + $0x25c] sm:$0xf0]  ;;  %v3925_v60 = vld [vmem:[%s6307_s0 + $0x1b4] sm:$0xf] }
  0x7b   :  { %2206 = vmatpush.bf16.msra.mxu3 %v3554_v3  ;;  %v3880_v3 = vld [vmem:[%s6307_s0 + $0x4c] sm:$0xf]  ;;  %v3206_v45 = vor.u32 %v4035_v38, %v3205_v37  ;;  %v3214_v48 = vor.u32 %v4036_v42, %v3213_v41  ;;  %v3573_v37 = vld [vmem:[%s6307_s0 + $0x740] sm:$0xf]  ;;  %v4125_v38 = vld [vmem:[%s6307_s0 + $0x7ec] sm:$0xf0] }
  0x7c   :  { %v4126_v41 = vld [vmem:[%s6307_s0 + $0x7f4] sm:$0xf0] }
  0x7d   :  { %2168 = vmatpush.bf16.msra.mxu0 %v3366_v9  ;;  %v2674_v9 = vor.u32 %v3880_v3, %v2671_v4  ;;  %v3926_v3 = vld [vmem:[%s6307_s0 + $0x1bc] sm:$0xf]  ;;  %v2863_v4 = vld [vmem:[%s6307_s0 + $0x268] sm:$0xf0] }
  0x7e   :  { %2181 = vmatpush.bf16.msra.mxu1 %v3370_v10  ;;  %2194 = vmatpush.bf16.msra.mxu2 %v3374_v11  ;;  %v1886_v10 = vsel %vm1824_vm0, %v3734_v62, 0  ;;  %v1889_v11 = vsel %vm1824_vm0, %v3738_v63, 0  ;;  %v2855_v62 = vld [vmem:[%s6307_s0 + $0x260] sm:$0xf0]  ;;  %v2861_v63 = vld [vmem:[%s6307_s0 + $0x1b8] sm:$0xf] }
  0x7f   :  { %2207 = vmatpush.bf16.msra.mxu3 %v3378_v15  ;;  %v4101_v15 = vld [vmem:[%s6307_s0 + $0x734] sm:$0xf] }
  0x81   :  { %2169 = vmatpush.bf16.msra.mxu0 %v3190_v21  ;;  %v3567_v21 = vld [vmem:[%s6307_s0 + $0x7e8] sm:$0xf0] }
  0x82   :  { %2182 = vmatpush.bf16.msra.mxu1 %v3194_v23  ;;  %2195 = vmatpush.bf16.msra.mxu2 %v3198_v24  ;;  %v3562_v23 = vor.u32 %v4101_v15, %v3559_v16  ;;  %v3566_v24 = vor.u32 %v4124_v18, %v3565_v17  ;;  %v2858_v15 = vor.u32 %v3925_v60, %v2855_v62  ;;  %v3881_v17 = vld [vmem:[%s6307_s0 + $0x54] sm:$0xf]  ;;  %v2679_v18 = vld [vmem:[%s6307_s0 + $0x100] sm:$0xf0] }
  0x83   :  { %2208 = vmatpush.bf16.msra.mxu3 %v3202_v28  ;;  %v3570_v28 = vor.u32 %v4102_v20, %v3567_v21  ;;  %v2862_v16 = vor.u32 %v3948_v2, %v2861_v63  ;;  %v2866_v20 = vor.u32 %v3926_v3, %v2863_v4  ;;  %v3904_v21 = vld [vmem:[%s6307_s0 + $0x104] sm:$0xf0]  ;;  %v2682_v30 = vor.u32 %v3881_v17, %v2679_v18  ;;  %v4015_v2 = vld [vmem:[%s6307_s0 + $0x484] sm:$0xf]  ;;  %v3223_v4 = vld [vmem:[%s6307_s0 + $0x530] sm:$0xf0] }
  0x84   :  { %v3047_v18 = vld [vmem:[%s6307_s0 + $0x3d0] sm:$0xf0] }
  0x85   :  { %2170 = vmatpush.bf16.msra.mxu0 %v3014_v35  ;;  %v3386_v35 = vor.u32 %v4057_v27, %v3383_v29  ;;  %v3882_v27 = vld [vmem:[%s6307_s0 + $0x5c] sm:$0xf]  ;;  %v2678_v29 = vor.u32 %v3903_v14, %v2677_v13  ;;  %v3045_v14 = vld [vmem:[%s6307_s0 + $0x320] sm:$0xf] }
  0x86   :  { %2183 = vmatpush.bf16.msra.mxu1 %v3018_v39  ;;  %2196 = vmatpush.bf16.msra.mxu2 %v3022_v40  ;;  %v4013_v39 = vld [vmem:[%s6307_s0 + $0x474] sm:$0xf]  ;;  %v3207_v40 = vld [vmem:[%s6307_s0 + $0x520] sm:$0xf0] }
  0x87   :  { %2209 = vmatpush.bf16.msra.mxu3 %v3026_v44  ;;  %v3215_v44 = vld [vmem:[%s6307_s0 + $0x528] sm:$0xf0]  ;;  %v3210_v47 = vor.u32 %v4013_v39, %v3207_v40  ;;  %v4103_v39 = vld [vmem:[%s6307_s0 + $0x744] sm:$0xf]  ;;  %v3581_v40 = vld [vmem:[%s6307_s0 + $0x748] sm:$0xf] }
  0x88   :  { %v3218_v52 = vor.u32 %v4014_v43, %v3215_v44  ;;  %v4104_v43 = vld [vmem:[%s6307_s0 + $0x74c] sm:$0xf]  ;;  %v3583_v44 = vld [vmem:[%s6307_s0 + $0x7f8] sm:$0xf0] }
  0x89   :  { %2171 = vmatpush.bf16.msra.mxu0 %v2838_v51  ;;  %v3031_v51 = vld [vmem:[%s6307_s0 + $0x3c0] sm:$0xf0] }
  0x8a   :  { %2184 = vmatpush.bf16.msra.mxu1 %v2842_v54  ;;  %2197 = vmatpush.bf16.msra.mxu2 %v2846_v55  ;;  %v3992_v54 = vld [vmem:[%s6307_s0 + $0x3c4] sm:$0xf0]  ;;  %v3970_v55 = vld [vmem:[%s6307_s0 + $0x31c] sm:$0xf]  ;;  %v3034_v0 = vor.u32 %v3969_v50, %v3031_v51  ;;  %v4059_v50 = vld [vmem:[%s6307_s0 + $0x5e4] sm:$0xf] }
  0x8b   :  { %2210 = vmatpush.bf16.msra.mxu3 %v2850_v59  ;;  %v3030_v59 = vor.u32 %v3991_v49, %v3029_v46  ;;  %v3038_v1 = vor.u32 %v3992_v54, %v3037_v53  ;;  %v4081_v49 = vld [vmem:[%s6307_s0 + $0x68c] sm:$0xf0]  ;;  %v5345_v51 = vld [vmem:[%s6308_s1] sm:$0x7]  ;;  %v3399_v53 = vld [vmem:[%s6307_s0 + $0x690] sm:$0xf0] }
  0x8c   :  { %v3405_v54 = vld [vmem:[%s6307_s0 + $0x5e8] sm:$0xf]  ;;  %v3402_v62 = vor.u32 %v4059_v50, %v3399_v53  ;;  %v2695_v50 = vld [vmem:[%s6307_s0 + $0x110] sm:$0xf0] }
  0x8d   :  { %2172 = vmatpush.bf16.msra.mxu0 %v2662_v5  ;;  %v3042_v5 = vor.u32 %v3970_v55, %v3039_v56  ;;  %v4082_v55 = vld [vmem:[%s6307_s0 + $0x694] sm:$0xf0] }
  0x8e   :  { %2185 = vmatpush.bf16.msra.mxu1 %v2666_v6  ;;  %2198 = vmatpush.bf16.msra.mxu2 %v2670_v7  ;;  %v3749_v6 = vld [vmem:[%s6307_s0 + $0x8a0] sm:$0xf]  ;;  %v4169_v7 = vld [vmem:[%s6307_s0 + $0x94c] sm:$0x30]  ;;  %v3406_v63 = vor.u32 %v4082_v55, %v3405_v54  ;;  %v3906_v54 = vld [vmem:[%s6307_s0 + $0x114] sm:$0xf0] }
  0x8f   :  { %2211 = vmatpush.bf16.msra.mxu3 %v2674_v9  ;;  %v3751_v9 = vld [vmem:[%s6307_s0 + $0x950] sm:$0x30] }
  0x90   :  { %3843 = vmatmul.msk.bf16.vlgmr.msra.gmra.mxu0 %vm1820_vm1, %v4455_v61 }
  0x91   :  { %2218 = vmatpush.bf16.msrb.mxu0 %v1886_v10  ;;  %3844 = vmatmul.msk.bf16.vlgmr.msra.gmra.mxu1 %vm1820_vm1, %v4455_v61  ;;  %v3757_v10 = vld [vmem:[%s6307_s0 + $0x8a8] sm:$0xf] }
  0x92   :  { %2231 = vmatpush.bf16.msrb.mxu1 %v1889_v11  ;;  %2244 = vmatpush.bf16.msrb.mxu2 %v1892_v12  ;;  %v4170_v11 = vld [vmem:[%s6307_s0 + $0x954] sm:$0x30]  ;;  %v2854_v12 = vor.u32 %v3947_v58, %v2853_v57  ;;  %v4060_v57 = vld [vmem:[%s6307_s0 + $0x5ec] sm:$0xf]  ;;  %v3407_v58 = vld [vmem:[%s6307_s0 + $0x698] sm:$0xf0] }
  0x93   :  { %2257 = vmatpush.bf16.msrb.mxu3 %v1895_v19  ;;  %3845 = vmatmul.msk.bf16.vlgmr.msra.gmra.mxu2 %vm1820_vm1, %v4455_v61  ;;  %v2685_v19 = vld [vmem:[%s6307_s0 + $0x58] sm:$0xf]  ;;  %v3410_v3 = vor.u32 %v4060_v57, %v3407_v58  ;;  %v4150_v57 = vld [vmem:[%s6307_s0 + $0x8bc] sm:$0xf]  ;;  %v3775_v58 = vld [vmem:[%s6307_s0 + $0x968] sm:$0x30] }
  0x94   :  { %3846 = vmatmul.msk.bf16.vlgmr.msra.gmra.mxu3 %vm1820_vm1, %v4455_v61  ;;  %v3394_v61 = vor.u32 %v4058_v32, %v3391_v33  ;;  %v2686_v31 = vor.u32 %v3904_v21, %v2685_v19  ;;  %v3762_v32 = vor.u32 %v4148_v25, %v3759_v26  ;;  %v3053_v19 = vld [vmem:[%s6307_s0 + $0x328] sm:$0xf]  ;;  %v2869_v26 = vld [vmem:[%s6307_s0 + $0x1c0] sm:$0xf] }
  0x95   :  { %2219 = vmatpush.bf16.msrb.mxu0 %v3558_v22  ;;  %v3750_v22 = vor.u32 %v4169_v7, %v3749_v6  ;;  %v4038_v6 = vld [vmem:[%s6307_s0 + $0x534] sm:$0xf0]  ;;  %v4016_v7 = vld [vmem:[%s6307_s0 + $0x48c] sm:$0xf] }
  0x96   :  { %2232 = vmatpush.bf16.msrb.mxu1 %v3562_v23  ;;  %2245 = vmatpush.bf16.msrb.mxu2 %v3566_v24  ;;  %v3754_v23 = vor.u32 %v4147_v8, %v3751_v9  ;;  %v3758_v24 = vor.u32 %v4170_v11, %v3757_v10  ;;  %v1907_v42 = vsel %vm1824_vm0, %v3762_v32, 0  ;;  %v3231_v8 = vld [vmem:[%s6307_s0 + $0x538] sm:$0xf0]  ;;  %v2877_v32 = vld [vmem:[%s6307_s0 + $0x1c8] sm:$0xf] }
  0x97   :  { %2258 = vmatpush.bf16.msrb.mxu3 %v3570_v28  ;;  %v2687_v28 = vld [vmem:[%s6307_s0 + $0x108] sm:$0xf0]  ;;  %v3234_v17 = vor.u32 %v4016_v7, %v3231_v8  ;;  %v3589_v7 = vld [vmem:[%s6307_s0 + $0x750] sm:$0xf] }
  0x98   :  { %v2690_v33 = vor.u32 %v3882_v27, %v2687_v28  ;;  %v3949_v27 = vld [vmem:[%s6307_s0 + $0x26c] sm:$0xf0] }
  0x99   :  { %2220 = vmatpush.bf16.msrb.mxu0 %v3382_v34  ;;  %v1898_v34 = vsel %vm1824_vm0, %v3750_v22, 0  ;;  %v3972_v22 = vld [vmem:[%s6307_s0 + $0x32c] sm:$0xf] }
  0x9a   :  { %2233 = vmatpush.bf16.msrb.mxu1 %v3386_v35  ;;  %2246 = vmatpush.bf16.msrb.mxu2 %v3390_v36  ;;  %v1901_v35 = vsel %vm1824_vm0, %v3754_v23, 0  ;;  %v1904_v36 = vsel %vm1824_vm0, %v3758_v24, 0  ;;  %v3055_v23 = vld [vmem:[%s6307_s0 + $0x3d8] sm:$0xf0] }
  0x9b   :  { %2259 = vmatpush.bf16.msrb.mxu3 %v3394_v61  ;;  %v3575_v61 = vld [vmem:[%s6307_s0 + $0x7f0] sm:$0xf0] }
  0x9c   :  { %v3578_v46 = vor.u32 %v4103_v39, %v3575_v61  ;;  %v3765_v39 = vld [vmem:[%s6307_s0 + $0x8b0] sm:$0xf]  ;;  %v4171_v61 = vld [vmem:[%s6307_s0 + $0x95c] sm:$0x30] }
  0x9d   :  { %2221 = vmatpush.bf16.msrb.mxu0 %v3206_v45  ;;  %v3574_v45 = vor.u32 %v4125_v38, %v3573_v37  ;;  %v5358_v56 = vpop.f32.mrf.mxu0  ;;  %v2693_v37 = vld [vmem:[%s6307_s0 + $0x60] sm:$0xf]  ;;  %v3905_v38 = vld [vmem:[%s6307_s0 + $0x10c] sm:$0xf0]  ;;  %v3766_v55 = vor.u32 %v4171_v61, %v3765_v39 }
  0x9e   :  { %2234 = vmatpush.bf16.msrb.mxu1 %v3210_v47  ;;  %2247 = vmatpush.bf16.msrb.mxu2 %v3214_v48  ;;  %v3582_v47 = vor.u32 %v4126_v41, %v3581_v40  ;;  %v3397_v48 = vld [vmem:[%s6307_s0 + $0x5e0] sm:$0xf]  ;;  %v4149_v40 = vld [vmem:[%s6307_s0 + $0x8b4] sm:$0xf]  ;;  %v3237_v39 = vld [vmem:[%s6307_s0 + $0x490] sm:$0xf] }
  0x9f   :  { %2260 = vmatpush.bf16.msrb.mxu3 %v3218_v52  ;;  %v3586_v52 = vor.u32 %v4104_v43, %v3583_v44  ;;  %v3398_v60 = vor.u32 %v4081_v49, %v3397_v48  ;;  %v3767_v43 = vld [vmem:[%s6307_s0 + $0x960] sm:$0x30]  ;;  %v3773_v44 = vld [vmem:[%s6307_s0 + $0x8b8] sm:$0xf]  ;;  %v4039_v61 = vld [vmem:[%s6307_s0 + $0x53c] sm:$0xf0] }
  0xa0   :  { %v3883_v49 = vld [vmem:[%s6307_s0 + $0x64] sm:$0xf] }
  0xa1   :  { %2222 = vmatpush.bf16.msrb.mxu0 %v3030_v59  ;;  %v5370_v59 = vpop.f32.mrf.mxu1 }
  0xa2   :  { %2235 = vmatpush.bf16.msrb.mxu1 %v3034_v0  ;;  %2248 = vmatpush.bf16.msrb.mxu2 %v3038_v1  ;;  %v3221_v0 = vld [vmem:[%s6307_s0 + $0x480] sm:$0xf]  ;;  %v4037_v1 = vld [vmem:[%s6307_s0 + $0x52c] sm:$0xf0] }
  0xa3   :  { %2261 = vmatpush.bf16.msrb.mxu3 %v3042_v5  ;;  %v3229_v5 = vld [vmem:[%s6307_s0 + $0x488] sm:$0xf]  ;;  %v3222_v10 = vor.u32 %v4037_v1, %v3221_v0  ;;  %v2694_v1 = vor.u32 %v3905_v38, %v2693_v37 }
  0xa4   :  { %v5398_v9 = vpop.f32.mrf.mxu2  ;;  %v3230_v13 = vor.u32 %v4038_v6, %v3229_v5  ;;  %v1910_v6 = vsel %vm1824_vm0, %v3766_v55, 0  ;;  %v3973_v55 = vld [vmem:[%s6307_s0 + $0x334] sm:$0xf] }
  0xa5   :  { %2223 = vmatpush.bf16.msrb.mxu0 %v2854_v12  ;;  %v3226_v12 = vor.u32 %v4015_v2, %v3223_v4  ;;  %v1968_v21 = vpop.f32.mrf.mxu0  ;;  %v2698_v2 = vor.u32 %v3883_v49, %v2695_v50  ;;  %v3778_v4 = vor.u32 %v4150_v57, %v3775_v58  ;;  %v3238_v49 = vor.u32 %v4039_v61, %v3237_v39  ;;  %v3063_v58 = vld [vmem:[%s6307_s0 + $0x3e0] sm:$0xf0]  ;;  %v3791_v39 = vld [vmem:[%s6307_s0 + $0x978] sm:$0x30] }
  0xa6   :  { %2236 = vmatpush.bf16.msrb.mxu1 %v2858_v15  ;;  %2249 = vmatpush.bf16.msrb.mxu2 %v2862_v16  ;;  %v3993_v15 = vld [vmem:[%s6307_s0 + $0x3cc] sm:$0xf0]  ;;  %v3971_v16 = vld [vmem:[%s6307_s0 + $0x324] sm:$0xf]  ;;  %v3886_v61 = vld [vmem:[%s6307_s0 + $0x7c] sm:$0xf] }
  0xa7   :  { %2262 = vmatpush.bf16.msrb.mxu3 %v2866_v20  ;;  %v5400_v11 = vpop.f32.mrf.mxu3  ;;  %v3994_v20 = vld [vmem:[%s6307_s0 + $0x3d4] sm:$0xf0]  ;;  %v3046_v25 = vor.u32 %v3993_v15, %v3045_v14  ;;  %v3050_v28 = vor.u32 %v3971_v16, %v3047_v18  ;;  %v3591_v14 = vld [vmem:[%s6307_s0 + $0x800] sm:$0xf0]  ;;  %v4128_v16 = vld [vmem:[%s6307_s0 + $0x804] sm:$0xf0] }
  0xa8   :  { %v3597_v15 = vld [vmem:[%s6307_s0 + $0x758] sm:$0xf]  ;;  %v1919_v18 = vsel %vm1824_vm0, %v3778_v4, 0  ;;  %v3951_v4 = vld [vmem:[%s6307_s0 + $0x27c] sm:$0xf0] }
  0xa9   :  { %2224 = vmatpush.bf16.msrb.mxu0 %v2678_v29  ;;  %v1981_v24 = vpop.f32.mrf.mxu1  ;;  %v3054_v29 = vor.u32 %v3994_v20, %v3053_v19  ;;  %v4106_v19 = vld [vmem:[%s6307_s0 + $0x75c] sm:$0xf]  ;;  %v3599_v20 = vld [vmem:[%s6307_s0 + $0x808] sm:$0xf0] }
  0xaa   :  { %2237 = vmatpush.bf16.msrb.mxu1 %v2682_v30  ;;  %2250 = vmatpush.bf16.msrb.mxu2 %v2686_v31  ;;  %v3927_v30 = vld [vmem:[%s6307_s0 + $0x1c4] sm:$0xf]  ;;  %v2871_v31 = vld [vmem:[%s6307_s0 + $0x270] sm:$0xf0]  ;;  %v3598_v24 = vor.u32 %v4128_v16, %v3597_v15  ;;  %v3930_v15 = vld [vmem:[%s6307_s0 + $0x1dc] sm:$0xf] }
  0xab   :  { %2263 = vmatpush.bf16.msrb.mxu3 %v2690_v33  ;;  %v3058_v33 = vor.u32 %v3972_v22, %v3055_v23  ;;  %v2895_v16 = vld [vmem:[%s6307_s0 + $0x288] sm:$0xf0] }
  0xac   :  { %3847 = vmatmul.msk.bf16.vlgmr.msrb.gmra.mxu0 %vm1820_vm1, %v5345_v51  ;;  %v1994_v41 = vpop.f32.mrf.mxu2 }
  0xad   :  { %2270 = vmatpush.bf16.msra.mxu0 %v1898_v34  ;;  %3848 = vmatmul.msk.bf16.vlgmr.msrb.gmra.mxu1 %vm1820_vm1, %v5345_v51  ;;  %v3950_v34 = vld [vmem:[%s6307_s0 + $0x274] sm:$0xf0] }
  0xae   :  { %2283 = vmatpush.bf16.msra.mxu1 %v1901_v35  ;;  %2296 = vmatpush.bf16.msra.mxu2 %v1904_v36  ;;  %v3928_v35 = vld [vmem:[%s6307_s0 + $0x1cc] sm:$0xf]  ;;  %v2879_v36 = vld [vmem:[%s6307_s0 + $0x278] sm:$0xf0]  ;;  %v2878_v48 = vor.u32 %v3950_v34, %v2877_v32 }
  0xaf   :  { %2309 = vmatpush.bf16.msra.mxu3 %v1907_v42  ;;  %3849 = vmatmul.msk.bf16.vlgmr.msrb.gmra.mxu2 %vm1820_vm1, %v5345_v51  ;;  %v2870_v42 = vor.u32 %v3949_v27, %v2869_v26  ;;  %v2882_v53 = vor.u32 %v3928_v35, %v2879_v36  ;;  %v4083_v26 = vld [vmem:[%s6307_s0 + $0x69c] sm:$0xf0]  ;;  %v4061_v27 = vld [vmem:[%s6307_s0 + $0x5f4] sm:$0xf]  ;;  %v4062_v32 = vld [vmem:[%s6307_s0 + $0x5fc] sm:$0xf] }
  0xb0   :  { %3850 = vmatmul.msk.bf16.vlgmr.msrb.gmra.mxu3 %vm1820_vm1, %v5345_v51 }
  0xb1   :  { %2271 = vmatpush.bf16.msra.mxu0 %v3574_v45  ;;  %v4172_v45 = vld [vmem:[%s6307_s0 + $0x964] sm:$0x30] }
  0xb2   :  { %2284 = vmatpush.bf16.msra.mxu1 %v3578_v46  ;;  %2297 = vmatpush.bf16.msra.mxu2 %v3582_v47  ;;  %v2007_v46 = vpop.f32.mrf.mxu3  ;;  %v2874_v47 = vor.u32 %v3927_v30, %v2871_v31  ;;  %v3774_v0 = vor.u32 %v4172_v45, %v3773_v44  ;;  %v3421_v30 = vld [vmem:[%s6307_s0 + $0x5f8] sm:$0xf]  ;;  %v4084_v31 = vld [vmem:[%s6307_s0 + $0x6a4] sm:$0xf0] }
  0xb3   :  { %2310 = vmatpush.bf16.msra.mxu3 %v3586_v52  ;;  %v2701_v52 = vld [vmem:[%s6307_s0 + $0x68] sm:$0xf]  ;;  %v3422_v38 = vor.u32 %v4084_v31, %v3421_v30  ;;  %v4018_v46 = vld [vmem:[%s6307_s0 + $0x49c] sm:$0xf]  ;;  %v3885_v30 = vld [vmem:[%s6307_s0 + $0x74] sm:$0xf] }
  0xb4   :  { %v4040_v44 = vld [vmem:[%s6307_s0 + $0x544] sm:$0xf0]  ;;  %v2711_v31 = vld [vmem:[%s6307_s0 + $0x120] sm:$0xf0] }
  0xb5   :  { %2272 = vmatpush.bf16.msra.mxu0 %v3398_v60  ;;  %v3884_v60 = vld [vmem:[%s6307_s0 + $0x6c] sm:$0xf] }
  0xb6   :  { %2285 = vmatpush.bf16.msra.mxu1 %v3402_v62  ;;  %2298 = vmatpush.bf16.msra.mxu2 %v3406_v63  ;;  %v2703_v62 = vld [vmem:[%s6307_s0 + $0x118] sm:$0xf0]  ;;  %v3770_v63 = vor.u32 %v4149_v40, %v3767_v43  ;;  %v4017_v40 = vld [vmem:[%s6307_s0 + $0x494] sm:$0xf]  ;;  %v3245_v43 = vld [vmem:[%s6307_s0 + $0x498] sm:$0xf] }
  0xb7   :  { %2311 = vmatpush.bf16.msra.mxu3 %v3410_v3  ;;  %v2702_v3 = vor.u32 %v3906_v54, %v2701_v52  ;;  %v2706_v5 = vor.u32 %v3884_v60, %v2703_v62  ;;  %v3246_v52 = vor.u32 %v4040_v44, %v3245_v43  ;;  %v3995_v54 = vld [vmem:[%s6307_s0 + $0x3dc] sm:$0xf0]  ;;  %v3069_v60 = vld [vmem:[%s6307_s0 + $0x338] sm:$0xf]  ;;  %v3996_v62 = vld [vmem:[%s6307_s0 + $0x3e4] sm:$0xf0]  ;;  %v2714_v44 = vor.u32 %v3885_v30, %v2711_v31 }
  0xb8   :  { %v1913_v8 = vsel %vm1824_vm0, %v3770_v63, 0  ;;  %v3974_v63 = vld [vmem:[%s6307_s0 + $0x33c] sm:$0xf]  ;;  %v3261_v30 = vld [vmem:[%s6307_s0 + $0x4a8] sm:$0xf] }
  0xb9   :  { %2273 = vmatpush.bf16.msra.mxu0 %v3222_v10  ;;  %v1916_v10 = vsel %vm1824_vm0, %v3774_v0, 0  ;;  %v3071_v0 = vld [vmem:[%s6307_s0 + $0x3e8] sm:$0xf0]  ;;  %v4042_v31 = vld [vmem:[%s6307_s0 + $0x554] sm:$0xf0] }
  0xba   :  { %2286 = vmatpush.bf16.msra.mxu1 %v3226_v12  ;;  %2299 = vmatpush.bf16.msra.mxu2 %v3230_v13  ;;  %v4127_v12 = vld [vmem:[%s6307_s0 + $0x7fc] sm:$0xf0]  ;;  %v4105_v13 = vld [vmem:[%s6307_s0 + $0x754] sm:$0xf] }
  0xbb   :  { %2312 = vmatpush.bf16.msra.mxu3 %v3234_v17  ;;  %v5519_v17 = vpop.f32.mrf.mxu0  ;;  %v3590_v22 = vor.u32 %v4127_v12, %v3589_v7  ;;  %v3594_v23 = vor.u32 %v4105_v13, %v3591_v14  ;;  %v3070_v7 = vor.u32 %v3996_v62, %v3069_v60  ;;  %v2893_v12 = vld [vmem:[%s6307_s0 + $0x1d8] sm:$0xf]  ;;  %v3074_v13 = vor.u32 %v3974_v63, %v3071_v0  ;;  %v3952_v14 = vld [vmem:[%s6307_s0 + $0x284] sm:$0xf0]  ;;  %v4108_v0 = vld [vmem:[%s6307_s0 + $0x76c] sm:$0xf] }
  0xbc   :  { %v5528_v21 = vpop.f32.mrf.mxu1  ;;  %v4130_v60 = vld [vmem:[%s6307_s0 + $0x814] sm:$0xf0] }
  0xbd   :  { %2274 = vmatpush.bf16.msra.mxu0 %v3046_v25  ;;  %v3413_v25 = vld [vmem:[%s6307_s0 + $0x5f0] sm:$0xf] }
  0xbe   :  { %2287 = vmatpush.bf16.msra.mxu1 %v3050_v28  ;;  %2300 = vmatpush.bf16.msra.mxu2 %v3054_v29  ;;  %v3602_v28 = vor.u32 %v4106_v19, %v3599_v20  ;;  %v3415_v29 = vld [vmem:[%s6307_s0 + $0x6a0] sm:$0xf0]  ;;  %v3414_v35 = vor.u32 %v4083_v26, %v3413_v25  ;;  %v3907_v19 = vld [vmem:[%s6307_s0 + $0x11c] sm:$0xf0]  ;;  %v3783_v25 = vld [vmem:[%s6307_s0 + $0x970] sm:$0x30] }
  0xbf   :  { %2313 = vmatpush.bf16.msra.mxu3 %v3058_v33  ;;  %v3423_v33 = vld [vmem:[%s6307_s0 + $0x6a8] sm:$0xf0]  ;;  %v3418_v37 = vor.u32 %v4061_v27, %v3415_v29  ;;  %v3781_v20 = vld [vmem:[%s6307_s0 + $0x8c0] sm:$0xf]  ;;  %v3789_v26 = vld [vmem:[%s6307_s0 + $0x8c8] sm:$0xf]  ;;  %v2894_v29 = vor.u32 %v3952_v14, %v2893_v12 }
  0xc0   :  { %v5560_v34 = vpop.f32.mrf.mxu2  ;;  %v3426_v41 = vor.u32 %v4062_v32, %v3423_v33  ;;  %v4174_v27 = vld [vmem:[%s6307_s0 + $0x974] sm:$0x30]  ;;  %v2898_v33 = vor.u32 %v3930_v15, %v2895_v16  ;;  %v3437_v12 = vld [vmem:[%s6307_s0 + $0x608] sm:$0xf]  ;;  %v4064_v14 = vld [vmem:[%s6307_s0 + $0x60c] sm:$0xf] }
  0xc1   :  { %2275 = vmatpush.bf16.msra.mxu0 %v2870_v42  ;;  %v3239_v42 = vld [vmem:[%s6307_s0 + $0x540] sm:$0xf0]  ;;  %v2717_v32 = vld [vmem:[%s6307_s0 + $0x78] sm:$0xf]  ;;  %v3439_v15 = vld [vmem:[%s6307_s0 + $0x6b8] sm:$0xf0] }
  0xc2   :  { %2288 = vmatpush.bf16.msra.mxu1 %v2874_v47  ;;  %2301 = vmatpush.bf16.msra.mxu2 %v2878_v48  ;;  %v3247_v47 = vld [vmem:[%s6307_s0 + $0x548] sm:$0xf0]  ;;  %v3242_v50 = vor.u32 %v4017_v40, %v3239_v42  ;;  %v3790_v42 = vor.u32 %v4174_v27, %v3789_v26 }
  0xc3   :  { %2314 = vmatpush.bf16.msra.mxu3 %v2882_v53  ;;  %v5562_v36 = vpop.f32.mrf.mxu3  ;;  %v2020_v45 = vpop.f32.mrf.mxu0  ;;  %v3061_v53 = vld [vmem:[%s6307_s0 + $0x330] sm:$0xf]  ;;  %v3250_v57 = vor.u32 %v4018_v46, %v3247_v47  ;;  %v2719_v40 = vld [vmem:[%s6307_s0 + $0x128] sm:$0xf0] }
  0xc4   :  { %v2033_v48 = vpop.f32.mrf.mxu1  ;;  %v2722_v47 = vor.u32 %v3886_v61, %v2719_v40  ;;  %v3262_v61 = vor.u32 %v4042_v31, %v3261_v30  ;;  %v3997_v40 = vld [vmem:[%s6307_s0 + $0x3ec] sm:$0xf0] }
  0xc5   :  { %2276 = vmatpush.bf16.msra.mxu0 %v2694_v1 }
  0xc6   :  { %2289 = vmatpush.bf16.msra.mxu1 %v2698_v2  ;;  %2302 = vmatpush.bf16.msra.mxu2 %v2702_v3  ;;  %v3062_v2 = vor.u32 %v3995_v54, %v3061_v53  ;;  %v2885_v3 = vld [vmem:[%s6307_s0 + $0x1d0] sm:$0xf]  ;;  %v4107_v54 = vld [vmem:[%s6307_s0 + $0x764] sm:$0xf] }
  0xc7   :  { %2315 = vmatpush.bf16.msra.mxu3 %v2706_v5  ;;  %v4129_v53 = vld [vmem:[%s6307_s0 + $0x80c] sm:$0xf0] }
  0xc8   :  { %3851 = vmatmul.msk.bf16.vlgmr.msra.gmra.mxu0 %vm1820_vm1, %v5345_v51  ;;  %v2046_v1 = vpop.f32.mrf.mxu2 }
  0xc9   :  { %2322 = vmatpush.bf16.msrb.mxu0 %v1910_v6  ;;  %3853 = vmatmul.msk.bf16.vlgmr.msra.gmra.mxu2 %vm1820_vm1, %v5345_v51  ;;  %v3066_v6 = vor.u32 %v3973_v55, %v3063_v58  ;;  %v3613_v58 = vld [vmem:[%s6307_s0 + $0x768] sm:$0xf]  ;;  %v3615_v1 = vld [vmem:[%s6307_s0 + $0x818] sm:$0xf0] }
  0xca   :  { %2335 = vmatpush.bf16.msrb.mxu1 %v1913_v8  ;;  %2348 = vmatpush.bf16.msrb.mxu2 %v1916_v10  ;;  %v3929_v8 = vld [vmem:[%s6307_s0 + $0x1d4] sm:$0xf]  ;;  %v2887_v10 = vld [vmem:[%s6307_s0 + $0x280] sm:$0xf0] }
  0xcb   :  { %2361 = vmatpush.bf16.msrb.mxu3 %v1919_v18  ;;  %3852 = vmatmul.msk.bf16.vlgmr.msra.gmra.mxu1 %vm1820_vm1, %v5345_v51  ;;  %v2059_v5 = vpop.f32.mrf.mxu3  ;;  %v2709_v18 = vld [vmem:[%s6307_s0 + $0x70] sm:$0xf] }
  0xcc   :  { %3854 = vmatmul.msk.bf16.vlgmr.msra.gmra.mxu3 %vm1820_vm1, %v5345_v51  ;;  %v2710_v43 = vor.u32 %v3907_v19, %v2709_v18  ;;  %v3429_v5 = vld [vmem:[%s6307_s0 + $0x600] sm:$0xf] }
  0xcd   :  { %2323 = vmatpush.bf16.msrb.mxu0 %v3590_v22  ;;  %v4173_v22 = vld [vmem:[%s6307_s0 + $0x96c] sm:$0x30] }
  0xce   :  { %2336 = vmatpush.bf16.msrb.mxu1 %v3594_v23  ;;  %2349 = vmatpush.bf16.msrb.mxu2 %v3598_v24  ;;  %v4151_v23 = vld [vmem:[%s6307_s0 + $0x8c4] sm:$0xf]  ;;  %v2886_v24 = vor.u32 %v3951_v4, %v2885_v3  ;;  %v3614_v4 = vor.u32 %v4130_v60, %v3613_v58 }
  0xcf   :  { %2362 = vmatpush.bf16.msrb.mxu3 %v3602_v28  ;;  %v2890_v28 = vor.u32 %v3929_v8, %v2887_v10  ;;  %v3618_v8 = vor.u32 %v4108_v0, %v3615_v1  ;;  %v3431_v10 = vld [vmem:[%s6307_s0 + $0x6b0] sm:$0xf0]  ;;  %v2562_v60 = vld [vmem:[%s6309_s2] sm:$0x3f]  ;;  %v3954_v1 = vld [vmem:[%s6307_s0 + $0x294] sm:$0xf0] }
  0xd1   :  { %2324 = vmatpush.bf16.msrb.mxu0 %v3414_v35  ;;  %v3908_v35 = vld [vmem:[%s6307_s0 + $0x124] sm:$0xf0] }
  0xd2   :  { %2337 = vmatpush.bf16.msrb.mxu1 %v3418_v37  ;;  %2350 = vmatpush.bf16.msrb.mxu2 %v3422_v38  ;;  %v3782_v37 = vor.u32 %v4173_v22, %v3781_v20  ;;  %v4152_v38 = vld [vmem:[%s6307_s0 + $0x8cc] sm:$0xf]  ;;  %v2718_v45 = vor.u32 %v3908_v35, %v2717_v32  ;;  %v3263_v35 = vld [vmem:[%s6307_s0 + $0x558] sm:$0xf0] }
  0xd3   :  { %2363 = vmatpush.bf16.msrb.mxu3 %v3426_v41  ;;  %v3786_v41 = vor.u32 %v4151_v23, %v3783_v25  ;;  %v3794_v46 = vor.u32 %v4152_v38, %v3791_v39  ;;  %v3253_v23 = vld [vmem:[%s6307_s0 + $0x4a0] sm:$0xf]  ;;  %v4019_v25 = vld [vmem:[%s6307_s0 + $0x4a4] sm:$0xf] }
  0xd4   :  { %v1922_v48 = vsel %vm1824_vm0, %v3782_v37, 0  ;;  %v3077_v38 = vld [vmem:[%s6307_s0 + $0x340] sm:$0xf] }
  0xd5   :  { %2325 = vmatpush.bf16.msrb.mxu0 %v3238_v49  ;;  %v3605_v49 = vld [vmem:[%s6307_s0 + $0x760] sm:$0xf]  ;;  %v5698_v55 = vpop.f32.mrf.mxu0  ;;  %v1931_v63 = vsel %vm1824_vm0, %v3794_v46, 0  ;;  %v3976_v46 = vld [vmem:[%s6307_s0 + $0x34c] sm:$0xf] }
  0xd6   :  { %2338 = vmatpush.bf16.msrb.mxu1 %v3242_v50  ;;  %2351 = vmatpush.bf16.msrb.mxu2 %v3246_v52  ;;  %v1925_v50 = vsel %vm1824_vm0, %v3786_v41, 0  ;;  %v1928_v52 = vsel %vm1824_vm0, %v3790_v42, 0  ;;  %v5709_v62 = vpop.f32.mrf.mxu1  ;;  %v3975_v41 = vld [vmem:[%s6307_s0 + $0x344] sm:$0xf]  ;;  %v3079_v42 = vld [vmem:[%s6307_s0 + $0x3f0] sm:$0xf0] }
  0xd7   :  { %2364 = vmatpush.bf16.msrb.mxu3 %v3250_v57  ;;  %v3607_v57 = vld [vmem:[%s6307_s0 + $0x810] sm:$0xf0] }
  0xd8   :  { %v3610_v3 = vor.u32 %v4107_v54, %v3607_v57  ;;  %v2903_v54 = vld [vmem:[%s6307_s0 + $0x290] sm:$0xf0]  ;;  %v2909_v57 = vld [vmem:[%s6307_s0 + $0x1e8] sm:$0xf] }
  0xd9   :  { %2326 = vmatpush.bf16.msrb.mxu0 %v3062_v2  ;;  %v3606_v2 = vor.u32 %v4129_v53, %v3605_v49  ;;  %v2901_v49 = vld [vmem:[%s6307_s0 + $0x1e0] sm:$0xf]  ;;  %v3931_v53 = vld [vmem:[%s6307_s0 + $0x1e4] sm:$0xf] }
  0xda   :  { %2339 = vmatpush.bf16.msrb.mxu1 %v3066_v6  ;;  %2352 = vmatpush.bf16.msrb.mxu2 %v3070_v7  ;;  %v4085_v6 = vld [vmem:[%s6307_s0 + $0x6ac] sm:$0xf0]  ;;  %v4063_v7 = vld [vmem:[%s6307_s0 + $0x604] sm:$0xf] }
  0xdb   :  { %2365 = vmatpush.bf16.msrb.mxu3 %v3074_v13  ;;  %v4086_v13 = vld [vmem:[%s6307_s0 + $0x6b4] sm:$0xf0]  ;;  %v3430_v18 = vor.u32 %v4085_v6, %v3429_v5  ;;  %v3434_v20 = vor.u32 %v4063_v7, %v3431_v10  ;;  %v3797_v6 = vld [vmem:[%s6307_s0 + $0x8d0] sm:$0xf]  ;;  %v4175_v7 = vld [vmem:[%s6307_s0 + $0x97c] sm:$0x30] }
  0xdc   :  { %v3438_v22 = vor.u32 %v4086_v13, %v3437_v12  ;;  %v3799_v10 = vld [vmem:[%s6307_s0 + $0x980] sm:$0x30]  ;;  %v3805_v12 = vld [vmem:[%s6307_s0 + $0x8d8] sm:$0xf]  ;;  %v4176_v13 = vld [vmem:[%s6307_s0 + $0x984] sm:$0x30] }
  0xdd   :  { %2327 = vmatpush.bf16.msrb.mxu0 %v2886_v24  ;;  %v4041_v24 = vld [vmem:[%s6307_s0 + $0x54c] sm:$0xf0]  ;;  %v2072_v27 = vpop.f32.mrf.mxu0  ;;  %v3806_v31 = vor.u32 %v4176_v13, %v3805_v12  ;;  %v3455_v12 = vld [vmem:[%s6307_s0 + $0x6c8] sm:$0xf0] }
  0xde   :  { %2340 = vmatpush.bf16.msrb.mxu1 %v2890_v28  ;;  %2353 = vmatpush.bf16.msrb.mxu2 %v2894_v29  ;;  %v5761_v26 = vpop.f32.mrf.mxu2  ;;  %v3442_v28 = vor.u32 %v4064_v14, %v3439_v15  ;;  %v3255_v29 = vld [vmem:[%s6307_s0 + $0x550] sm:$0xf0]  ;;  %v2085_v32 = vpop.f32.mrf.mxu1  ;;  %v3254_v37 = vor.u32 %v4041_v24, %v3253_v23  ;;  %v2725_v15 = vld [vmem:[%s6307_s0 + $0x80] sm:$0xf]  ;;  %v3887_v23 = vld [vmem:[%s6307_s0 + $0x84] sm:$0xf] }
  0xdf   :  { %2366 = vmatpush.bf16.msrb.mxu3 %v2898_v33  ;;  %v5748_v16 = vpop.f32.mrf.mxu3  ;;  %v4020_v33 = vld [vmem:[%s6307_s0 + $0x4ac] sm:$0xf]  ;;  %v3258_v39 = vor.u32 %v4019_v25, %v3255_v29  ;;  %v2727_v24 = vld [vmem:[%s6307_s0 + $0x130] sm:$0xf0]  ;;  %v2733_v25 = vld [vmem:[%s6307_s0 + $0x88] sm:$0xf]  ;;  %v3798_v29 = vor.u32 %v4175_v7, %v3797_v6 }
  0xe0   :  { %v2529_v19 = vmax.f32 %v5358_v56, %v5748_v16  ;;  %v4154_v32 = vld [vmem:[%s6307_s0 + $0x8dc] sm:$0xf]  ;;  %v3447_v6 = vld [vmem:[%s6307_s0 + $0x6c0] sm:$0xf0]  ;;  %v3453_v7 = vld [vmem:[%s6307_s0 + $0x618] sm:$0xf] }
  0xe1   :  { %2328 = vmatpush.bf16.msrb.mxu0 %v2710_v43  ;;  %v3266_v43 = vor.u32 %v4020_v33, %v3263_v35  ;;  %v3807_v33 = vld [vmem:[%s6307_s0 + $0x988] sm:$0x30] }
  0xe2   :  { %2341 = vmatpush.bf16.msrb.mxu1 %v2714_v44  ;;  %2354 = vmatpush.bf16.msrb.mxu2 %v2718_v45  ;;  %v3085_v44 = vld [vmem:[%s6307_s0 + $0x348] sm:$0xf]  ;;  %v3998_v45 = vld [vmem:[%s6307_s0 + $0x3f4] sm:$0xf0]  ;;  %v3888_v35 = vld [vmem:[%s6307_s0 + $0x8c] sm:$0xf] }
  0xe3   :  { %2367 = vmatpush.bf16.msrb.mxu3 %v2722_v47  ;;  %v4183_v47 = vmov 0   ;;  %v3086_v0 = vor.u32 %v3998_v45, %v3085_v44  ;;  %v1940_v44 = vsel %vm1824_vm0, %v3806_v31, 0  ;;  %v4044_v31 = vld [vmem:[%s6307_s0 + $0x564] sm:$0xf0] }
  0xe4   :  { %3855 = vmatmul.msk.bf16.vlgmr.msrb.gmra.mxu0 %vm1820_vm1, %v5345_v51  ;;  %4180 = vset.pattern.permute.xlu0 %v4183_v47  ;;  %v4131_v47 = vld [vmem:[%s6307_s0 + $0x81c] sm:$0xf0] }
  0xe5   :  { %2374 = vmatpush.bf16.msra.mxu0 %v1922_v48  ;;  %3856 = vmatmul.msk.bf16.vlgmr.msrb.gmra.mxu1 %vm1820_vm1, %v5345_v51  ;;  %v3087_v48 = vld [vmem:[%s6307_s0 + $0x3f8] sm:$0xf0] }
  0xe6   :  { %2387 = vmatpush.bf16.msra.mxu1 %v1925_v50  ;;  %2400 = vmatpush.bf16.msra.mxu2 %v1928_v52  ;;  %v3953_v50 = vld [vmem:[%s6307_s0 + $0x28c] sm:$0xf0]  ;;  %v3078_v52 = vor.u32 %v3997_v40, %v3077_v38  ;;  %v3090_v5 = vor.u32 %v3976_v46, %v3087_v48  ;;  %v3810_v40 = vor.u32 %v4154_v32, %v3807_v33  ;;  %v4109_v48 = vld [vmem:[%s6307_s0 + $0x774] sm:$0xf]  ;;  %v4022_v33 = vld [vmem:[%s6307_s0 + $0x4bc] sm:$0xf] }
  0xe7   :  { %2413 = vmatpush.bf16.msra.mxu3 %v1931_v63  ;;  %3857 = vmatmul.msk.bf16.vlgmr.msrb.gmra.mxu2 %vm1820_vm1, %v5345_v51  ;;  %v2111_v58 = vpop.f32.mrf.mxu3  ;;  %v3082_v63 = vor.u32 %v3975_v41, %v3079_v42  ;;  %v2902_v14 = vor.u32 %v3953_v50, %v2901_v49  ;;  %v1934_v42 = vsel %vm1824_vm0, %v3798_v29, 0  ;;  %v3621_v46 = vld [vmem:[%s6307_s0 + $0x770] sm:$0xf]  ;;  %v3623_v50 = vld [vmem:[%s6307_s0 + $0x820] sm:$0xf0] }
  0xe8   :  { %3858 = vmatmul.msk.bf16.vlgmr.msrb.gmra.mxu3 %vm1820_vm1, %v5345_v51  ;;  %2565 = vperm.xlu0 %4180, %v2562_v60   ;;  %v4110_v58 = vld [vmem:[%s6307_s0 + $0x77c] sm:$0xf]  ;;  %v3631_v60 = vld [vmem:[%s6307_s0 + $0x828] sm:$0xf0]  ;;  %v3271_v29 = vld [vmem:[%s6307_s0 + $0x560] sm:$0xf0] }
  0xe9   :  { %2375 = vmatpush.bf16.msra.mxu0 %v3606_v2  ;;  %v3932_v2 = vld [vmem:[%s6307_s0 + $0x1ec] sm:$0xf] }
  0xea   :  { %2388 = vmatpush.bf16.msra.mxu1 %v3610_v3  ;;  %2401 = vmatpush.bf16.msra.mxu2 %v3614_v4  ;;  %v2911_v3 = vld [vmem:[%s6307_s0 + $0x298] sm:$0xf0]  ;;  %v2098_v4 = vpop.f32.mrf.mxu2 }
  0xeb   :  { %2414 = vmatpush.bf16.msra.mxu3 %v3618_v8  ;;  %v4153_v8 = vld [vmem:[%s6307_s0 + $0x8d4] sm:$0xf]  ;;  %v2914_v27 = vor.u32 %v3932_v2, %v2911_v3  ;;  %v3445_v2 = vld [vmem:[%s6307_s0 + $0x610] sm:$0xf]  ;;  %v4087_v3 = vld [vmem:[%s6307_s0 + $0x6bc] sm:$0xf0] }
  0xec   :  { %v3802_v30 = vor.u32 %v4153_v8, %v3799_v10  ;;  %v4065_v4 = vld [vmem:[%s6307_s0 + $0x614] sm:$0xf]  ;;  %v4088_v8 = vld [vmem:[%s6307_s0 + $0x6c4] sm:$0xf0]  ;;  %v4066_v10 = vld [vmem:[%s6307_s0 + $0x61c] sm:$0xf] }
  0xed   :  { %2376 = vmatpush.bf16.msra.mxu0 %v3430_v18  ;;  %v3909_v18 = vld [vmem:[%s6307_s0 + $0x12c] sm:$0xf0] }
  0xee   :  { %2389 = vmatpush.bf16.msra.mxu1 %v3434_v20  ;;  %2402 = vmatpush.bf16.msra.mxu2 %v3438_v22  ;;  %v2906_v20 = vor.u32 %v3931_v53, %v2903_v54  ;;  %v2910_v22 = vor.u32 %v3954_v1, %v2909_v57  ;;  %v2726_v38 = vor.u32 %v3909_v18, %v2725_v15  ;;  %v4132_v53 = vld [vmem:[%s6307_s0 + $0x824] sm:$0xf0]  ;;  %v1943_v54 = vsel %vm1824_vm0, %v3810_v40, 0  ;;  %v3977_v40 = vld [vmem:[%s6307_s0 + $0x354] sm:$0xf] }
  0xef   :  { %2415 = vmatpush.bf16.msra.mxu3 %v3442_v28  ;;  %v3910_v28 = vld [vmem:[%s6307_s0 + $0x134] sm:$0xf0]  ;;  %v3450_v18 = vor.u32 %v4065_v4, %v3447_v6  ;;  %v3813_v6 = vld [vmem:[%s6307_s0 + $0x8e0] sm:$0xf] }
  0xf1   :  { %2377 = vmatpush.bf16.msra.mxu0 %v3254_v37  ;;  %v2735_v37 = vld [vmem:[%s6307_s0 + $0x138] sm:$0xf0]  ;;  %v5882_v45 = vpop.f32.mrf.mxu0 }
  0xf2   :  { %2390 = vmatpush.bf16.msra.mxu1 %v3258_v39  ;;  %2403 = vmatpush.bf16.msra.mxu2 %v3262_v61  ;;  %v2730_v39 = vor.u32 %v3887_v23, %v2727_v24  ;;  %v2734_v61 = vor.u32 %v3910_v28, %v2733_v25  ;;  %v2738_v41 = vor.u32 %v3888_v35, %v2735_v37  ;;  %v5893_v49 = vpop.f32.mrf.mxu1  ;;  %v4043_v23 = vld [vmem:[%s6307_s0 + $0x55c] sm:$0xf0]  ;;  %v4021_v24 = vld [vmem:[%s6307_s0 + $0x4b4] sm:$0xf]  ;;  %v3093_v37 = vld [vmem:[%s6307_s0 + $0x350] sm:$0xf] }
  0xf3   :  { %2416 = vmatpush.bf16.msra.mxu3 %v3266_v43  ;;  %v1937_v43 = vsel %vm1824_vm0, %v3802_v30, 0  ;;  %v2531_v57 = vmax.f32 %v5398_v9, %v5893_v49  ;;  %v3458_v28 = vor.u32 %v4066_v10, %v3455_v12  ;;  %v3277_v30 = vld [vmem:[%s6307_s0 + $0x4b8] sm:$0xf]  ;;  %v3815_v10 = vld [vmem:[%s6307_s0 + $0x990] sm:$0x30] }
  0xf4   :  { %v3821_v12 = vld [vmem:[%s6307_s0 + $0x8e8] sm:$0xf] }
  0xf5   :  { %2378 = vmatpush.bf16.msra.mxu0 %v3078_v52  ;;  %v3629_v52 = vld [vmem:[%s6307_s0 + $0x778] sm:$0xf] }
  0xf6   :  { %2391 = vmatpush.bf16.msra.mxu1 %v3082_v63  ;;  %2404 = vmatpush.bf16.msra.mxu2 %v3086_v0  ;;  %v3622_v63 = vor.u32 %v4131_v47, %v3621_v46  ;;  %v3626_v0 = vor.u32 %v4109_v48, %v3623_v50  ;;  %v3630_v1 = vor.u32 %v4132_v53, %v3629_v52  ;;  %v3978_v46 = vld [vmem:[%s6307_s0 + $0x35c] sm:$0xf]  ;;  %v3103_v47 = vld [vmem:[%s6307_s0 + $0x408] sm:$0xf0]  ;;  %v2917_v48 = vld [vmem:[%s6307_s0 + $0x1f0] sm:$0xf] }
  0xf7   :  { %2417 = vmatpush.bf16.msra.mxu3 %v3090_v5  ;;  %v3634_v5 = vor.u32 %v4110_v58, %v3631_v60  ;;  %v3955_v50 = vld [vmem:[%s6307_s0 + $0x29c] sm:$0xf0]  ;;  %v3933_v53 = vld [vmem:[%s6307_s0 + $0x1f4] sm:$0xf]  ;;  %v2925_v58 = vld [vmem:[%s6307_s0 + $0x1f8] sm:$0xf] }
  0xf9   :  { %2379 = vmatpush.bf16.msra.mxu0 %v2902_v14  ;;  %v3446_v14 = vor.u32 %v4087_v3, %v3445_v2  ;;  %v2124_v25 = vpop.f32.mrf.mxu0  ;;  %v3934_v2 = vld [vmem:[%s6307_s0 + $0x1fc] sm:$0xf]  ;;  %v2927_v3 = vld [vmem:[%s6307_s0 + $0x2a8] sm:$0xf0] }
  0xfa   :  { %2392 = vmatpush.bf16.msra.mxu1 %v2906_v20  ;;  %2405 = vmatpush.bf16.msra.mxu2 %v2910_v22  ;;  %v5943_v13 = vpop.f32.mrf.mxu2  ;;  %v3454_v20 = vor.u32 %v4088_v8, %v3453_v7  ;;  %v3269_v22 = vld [vmem:[%s6307_s0 + $0x4b0] sm:$0xf]  ;;  %v2137_v32 = vpop.f32.mrf.mxu1  ;;  %v4155_v8 = vld [vmem:[%s6307_s0 + $0x8e4] sm:$0xf]  ;;  %v3889_v25 = vld [vmem:[%s6307_s0 + $0x94] sm:$0xf] }
  0xfb   :  { %2418 = vmatpush.bf16.msra.mxu3 %v2914_v27  ;;  %v5945_v15 = vpop.f32.mrf.mxu3  ;;  %v3270_v35 = vor.u32 %v4043_v23, %v3269_v22  ;;  %v4177_v7 = vld [vmem:[%s6307_s0 + $0x98c] sm:$0x30]  ;;  %v3911_v22 = vld [vmem:[%s6307_s0 + $0x13c] sm:$0xf0] }
  0xfc   :  { %v2533_v27 = vmax.f32 %v5519_v17, %v5945_v15  ;;  %v3814_v32 = vor.u32 %v4177_v7, %v3813_v6  ;;  %v3461_v6 = vld [vmem:[%s6307_s0 + $0x620] sm:$0xf]  ;;  %v4089_v7 = vld [vmem:[%s6307_s0 + $0x6cc] sm:$0xf0] }
  0xfd   :  { %2380 = vmatpush.bf16.msra.mxu0 %v2726_v38  ;;  %v3274_v38 = vor.u32 %v4021_v24, %v3271_v29  ;;  %v2749_v29 = vld [vmem:[%s6307_s0 + $0x98] sm:$0xf] }
  0xfe   :  { %2393 = vmatpush.bf16.msra.mxu1 %v2730_v39  ;;  %2406 = vmatpush.bf16.msra.mxu2 %v2734_v61  ;;  %v3278_v39 = vor.u32 %v4044_v31, %v3277_v30  ;;  %v3999_v61 = vld [vmem:[%s6307_s0 + $0x3fc] sm:$0xf0]  ;;  %v2930_v30 = vor.u32 %v3934_v2, %v2927_v3  ;;  %v3912_v31 = vld [vmem:[%s6307_s0 + $0x144] sm:$0xf0]  ;;  %v3647_v2 = vld [vmem:[%s6307_s0 + $0x838] sm:$0xf0] }
  0xff   :  { %2419 = vmatpush.bf16.msra.mxu3 %v2738_v41  ;;  %v3095_v41 = vld [vmem:[%s6307_s0 + $0x400] sm:$0xf0]  ;;  %v3094_v52 = vor.u32 %v3999_v61, %v3093_v37  ;;  %v3823_v37 = vld [vmem:[%s6307_s0 + $0x998] sm:$0x30] }
 0x100   :  { %3859 = vmatmul.msk.bf16.vlgmr.msra.gmra.mxu0 %vm1820_vm1, %v5345_v51 }
 0x101   :  { %2426 = vmatpush.bf16.msrb.mxu0 %v1934_v42  ;;  %3860 = vmatmul.msk.bf16.vlgmr.msra.gmra.mxu1 %vm1820_vm1, %v5345_v51 }
 0x102   :  { %2439 = vmatpush.bf16.msrb.mxu1 %v1937_v43  ;;  %2452 = vmatpush.bf16.msrb.mxu2 %v1940_v44  ;;  %v3101_v43 = vld [vmem:[%s6307_s0 + $0x358] sm:$0xf]  ;;  %v4000_v44 = vld [vmem:[%s6307_s0 + $0x404] sm:$0xf0]  ;;  %v2150_v60 = vpop.f32.mrf.mxu2 }
 0x103   :  { %2465 = vmatpush.bf16.msrb.mxu3 %v1943_v54  ;;  %3861 = vmatmul.msk.bf16.vlgmr.msra.gmra.mxu2 %vm1820_vm1, %v5345_v51  ;;  %v2919_v54 = vld [vmem:[%s6307_s0 + $0x2a0] sm:$0xf0]  ;;  %v2163_v4 = vpop.f32.mrf.mxu3  ;;  %v3645_v60 = vld [vmem:[%s6307_s0 + $0x788] sm:$0xf] }
 0x104   :  { %3862 = vmatmul.msk.bf16.vlgmr.msra.gmra.mxu3 %vm1820_vm1, %v5345_v51  ;;  %v3279_v51 = vld [vmem:[%s6307_s0 + $0x568] sm:$0xf0]  ;;  %v2922_v23 = vor.u32 %v3933_v53, %v2919_v54  ;;  %v4111_v53 = vld [vmem:[%s6307_s0 + $0x784] sm:$0xf] }
 0x105   :  { %2427 = vmatpush.bf16.msrb.mxu0 %v3622_v63  ;;  %v3282_v42 = vor.u32 %v4022_v33, %v3279_v51  ;;  %v3098_v63 = vor.u32 %v3977_v40, %v3095_v41  ;;  %v3818_v33 = vor.u32 %v4155_v8, %v3815_v10  ;;  %v2750_v41 = vor.u32 %v3912_v31, %v2749_v29  ;;  %v4067_v8 = vld [vmem:[%s6307_s0 + $0x624] sm:$0xf]  ;;  %v6115_v10 = vld [vmem:[%s6308_s1] sm:$0x7] }
 0x106   :  { %2440 = vmatpush.bf16.msrb.mxu1 %v3626_v0  ;;  %2453 = vmatpush.bf16.msrb.mxu2 %v3630_v1  ;;  %v3102_v0 = vor.u32 %v4000_v44, %v3101_v43  ;;  %v3956_v1 = vld [vmem:[%s6307_s0 + $0x2a4] sm:$0xf0]  ;;  %v1946_v44 = vsel %vm1824_vm0, %v3814_v32, 0  ;;  %v3285_v31 = vld [vmem:[%s6307_s0 + $0x4c0] sm:$0xf] }
 0x107   :  { %2466 = vmatpush.bf16.msrb.mxu3 %v3634_v5  ;;  %v3106_v5 = vor.u32 %v3978_v46, %v3103_v47  ;;  %v2926_v24 = vor.u32 %v3956_v1, %v2925_v58  ;;  %v1949_v46 = vsel %vm1824_vm0, %v3818_v33, 0  ;;  %v3639_v58 = vld [vmem:[%s6307_s0 + $0x830] sm:$0xf0]  ;;  %v4112_v1 = vld [vmem:[%s6307_s0 + $0x78c] sm:$0xf] }
 0x108   :  { %v3642_v4 = vor.u32 %v4111_v53, %v3639_v58  ;;  %v4045_v32 = vld [vmem:[%s6307_s0 + $0x56c] sm:$0xf0]  ;;  %v4023_v33 = vld [vmem:[%s6307_s0 + $0x4c4] sm:$0xf]  ;;  %v3111_v58 = vld [vmem:[%s6307_s0 + $0x410] sm:$0xf0] }
 0x109   :  { %2428 = vmatpush.bf16.msrb.mxu0 %v3446_v14  ;;  %v4178_v14 = vld [vmem:[%s6307_s0 + $0x994] sm:$0x30] }
 0x10a   :  { %2441 = vmatpush.bf16.msrb.mxu1 %v3450_v18  ;;  %2454 = vmatpush.bf16.msrb.mxu2 %v3454_v20  ;;  %v2918_v18 = vor.u32 %v3955_v50, %v2917_v48  ;;  %v2741_v20 = vld [vmem:[%s6307_s0 + $0x90] sm:$0xf]  ;;  %v3822_v51 = vor.u32 %v4178_v14, %v3821_v12  ;;  %v3637_v50 = vld [vmem:[%s6307_s0 + $0x780] sm:$0xf]  ;;  %v3650_v12 = vor.u32 %v4112_v1, %v3647_v2  ;;  %v3463_v14 = vld [vmem:[%s6307_s0 + $0x6d0] sm:$0xf0] }
 0x10b   :  { %2467 = vmatpush.bf16.msrb.mxu3 %v3458_v28  ;;  %v2743_v28 = vld [vmem:[%s6307_s0 + $0x140] sm:$0xf0]  ;;  %v2742_v61 = vor.u32 %v3911_v22, %v2741_v20  ;;  %v4090_v20 = vld [vmem:[%s6307_s0 + $0x6d4] sm:$0xf0]  ;;  %v4068_v22 = vld [vmem:[%s6307_s0 + $0x62c] sm:$0xf]  ;;  %v3466_v29 = vor.u32 %v4067_v8, %v3463_v14 }
 0x10c   :  { %v2746_v40 = vor.u32 %v3889_v25, %v2743_v28  ;;  %v1952_v47 = vsel %vm1824_vm0, %v3822_v51, 0  ;;  %v3462_v25 = vor.u32 %v4089_v7, %v3461_v6  ;;  %v3119_v1 = vld [vmem:[%s6307_s0 + $0x418] sm:$0xf0]  ;;  %v2933_v6 = vld [vmem:[%s6307_s0 + $0x200] sm:$0xf] }
 0x10d   :  { %2429 = vmatpush.bf16.msrb.mxu0 %v3270_v35  ;;  %v4156_v35 = vld [vmem:[%s6307_s0 + $0x8ec] sm:$0xf]  ;;  %v6074_v48 = vpop.f32.mrf.mxu0  ;;  %v3957_v7 = vld [vmem:[%s6307_s0 + $0x2ac] sm:$0xf0]  ;;  %v3935_v8 = vld [vmem:[%s6307_s0 + $0x204] sm:$0xf] }
 0x10e   :  { %2442 = vmatpush.bf16.msrb.mxu1 %v3274_v38  ;;  %2455 = vmatpush.bf16.msrb.mxu2 %v3278_v39  ;;  %v3890_v38 = vld [vmem:[%s6307_s0 + $0x9c] sm:$0xf]  ;;  %v2751_v39 = vld [vmem:[%s6307_s0 + $0x148] sm:$0xf0]  ;;  %v6085_v54 = vpop.f32.mrf.mxu1 }
 0x10f   :  { %2468 = vmatpush.bf16.msrb.mxu3 %v3282_v42  ;;  %v3826_v42 = vor.u32 %v4156_v35, %v3823_v37  ;;  %v2754_v43 = vor.u32 %v3890_v38, %v2751_v39  ;;  %v3287_v38 = vld [vmem:[%s6307_s0 + $0x570] sm:$0xf0]  ;;  %v3293_v39 = vld [vmem:[%s6307_s0 + $0x4c8] sm:$0xf] }
 0x111   :  { %2430 = vmatpush.bf16.msrb.mxu0 %v3094_v52  ;;  %v4133_v52 = vld [vmem:[%s6307_s0 + $0x82c] sm:$0xf0] }
 0x112   :  { %2443 = vmatpush.bf16.msrb.mxu1 %v3098_v63  ;;  %2456 = vmatpush.bf16.msrb.mxu2 %v3102_v0  ;;  %v4134_v63 = vld [vmem:[%s6307_s0 + $0x834] sm:$0xf0]  ;;  %v1955_v0 = vsel %vm1824_vm0, %v3826_v42, 0  ;;  %v3638_v3 = vor.u32 %v4133_v52, %v3637_v50  ;;  %v3295_v42 = vld [vmem:[%s6307_s0 + $0x578] sm:$0xf0] }
 0x113   :  { %2469 = vmatpush.bf16.msrb.mxu3 %v3106_v5  ;;  %v3646_v5 = vor.u32 %v4134_v63, %v3645_v60  ;;  %v4001_v50 = vld [vmem:[%s6307_s0 + $0x40c] sm:$0xf0]  ;;  %v3979_v52 = vld [vmem:[%s6307_s0 + $0x364] sm:$0xf]  ;;  %v3117_v60 = vld [vmem:[%s6307_s0 + $0x368] sm:$0xf] }
 0x114   :  { %v4002_v63 = vld [vmem:[%s6307_s0 + $0x414] sm:$0xf0] }
 0x115   :  { %2431 = vmatpush.bf16.msrb.mxu0 %v2918_v18  ;;  %v3469_v18 = vld [vmem:[%s6307_s0 + $0x628] sm:$0xf]  ;;  %v2176_v51 = vpop.f32.mrf.mxu0 }
 0x116   :  { %2444 = vmatpush.bf16.msrb.mxu1 %v2922_v23  ;;  %2457 = vmatpush.bf16.msrb.mxu2 %v2926_v24  ;;  %v3471_v23 = vld [vmem:[%s6307_s0 + $0x6d8] sm:$0xf0]  ;;  %v6140_v24 = vpop.f32.mrf.mxu2  ;;  %v3891_v51 = vld [vmem:[%s6307_s0 + $0xa4] sm:$0xf] }
 0x117   :  { %2470 = vmatpush.bf16.msrb.mxu3 %v2930_v30  ;;  %v6142_v28 = vpop.f32.mrf.mxu3  ;;  %v3470_v30 = vor.u32 %v4090_v20, %v3469_v18  ;;  %v3474_v37 = vor.u32 %v4068_v22, %v3471_v23  ;;  %v2935_v18 = vld [vmem:[%s6307_s0 + $0x2b0] sm:$0xf0]  ;;  %v2941_v20 = vld [vmem:[%s6307_s0 + $0x208] sm:$0xf]  ;;  %v3958_v22 = vld [vmem:[%s6307_s0 + $0x2b4] sm:$0xf0] }
 0x118   :  { %v2537_v35 = vmax.f32 %v5698_v55, %v6142_v28  ;;  %v3936_v23 = vld [vmem:[%s6307_s0 + $0x20c] sm:$0xf] }
 0x119   :  { %2432 = vmatpush.bf16.msrb.mxu0 %v2742_v61  ;;  %v4046_v61 = vld [vmem:[%s6307_s0 + $0x574] sm:$0xf0] }
 0x11a   :  { %2445 = vmatpush.bf16.msrb.mxu1 %v2746_v40  ;;  %2458 = vmatpush.bf16.msrb.mxu2 %v2750_v41  ;;  %v2189_v40 = vpop.f32.mrf.mxu1  ;;  %v4024_v41 = vld [vmem:[%s6307_s0 + $0x4cc] sm:$0xf] }
 0x11b   :  { %2471 = vmatpush.bf16.msrb.mxu3 %v2754_v43  ;;  %v3286_v43 = vor.u32 %v4045_v32, %v3285_v31  ;;  %v3298_v53 = vor.u32 %v4024_v41, %v3295_v42  ;;  %v2942_v31 = vor.u32 %v3958_v22, %v2941_v20  ;;  %v2757_v32 = vld [vmem:[%s6307_s0 + $0xa0] sm:$0xf]  ;;  %v3892_v40 = vld [vmem:[%s6307_s0 + $0xac] sm:$0xf]  ;;  %v2767_v41 = vld [vmem:[%s6307_s0 + $0x158] sm:$0xf0] }
 0x11c   :  { %3863 = vmatmul.msk.bf16.vlgmr.msrb.gmra.mxu0 %vm1820_vm1, %v6115_v10 }
 0x11d   :  { %2478 = vmatpush.bf16.msra.mxu0 %v1946_v44  ;;  %3864 = vmatmul.msk.bf16.vlgmr.msrb.gmra.mxu1 %vm1820_vm1, %v6115_v10  ;;  %v3290_v44 = vor.u32 %v4023_v33, %v3287_v38  ;;  %v3913_v33 = vld [vmem:[%s6307_s0 + $0x14c] sm:$0xf0]  ;;  %v2759_v38 = vld [vmem:[%s6307_s0 + $0x150] sm:$0xf0] }
 0x11e   :  { %2491 = vmatpush.bf16.msra.mxu1 %v1949_v46  ;;  %2504 = vmatpush.bf16.msra.mxu2 %v1952_v47  ;;  %v3294_v46 = vor.u32 %v4046_v61, %v3293_v39  ;;  %v3109_v47 = vld [vmem:[%s6307_s0 + $0x360] sm:$0xf]  ;;  %v2765_v39 = vld [vmem:[%s6307_s0 + $0xa8] sm:$0xf]  ;;  %v3914_v61 = vld [vmem:[%s6307_s0 + $0x154] sm:$0xf0]  ;;  %v2758_v42 = vor.u32 %v3913_v33, %v2757_v32 }
 0x11f   :  { %2517 = vmatpush.bf16.msra.mxu3 %v1955_v0  ;;  %3865 = vmatmul.msk.bf16.vlgmr.msrb.gmra.mxu2 %vm1820_vm1, %v6115_v10  ;;  %v3980_v0 = vld [vmem:[%s6307_s0 + $0x36c] sm:$0xf]  ;;  %v3110_v2 = vor.u32 %v4001_v50, %v3109_v47 }
 0x120   :  { %3866 = vmatmul.msk.bf16.vlgmr.msrb.gmra.mxu3 %vm1820_vm1, %v6115_v10  ;;  %v3122_v14 = vor.u32 %v3980_v0, %v3119_v1 }
 0x121   :  { %2479 = vmatpush.bf16.msra.mxu0 %v3638_v3  ;;  %v2202_v3 = vpop.f32.mrf.mxu2 }
 0x122   :  { %2492 = vmatpush.bf16.msra.mxu1 %v3642_v4  ;;  %2505 = vmatpush.bf16.msra.mxu2 %v3646_v5  ;;  %v3114_v4 = vor.u32 %v3979_v52, %v3111_v58  ;;  %v3118_v5 = vor.u32 %v4002_v63, %v3117_v60 }
 0x123   :  { %2518 = vmatpush.bf16.msra.mxu3 %v3650_v12  ;;  %v2215_v12 = vpop.f32.mrf.mxu3 }
 0x125   :  { %2480 = vmatpush.bf16.msra.mxu0 %v3462_v25  ;;  %v2943_v25 = vld [vmem:[%s6307_s0 + $0x2b8] sm:$0xf0] }
 0x126   :  { %2493 = vmatpush.bf16.msra.mxu1 %v3466_v29  ;;  %2506 = vmatpush.bf16.msra.mxu2 %v3470_v30  ;;  %v2934_v29 = vor.u32 %v3957_v7, %v2933_v6  ;;  %v2938_v30 = vor.u32 %v3935_v8, %v2935_v18 }
 0x127   :  { %2519 = vmatpush.bf16.msra.mxu3 %v3474_v37  ;;  %v2946_v37 = vor.u32 %v3936_v23, %v2943_v25 }
 0x129   :  { %2481 = vmatpush.bf16.msra.mxu0 %v3286_v43  ;;  %v2762_v43 = vor.u32 %v3891_v51, %v2759_v38  ;;  %v6242_v47 = vpop.f32.mrf.mxu0  ;;  %v2530_v38 = vmax.f32 %v5370_v59, %v5882_v45  ;;  %v2532_v45 = vmax.f32 %v5400_v11, %v5943_v13  ;;  %v2535_v11 = vmax.f32 %v5560_v34, %v6085_v54 }
 0x12a   :  { %2494 = vmatpush.bf16.msra.mxu1 %v3290_v44  ;;  %2507 = vmatpush.bf16.msra.mxu2 %v3294_v46  ;;  %v2766_v44 = vor.u32 %v3914_v61, %v2765_v39  ;;  %v2770_v46 = vor.u32 %v3892_v40, %v2767_v41  ;;  %v6244_v50 = vpop.f32.mrf.mxu1  ;;  %v2536_v34 = vmax.f32 %v5562_v36, %v6140_v24 }
 0x12b   :  { %2520 = vmatpush.bf16.msra.mxu3 %v3298_v53  ;;  %v2539_v52 = vmax.f32 %v5761_v26, %v6244_v50 }
 0x12d   :  { %2482 = vmatpush.bf16.msra.mxu0 %v3110_v2 }
 0x12e   :  { %2495 = vmatpush.bf16.msra.mxu1 %v3114_v4  ;;  %2508 = vmatpush.bf16.msra.mxu2 %v3118_v5 }
 0x12f   :  { %2521 = vmatpush.bf16.msra.mxu3 %v3122_v14 }
 0x131   :  { %2483 = vmatpush.bf16.msra.mxu0 %v2934_v29  ;;  %v2228_v60 = vpop.f32.mrf.mxu0 }
 0x132   :  { %2496 = vmatpush.bf16.msra.mxu1 %v2938_v30  ;;  %2509 = vmatpush.bf16.msra.mxu2 %v2942_v31  ;;  %v2252_v53 = vpop.f32.mrf.mxu2  ;;  %v2241_v63 = vpop.f32.mrf.mxu1 }
 0x133   :  { %2522 = vmatpush.bf16.msra.mxu3 %v2946_v37  ;;  %v2265_v58 = vpop.f32.mrf.mxu3 }
 0x135   :  { %2484 = vmatpush.bf16.msra.mxu0 %v2758_v42 }
 0x136   :  { %2497 = vmatpush.bf16.msra.mxu1 %v2762_v43  ;;  %2510 = vmatpush.bf16.msra.mxu2 %v2766_v44 }
 0x137   :  { %2523 = vmatpush.bf16.msra.mxu3 %v2770_v46 }
 0x138   :  { %3867 = vmatmul.msk.bf16.vlgmr.msra.gmra.mxu0 %vm1820_vm1, %v6115_v10 }
 0x139   :  { %3868 = vmatmul.msk.bf16.vlgmr.msra.gmra.mxu1 %vm1820_vm1, %v6115_v10  ;;  %3869 = vmatmul.msk.bf16.vlgmr.msra.gmra.mxu2 %vm1820_vm1, %v6115_v10 }
 0x13a   :  { %3870 = vmatmul.msk.bf16.vlgmr.msra.gmra.mxu3 %vm1820_vm1, %v6115_v10  ;;  %v2254_v0 = vpop.f32.mrf.mxu2 }
 0x13b   :  { %v2267_v1 = vpop.f32.mrf.mxu3 }
 0x145   :  { %v2278_v3 = vpop.f32.mrf.mxu0 }
 0x148   :  { %v2291_v2 = vpop.f32.mrf.mxu1 }
 0x14c   :  { %v2304_v4 = vpop.f32.mrf.mxu2 }
 0x14d   :  { %v2280_v7 = vpop.f32.mrf.mxu0 }
 0x14f   :  { %v2317_v5 = vpop.f32.mrf.mxu3 }
 0x150   :  { %v2293_v6 = vpop.f32.mrf.mxu1 }
 0x154   :  { %v2306_v8 = vpop.f32.mrf.mxu2 }
 0x157   :  { %v2319_v12 = vpop.f32.mrf.mxu3 }
 0x15a   :  { %v2566_v41 = vpop.permute.xlu0 %2565 }
 0x161   :  { %v2330_v18 = vpop.f32.mrf.mxu0 }
 0x162   :  { %v2343_v14 = vpop.f32.mrf.mxu1 }
 0x169   :  { %v2332_v23 = vpop.f32.mrf.mxu0 }
 0x16a   :  { %v2356_v20 = vpop.f32.mrf.mxu2  ;;  %v2345_v10 = vpop.f32.mrf.mxu1 }
 0x16b   :  { %v6256_v22 = vpop.f32.mrf.mxu3 }
 0x172   :  { %v2358_v25 = vpop.f32.mrf.mxu2 }
 0x173   :  { %v2371_v29 = vpop.f32.mrf.mxu3 }
 0x17d   :  { %v6261_v33 = vpop.f32.mrf.mxu0 }
 0x17e   :  { %v2395_v30 = vpop.f32.mrf.mxu1 }
 0x17f   :  { %v2540_v31 = vmax.f32 %v2252_v53, %v2395_v30 }
 0x181   :  { %v2551_v32 = vmax.f32 %v2529_v19, %v2540_v31 }
 0x183   :  { %v2568_v44 = vadd.f32 %v2566_v41, %v2551_v32 }
 0x185   :  { %v2384_v56 = vpop.f32.mrf.mxu0 }
 0x186   :  { %v2408_v51 = vpop.f32.mrf.mxu2  ;;  %v2397_v40 = vpop.f32.mrf.mxu1 }
 0x187   :  { %v2421_v37 = vpop.f32.mrf.mxu3  ;;  %v2541_v39 = vmax.f32 %v2265_v58, %v2408_v51 }
 0x188   :  { %v2542_v61 = vmax.f32 %v2278_v3, %v2421_v37  ;;  %v2534_v3 = vmax.f32 %v5528_v21, %v6074_v48  ;;  %v2538_v37 = vmax.f32 %v5709_v62, %v6242_v47 }
 0x189   :  { %v2552_v42 = vmax.f32 %v2530_v38, %v2541_v39 }
 0x18a   :  { %v2553_v43 = vmax.f32 %v2531_v57, %v2542_v61 }
 0x18b   :  { %v2569_v46 = vadd.f32 %v2566_v41, %v2552_v42 }
 0x18c   :  { %v2570_v9 = vadd.f32 %v2566_v41, %v2553_v43 }
 0x18d   :  { %v2579_v16 = vpack.c.bf16 %v2569_v46, %v2568_v44 }
 0x18e   :  { %v2410_v19 = vpop.f32.mrf.mxu2 }
 0x18f   :  { %v2423_v53 = vpop.f32.mrf.mxu3  ;;  %2585 = vst [vmem:[%s6310_s3] sm:$0x77] %v2579_v16 }
 0x199   :  { %v2434_v59 = vpop.f32.mrf.mxu0 }
 0x19a   :  { %v2543_v58 = vmax.f32 %v2291_v2, %v2434_v59  ;;  %v2447_v60 = vpop.f32.mrf.mxu1 }
 0x19b   :  { %v2544_v0 = vmax.f32 %v2304_v4, %v2447_v60 }
 0x19c   :  { %v2554_v63 = vmax.f32 %v2532_v45, %v2543_v58 }
 0x19d   :  { %v2555_v6 = vmax.f32 %v2533_v27, %v2544_v0 }
 0x19e   :  { %v2571_v49 = vadd.f32 %v2566_v41, %v2554_v63 }
 0x19f   :  { %v2572_v23 = vadd.f32 %v2566_v41, %v2555_v6 }
 0x1a0   :  { %v2580_v57 = vpack.c.bf16 %v2571_v49, %v2570_v9 }
 0x1a1   :  { %v2436_v12 = vpop.f32.mrf.mxu0 }
 0x1a2   :  { %v2460_v1 = vpop.f32.mrf.mxu2  ;;  %2586 = vst [vmem:[%s6310_s3 + $0x8] sm:$0x77] %v2580_v57  ;;  %v2449_v2 = vpop.f32.mrf.mxu1 }
 0x1a3   :  { %v2545_v7 = vmax.f32 %v2317_v5, %v2460_v1  ;;  %v2473_v8 = vpop.f32.mrf.mxu3 }
 0x1a4   :  { %v2546_v13 = vmax.f32 %v2330_v18, %v2473_v8 }
 0x1a5   :  { %v2556_v4 = vmax.f32 %v2534_v3, %v2545_v7 }
 0x1a6   :  { %v2557_v10 = vmax.f32 %v2535_v11, %v2546_v13 }
 0x1a7   :  { %v2573_v21 = vadd.f32 %v2566_v41, %v2556_v4 }
 0x1a8   :  { %v2574_v30 = vadd.f32 %v2566_v41, %v2557_v10 }
 0x1a9   :  { %v2581_v48 = vpack.c.bf16 %v2573_v21, %v2572_v23 }
 0x1aa   :  { %v2462_v25 = vpop.f32.mrf.mxu2 }
 0x1ab   :  { %2587 = vst [vmem:[%s6310_s3 + $0x10] sm:$0x77] %v2581_v48  ;;  %v2475_v17 = vpop.f32.mrf.mxu3 }
 0x1b5   :  { %v2486_v15 = vpop.f32.mrf.mxu0 }
 0x1b6   :  { %v2547_v27 = vmax.f32 %v2343_v14, %v2486_v15  ;;  %v2499_v54 = vpop.f32.mrf.mxu1 }
 0x1b7   :  { %v2548_v5 = vmax.f32 %v2356_v20, %v2499_v54 }
 0x1b8   :  { %v2558_v18 = vmax.f32 %v2536_v34, %v2547_v27 }
 0x1b9   :  { %v2559_v29 = vmax.f32 %v2537_v35, %v2548_v5 }
 0x1ba   :  { %v2575_v31 = vadd.f32 %v2566_v41, %v2558_v18 }
 0x1bb   :  { %v2576_v35 = vadd.f32 %v2566_v41, %v2559_v29 }
 0x1bc   :  { %v2582_v32 = vpack.c.bf16 %v2575_v31, %v2574_v30  ;;  %v2512_v51 = vpop.f32.mrf.mxu2 }
 0x1bd   :  { %v2549_v38 = vmax.f32 %v6256_v22, %v2512_v51  ;;  %v2525_v39 = vpop.f32.mrf.mxu3  ;;  %v2488_v61 = vpop.f32.mrf.mxu0 }
 0x1be   :  { %2588 = vst [vmem:[%s6310_s3 + $0x18] sm:$0x77] %v2582_v32  ;;  %v2550_v36 = vmax.f32 %v6261_v33, %v2525_v39  ;;  %v2501_v24 = vpop.f32.mrf.mxu1 }
 0x1bf   :  { %v2560_v55 = vmax.f32 %v2538_v37, %v2549_v38 }
 0x1c0   :  { %v2561_v28 = vmax.f32 %v2539_v52, %v2550_v36 }
 0x1c1   :  { %v2577_v14 = vadd.f32 %v2566_v41, %v2560_v55 }
 0x1c2   :  { %v2578_v20 = vadd.f32 %v2566_v41, %v2561_v28 }
 0x1c3   :  { %v2583_v62 = vpack.c.bf16 %v2577_v14, %v2576_v35 }
 0x1c4   :  { %v2584_v47 = vpack.c.bf16 %v2578_v20, %v2578_v20  ;;  %v2514_v22 = vpop.f32.mrf.mxu2 }
 0x1c5   :  { %2589 = vst [vmem:[%s6310_s3 + $0x20] sm:$0x77] %v2583_v62  ;;  %v2527_v40 = vpop.f32.mrf.mxu3 }
 0x1c6   :  { %2590 = vst [vmem:[%s6310_s3 + $0x28] sm:$0x7] %v2584_v47 }

// kernel: critic_forward.3
= control target key start
LH: loop header
LB: loop body
LE: loop exit
PB: predicated region body
PF: predicated region fallthrough
CT: control target
= control target key end

     0   :  { %20 = vsyncpa [#allocation6], 0  ;;  %s13035_s0 = inlined_call_operand.vmem [shape: bf16[216,1024], index: 0, kind: input, shape index: {}]   ;;  %s13036_s1 = inlined_call_operand.vmem [shape: bf16[16,216], index: 1, kind: input, shape index: {}]   ;;  %s13037_s2 = inlined_call_operand.vmem [shape: f32[16,1], index: 2, kind: input, shape index: {}]   ;;  %s13038_s3 = inlined_call_operand.vmem [shape: f32[2,4], index: 3, kind: input, shape index: {}]   ;;  %s13039_s4 = inlined_call_operand.vmem [shape: bf16[2048,512], index: 4, kind: input, shape index: {}]   ;;  %s13040_s5 = inlined_call_operand.vmem [shape: f32[4,512], index: 5, kind: input, shape index: {}]   ;;  %s13041_s6 = inlined_call_operand.vmem [shape: f32[1,512], index: 6, kind: input, shape index: {}]   ;;  %s13042_s7 = inlined_call_operand.vmem [shape: f32[2,256,128], index: 7, kind: input, shape index: {}]   ;;  %s13043_s8 = inlined_call_operand.vmem [shape: f32[2,1,128], index: 8, kind: input, shape index: {}]   ;;  %s13044_s9 = inlined_call_operand.vmem [shape: f32[2,128,64], index: 9, kind: input, shape index: {}]   ;;  %s13045_s10 = inlined_call_operand.vmem [shape: f32[2,1,64], index: 10, kind: input, shape index: {}]   ;;  %s13046_s11 = inlined_call_operand.vmem [shape: f32[2,64,4], index: 11, kind: input, shape index: {}]   ;;  %s13047_s12 = inlined_call_operand.vmem [shape: f32[2,1,4], index: 12, kind: input, shape index: {}]   ;;  %s13048_s13 = inlined_call_operand.hbm [shape: f32[2,4], index: 13, kind: output, shape index: {0}]   ;;  %s13049_s14 = inlined_call_operand.hbm [shape: f32[2,4], index: 14, kind: output, shape index: {1}]  }
   0x1   :  { %21 = vsyncpa [#allocation8], 0  ;;  %v57_v0 = vld [vmem:[%s13039_s4] sm:$0xff]  ;;  %v59_v1 = vld [vmem:[%s13039_s4 + $0x8] sm:$0xff] }
   0x2   :  { %58 = vst [vmem:[#allocation2] sm:$0xff] %v57_v0  ;;  %v61_v2 = vld [vmem:[%s13039_s4 + $0x10] sm:$0xff]  ;;  %v63_v3 = vld [vmem:[%s13039_s4 + $0x18] sm:$0xff]  ;;  %v65_v4 = vld [vmem:[%s13039_s4 + $0x20] sm:$0xff] }
   0x3   :  { %60 = vst [vmem:[#allocation2 + $0x8] sm:$0xff] %v59_v1  ;;  %v67_v5 = vld [vmem:[%s13039_s4 + $0x28] sm:$0xff]  ;;  %v69_v6 = vld [vmem:[%s13039_s4 + $0x30] sm:$0xff]  ;;  %v71_v7 = vld [vmem:[%s13039_s4 + $0x38] sm:$0xff] }
   0x4   :  { %62 = vst [vmem:[#allocation2 + $0x10] sm:$0xff] %v61_v2  ;;  %v73_v8 = vld [vmem:[%s13039_s4 + $0x40] sm:$0xff]  ;;  %v75_v9 = vld [vmem:[%s13039_s4 + $0x48] sm:$0xff]  ;;  %v77_v10 = vld [vmem:[%s13039_s4 + $0x50] sm:$0xff] }
   0x5   :  { %64 = vst [vmem:[#allocation2 + $0x18] sm:$0xff] %v63_v3  ;;  %v79_v11 = vld [vmem:[%s13039_s4 + $0x58] sm:$0xff]  ;;  %v81_v12 = vld [vmem:[%s13039_s4 + $0x60] sm:$0xff]  ;;  %v83_v13 = vld [vmem:[%s13039_s4 + $0x68] sm:$0xff] }
   0x6   :  { %66 = vst [vmem:[#allocation2 + $0x20] sm:$0xff] %v65_v4  ;;  %v85_v14 = vld [vmem:[%s13039_s4 + $0x70] sm:$0xff]  ;;  %v87_v15 = vld [vmem:[%s13039_s4 + $0x78] sm:$0xff]  ;;  %v89_v16 = vld [vmem:[%s13039_s4 + $0x80] sm:$0xff] }
   0x7   :  { %68 = vst [vmem:[#allocation2 + $0x28] sm:$0xff] %v67_v5  ;;  %v91_v17 = vld [vmem:[%s13039_s4 + $0x88] sm:$0xff]  ;;  %v93_v18 = vld [vmem:[%s13039_s4 + $0x90] sm:$0xff]  ;;  %v95_v19 = vld [vmem:[%s13039_s4 + $0x98] sm:$0xff] }
   0x8   :  { %70 = vst [vmem:[#allocation2 + $0x30] sm:$0xff] %v69_v6  ;;  %v97_v20 = vld [vmem:[%s13039_s4 + $0xa0] sm:$0xff]  ;;  %v99_v21 = vld [vmem:[%s13039_s4 + $0xa8] sm:$0xff]  ;;  %v101_v22 = vld [vmem:[%s13039_s4 + $0xb0] sm:$0xff] }
   0x9   :  { %72 = vst [vmem:[#allocation2 + $0x38] sm:$0xff] %v71_v7  ;;  %v103_v23 = vld [vmem:[%s13039_s4 + $0xb8] sm:$0xff]  ;;  %v105_v24 = vld [vmem:[%s13039_s4 + $0xc0] sm:$0xff]  ;;  %v107_v25 = vld [vmem:[%s13039_s4 + $0xc8] sm:$0xff] }
   0xa   :  { %74 = vst [vmem:[#allocation2 + $0x40] sm:$0xff] %v73_v8  ;;  %v109_v26 = vld [vmem:[%s13039_s4 + $0xd0] sm:$0xff]  ;;  %v111_v27 = vld [vmem:[%s13039_s4 + $0xd8] sm:$0xff]  ;;  %v113_v28 = vld [vmem:[%s13039_s4 + $0xe0] sm:$0xff] }
   0xb   :  { %76 = vst [vmem:[#allocation2 + $0x48] sm:$0xff] %v75_v9  ;;  %v115_v29 = vld [vmem:[%s13039_s4 + $0xe8] sm:$0xff]  ;;  %v117_v30 = vld [vmem:[%s13039_s4 + $0xf0] sm:$0xff]  ;;  %v119_v31 = vld [vmem:[%s13039_s4 + $0xf8] sm:$0xff] }
   0xc   :  { %78 = vst [vmem:[#allocation2 + $0x50] sm:$0xff] %v77_v10  ;;  %v121_v32 = vld [vmem:[%s13039_s4 + $0x100] sm:$0xff]  ;;  %v123_v33 = vld [vmem:[%s13039_s4 + $0x108] sm:$0xff]  ;;  %v125_v34 = vld [vmem:[%s13039_s4 + $0x110] sm:$0xff] }
   0xd   :  { %80 = vst [vmem:[#allocation2 + $0x58] sm:$0xff] %v79_v11  ;;  %v127_v35 = vld [vmem:[%s13039_s4 + $0x118] sm:$0xff]  ;;  %v129_v36 = vld [vmem:[%s13039_s4 + $0x120] sm:$0xff]  ;;  %v131_v37 = vld [vmem:[%s13039_s4 + $0x128] sm:$0xff] }
   0xe   :  { %82 = vst [vmem:[#allocation2 + $0x60] sm:$0xff] %v81_v12  ;;  %v133_v38 = vld [vmem:[%s13039_s4 + $0x130] sm:$0xff]  ;;  %v135_v39 = vld [vmem:[%s13039_s4 + $0x138] sm:$0xff]  ;;  %v137_v40 = vld [vmem:[%s13039_s4 + $0x140] sm:$0xff] }
   0xf   :  { %84 = vst [vmem:[#allocation2 + $0x68] sm:$0xff] %v83_v13  ;;  %v139_v41 = vld [vmem:[%s13039_s4 + $0x148] sm:$0xff]  ;;  %v141_v42 = vld [vmem:[%s13039_s4 + $0x150] sm:$0xff]  ;;  %v143_v43 = vld [vmem:[%s13039_s4 + $0x158] sm:$0xff] }
  0x10   :  { %86 = vst [vmem:[#allocation2 + $0x70] sm:$0xff] %v85_v14  ;;  %v145_v44 = vld [vmem:[%s13039_s4 + $0x160] sm:$0xff]  ;;  %v147_v45 = vld [vmem:[%s13039_s4 + $0x168] sm:$0xff]  ;;  %v149_v46 = vld [vmem:[%s13039_s4 + $0x170] sm:$0xff] }
  0x11   :  { %88 = vst [vmem:[#allocation2 + $0x78] sm:$0xff] %v87_v15  ;;  %v151_v47 = vld [vmem:[%s13039_s4 + $0x178] sm:$0xff]  ;;  %v153_v48 = vld [vmem:[%s13039_s4 + $0x180] sm:$0xff]  ;;  %v155_v49 = vld [vmem:[%s13039_s4 + $0x188] sm:$0xff] }
  0x12   :  { %90 = vst [vmem:[#allocation2 + $0x80] sm:$0xff] %v89_v16  ;;  %v157_v50 = vld [vmem:[%s13039_s4 + $0x190] sm:$0xff]  ;;  %v159_v51 = vld [vmem:[%s13039_s4 + $0x198] sm:$0xff]  ;;  %v161_v52 = vld [vmem:[%s13039_s4 + $0x1a0] sm:$0xff] }
  0x13   :  { %92 = vst [vmem:[#allocation2 + $0x88] sm:$0xff] %v91_v17  ;;  %v163_v53 = vld [vmem:[%s13039_s4 + $0x1a8] sm:$0xff]  ;;  %v165_v54 = vld [vmem:[%s13039_s4 + $0x1b0] sm:$0xff]  ;;  %v167_v55 = vld [vmem:[%s13039_s4 + $0x1b8] sm:$0xff] }
  0x14   :  { %94 = vst [vmem:[#allocation2 + $0x90] sm:$0xff] %v93_v18  ;;  %v169_v56 = vld [vmem:[%s13039_s4 + $0x1c0] sm:$0xff]  ;;  %v171_v57 = vld [vmem:[%s13039_s4 + $0x1c8] sm:$0xff]  ;;  %v173_v58 = vld [vmem:[%s13039_s4 + $0x1d0] sm:$0xff] }
  0x15   :  { %96 = vst [vmem:[#allocation2 + $0x98] sm:$0xff] %v95_v19  ;;  %v175_v59 = vld [vmem:[%s13039_s4 + $0x1d8] sm:$0xff]  ;;  %v177_v60 = vld [vmem:[%s13039_s4 + $0x1e0] sm:$0xff]  ;;  %v179_v61 = vld [vmem:[%s13039_s4 + $0x1e8] sm:$0xff] }
  0x16   :  { %98 = vst [vmem:[#allocation2 + $0xa0] sm:$0xff] %v97_v20  ;;  %v181_v62 = vld [vmem:[%s13039_s4 + $0x1f0] sm:$0xff]  ;;  %v183_v63 = vld [vmem:[%s13039_s4 + $0x1f8] sm:$0xff]  ;;  %v185_v0 = vld [vmem:[%s13039_s4 + $0x200] sm:$0xff] }
  0x17   :  { %100 = vst [vmem:[#allocation2 + $0xa8] sm:$0xff] %v99_v21  ;;  %v187_v1 = vld [vmem:[%s13039_s4 + $0x208] sm:$0xff]  ;;  %v189_v2 = vld [vmem:[%s13039_s4 + $0x210] sm:$0xff]  ;;  %v191_v3 = vld [vmem:[%s13039_s4 + $0x218] sm:$0xff] }
  0x18   :  { %102 = vst [vmem:[#allocation2 + $0xb0] sm:$0xff] %v101_v22  ;;  %v193_v4 = vld [vmem:[%s13039_s4 + $0x220] sm:$0xff]  ;;  %v195_v5 = vld [vmem:[%s13039_s4 + $0x228] sm:$0xff]  ;;  %v197_v6 = vld [vmem:[%s13039_s4 + $0x230] sm:$0xff] }
  0x19   :  { %104 = vst [vmem:[#allocation2 + $0xb8] sm:$0xff] %v103_v23  ;;  %v199_v7 = vld [vmem:[%s13039_s4 + $0x238] sm:$0xff]  ;;  %v201_v8 = vld [vmem:[%s13039_s4 + $0x240] sm:$0xff]  ;;  %v203_v9 = vld [vmem:[%s13039_s4 + $0x248] sm:$0xff] }
  0x1a   :  { %106 = vst [vmem:[#allocation2 + $0xc0] sm:$0xff] %v105_v24  ;;  %v205_v10 = vld [vmem:[%s13039_s4 + $0x250] sm:$0xff]  ;;  %v207_v11 = vld [vmem:[%s13039_s4 + $0x258] sm:$0xff]  ;;  %v209_v12 = vld [vmem:[%s13039_s4 + $0x260] sm:$0xff] }
  0x1b   :  { %108 = vst [vmem:[#allocation2 + $0xc8] sm:$0xff] %v107_v25  ;;  %v211_v13 = vld [vmem:[%s13039_s4 + $0x268] sm:$0xff]  ;;  %v213_v14 = vld [vmem:[%s13039_s4 + $0x270] sm:$0xff]  ;;  %v215_v15 = vld [vmem:[%s13039_s4 + $0x278] sm:$0xff] }
  0x1c   :  { %110 = vst [vmem:[#allocation2 + $0xd0] sm:$0xff] %v109_v26  ;;  %v217_v16 = vld [vmem:[%s13039_s4 + $0x280] sm:$0xff]  ;;  %v219_v17 = vld [vmem:[%s13039_s4 + $0x288] sm:$0xff]  ;;  %v221_v18 = vld [vmem:[%s13039_s4 + $0x290] sm:$0xff] }
  0x1d   :  { %112 = vst [vmem:[#allocation2 + $0xd8] sm:$0xff] %v111_v27  ;;  %v223_v19 = vld [vmem:[%s13039_s4 + $0x298] sm:$0xff]  ;;  %v225_v20 = vld [vmem:[%s13039_s4 + $0x2a0] sm:$0xff]  ;;  %v227_v21 = vld [vmem:[%s13039_s4 + $0x2a8] sm:$0xff] }
  0x1e   :  { %114 = vst [vmem:[#allocation2 + $0xe0] sm:$0xff] %v113_v28  ;;  %v229_v22 = vld [vmem:[%s13039_s4 + $0x2b0] sm:$0xff]  ;;  %v231_v23 = vld [vmem:[%s13039_s4 + $0x2b8] sm:$0xff]  ;;  %v233_v24 = vld [vmem:[%s13039_s4 + $0x2c0] sm:$0xff] }
  0x1f   :  { %116 = vst [vmem:[#allocation2 + $0xe8] sm:$0xff] %v115_v29  ;;  %v235_v25 = vld [vmem:[%s13039_s4 + $0x2c8] sm:$0xff]  ;;  %v237_v26 = vld [vmem:[%s13039_s4 + $0x2d0] sm:$0xff]  ;;  %v239_v27 = vld [vmem:[%s13039_s4 + $0x2d8] sm:$0xff] }
  0x20   :  { %118 = vst [vmem:[#allocation2 + $0xf0] sm:$0xff] %v117_v30  ;;  %v241_v28 = vld [vmem:[%s13039_s4 + $0x2e0] sm:$0xff]  ;;  %v243_v29 = vld [vmem:[%s13039_s4 + $0x2e8] sm:$0xff]  ;;  %v245_v30 = vld [vmem:[%s13039_s4 + $0x2f0] sm:$0xff] }
  0x21   :  { %120 = vst [vmem:[#allocation2 + $0xf8] sm:$0xff] %v119_v31  ;;  %v247_v31 = vld [vmem:[%s13039_s4 + $0x2f8] sm:$0xff] }
  0x22   :  { %122 = vst [vmem:[#allocation2 + $0x100] sm:$0xff] %v121_v32  ;;  %v249_v32 = vld [vmem:[%s13039_s4 + $0x300] sm:$0xff] }
  0x23   :  { %124 = vst [vmem:[#allocation2 + $0x108] sm:$0xff] %v123_v33  ;;  %v251_v33 = vld [vmem:[%s13039_s4 + $0x308] sm:$0xff] }
  0x24   :  { %126 = vst [vmem:[#allocation2 + $0x110] sm:$0xff] %v125_v34  ;;  %v253_v34 = vld [vmem:[%s13039_s4 + $0x310] sm:$0xff] }
  0x25   :  { %128 = vst [vmem:[#allocation2 + $0x118] sm:$0xff] %v127_v35  ;;  %v255_v35 = vld [vmem:[%s13039_s4 + $0x318] sm:$0xff] }
  0x26   :  { %130 = vst [vmem:[#allocation2 + $0x120] sm:$0xff] %v129_v36  ;;  %v257_v36 = vld [vmem:[%s13039_s4 + $0x320] sm:$0xff] }
  0x27   :  { %132 = vst [vmem:[#allocation2 + $0x128] sm:$0xff] %v131_v37  ;;  %v259_v37 = vld [vmem:[%s13039_s4 + $0x328] sm:$0xff] }
  0x28   :  { %134 = vst [vmem:[#allocation2 + $0x130] sm:$0xff] %v133_v38  ;;  %v261_v38 = vld [vmem:[%s13039_s4 + $0x330] sm:$0xff] }
  0x29   :  { %136 = vst [vmem:[#allocation2 + $0x138] sm:$0xff] %v135_v39  ;;  %v263_v39 = vld [vmem:[%s13039_s4 + $0x338] sm:$0xff] }
  0x2a   :  { %138 = vst [vmem:[#allocation2 + $0x140] sm:$0xff] %v137_v40  ;;  %v265_v40 = vld [vmem:[%s13039_s4 + $0x340] sm:$0xff] }
  0x2b   :  { %140 = vst [vmem:[#allocation2 + $0x148] sm:$0xff] %v139_v41  ;;  %v267_v41 = vld [vmem:[%s13039_s4 + $0x348] sm:$0xff] }
  0x2c   :  { %142 = vst [vmem:[#allocation2 + $0x150] sm:$0xff] %v141_v42  ;;  %v269_v42 = vld [vmem:[%s13039_s4 + $0x350] sm:$0xff] }
  0x2d   :  { %144 = vst [vmem:[#allocation2 + $0x158] sm:$0xff] %v143_v43  ;;  %v271_v43 = vld [vmem:[%s13039_s4 + $0x358] sm:$0xff] }
  0x2e   :  { %146 = vst [vmem:[#allocation2 + $0x160] sm:$0xff] %v145_v44  ;;  %v273_v44 = vld [vmem:[%s13039_s4 + $0x360] sm:$0xff] }
  0x2f   :  { %148 = vst [vmem:[#allocation2 + $0x168] sm:$0xff] %v147_v45  ;;  %v275_v45 = vld [vmem:[%s13039_s4 + $0x368] sm:$0xff] }
  0x30   :  { %150 = vst [vmem:[#allocation2 + $0x170] sm:$0xff] %v149_v46  ;;  %v277_v46 = vld [vmem:[%s13039_s4 + $0x370] sm:$0xff] }
  0x31   :  { %152 = vst [vmem:[#allocation2 + $0x178] sm:$0xff] %v151_v47  ;;  %v279_v47 = vld [vmem:[%s13039_s4 + $0x378] sm:$0xff] }
  0x32   :  { %154 = vst [vmem:[#allocation2 + $0x180] sm:$0xff] %v153_v48  ;;  %v281_v48 = vld [vmem:[%s13039_s4 + $0x380] sm:$0xff] }
  0x33   :  { %156 = vst [vmem:[#allocation2 + $0x188] sm:$0xff] %v155_v49  ;;  %v283_v49 = vld [vmem:[%s13039_s4 + $0x388] sm:$0xff] }
  0x34   :  { %158 = vst [vmem:[#allocation2 + $0x190] sm:$0xff] %v157_v50  ;;  %v285_v50 = vld [vmem:[%s13039_s4 + $0x390] sm:$0xff] }
  0x35   :  { %160 = vst [vmem:[#allocation2 + $0x198] sm:$0xff] %v159_v51  ;;  %v287_v51 = vld [vmem:[%s13039_s4 + $0x398] sm:$0xff] }
  0x36   :  { %162 = vst [vmem:[#allocation2 + $0x1a0] sm:$0xff] %v161_v52  ;;  %v289_v52 = vld [vmem:[%s13039_s4 + $0x3a0] sm:$0xff] }
  0x37   :  { %164 = vst [vmem:[#allocation2 + $0x1a8] sm:$0xff] %v163_v53  ;;  %v291_v53 = vld [vmem:[%s13039_s4 + $0x3a8] sm:$0xff] }
  0x38   :  { %166 = vst [vmem:[#allocation2 + $0x1b0] sm:$0xff] %v165_v54  ;;  %v293_v54 = vld [vmem:[%s13039_s4 + $0x3b0] sm:$0xff] }
  0x39   :  { %168 = vst [vmem:[#allocation2 + $0x1b8] sm:$0xff] %v167_v55  ;;  %v295_v55 = vld [vmem:[%s13039_s4 + $0x3b8] sm:$0xff] }
  0x3a   :  { %170 = vst [vmem:[#allocation2 + $0x1c0] sm:$0xff] %v169_v56  ;;  %v297_v56 = vld [vmem:[%s13039_s4 + $0x3c0] sm:$0xff] }
  0x3b   :  { %172 = vst [vmem:[#allocation2 + $0x1c8] sm:$0xff] %v171_v57  ;;  %v299_v57 = vld [vmem:[%s13039_s4 + $0x3c8] sm:$0xff] }
  0x3c   :  { %174 = vst [vmem:[#allocation2 + $0x1d0] sm:$0xff] %v173_v58  ;;  %v301_v58 = vld [vmem:[%s13039_s4 + $0x3d0] sm:$0xff] }
  0x3d   :  { %176 = vst [vmem:[#allocation2 + $0x1d8] sm:$0xff] %v175_v59  ;;  %v303_v59 = vld [vmem:[%s13039_s4 + $0x3d8] sm:$0xff] }
  0x3e   :  { %178 = vst [vmem:[#allocation2 + $0x1e0] sm:$0xff] %v177_v60  ;;  %v305_v60 = vld [vmem:[%s13039_s4 + $0x3e0] sm:$0xff] }
  0x3f   :  { %180 = vst [vmem:[#allocation2 + $0x1e8] sm:$0xff] %v179_v61  ;;  %v307_v61 = vld [vmem:[%s13039_s4 + $0x3e8] sm:$0xff] }
  0x40   :  { %182 = vst [vmem:[#allocation2 + $0x1f0] sm:$0xff] %v181_v62  ;;  %v309_v62 = vld [vmem:[%s13039_s4 + $0x3f0] sm:$0xff] }
  0x41   :  { %184 = vst [vmem:[#allocation2 + $0x1f8] sm:$0xff] %v183_v63  ;;  %v311_v63 = vld [vmem:[%s13039_s4 + $0x3f8] sm:$0xff] }
  0x42   :  { %186 = vst [vmem:[#allocation2 + $0x200] sm:$0xff] %v185_v0  ;;  %v313_v0 = vld [vmem:[%s13039_s4 + $0x400] sm:$0xff] }
  0x43   :  { %188 = vst [vmem:[#allocation2 + $0x208] sm:$0xff] %v187_v1  ;;  %v315_v1 = vld [vmem:[%s13039_s4 + $0x408] sm:$0xff] }
  0x44   :  { %190 = vst [vmem:[#allocation2 + $0x210] sm:$0xff] %v189_v2  ;;  %v317_v2 = vld [vmem:[%s13039_s4 + $0x410] sm:$0xff] }
  0x45   :  { %192 = vst [vmem:[#allocation2 + $0x218] sm:$0xff] %v191_v3  ;;  %v319_v3 = vld [vmem:[%s13039_s4 + $0x418] sm:$0xff] }
  0x46   :  { %194 = vst [vmem:[#allocation2 + $0x220] sm:$0xff] %v193_v4  ;;  %v321_v4 = vld [vmem:[%s13039_s4 + $0x420] sm:$0xff] }
  0x47   :  { %196 = vst [vmem:[#allocation2 + $0x228] sm:$0xff] %v195_v5  ;;  %v323_v5 = vld [vmem:[%s13039_s4 + $0x428] sm:$0xff] }
  0x48   :  { %198 = vst [vmem:[#allocation2 + $0x230] sm:$0xff] %v197_v6  ;;  %v325_v6 = vld [vmem:[%s13039_s4 + $0x430] sm:$0xff] }
  0x49   :  { %200 = vst [vmem:[#allocation2 + $0x238] sm:$0xff] %v199_v7  ;;  %v327_v7 = vld [vmem:[%s13039_s4 + $0x438] sm:$0xff] }
  0x4a   :  { %202 = vst [vmem:[#allocation2 + $0x240] sm:$0xff] %v201_v8  ;;  %v329_v8 = vld [vmem:[%s13039_s4 + $0x440] sm:$0xff] }
  0x4b   :  { %204 = vst [vmem:[#allocation2 + $0x248] sm:$0xff] %v203_v9  ;;  %v331_v9 = vld [vmem:[%s13039_s4 + $0x448] sm:$0xff] }
  0x4c   :  { %206 = vst [vmem:[#allocation2 + $0x250] sm:$0xff] %v205_v10  ;;  %v333_v10 = vld [vmem:[%s13039_s4 + $0x450] sm:$0xff] }
  0x4d   :  { %208 = vst [vmem:[#allocation2 + $0x258] sm:$0xff] %v207_v11  ;;  %v335_v11 = vld [vmem:[%s13039_s4 + $0x458] sm:$0xff] }
  0x4e   :  { %210 = vst [vmem:[#allocation2 + $0x260] sm:$0xff] %v209_v12  ;;  %v337_v12 = vld [vmem:[%s13039_s4 + $0x460] sm:$0xff] }
  0x4f   :  { %212 = vst [vmem:[#allocation2 + $0x268] sm:$0xff] %v211_v13  ;;  %v339_v13 = vld [vmem:[%s13039_s4 + $0x468] sm:$0xff] }
  0x50   :  { %214 = vst [vmem:[#allocation2 + $0x270] sm:$0xff] %v213_v14  ;;  %v341_v14 = vld [vmem:[%s13039_s4 + $0x470] sm:$0xff] }
  0x51   :  { %216 = vst [vmem:[#allocation2 + $0x278] sm:$0xff] %v215_v15  ;;  %v343_v15 = vld [vmem:[%s13039_s4 + $0x478] sm:$0xff] }
  0x52   :  { %218 = vst [vmem:[#allocation2 + $0x280] sm:$0xff] %v217_v16  ;;  %v345_v16 = vld [vmem:[%s13039_s4 + $0x480] sm:$0xff] }
  0x53   :  { %220 = vst [vmem:[#allocation2 + $0x288] sm:$0xff] %v219_v17  ;;  %v347_v17 = vld [vmem:[%s13039_s4 + $0x488] sm:$0xff] }
  0x54   :  { %222 = vst [vmem:[#allocation2 + $0x290] sm:$0xff] %v221_v18  ;;  %v349_v18 = vld [vmem:[%s13039_s4 + $0x490] sm:$0xff] }
  0x55   :  { %224 = vst [vmem:[#allocation2 + $0x298] sm:$0xff] %v223_v19  ;;  %v351_v19 = vld [vmem:[%s13039_s4 + $0x498] sm:$0xff] }
  0x56   :  { %226 = vst [vmem:[#allocation2 + $0x2a0] sm:$0xff] %v225_v20  ;;  %v353_v20 = vld [vmem:[%s13039_s4 + $0x4a0] sm:$0xff] }
  0x57   :  { %228 = vst [vmem:[#allocation2 + $0x2a8] sm:$0xff] %v227_v21  ;;  %v355_v21 = vld [vmem:[%s13039_s4 + $0x4a8] sm:$0xff] }
  0x58   :  { %230 = vst [vmem:[#allocation2 + $0x2b0] sm:$0xff] %v229_v22  ;;  %v357_v22 = vld [vmem:[%s13039_s4 + $0x4b0] sm:$0xff] }
  0x59   :  { %232 = vst [vmem:[#allocation2 + $0x2b8] sm:$0xff] %v231_v23  ;;  %v359_v23 = vld [vmem:[%s13039_s4 + $0x4b8] sm:$0xff] }
  0x5a   :  { %234 = vst [vmem:[#allocation2 + $0x2c0] sm:$0xff] %v233_v24  ;;  %v361_v24 = vld [vmem:[%s13039_s4 + $0x4c0] sm:$0xff] }
  0x5b   :  { %236 = vst [vmem:[#allocation2 + $0x2c8] sm:$0xff] %v235_v25  ;;  %v363_v25 = vld [vmem:[%s13039_s4 + $0x4c8] sm:$0xff] }
  0x5c   :  { %238 = vst [vmem:[#allocation2 + $0x2d0] sm:$0xff] %v237_v26  ;;  %v365_v26 = vld [vmem:[%s13039_s4 + $0x4d0] sm:$0xff] }
  0x5d   :  { %240 = vst [vmem:[#allocation2 + $0x2d8] sm:$0xff] %v239_v27  ;;  %v367_v27 = vld [vmem:[%s13039_s4 + $0x4d8] sm:$0xff] }
  0x5e   :  { %242 = vst [vmem:[#allocation2 + $0x2e0] sm:$0xff] %v241_v28  ;;  %v369_v28 = vld [vmem:[%s13039_s4 + $0x4e0] sm:$0xff] }
  0x5f   :  { %244 = vst [vmem:[#allocation2 + $0x2e8] sm:$0xff] %v243_v29  ;;  %v371_v29 = vld [vmem:[%s13039_s4 + $0x4e8] sm:$0xff] }
  0x60   :  { %246 = vst [vmem:[#allocation2 + $0x2f0] sm:$0xff] %v245_v30  ;;  %v373_v30 = vld [vmem:[%s13039_s4 + $0x4f0] sm:$0xff] }
  0x61   :  { %248 = vst [vmem:[#allocation2 + $0x2f8] sm:$0xff] %v247_v31  ;;  %v375_v31 = vld [vmem:[%s13039_s4 + $0x4f8] sm:$0xff] }
  0x62   :  { %250 = vst [vmem:[#allocation2 + $0x300] sm:$0xff] %v249_v32  ;;  %v377_v32 = vld [vmem:[%s13039_s4 + $0x500] sm:$0xff] }
  0x63   :  { %252 = vst [vmem:[#allocation2 + $0x308] sm:$0xff] %v251_v33  ;;  %v379_v33 = vld [vmem:[%s13039_s4 + $0x508] sm:$0xff] }
  0x64   :  { %254 = vst [vmem:[#allocation2 + $0x310] sm:$0xff] %v253_v34  ;;  %v381_v34 = vld [vmem:[%s13039_s4 + $0x510] sm:$0xff] }
  0x65   :  { %256 = vst [vmem:[#allocation2 + $0x318] sm:$0xff] %v255_v35  ;;  %v383_v35 = vld [vmem:[%s13039_s4 + $0x518] sm:$0xff] }
  0x66   :  { %258 = vst [vmem:[#allocation2 + $0x320] sm:$0xff] %v257_v36  ;;  %v385_v36 = vld [vmem:[%s13039_s4 + $0x520] sm:$0xff] }
  0x67   :  { %260 = vst [vmem:[#allocation2 + $0x328] sm:$0xff] %v259_v37  ;;  %v387_v37 = vld [vmem:[%s13039_s4 + $0x528] sm:$0xff] }
  0x68   :  { %262 = vst [vmem:[#allocation2 + $0x330] sm:$0xff] %v261_v38  ;;  %v389_v38 = vld [vmem:[%s13039_s4 + $0x530] sm:$0xff] }
  0x69   :  { %264 = vst [vmem:[#allocation2 + $0x338] sm:$0xff] %v263_v39  ;;  %v391_v39 = vld [vmem:[%s13039_s4 + $0x538] sm:$0xff] }
  0x6a   :  { %266 = vst [vmem:[#allocation2 + $0x340] sm:$0xff] %v265_v40  ;;  %v393_v40 = vld [vmem:[%s13039_s4 + $0x540] sm:$0xff] }
  0x6b   :  { %268 = vst [vmem:[#allocation2 + $0x348] sm:$0xff] %v267_v41  ;;  %v395_v41 = vld [vmem:[%s13039_s4 + $0x548] sm:$0xff] }
  0x6c   :  { %270 = vst [vmem:[#allocation2 + $0x350] sm:$0xff] %v269_v42  ;;  %v397_v42 = vld [vmem:[%s13039_s4 + $0x550] sm:$0xff] }
  0x6d   :  { %272 = vst [vmem:[#allocation2 + $0x358] sm:$0xff] %v271_v43  ;;  %v399_v43 = vld [vmem:[%s13039_s4 + $0x558] sm:$0xff] }
  0x6e   :  { %274 = vst [vmem:[#allocation2 + $0x360] sm:$0xff] %v273_v44  ;;  %v401_v44 = vld [vmem:[%s13039_s4 + $0x560] sm:$0xff] }
  0x6f   :  { %276 = vst [vmem:[#allocation2 + $0x368] sm:$0xff] %v275_v45  ;;  %v403_v45 = vld [vmem:[%s13039_s4 + $0x568] sm:$0xff] }
  0x70   :  { %278 = vst [vmem:[#allocation2 + $0x370] sm:$0xff] %v277_v46  ;;  %v405_v46 = vld [vmem:[%s13039_s4 + $0x570] sm:$0xff] }
  0x71   :  { %280 = vst [vmem:[#allocation2 + $0x378] sm:$0xff] %v279_v47  ;;  %v407_v47 = vld [vmem:[%s13039_s4 + $0x578] sm:$0xff] }
  0x72   :  { %282 = vst [vmem:[#allocation2 + $0x380] sm:$0xff] %v281_v48  ;;  %v409_v48 = vld [vmem:[%s13039_s4 + $0x580] sm:$0xff] }
  0x73   :  { %284 = vst [vmem:[#allocation2 + $0x388] sm:$0xff] %v283_v49  ;;  %v411_v49 = vld [vmem:[%s13039_s4 + $0x588] sm:$0xff] }
  0x74   :  { %286 = vst [vmem:[#allocation2 + $0x390] sm:$0xff] %v285_v50  ;;  %v413_v50 = vld [vmem:[%s13039_s4 + $0x590] sm:$0xff] }
  0x75   :  { %288 = vst [vmem:[#allocation2 + $0x398] sm:$0xff] %v287_v51  ;;  %v415_v51 = vld [vmem:[%s13039_s4 + $0x598] sm:$0xff] }
  0x76   :  { %290 = vst [vmem:[#allocation2 + $0x3a0] sm:$0xff] %v289_v52  ;;  %v417_v52 = vld [vmem:[%s13039_s4 + $0x5a0] sm:$0xff] }
  0x77   :  { %292 = vst [vmem:[#allocation2 + $0x3a8] sm:$0xff] %v291_v53  ;;  %v419_v53 = vld [vmem:[%s13039_s4 + $0x5a8] sm:$0xff] }
  0x78   :  { %294 = vst [vmem:[#allocation2 + $0x3b0] sm:$0xff] %v293_v54  ;;  %v421_v54 = vld [vmem:[%s13039_s4 + $0x5b0] sm:$0xff] }
  0x79   :  { %296 = vst [vmem:[#allocation2 + $0x3b8] sm:$0xff] %v295_v55  ;;  %v423_v55 = vld [vmem:[%s13039_s4 + $0x5b8] sm:$0xff] }
  0x7a   :  { %298 = vst [vmem:[#allocation2 + $0x3c0] sm:$0xff] %v297_v56  ;;  %v425_v56 = vld [vmem:[%s13039_s4 + $0x5c0] sm:$0xff] }
  0x7b   :  { %300 = vst [vmem:[#allocation2 + $0x3c8] sm:$0xff] %v299_v57  ;;  %v427_v57 = vld [vmem:[%s13039_s4 + $0x5c8] sm:$0xff] }
  0x7c   :  { %302 = vst [vmem:[#allocation2 + $0x3d0] sm:$0xff] %v301_v58  ;;  %v429_v58 = vld [vmem:[%s13039_s4 + $0x5d0] sm:$0xff] }
  0x7d   :  { %304 = vst [vmem:[#allocation2 + $0x3d8] sm:$0xff] %v303_v59  ;;  %v431_v59 = vld [vmem:[%s13039_s4 + $0x5d8] sm:$0xff] }
  0x7e   :  { %306 = vst [vmem:[#allocation2 + $0x3e0] sm:$0xff] %v305_v60  ;;  %v433_v60 = vld [vmem:[%s13039_s4 + $0x5e0] sm:$0xff] }
  0x7f   :  { %308 = vst [vmem:[#allocation2 + $0x3e8] sm:$0xff] %v307_v61  ;;  %v435_v61 = vld [vmem:[%s13039_s4 + $0x5e8] sm:$0xff] }
  0x80   :  { %310 = vst [vmem:[#allocation2 + $0x3f0] sm:$0xff] %v309_v62  ;;  %v437_v62 = vld [vmem:[%s13039_s4 + $0x5f0] sm:$0xff] }
  0x81   :  { %312 = vst [vmem:[#allocation2 + $0x3f8] sm:$0xff] %v311_v63  ;;  %v439_v63 = vld [vmem:[%s13039_s4 + $0x5f8] sm:$0xff] }
  0x82   :  { %314 = vst [vmem:[#allocation2 + $0x400] sm:$0xff] %v313_v0  ;;  %v441_v0 = vld [vmem:[%s13039_s4 + $0x600] sm:$0xff] }
  0x83   :  { %316 = vst [vmem:[#allocation2 + $0x408] sm:$0xff] %v315_v1  ;;  %v443_v1 = vld [vmem:[%s13039_s4 + $0x608] sm:$0xff] }
  0x84   :  { %318 = vst [vmem:[#allocation2 + $0x410] sm:$0xff] %v317_v2  ;;  %v445_v2 = vld [vmem:[%s13039_s4 + $0x610] sm:$0xff] }
  0x85   :  { %320 = vst [vmem:[#allocation2 + $0x418] sm:$0xff] %v319_v3  ;;  %v447_v3 = vld [vmem:[%s13039_s4 + $0x618] sm:$0xff] }
  0x86   :  { %322 = vst [vmem:[#allocation2 + $0x420] sm:$0xff] %v321_v4  ;;  %v449_v4 = vld [vmem:[%s13039_s4 + $0x620] sm:$0xff] }
  0x87   :  { %324 = vst [vmem:[#allocation2 + $0x428] sm:$0xff] %v323_v5  ;;  %v451_v5 = vld [vmem:[%s13039_s4 + $0x628] sm:$0xff] }
  0x88   :  { %326 = vst [vmem:[#allocation2 + $0x430] sm:$0xff] %v325_v6  ;;  %v453_v6 = vld [vmem:[%s13039_s4 + $0x630] sm:$0xff] }
  0x89   :  { %328 = vst [vmem:[#allocation2 + $0x438] sm:$0xff] %v327_v7  ;;  %v455_v7 = vld [vmem:[%s13039_s4 + $0x638] sm:$0xff] }
  0x8a   :  { %330 = vst [vmem:[#allocation2 + $0x440] sm:$0xff] %v329_v8  ;;  %v457_v8 = vld [vmem:[%s13039_s4 + $0x640] sm:$0xff] }
  0x8b   :  { %332 = vst [vmem:[#allocation2 + $0x448] sm:$0xff] %v331_v9  ;;  %v459_v9 = vld [vmem:[%s13039_s4 + $0x648] sm:$0xff] }
  0x8c   :  { %334 = vst [vmem:[#allocation2 + $0x450] sm:$0xff] %v333_v10  ;;  %v461_v10 = vld [vmem:[%s13039_s4 + $0x650] sm:$0xff] }
  0x8d   :  { %336 = vst [vmem:[#allocation2 + $0x458] sm:$0xff] %v335_v11  ;;  %v463_v11 = vld [vmem:[%s13039_s4 + $0x658] sm:$0xff] }
  0x8e   :  { %338 = vst [vmem:[#allocation2 + $0x460] sm:$0xff] %v337_v12  ;;  %v465_v12 = vld [vmem:[%s13039_s4 + $0x660] sm:$0xff] }
  0x8f   :  { %340 = vst [vmem:[#allocation2 + $0x468] sm:$0xff] %v339_v13  ;;  %v467_v13 = vld [vmem:[%s13039_s4 + $0x668] sm:$0xff] }
  0x90   :  { %342 = vst [vmem:[#allocation2 + $0x470] sm:$0xff] %v341_v14  ;;  %v469_v14 = vld [vmem:[%s13039_s4 + $0x670] sm:$0xff] }
  0x91   :  { %344 = vst [vmem:[#allocation2 + $0x478] sm:$0xff] %v343_v15  ;;  %v471_v15 = vld [vmem:[%s13039_s4 + $0x678] sm:$0xff] }
  0x92   :  { %346 = vst [vmem:[#allocation2 + $0x480] sm:$0xff] %v345_v16  ;;  %v473_v16 = vld [vmem:[%s13039_s4 + $0x680] sm:$0xff] }
  0x93   :  { %348 = vst [vmem:[#allocation2 + $0x488] sm:$0xff] %v347_v17  ;;  %v475_v17 = vld [vmem:[%s13039_s4 + $0x688] sm:$0xff] }
  0x94   :  { %350 = vst [vmem:[#allocation2 + $0x490] sm:$0xff] %v349_v18  ;;  %v477_v18 = vld [vmem:[%s13039_s4 + $0x690] sm:$0xff] }
  0x95   :  { %352 = vst [vmem:[#allocation2 + $0x498] sm:$0xff] %v351_v19  ;;  %v479_v19 = vld [vmem:[%s13039_s4 + $0x698] sm:$0xff] }
  0x96   :  { %354 = vst [vmem:[#allocation2 + $0x4a0] sm:$0xff] %v353_v20  ;;  %v481_v20 = vld [vmem:[%s13039_s4 + $0x6a0] sm:$0xff] }
  0x97   :  { %356 = vst [vmem:[#allocation2 + $0x4a8] sm:$0xff] %v355_v21  ;;  %v483_v21 = vld [vmem:[%s13039_s4 + $0x6a8] sm:$0xff] }
  0x98   :  { %358 = vst [vmem:[#allocation2 + $0x4b0] sm:$0xff] %v357_v22  ;;  %v485_v22 = vld [vmem:[%s13039_s4 + $0x6b0] sm:$0xff] }
  0x99   :  { %360 = vst [vmem:[#allocation2 + $0x4b8] sm:$0xff] %v359_v23  ;;  %v487_v23 = vld [vmem:[%s13039_s4 + $0x6b8] sm:$0xff] }
  0x9a   :  { %362 = vst [vmem:[#allocation2 + $0x4c0] sm:$0xff] %v361_v24  ;;  %v489_v24 = vld [vmem:[%s13039_s4 + $0x6c0] sm:$0xff] }
  0x9b   :  { %364 = vst [vmem:[#allocation2 + $0x4c8] sm:$0xff] %v363_v25  ;;  %v491_v25 = vld [vmem:[%s13039_s4 + $0x6c8] sm:$0xff] }
  0x9c   :  { %366 = vst [vmem:[#allocation2 + $0x4d0] sm:$0xff] %v365_v26  ;;  %v493_v26 = vld [vmem:[%s13039_s4 + $0x6d0] sm:$0xff] }
  0x9d   :  { %368 = vst [vmem:[#allocation2 + $0x4d8] sm:$0xff] %v367_v27  ;;  %v495_v27 = vld [vmem:[%s13039_s4 + $0x6d8] sm:$0xff] }
  0x9e   :  { %370 = vst [vmem:[#allocation2 + $0x4e0] sm:$0xff] %v369_v28  ;;  %v497_v28 = vld [vmem:[%s13039_s4 + $0x6e0] sm:$0xff] }
  0x9f   :  { %372 = vst [vmem:[#allocation2 + $0x4e8] sm:$0xff] %v371_v29  ;;  %v499_v29 = vld [vmem:[%s13039_s4 + $0x6e8] sm:$0xff] }
  0xa0   :  { %374 = vst [vmem:[#allocation2 + $0x4f0] sm:$0xff] %v373_v30  ;;  %v501_v30 = vld [vmem:[%s13039_s4 + $0x6f0] sm:$0xff] }
  0xa1   :  { %376 = vst [vmem:[#allocation2 + $0x4f8] sm:$0xff] %v375_v31  ;;  %v503_v31 = vld [vmem:[%s13039_s4 + $0x6f8] sm:$0xff] }
  0xa2   :  { %378 = vst [vmem:[#allocation2 + $0x500] sm:$0xff] %v377_v32  ;;  %v505_v32 = vld [vmem:[%s13039_s4 + $0x700] sm:$0xff] }
  0xa3   :  { %380 = vst [vmem:[#allocation2 + $0x508] sm:$0xff] %v379_v33  ;;  %v507_v33 = vld [vmem:[%s13039_s4 + $0x708] sm:$0xff] }
  0xa4   :  { %382 = vst [vmem:[#allocation2 + $0x510] sm:$0xff] %v381_v34  ;;  %v509_v34 = vld [vmem:[%s13039_s4 + $0x710] sm:$0xff] }
  0xa5   :  { %384 = vst [vmem:[#allocation2 + $0x518] sm:$0xff] %v383_v35  ;;  %v511_v35 = vld [vmem:[%s13039_s4 + $0x718] sm:$0xff] }
  0xa6   :  { %386 = vst [vmem:[#allocation2 + $0x520] sm:$0xff] %v385_v36  ;;  %v513_v36 = vld [vmem:[%s13039_s4 + $0x720] sm:$0xff] }
  0xa7   :  { %388 = vst [vmem:[#allocation2 + $0x528] sm:$0xff] %v387_v37  ;;  %v515_v37 = vld [vmem:[%s13039_s4 + $0x728] sm:$0xff] }
  0xa8   :  { %390 = vst [vmem:[#allocation2 + $0x530] sm:$0xff] %v389_v38  ;;  %v517_v38 = vld [vmem:[%s13039_s4 + $0x730] sm:$0xff] }
  0xa9   :  { %392 = vst [vmem:[#allocation2 + $0x538] sm:$0xff] %v391_v39  ;;  %v519_v39 = vld [vmem:[%s13039_s4 + $0x738] sm:$0xff] }
  0xaa   :  { %394 = vst [vmem:[#allocation2 + $0x540] sm:$0xff] %v393_v40  ;;  %v521_v40 = vld [vmem:[%s13039_s4 + $0x740] sm:$0xff] }
  0xab   :  { %396 = vst [vmem:[#allocation2 + $0x548] sm:$0xff] %v395_v41  ;;  %v523_v41 = vld [vmem:[%s13039_s4 + $0x748] sm:$0xff] }
  0xac   :  { %398 = vst [vmem:[#allocation2 + $0x550] sm:$0xff] %v397_v42  ;;  %v525_v42 = vld [vmem:[%s13039_s4 + $0x750] sm:$0xff] }
  0xad   :  { %400 = vst [vmem:[#allocation2 + $0x558] sm:$0xff] %v399_v43  ;;  %v527_v43 = vld [vmem:[%s13039_s4 + $0x758] sm:$0xff] }
  0xae   :  { %402 = vst [vmem:[#allocation2 + $0x560] sm:$0xff] %v401_v44  ;;  %v529_v44 = vld [vmem:[%s13039_s4 + $0x760] sm:$0xff] }
  0xaf   :  { %404 = vst [vmem:[#allocation2 + $0x568] sm:$0xff] %v403_v45  ;;  %v531_v45 = vld [vmem:[%s13039_s4 + $0x768] sm:$0xff] }
  0xb0   :  { %406 = vst [vmem:[#allocation2 + $0x570] sm:$0xff] %v405_v46  ;;  %v533_v46 = vld [vmem:[%s13039_s4 + $0x770] sm:$0xff] }
  0xb1   :  { %408 = vst [vmem:[#allocation2 + $0x578] sm:$0xff] %v407_v47  ;;  %v535_v47 = vld [vmem:[%s13039_s4 + $0x778] sm:$0xff] }
  0xb2   :  { %410 = vst [vmem:[#allocation2 + $0x580] sm:$0xff] %v409_v48  ;;  %v537_v48 = vld [vmem:[%s13039_s4 + $0x780] sm:$0xff] }
  0xb3   :  { %412 = vst [vmem:[#allocation2 + $0x588] sm:$0xff] %v411_v49  ;;  %v539_v49 = vld [vmem:[%s13039_s4 + $0x788] sm:$0xff] }
  0xb4   :  { %414 = vst [vmem:[#allocation2 + $0x590] sm:$0xff] %v413_v50  ;;  %v541_v50 = vld [vmem:[%s13039_s4 + $0x790] sm:$0xff] }
  0xb5   :  { %416 = vst [vmem:[#allocation2 + $0x598] sm:$0xff] %v415_v51  ;;  %v543_v51 = vld [vmem:[%s13039_s4 + $0x798] sm:$0xff] }
  0xb6   :  { %418 = vst [vmem:[#allocation2 + $0x5a0] sm:$0xff] %v417_v52  ;;  %v545_v52 = vld [vmem:[%s13039_s4 + $0x7a0] sm:$0xff] }
  0xb7   :  { %420 = vst [vmem:[#allocation2 + $0x5a8] sm:$0xff] %v419_v53  ;;  %v547_v53 = vld [vmem:[%s13039_s4 + $0x7a8] sm:$0xff] }
  0xb8   :  { %422 = vst [vmem:[#allocation2 + $0x5b0] sm:$0xff] %v421_v54  ;;  %v549_v54 = vld [vmem:[%s13039_s4 + $0x7b0] sm:$0xff] }
  0xb9   :  { %424 = vst [vmem:[#allocation2 + $0x5b8] sm:$0xff] %v423_v55  ;;  %v551_v55 = vld [vmem:[%s13039_s4 + $0x7b8] sm:$0xff] }
  0xba   :  { %426 = vst [vmem:[#allocation2 + $0x5c0] sm:$0xff] %v425_v56  ;;  %v553_v56 = vld [vmem:[%s13039_s4 + $0x7c0] sm:$0xff] }
  0xbb   :  { %428 = vst [vmem:[#allocation2 + $0x5c8] sm:$0xff] %v427_v57  ;;  %v555_v57 = vld [vmem:[%s13039_s4 + $0x7c8] sm:$0xff] }
  0xbc   :  { %430 = vst [vmem:[#allocation2 + $0x5d0] sm:$0xff] %v429_v58  ;;  %v557_v58 = vld [vmem:[%s13039_s4 + $0x7d0] sm:$0xff] }
  0xbd   :  { %432 = vst [vmem:[#allocation2 + $0x5d8] sm:$0xff] %v431_v59  ;;  %v559_v59 = vld [vmem:[%s13039_s4 + $0x7d8] sm:$0xff] }
  0xbe   :  { %434 = vst [vmem:[#allocation2 + $0x5e0] sm:$0xff] %v433_v60  ;;  %v561_v60 = vld [vmem:[%s13039_s4 + $0x7e0] sm:$0xff] }
  0xbf   :  { %436 = vst [vmem:[#allocation2 + $0x5e8] sm:$0xff] %v435_v61  ;;  %v563_v61 = vld [vmem:[%s13039_s4 + $0x7e8] sm:$0xff] }
  0xc0   :  { %438 = vst [vmem:[#allocation2 + $0x5f0] sm:$0xff] %v437_v62  ;;  %v565_v62 = vld [vmem:[%s13039_s4 + $0x7f0] sm:$0xff] }
  0xc1   :  { %440 = vst [vmem:[#allocation2 + $0x5f8] sm:$0xff] %v439_v63  ;;  %v567_v63 = vld [vmem:[%s13039_s4 + $0x7f8] sm:$0xff] }
  0xc2   :  { %442 = vst [vmem:[#allocation2 + $0x600] sm:$0xff] %v441_v0  ;;  %v569_v0 = vld [vmem:[%s13039_s4 + $0x800] sm:$0xff] }
  0xc3   :  { %444 = vst [vmem:[#allocation2 + $0x608] sm:$0xff] %v443_v1  ;;  %v571_v1 = vld [vmem:[%s13039_s4 + $0x808] sm:$0xff] }
  0xc4   :  { %446 = vst [vmem:[#allocation2 + $0x610] sm:$0xff] %v445_v2  ;;  %v573_v2 = vld [vmem:[%s13039_s4 + $0x810] sm:$0xff] }
  0xc5   :  { %448 = vst [vmem:[#allocation2 + $0x618] sm:$0xff] %v447_v3  ;;  %v575_v3 = vld [vmem:[%s13039_s4 + $0x818] sm:$0xff] }
  0xc6   :  { %450 = vst [vmem:[#allocation2 + $0x620] sm:$0xff] %v449_v4  ;;  %v577_v4 = vld [vmem:[%s13039_s4 + $0x820] sm:$0xff] }
  0xc7   :  { %452 = vst [vmem:[#allocation2 + $0x628] sm:$0xff] %v451_v5  ;;  %v579_v5 = vld [vmem:[%s13039_s4 + $0x828] sm:$0xff] }
  0xc8   :  { %454 = vst [vmem:[#allocation2 + $0x630] sm:$0xff] %v453_v6  ;;  %v581_v6 = vld [vmem:[%s13039_s4 + $0x830] sm:$0xff] }
  0xc9   :  { %456 = vst [vmem:[#allocation2 + $0x638] sm:$0xff] %v455_v7  ;;  %v583_v7 = vld [vmem:[%s13039_s4 + $0x838] sm:$0xff] }
  0xca   :  { %458 = vst [vmem:[#allocation2 + $0x640] sm:$0xff] %v457_v8  ;;  %v585_v8 = vld [vmem:[%s13039_s4 + $0x840] sm:$0xff] }
  0xcb   :  { %460 = vst [vmem:[#allocation2 + $0x648] sm:$0xff] %v459_v9  ;;  %v587_v9 = vld [vmem:[%s13039_s4 + $0x848] sm:$0xff] }
  0xcc   :  { %462 = vst [vmem:[#allocation2 + $0x650] sm:$0xff] %v461_v10  ;;  %v589_v10 = vld [vmem:[%s13039_s4 + $0x850] sm:$0xff] }
  0xcd   :  { %464 = vst [vmem:[#allocation2 + $0x658] sm:$0xff] %v463_v11  ;;  %v591_v11 = vld [vmem:[%s13039_s4 + $0x858] sm:$0xff] }
  0xce   :  { %466 = vst [vmem:[#allocation2 + $0x660] sm:$0xff] %v465_v12  ;;  %v593_v12 = vld [vmem:[%s13039_s4 + $0x860] sm:$0xff] }
  0xcf   :  { %468 = vst [vmem:[#allocation2 + $0x668] sm:$0xff] %v467_v13  ;;  %v595_v13 = vld [vmem:[%s13039_s4 + $0x868] sm:$0xff] }
  0xd0   :  { %470 = vst [vmem:[#allocation2 + $0x670] sm:$0xff] %v469_v14  ;;  %v597_v14 = vld [vmem:[%s13039_s4 + $0x870] sm:$0xff] }
  0xd1   :  { %472 = vst [vmem:[#allocation2 + $0x678] sm:$0xff] %v471_v15  ;;  %v599_v15 = vld [vmem:[%s13039_s4 + $0x878] sm:$0xff] }
  0xd2   :  { %474 = vst [vmem:[#allocation2 + $0x680] sm:$0xff] %v473_v16  ;;  %v601_v16 = vld [vmem:[%s13039_s4 + $0x880] sm:$0xff] }
  0xd3   :  { %476 = vst [vmem:[#allocation2 + $0x688] sm:$0xff] %v475_v17  ;;  %v603_v17 = vld [vmem:[%s13039_s4 + $0x888] sm:$0xff] }
  0xd4   :  { %478 = vst [vmem:[#allocation2 + $0x690] sm:$0xff] %v477_v18  ;;  %v605_v18 = vld [vmem:[%s13039_s4 + $0x890] sm:$0xff] }
  0xd5   :  { %480 = vst [vmem:[#allocation2 + $0x698] sm:$0xff] %v479_v19  ;;  %v607_v19 = vld [vmem:[%s13039_s4 + $0x898] sm:$0xff] }
  0xd6   :  { %482 = vst [vmem:[#allocation2 + $0x6a0] sm:$0xff] %v481_v20  ;;  %v609_v20 = vld [vmem:[%s13039_s4 + $0x8a0] sm:$0xff] }
  0xd7   :  { %484 = vst [vmem:[#allocation2 + $0x6a8] sm:$0xff] %v483_v21  ;;  %v611_v21 = vld [vmem:[%s13039_s4 + $0x8a8] sm:$0xff] }
  0xd8   :  { %486 = vst [vmem:[#allocation2 + $0x6b0] sm:$0xff] %v485_v22  ;;  %v613_v22 = vld [vmem:[%s13039_s4 + $0x8b0] sm:$0xff] }
  0xd9   :  { %488 = vst [vmem:[#allocation2 + $0x6b8] sm:$0xff] %v487_v23  ;;  %v615_v23 = vld [vmem:[%s13039_s4 + $0x8b8] sm:$0xff] }
  0xda   :  { %490 = vst [vmem:[#allocation2 + $0x6c0] sm:$0xff] %v489_v24  ;;  %v617_v24 = vld [vmem:[%s13039_s4 + $0x8c0] sm:$0xff] }
  0xdb   :  { %492 = vst [vmem:[#allocation2 + $0x6c8] sm:$0xff] %v491_v25  ;;  %v619_v25 = vld [vmem:[%s13039_s4 + $0x8c8] sm:$0xff] }
  0xdc   :  { %494 = vst [vmem:[#allocation2 + $0x6d0] sm:$0xff] %v493_v26  ;;  %v621_v26 = vld [vmem:[%s13039_s4 + $0x8d0] sm:$0xff] }
  0xdd   :  { %496 = vst [vmem:[#allocation2 + $0x6d8] sm:$0xff] %v495_v27  ;;  %v623_v27 = vld [vmem:[%s13039_s4 + $0x8d8] sm:$0xff] }
  0xde   :  { %498 = vst [vmem:[#allocation2 + $0x6e0] sm:$0xff] %v497_v28  ;;  %v625_v28 = vld [vmem:[%s13039_s4 + $0x8e0] sm:$0xff] }
  0xdf   :  { %500 = vst [vmem:[#allocation2 + $0x6e8] sm:$0xff] %v499_v29  ;;  %v627_v29 = vld [vmem:[%s13039_s4 + $0x8e8] sm:$0xff] }
  0xe0   :  { %502 = vst [vmem:[#allocation2 + $0x6f0] sm:$0xff] %v501_v30  ;;  %v629_v30 = vld [vmem:[%s13039_s4 + $0x8f0] sm:$0xff] }
  0xe1   :  { %504 = vst [vmem:[#allocation2 + $0x6f8] sm:$0xff] %v503_v31  ;;  %v631_v31 = vld [vmem:[%s13039_s4 + $0x8f8] sm:$0xff] }
  0xe2   :  { %506 = vst [vmem:[#allocation2 + $0x700] sm:$0xff] %v505_v32  ;;  %v633_v32 = vld [vmem:[%s13039_s4 + $0x900] sm:$0xff] }
  0xe3   :  { %508 = vst [vmem:[#allocation2 + $0x708] sm:$0xff] %v507_v33  ;;  %v635_v33 = vld [vmem:[%s13039_s4 + $0x908] sm:$0xff] }
  0xe4   :  { %510 = vst [vmem:[#allocation2 + $0x710] sm:$0xff] %v509_v34  ;;  %v637_v34 = vld [vmem:[%s13039_s4 + $0x910] sm:$0xff] }
  0xe5   :  { %512 = vst [vmem:[#allocation2 + $0x718] sm:$0xff] %v511_v35  ;;  %v639_v35 = vld [vmem:[%s13039_s4 + $0x918] sm:$0xff] }
  0xe6   :  { %514 = vst [vmem:[#allocation2 + $0x720] sm:$0xff] %v513_v36  ;;  %v641_v36 = vld [vmem:[%s13039_s4 + $0x920] sm:$0xff] }
  0xe7   :  { %516 = vst [vmem:[#allocation2 + $0x728] sm:$0xff] %v515_v37  ;;  %v643_v37 = vld [vmem:[%s13039_s4 + $0x928] sm:$0xff] }
  0xe8   :  { %518 = vst [vmem:[#allocation2 + $0x730] sm:$0xff] %v517_v38  ;;  %v645_v38 = vld [vmem:[%s13039_s4 + $0x930] sm:$0xff] }
  0xe9   :  { %520 = vst [vmem:[#allocation2 + $0x738] sm:$0xff] %v519_v39  ;;  %v647_v39 = vld [vmem:[%s13039_s4 + $0x938] sm:$0xff] }
  0xea   :  { %522 = vst [vmem:[#allocation2 + $0x740] sm:$0xff] %v521_v40  ;;  %v649_v40 = vld [vmem:[%s13039_s4 + $0x940] sm:$0xff] }
  0xeb   :  { %524 = vst [vmem:[#allocation2 + $0x748] sm:$0xff] %v523_v41  ;;  %v651_v41 = vld [vmem:[%s13039_s4 + $0x948] sm:$0xff] }
  0xec   :  { %526 = vst [vmem:[#allocation2 + $0x750] sm:$0xff] %v525_v42  ;;  %v653_v42 = vld [vmem:[%s13039_s4 + $0x950] sm:$0xff] }
  0xed   :  { %528 = vst [vmem:[#allocation2 + $0x758] sm:$0xff] %v527_v43  ;;  %v655_v43 = vld [vmem:[%s13039_s4 + $0x958] sm:$0xff] }
  0xee   :  { %530 = vst [vmem:[#allocation2 + $0x760] sm:$0xff] %v529_v44  ;;  %v657_v44 = vld [vmem:[%s13039_s4 + $0x960] sm:$0xff] }
  0xef   :  { %532 = vst [vmem:[#allocation2 + $0x768] sm:$0xff] %v531_v45  ;;  %v659_v45 = vld [vmem:[%s13039_s4 + $0x968] sm:$0xff] }
  0xf0   :  { %534 = vst [vmem:[#allocation2 + $0x770] sm:$0xff] %v533_v46  ;;  %v661_v46 = vld [vmem:[%s13039_s4 + $0x970] sm:$0xff] }
  0xf1   :  { %536 = vst [vmem:[#allocation2 + $0x778] sm:$0xff] %v535_v47  ;;  %v663_v47 = vld [vmem:[%s13039_s4 + $0x978] sm:$0xff] }
  0xf2   :  { %538 = vst [vmem:[#allocation2 + $0x780] sm:$0xff] %v537_v48  ;;  %v665_v48 = vld [vmem:[%s13039_s4 + $0x980] sm:$0xff] }
  0xf3   :  { %540 = vst [vmem:[#allocation2 + $0x788] sm:$0xff] %v539_v49  ;;  %v667_v49 = vld [vmem:[%s13039_s4 + $0x988] sm:$0xff] }
  0xf4   :  { %542 = vst [vmem:[#allocation2 + $0x790] sm:$0xff] %v541_v50  ;;  %v669_v50 = vld [vmem:[%s13039_s4 + $0x990] sm:$0xff] }
  0xf5   :  { %544 = vst [vmem:[#allocation2 + $0x798] sm:$0xff] %v543_v51  ;;  %v671_v51 = vld [vmem:[%s13039_s4 + $0x998] sm:$0xff] }
  0xf6   :  { %546 = vst [vmem:[#allocation2 + $0x7a0] sm:$0xff] %v545_v52  ;;  %v673_v52 = vld [vmem:[%s13039_s4 + $0x9a0] sm:$0xff] }
  0xf7   :  { %548 = vst [vmem:[#allocation2 + $0x7a8] sm:$0xff] %v547_v53  ;;  %v675_v53 = vld [vmem:[%s13039_s4 + $0x9a8] sm:$0xff] }
  0xf8   :  { %550 = vst [vmem:[#allocation2 + $0x7b0] sm:$0xff] %v549_v54  ;;  %v677_v54 = vld [vmem:[%s13039_s4 + $0x9b0] sm:$0xff] }
  0xf9   :  { %552 = vst [vmem:[#allocation2 + $0x7b8] sm:$0xff] %v551_v55  ;;  %v679_v55 = vld [vmem:[%s13039_s4 + $0x9b8] sm:$0xff] }
  0xfa   :  { %554 = vst [vmem:[#allocation2 + $0x7c0] sm:$0xff] %v553_v56  ;;  %v681_v56 = vld [vmem:[%s13039_s4 + $0x9c0] sm:$0xff] }
  0xfb   :  { %556 = vst [vmem:[#allocation2 + $0x7c8] sm:$0xff] %v555_v57  ;;  %v683_v57 = vld [vmem:[%s13039_s4 + $0x9c8] sm:$0xff] }
  0xfc   :  { %558 = vst [vmem:[#allocation2 + $0x7d0] sm:$0xff] %v557_v58  ;;  %v685_v58 = vld [vmem:[%s13039_s4 + $0x9d0] sm:$0xff] }
  0xfd   :  { %560 = vst [vmem:[#allocation2 + $0x7d8] sm:$0xff] %v559_v59  ;;  %v687_v59 = vld [vmem:[%s13039_s4 + $0x9d8] sm:$0xff] }
  0xfe   :  { %562 = vst [vmem:[#allocation2 + $0x7e0] sm:$0xff] %v561_v60  ;;  %v689_v60 = vld [vmem:[%s13039_s4 + $0x9e0] sm:$0xff] }
  0xff   :  { %564 = vst [vmem:[#allocation2 + $0x7e8] sm:$0xff] %v563_v61  ;;  %v691_v61 = vld [vmem:[%s13039_s4 + $0x9e8] sm:$0xff] }
 0x100   :  { %566 = vst [vmem:[#allocation2 + $0x7f0] sm:$0xff] %v565_v62  ;;  %v693_v62 = vld [vmem:[%s13039_s4 + $0x9f0] sm:$0xff] }
 0x101   :  { %568 = vst [vmem:[#allocation2 + $0x7f8] sm:$0xff] %v567_v63  ;;  %v695_v63 = vld [vmem:[%s13039_s4 + $0x9f8] sm:$0xff] }
 0x102   :  { %570 = vst [vmem:[#allocation2 + $0x800] sm:$0xff] %v569_v0  ;;  %v697_v0 = vld [vmem:[%s13039_s4 + $0xa00] sm:$0xff] }
 0x103   :  { %572 = vst [vmem:[#allocation2 + $0x808] sm:$0xff] %v571_v1  ;;  %v699_v1 = vld [vmem:[%s13039_s4 + $0xa08] sm:$0xff] }
 0x104   :  { %574 = vst [vmem:[#allocation2 + $0x810] sm:$0xff] %v573_v2  ;;  %v701_v2 = vld [vmem:[%s13039_s4 + $0xa10] sm:$0xff] }
 0x105   :  { %576 = vst [vmem:[#allocation2 + $0x818] sm:$0xff] %v575_v3  ;;  %v703_v3 = vld [vmem:[%s13039_s4 + $0xa18] sm:$0xff] }
 0x106   :  { %578 = vst [vmem:[#allocation2 + $0x820] sm:$0xff] %v577_v4  ;;  %v705_v4 = vld [vmem:[%s13039_s4 + $0xa20] sm:$0xff] }
 0x107   :  { %580 = vst [vmem:[#allocation2 + $0x828] sm:$0xff] %v579_v5  ;;  %v707_v5 = vld [vmem:[%s13039_s4 + $0xa28] sm:$0xff] }
 0x108   :  { %582 = vst [vmem:[#allocation2 + $0x830] sm:$0xff] %v581_v6  ;;  %v709_v6 = vld [vmem:[%s13039_s4 + $0xa30] sm:$0xff] }
 0x109   :  { %584 = vst [vmem:[#allocation2 + $0x838] sm:$0xff] %v583_v7  ;;  %v711_v7 = vld [vmem:[%s13039_s4 + $0xa38] sm:$0xff] }
 0x10a   :  { %586 = vst [vmem:[#allocation2 + $0x840] sm:$0xff] %v585_v8  ;;  %v713_v8 = vld [vmem:[%s13039_s4 + $0xa40] sm:$0xff] }
 0x10b   :  { %588 = vst [vmem:[#allocation2 + $0x848] sm:$0xff] %v587_v9  ;;  %v715_v9 = vld [vmem:[%s13039_s4 + $0xa48] sm:$0xff] }
 0x10c   :  { %590 = vst [vmem:[#allocation2 + $0x850] sm:$0xff] %v589_v10  ;;  %v717_v10 = vld [vmem:[%s13039_s4 + $0xa50] sm:$0xff] }
 0x10d   :  { %592 = vst [vmem:[#allocation2 + $0x858] sm:$0xff] %v591_v11  ;;  %v719_v11 = vld [vmem:[%s13039_s4 + $0xa58] sm:$0xff] }
 0x10e   :  { %594 = vst [vmem:[#allocation2 + $0x860] sm:$0xff] %v593_v12  ;;  %v721_v12 = vld [vmem:[%s13039_s4 + $0xa60] sm:$0xff] }
 0x10f   :  { %596 = vst [vmem:[#allocation2 + $0x868] sm:$0xff] %v595_v13  ;;  %v723_v13 = vld [vmem:[%s13039_s4 + $0xa68] sm:$0xff] }
 0x110   :  { %598 = vst [vmem:[#allocation2 + $0x870] sm:$0xff] %v597_v14  ;;  %v725_v14 = vld [vmem:[%s13039_s4 + $0xa70] sm:$0xff] }
 0x111   :  { %600 = vst [vmem:[#allocation2 + $0x878] sm:$0xff] %v599_v15  ;;  %v727_v15 = vld [vmem:[%s13039_s4 + $0xa78] sm:$0xff] }
 0x112   :  { %602 = vst [vmem:[#allocation2 + $0x880] sm:$0xff] %v601_v16  ;;  %v729_v16 = vld [vmem:[%s13039_s4 + $0xa80] sm:$0xff] }
 0x113   :  { %604 = vst [vmem:[#allocation2 + $0x888] sm:$0xff] %v603_v17  ;;  %v731_v17 = vld [vmem:[%s13039_s4 + $0xa88] sm:$0xff] }
 0x114   :  { %606 = vst [vmem:[#allocation2 + $0x890] sm:$0xff] %v605_v18  ;;  %v733_v18 = vld [vmem:[%s13039_s4 + $0xa90] sm:$0xff] }
 0x115   :  { %608 = vst [vmem:[#allocation2 + $0x898] sm:$0xff] %v607_v19  ;;  %v735_v19 = vld [vmem:[%s13039_s4 + $0xa98] sm:$0xff] }
 0x116   :  { %610 = vst [vmem:[#allocation2 + $0x8a0] sm:$0xff] %v609_v20  ;;  %v737_v20 = vld [vmem:[%s13039_s4 + $0xaa0] sm:$0xff] }
 0x117   :  { %612 = vst [vmem:[#allocation2 + $0x8a8] sm:$0xff] %v611_v21  ;;  %v739_v21 = vld [vmem:[%s13039_s4 + $0xaa8] sm:$0xff] }
 0x118   :  { %614 = vst [vmem:[#allocation2 + $0x8b0] sm:$0xff] %v613_v22  ;;  %v741_v22 = vld [vmem:[%s13039_s4 + $0xab0] sm:$0xff] }
 0x119   :  { %616 = vst [vmem:[#allocation2 + $0x8b8] sm:$0xff] %v615_v23  ;;  %v743_v23 = vld [vmem:[%s13039_s4 + $0xab8] sm:$0xff] }
 0x11a   :  { %618 = vst [vmem:[#allocation2 + $0x8c0] sm:$0xff] %v617_v24  ;;  %v745_v24 = vld [vmem:[%s13039_s4 + $0xac0] sm:$0xff] }
 0x11b   :  { %620 = vst [vmem:[#allocation2 + $0x8c8] sm:$0xff] %v619_v25  ;;  %v747_v25 = vld [vmem:[%s13039_s4 + $0xac8] sm:$0xff] }
 0x11c   :  { %622 = vst [vmem:[#allocation2 + $0x8d0] sm:$0xff] %v621_v26  ;;  %v749_v26 = vld [vmem:[%s13039_s4 + $0xad0] sm:$0xff] }
 0x11d   :  { %624 = vst [vmem:[#allocation2 + $0x8d8] sm:$0xff] %v623_v27  ;;  %v751_v27 = vld [vmem:[%s13039_s4 + $0xad8] sm:$0xff] }
 0x11e   :  { %626 = vst [vmem:[#allocation2 + $0x8e0] sm:$0xff] %v625_v28  ;;  %v753_v28 = vld [vmem:[%s13039_s4 + $0xae0] sm:$0xff] }
 0x11f   :  { %628 = vst [vmem:[#allocation2 + $0x8e8] sm:$0xff] %v627_v29  ;;  %v755_v29 = vld [vmem:[%s13039_s4 + $0xae8] sm:$0xff] }
 0x120   :  { %630 = vst [vmem:[#allocation2 + $0x8f0] sm:$0xff] %v629_v30  ;;  %v757_v30 = vld [vmem:[%s13039_s4 + $0xaf0] sm:$0xff] }
 0x121   :  { %632 = vst [vmem:[#allocation2 + $0x8f8] sm:$0xff] %v631_v31  ;;  %v759_v31 = vld [vmem:[%s13039_s4 + $0xaf8] sm:$0xff] }
 0x122   :  { %634 = vst [vmem:[#allocation2 + $0x900] sm:$0xff] %v633_v32  ;;  %v761_v32 = vld [vmem:[%s13039_s4 + $0xb00] sm:$0xff] }
 0x123   :  { %636 = vst [vmem:[#allocation2 + $0x908] sm:$0xff] %v635_v33  ;;  %v763_v33 = vld [vmem:[%s13039_s4 + $0xb08] sm:$0xff] }
 0x124   :  { %638 = vst [vmem:[#allocation2 + $0x910] sm:$0xff] %v637_v34  ;;  %v765_v34 = vld [vmem:[%s13039_s4 + $0xb10] sm:$0xff] }
 0x125   :  { %640 = vst [vmem:[#allocation2 + $0x918] sm:$0xff] %v639_v35  ;;  %v767_v35 = vld [vmem:[%s13039_s4 + $0xb18] sm:$0xff] }
 0x126   :  { %642 = vst [vmem:[#allocation2 + $0x920] sm:$0xff] %v641_v36  ;;  %v769_v36 = vld [vmem:[%s13039_s4 + $0xb20] sm:$0xff] }
 0x127   :  { %644 = vst [vmem:[#allocation2 + $0x928] sm:$0xff] %v643_v37  ;;  %v771_v37 = vld [vmem:[%s13039_s4 + $0xb28] sm:$0xff] }
 0x128   :  { %646 = vst [vmem:[#allocation2 + $0x930] sm:$0xff] %v645_v38  ;;  %v773_v38 = vld [vmem:[%s13039_s4 + $0xb30] sm:$0xff] }
 0x129   :  { %648 = vst [vmem:[#allocation2 + $0x938] sm:$0xff] %v647_v39  ;;  %v775_v39 = vld [vmem:[%s13039_s4 + $0xb38] sm:$0xff] }
 0x12a   :  { %650 = vst [vmem:[#allocation2 + $0x940] sm:$0xff] %v649_v40  ;;  %v777_v40 = vld [vmem:[%s13039_s4 + $0xb40] sm:$0xff] }
 0x12b   :  { %652 = vst [vmem:[#allocation2 + $0x948] sm:$0xff] %v651_v41  ;;  %v779_v41 = vld [vmem:[%s13039_s4 + $0xb48] sm:$0xff] }
 0x12c   :  { %654 = vst [vmem:[#allocation2 + $0x950] sm:$0xff] %v653_v42  ;;  %v781_v42 = vld [vmem:[%s13039_s4 + $0xb50] sm:$0xff] }
 0x12d   :  { %656 = vst [vmem:[#allocation2 + $0x958] sm:$0xff] %v655_v43  ;;  %v783_v43 = vld [vmem:[%s13039_s4 + $0xb58] sm:$0xff] }
 0x12e   :  { %658 = vst [vmem:[#allocation2 + $0x960] sm:$0xff] %v657_v44  ;;  %v785_v44 = vld [vmem:[%s13039_s4 + $0xb60] sm:$0xff] }
 0x12f   :  { %660 = vst [vmem:[#allocation2 + $0x968] sm:$0xff] %v659_v45  ;;  %v787_v45 = vld [vmem:[%s13039_s4 + $0xb68] sm:$0xff] }
 0x130   :  { %662 = vst [vmem:[#allocation2 + $0x970] sm:$0xff] %v661_v46  ;;  %v789_v46 = vld [vmem:[%s13039_s4 + $0xb70] sm:$0xff] }
 0x131   :  { %664 = vst [vmem:[#allocation2 + $0x978] sm:$0xff] %v663_v47  ;;  %v791_v47 = vld [vmem:[%s13039_s4 + $0xb78] sm:$0xff] }
 0x132   :  { %666 = vst [vmem:[#allocation2 + $0x980] sm:$0xff] %v665_v48  ;;  %v793_v48 = vld [vmem:[%s13039_s4 + $0xb80] sm:$0xff] }
 0x133   :  { %668 = vst [vmem:[#allocation2 + $0x988] sm:$0xff] %v667_v49  ;;  %v795_v49 = vld [vmem:[%s13039_s4 + $0xb88] sm:$0xff] }
 0x134   :  { %670 = vst [vmem:[#allocation2 + $0x990] sm:$0xff] %v669_v50  ;;  %v797_v50 = vld [vmem:[%s13039_s4 + $0xb90] sm:$0xff] }
 0x135   :  { %672 = vst [vmem:[#allocation2 + $0x998] sm:$0xff] %v671_v51  ;;  %v799_v51 = vld [vmem:[%s13039_s4 + $0xb98] sm:$0xff] }
 0x136   :  { %674 = vst [vmem:[#allocation2 + $0x9a0] sm:$0xff] %v673_v52  ;;  %v801_v52 = vld [vmem:[%s13039_s4 + $0xba0] sm:$0xff] }
 0x137   :  { %676 = vst [vmem:[#allocation2 + $0x9a8] sm:$0xff] %v675_v53  ;;  %v803_v53 = vld [vmem:[%s13039_s4 + $0xba8] sm:$0xff] }
 0x138   :  { %678 = vst [vmem:[#allocation2 + $0x9b0] sm:$0xff] %v677_v54  ;;  %v805_v54 = vld [vmem:[%s13039_s4 + $0xbb0] sm:$0xff] }
 0x139   :  { %680 = vst [vmem:[#allocation2 + $0x9b8] sm:$0xff] %v679_v55  ;;  %v807_v55 = vld [vmem:[%s13039_s4 + $0xbb8] sm:$0xff] }
 0x13a   :  { %682 = vst [vmem:[#allocation2 + $0x9c0] sm:$0xff] %v681_v56  ;;  %v809_v56 = vld [vmem:[%s13039_s4 + $0xbc0] sm:$0xff] }
 0x13b   :  { %684 = vst [vmem:[#allocation2 + $0x9c8] sm:$0xff] %v683_v57  ;;  %v811_v57 = vld [vmem:[%s13039_s4 + $0xbc8] sm:$0xff] }
 0x13c   :  { %686 = vst [vmem:[#allocation2 + $0x9d0] sm:$0xff] %v685_v58  ;;  %v813_v58 = vld [vmem:[%s13039_s4 + $0xbd0] sm:$0xff] }
 0x13d   :  { %688 = vst [vmem:[#allocation2 + $0x9d8] sm:$0xff] %v687_v59  ;;  %v815_v59 = vld [vmem:[%s13039_s4 + $0xbd8] sm:$0xff] }
 0x13e   :  { %690 = vst [vmem:[#allocation2 + $0x9e0] sm:$0xff] %v689_v60  ;;  %v817_v60 = vld [vmem:[%s13039_s4 + $0xbe0] sm:$0xff] }
 0x13f   :  { %692 = vst [vmem:[#allocation2 + $0x9e8] sm:$0xff] %v691_v61  ;;  %v819_v61 = vld [vmem:[%s13039_s4 + $0xbe8] sm:$0xff] }
 0x140   :  { %694 = vst [vmem:[#allocation2 + $0x9f0] sm:$0xff] %v693_v62  ;;  %v821_v62 = vld [vmem:[%s13039_s4 + $0xbf0] sm:$0xff] }
 0x141   :  { %696 = vst [vmem:[#allocation2 + $0x9f8] sm:$0xff] %v695_v63  ;;  %v823_v63 = vld [vmem:[%s13039_s4 + $0xbf8] sm:$0xff] }
 0x142   :  { %698 = vst [vmem:[#allocation2 + $0xa00] sm:$0xff] %v697_v0  ;;  %v825_v0 = vld [vmem:[%s13039_s4 + $0xc00] sm:$0xff] }
 0x143   :  { %700 = vst [vmem:[#allocation2 + $0xa08] sm:$0xff] %v699_v1  ;;  %v827_v1 = vld [vmem:[%s13039_s4 + $0xc08] sm:$0xff] }
 0x144   :  { %702 = vst [vmem:[#allocation2 + $0xa10] sm:$0xff] %v701_v2  ;;  %v829_v2 = vld [vmem:[%s13039_s4 + $0xc10] sm:$0xff] }
 0x145   :  { %704 = vst [vmem:[#allocation2 + $0xa18] sm:$0xff] %v703_v3  ;;  %v831_v3 = vld [vmem:[%s13039_s4 + $0xc18] sm:$0xff] }
 0x146   :  { %706 = vst [vmem:[#allocation2 + $0xa20] sm:$0xff] %v705_v4  ;;  %v833_v4 = vld [vmem:[%s13039_s4 + $0xc20] sm:$0xff] }
 0x147   :  { %708 = vst [vmem:[#allocation2 + $0xa28] sm:$0xff] %v707_v5  ;;  %v835_v5 = vld [vmem:[%s13039_s4 + $0xc28] sm:$0xff] }
 0x148   :  { %710 = vst [vmem:[#allocation2 + $0xa30] sm:$0xff] %v709_v6  ;;  %v837_v6 = vld [vmem:[%s13039_s4 + $0xc30] sm:$0xff] }
 0x149   :  { %712 = vst [vmem:[#allocation2 + $0xa38] sm:$0xff] %v711_v7  ;;  %v839_v7 = vld [vmem:[%s13039_s4 + $0xc38] sm:$0xff] }
 0x14a   :  { %714 = vst [vmem:[#allocation2 + $0xa40] sm:$0xff] %v713_v8  ;;  %v841_v8 = vld [vmem:[%s13039_s4 + $0xc40] sm:$0xff] }
 0x14b   :  { %716 = vst [vmem:[#allocation2 + $0xa48] sm:$0xff] %v715_v9  ;;  %v843_v9 = vld [vmem:[%s13039_s4 + $0xc48] sm:$0xff] }
 0x14c   :  { %718 = vst [vmem:[#allocation2 + $0xa50] sm:$0xff] %v717_v10  ;;  %v845_v10 = vld [vmem:[%s13039_s4 + $0xc50] sm:$0xff] }
 0x14d   :  { %720 = vst [vmem:[#allocation2 + $0xa58] sm:$0xff] %v719_v11  ;;  %v847_v11 = vld [vmem:[%s13039_s4 + $0xc58] sm:$0xff] }
 0x14e   :  { %722 = vst [vmem:[#allocation2 + $0xa60] sm:$0xff] %v721_v12  ;;  %v849_v12 = vld [vmem:[%s13039_s4 + $0xc60] sm:$0xff] }
 0x14f   :  { %724 = vst [vmem:[#allocation2 + $0xa68] sm:$0xff] %v723_v13  ;;  %v851_v13 = vld [vmem:[%s13039_s4 + $0xc68] sm:$0xff] }
 0x150   :  { %726 = vst [vmem:[#allocation2 + $0xa70] sm:$0xff] %v725_v14  ;;  %v853_v14 = vld [vmem:[%s13039_s4 + $0xc70] sm:$0xff] }
 0x151   :  { %728 = vst [vmem:[#allocation2 + $0xa78] sm:$0xff] %v727_v15  ;;  %v855_v15 = vld [vmem:[%s13039_s4 + $0xc78] sm:$0xff] }
 0x152   :  { %730 = vst [vmem:[#allocation2 + $0xa80] sm:$0xff] %v729_v16  ;;  %v857_v16 = vld [vmem:[%s13039_s4 + $0xc80] sm:$0xff] }
 0x153   :  { %732 = vst [vmem:[#allocation2 + $0xa88] sm:$0xff] %v731_v17  ;;  %v859_v17 = vld [vmem:[%s13039_s4 + $0xc88] sm:$0xff] }
 0x154   :  { %734 = vst [vmem:[#allocation2 + $0xa90] sm:$0xff] %v733_v18  ;;  %v861_v18 = vld [vmem:[%s13039_s4 + $0xc90] sm:$0xff] }
 0x155   :  { %736 = vst [vmem:[#allocation2 + $0xa98] sm:$0xff] %v735_v19  ;;  %v863_v19 = vld [vmem:[%s13039_s4 + $0xc98] sm:$0xff] }
 0x156   :  { %738 = vst [vmem:[#allocation2 + $0xaa0] sm:$0xff] %v737_v20  ;;  %v865_v20 = vld [vmem:[%s13039_s4 + $0xca0] sm:$0xff] }
 0x157   :  { %740 = vst [vmem:[#allocation2 + $0xaa8] sm:$0xff] %v739_v21  ;;  %v867_v21 = vld [vmem:[%s13039_s4 + $0xca8] sm:$0xff] }
 0x158   :  { %742 = vst [vmem:[#allocation2 + $0xab0] sm:$0xff] %v741_v22  ;;  %v869_v22 = vld [vmem:[%s13039_s4 + $0xcb0] sm:$0xff] }
 0x159   :  { %744 = vst [vmem:[#allocation2 + $0xab8] sm:$0xff] %v743_v23  ;;  %v871_v23 = vld [vmem:[%s13039_s4 + $0xcb8] sm:$0xff] }
 0x15a   :  { %746 = vst [vmem:[#allocation2 + $0xac0] sm:$0xff] %v745_v24  ;;  %v873_v24 = vld [vmem:[%s13039_s4 + $0xcc0] sm:$0xff] }
 0x15b   :  { %748 = vst [vmem:[#allocation2 + $0xac8] sm:$0xff] %v747_v25  ;;  %v875_v25 = vld [vmem:[%s13039_s4 + $0xcc8] sm:$0xff] }
 0x15c   :  { %750 = vst [vmem:[#allocation2 + $0xad0] sm:$0xff] %v749_v26  ;;  %v877_v26 = vld [vmem:[%s13039_s4 + $0xcd0] sm:$0xff] }
 0x15d   :  { %752 = vst [vmem:[#allocation2 + $0xad8] sm:$0xff] %v751_v27  ;;  %v879_v27 = vld [vmem:[%s13039_s4 + $0xcd8] sm:$0xff] }
 0x15e   :  { %754 = vst [vmem:[#allocation2 + $0xae0] sm:$0xff] %v753_v28  ;;  %v881_v28 = vld [vmem:[%s13039_s4 + $0xce0] sm:$0xff] }
 0x15f   :  { %756 = vst [vmem:[#allocation2 + $0xae8] sm:$0xff] %v755_v29  ;;  %v883_v29 = vld [vmem:[%s13039_s4 + $0xce8] sm:$0xff] }
 0x160   :  { %758 = vst [vmem:[#allocation2 + $0xaf0] sm:$0xff] %v757_v30  ;;  %v885_v30 = vld [vmem:[%s13039_s4 + $0xcf0] sm:$0xff] }
 0x161   :  { %760 = vst [vmem:[#allocation2 + $0xaf8] sm:$0xff] %v759_v31  ;;  %v887_v31 = vld [vmem:[%s13039_s4 + $0xcf8] sm:$0xff] }
 0x162   :  { %762 = vst [vmem:[#allocation2 + $0xb00] sm:$0xff] %v761_v32  ;;  %v889_v32 = vld [vmem:[%s13039_s4 + $0xd00] sm:$0xff] }
 0x163   :  { %764 = vst [vmem:[#allocation2 + $0xb08] sm:$0xff] %v763_v33  ;;  %v891_v33 = vld [vmem:[%s13039_s4 + $0xd08] sm:$0xff] }
 0x164   :  { %766 = vst [vmem:[#allocation2 + $0xb10] sm:$0xff] %v765_v34  ;;  %v893_v34 = vld [vmem:[%s13039_s4 + $0xd10] sm:$0xff] }
 0x165   :  { %768 = vst [vmem:[#allocation2 + $0xb18] sm:$0xff] %v767_v35  ;;  %v895_v35 = vld [vmem:[%s13039_s4 + $0xd18] sm:$0xff] }
 0x166   :  { %770 = vst [vmem:[#allocation2 + $0xb20] sm:$0xff] %v769_v36  ;;  %v897_v36 = vld [vmem:[%s13039_s4 + $0xd20] sm:$0xff] }
 0x167   :  { %772 = vst [vmem:[#allocation2 + $0xb28] sm:$0xff] %v771_v37  ;;  %v899_v37 = vld [vmem:[%s13039_s4 + $0xd28] sm:$0xff] }
 0x168   :  { %774 = vst [vmem:[#allocation2 + $0xb30] sm:$0xff] %v773_v38  ;;  %v901_v38 = vld [vmem:[%s13039_s4 + $0xd30] sm:$0xff] }
 0x169   :  { %776 = vst [vmem:[#allocation2 + $0xb38] sm:$0xff] %v775_v39  ;;  %v903_v39 = vld [vmem:[%s13039_s4 + $0xd38] sm:$0xff] }
 0x16a   :  { %778 = vst [vmem:[#allocation2 + $0xb40] sm:$0xff] %v777_v40  ;;  %v905_v40 = vld [vmem:[%s13039_s4 + $0xd40] sm:$0xff] }
 0x16b   :  { %780 = vst [vmem:[#allocation2 + $0xb48] sm:$0xff] %v779_v41  ;;  %v907_v41 = vld [vmem:[%s13039_s4 + $0xd48] sm:$0xff] }
 0x16c   :  { %782 = vst [vmem:[#allocation2 + $0xb50] sm:$0xff] %v781_v42  ;;  %v909_v42 = vld [vmem:[%s13039_s4 + $0xd50] sm:$0xff] }
 0x16d   :  { %784 = vst [vmem:[#allocation2 + $0xb58] sm:$0xff] %v783_v43  ;;  %v911_v43 = vld [vmem:[%s13039_s4 + $0xd58] sm:$0xff] }
 0x16e   :  { %786 = vst [vmem:[#allocation2 + $0xb60] sm:$0xff] %v785_v44  ;;  %v913_v44 = vld [vmem:[%s13039_s4 + $0xd60] sm:$0xff] }
 0x16f   :  { %788 = vst [vmem:[#allocation2 + $0xb68] sm:$0xff] %v787_v45  ;;  %v915_v45 = vld [vmem:[%s13039_s4 + $0xd68] sm:$0xff] }
 0x170   :  { %790 = vst [vmem:[#allocation2 + $0xb70] sm:$0xff] %v789_v46  ;;  %v917_v46 = vld [vmem:[%s13039_s4 + $0xd70] sm:$0xff] }
 0x171   :  { %792 = vst [vmem:[#allocation2 + $0xb78] sm:$0xff] %v791_v47  ;;  %v919_v47 = vld [vmem:[%s13039_s4 + $0xd78] sm:$0xff] }
 0x172   :  { %794 = vst [vmem:[#allocation2 + $0xb80] sm:$0xff] %v793_v48  ;;  %v921_v48 = vld [vmem:[%s13039_s4 + $0xd80] sm:$0xff] }
 0x173   :  { %796 = vst [vmem:[#allocation2 + $0xb88] sm:$0xff] %v795_v49  ;;  %v923_v49 = vld [vmem:[%s13039_s4 + $0xd88] sm:$0xff] }
 0x174   :  { %798 = vst [vmem:[#allocation2 + $0xb90] sm:$0xff] %v797_v50  ;;  %v925_v50 = vld [vmem:[%s13039_s4 + $0xd90] sm:$0xff] }
 0x175   :  { %800 = vst [vmem:[#allocation2 + $0xb98] sm:$0xff] %v799_v51  ;;  %v927_v51 = vld [vmem:[%s13039_s4 + $0xd98] sm:$0xff] }
 0x176   :  { %802 = vst [vmem:[#allocation2 + $0xba0] sm:$0xff] %v801_v52  ;;  %v929_v52 = vld [vmem:[%s13039_s4 + $0xda0] sm:$0xff] }
 0x177   :  { %804 = vst [vmem:[#allocation2 + $0xba8] sm:$0xff] %v803_v53  ;;  %v931_v53 = vld [vmem:[%s13039_s4 + $0xda8] sm:$0xff] }
 0x178   :  { %806 = vst [vmem:[#allocation2 + $0xbb0] sm:$0xff] %v805_v54  ;;  %v933_v54 = vld [vmem:[%s13039_s4 + $0xdb0] sm:$0xff] }
 0x179   :  { %808 = vst [vmem:[#allocation2 + $0xbb8] sm:$0xff] %v807_v55  ;;  %v935_v55 = vld [vmem:[%s13039_s4 + $0xdb8] sm:$0xff] }
 0x17a   :  { %810 = vst [vmem:[#allocation2 + $0xbc0] sm:$0xff] %v809_v56  ;;  %v937_v56 = vld [vmem:[%s13039_s4 + $0xdc0] sm:$0xff] }
 0x17b   :  { %812 = vst [vmem:[#allocation2 + $0xbc8] sm:$0xff] %v811_v57  ;;  %v939_v57 = vld [vmem:[%s13039_s4 + $0xdc8] sm:$0xff] }
 0x17c   :  { %814 = vst [vmem:[#allocation2 + $0xbd0] sm:$0xff] %v813_v58  ;;  %v941_v58 = vld [vmem:[%s13039_s4 + $0xdd0] sm:$0xff] }
 0x17d   :  { %816 = vst [vmem:[#allocation2 + $0xbd8] sm:$0xff] %v815_v59  ;;  %v943_v59 = vld [vmem:[%s13039_s4 + $0xdd8] sm:$0xff] }
 0x17e   :  { %818 = vst [vmem:[#allocation2 + $0xbe0] sm:$0xff] %v817_v60  ;;  %v945_v60 = vld [vmem:[%s13039_s4 + $0xde0] sm:$0xff] }
 0x17f   :  { %820 = vst [vmem:[#allocation2 + $0xbe8] sm:$0xff] %v819_v61  ;;  %v947_v61 = vld [vmem:[%s13039_s4 + $0xde8] sm:$0xff] }
 0x180   :  { %822 = vst [vmem:[#allocation2 + $0xbf0] sm:$0xff] %v821_v62  ;;  %v949_v62 = vld [vmem:[%s13039_s4 + $0xdf0] sm:$0xff] }
 0x181   :  { %824 = vst [vmem:[#allocation2 + $0xbf8] sm:$0xff] %v823_v63  ;;  %v951_v63 = vld [vmem:[%s13039_s4 + $0xdf8] sm:$0xff] }
 0x182   :  { %826 = vst [vmem:[#allocation2 + $0xc00] sm:$0xff] %v825_v0  ;;  %v953_v0 = vld [vmem:[%s13039_s4 + $0xe00] sm:$0xff] }
 0x183   :  { %828 = vst [vmem:[#allocation2 + $0xc08] sm:$0xff] %v827_v1  ;;  %v955_v1 = vld [vmem:[%s13039_s4 + $0xe08] sm:$0xff] }
 0x184   :  { %830 = vst [vmem:[#allocation2 + $0xc10] sm:$0xff] %v829_v2  ;;  %v957_v2 = vld [vmem:[%s13039_s4 + $0xe10] sm:$0xff] }
 0x185   :  { %832 = vst [vmem:[#allocation2 + $0xc18] sm:$0xff] %v831_v3  ;;  %v959_v3 = vld [vmem:[%s13039_s4 + $0xe18] sm:$0xff] }
 0x186   :  { %834 = vst [vmem:[#allocation2 + $0xc20] sm:$0xff] %v833_v4  ;;  %v961_v4 = vld [vmem:[%s13039_s4 + $0xe20] sm:$0xff] }
 0x187   :  { %836 = vst [vmem:[#allocation2 + $0xc28] sm:$0xff] %v835_v5  ;;  %v963_v5 = vld [vmem:[%s13039_s4 + $0xe28] sm:$0xff] }
 0x188   :  { %838 = vst [vmem:[#allocation2 + $0xc30] sm:$0xff] %v837_v6  ;;  %v965_v6 = vld [vmem:[%s13039_s4 + $0xe30] sm:$0xff] }
 0x189   :  { %840 = vst [vmem:[#allocation2 + $0xc38] sm:$0xff] %v839_v7  ;;  %v967_v7 = vld [vmem:[%s13039_s4 + $0xe38] sm:$0xff] }
 0x18a   :  { %842 = vst [vmem:[#allocation2 + $0xc40] sm:$0xff] %v841_v8  ;;  %v969_v8 = vld [vmem:[%s13039_s4 + $0xe40] sm:$0xff] }
 0x18b   :  { %844 = vst [vmem:[#allocation2 + $0xc48] sm:$0xff] %v843_v9  ;;  %v971_v9 = vld [vmem:[%s13039_s4 + $0xe48] sm:$0xff] }
 0x18c   :  { %846 = vst [vmem:[#allocation2 + $0xc50] sm:$0xff] %v845_v10  ;;  %v973_v10 = vld [vmem:[%s13039_s4 + $0xe50] sm:$0xff] }
 0x18d   :  { %848 = vst [vmem:[#allocation2 + $0xc58] sm:$0xff] %v847_v11  ;;  %v975_v11 = vld [vmem:[%s13039_s4 + $0xe58] sm:$0xff] }
 0x18e   :  { %850 = vst [vmem:[#allocation2 + $0xc60] sm:$0xff] %v849_v12  ;;  %v977_v12 = vld [vmem:[%s13039_s4 + $0xe60] sm:$0xff] }
 0x18f   :  { %852 = vst [vmem:[#allocation2 + $0xc68] sm:$0xff] %v851_v13  ;;  %v979_v13 = vld [vmem:[%s13039_s4 + $0xe68] sm:$0xff] }
 0x190   :  { %854 = vst [vmem:[#allocation2 + $0xc70] sm:$0xff] %v853_v14  ;;  %v981_v14 = vld [vmem:[%s13039_s4 + $0xe70] sm:$0xff] }
 0x191   :  { %856 = vst [vmem:[#allocation2 + $0xc78] sm:$0xff] %v855_v15  ;;  %v983_v15 = vld [vmem:[%s13039_s4 + $0xe78] sm:$0xff] }
 0x192   :  { %858 = vst [vmem:[#allocation2 + $0xc80] sm:$0xff] %v857_v16  ;;  %v985_v16 = vld [vmem:[%s13039_s4 + $0xe80] sm:$0xff] }
 0x193   :  { %860 = vst [vmem:[#allocation2 + $0xc88] sm:$0xff] %v859_v17  ;;  %v987_v17 = vld [vmem:[%s13039_s4 + $0xe88] sm:$0xff] }
 0x194   :  { %862 = vst [vmem:[#allocation2 + $0xc90] sm:$0xff] %v861_v18  ;;  %v989_v18 = vld [vmem:[%s13039_s4 + $0xe90] sm:$0xff] }
 0x195   :  { %864 = vst [vmem:[#allocation2 + $0xc98] sm:$0xff] %v863_v19  ;;  %v991_v19 = vld [vmem:[%s13039_s4 + $0xe98] sm:$0xff] }
 0x196   :  { %866 = vst [vmem:[#allocation2 + $0xca0] sm:$0xff] %v865_v20  ;;  %v993_v20 = vld [vmem:[%s13039_s4 + $0xea0] sm:$0xff] }
 0x197   :  { %868 = vst [vmem:[#allocation2 + $0xca8] sm:$0xff] %v867_v21  ;;  %v995_v21 = vld [vmem:[%s13039_s4 + $0xea8] sm:$0xff] }
 0x198   :  { %870 = vst [vmem:[#allocation2 + $0xcb0] sm:$0xff] %v869_v22  ;;  %v997_v22 = vld [vmem:[%s13039_s4 + $0xeb0] sm:$0xff] }
 0x199   :  { %872 = vst [vmem:[#allocation2 + $0xcb8] sm:$0xff] %v871_v23  ;;  %v999_v23 = vld [vmem:[%s13039_s4 + $0xeb8] sm:$0xff] }
 0x19a   :  { %874 = vst [vmem:[#allocation2 + $0xcc0] sm:$0xff] %v873_v24  ;;  %v1001_v24 = vld [vmem:[%s13039_s4 + $0xec0] sm:$0xff] }
 0x19b   :  { %876 = vst [vmem:[#allocation2 + $0xcc8] sm:$0xff] %v875_v25  ;;  %v1003_v25 = vld [vmem:[%s13039_s4 + $0xec8] sm:$0xff] }
 0x19c   :  { %878 = vst [vmem:[#allocation2 + $0xcd0] sm:$0xff] %v877_v26  ;;  %v1005_v26 = vld [vmem:[%s13039_s4 + $0xed0] sm:$0xff] }
 0x19d   :  { %880 = vst [vmem:[#allocation2 + $0xcd8] sm:$0xff] %v879_v27  ;;  %v1007_v27 = vld [vmem:[%s13039_s4 + $0xed8] sm:$0xff] }
 0x19e   :  { %882 = vst [vmem:[#allocation2 + $0xce0] sm:$0xff] %v881_v28  ;;  %v1009_v28 = vld [vmem:[%s13039_s4 + $0xee0] sm:$0xff] }
 0x19f   :  { %884 = vst [vmem:[#allocation2 + $0xce8] sm:$0xff] %v883_v29  ;;  %v1011_v29 = vld [vmem:[%s13039_s4 + $0xee8] sm:$0xff] }
 0x1a0   :  { %886 = vst [vmem:[#allocation2 + $0xcf0] sm:$0xff] %v885_v30  ;;  %v1013_v30 = vld [vmem:[%s13039_s4 + $0xef0] sm:$0xff] }
 0x1a1   :  { %888 = vst [vmem:[#allocation2 + $0xcf8] sm:$0xff] %v887_v31  ;;  %v1015_v31 = vld [vmem:[%s13039_s4 + $0xef8] sm:$0xff] }
 0x1a2   :  { %890 = vst [vmem:[#allocation2 + $0xd00] sm:$0xff] %v889_v32  ;;  %v1017_v32 = vld [vmem:[%s13039_s4 + $0xf00] sm:$0xff] }
 0x1a3   :  { %892 = vst [vmem:[#allocation2 + $0xd08] sm:$0xff] %v891_v33  ;;  %v1019_v33 = vld [vmem:[%s13039_s4 + $0xf08] sm:$0xff] }
 0x1a4   :  { %894 = vst [vmem:[#allocation2 + $0xd10] sm:$0xff] %v893_v34  ;;  %v1021_v34 = vld [vmem:[%s13039_s4 + $0xf10] sm:$0xff] }
 0x1a5   :  { %896 = vst [vmem:[#allocation2 + $0xd18] sm:$0xff] %v895_v35  ;;  %v1023_v35 = vld [vmem:[%s13039_s4 + $0xf18] sm:$0xff] }
 0x1a6   :  { %898 = vst [vmem:[#allocation2 + $0xd20] sm:$0xff] %v897_v36  ;;  %v1025_v36 = vld [vmem:[%s13039_s4 + $0xf20] sm:$0xff] }
 0x1a7   :  { %900 = vst [vmem:[#allocation2 + $0xd28] sm:$0xff] %v899_v37  ;;  %v1027_v37 = vld [vmem:[%s13039_s4 + $0xf28] sm:$0xff] }
 0x1a8   :  { %902 = vst [vmem:[#allocation2 + $0xd30] sm:$0xff] %v901_v38  ;;  %v1029_v38 = vld [vmem:[%s13039_s4 + $0xf30] sm:$0xff] }
 0x1a9   :  { %904 = vst [vmem:[#allocation2 + $0xd38] sm:$0xff] %v903_v39  ;;  %v1031_v39 = vld [vmem:[%s13039_s4 + $0xf38] sm:$0xff] }
 0x1aa   :  { %906 = vst [vmem:[#allocation2 + $0xd40] sm:$0xff] %v905_v40  ;;  %v1033_v40 = vld [vmem:[%s13039_s4 + $0xf40] sm:$0xff] }
 0x1ab   :  { %908 = vst [vmem:[#allocation2 + $0xd48] sm:$0xff] %v907_v41  ;;  %v1035_v41 = vld [vmem:[%s13039_s4 + $0xf48] sm:$0xff] }
 0x1ac   :  { %910 = vst [vmem:[#allocation2 + $0xd50] sm:$0xff] %v909_v42  ;;  %v1037_v42 = vld [vmem:[%s13039_s4 + $0xf50] sm:$0xff] }
 0x1ad   :  { %912 = vst [vmem:[#allocation2 + $0xd58] sm:$0xff] %v911_v43  ;;  %v1039_v43 = vld [vmem:[%s13039_s4 + $0xf58] sm:$0xff] }
 0x1ae   :  { %914 = vst [vmem:[#allocation2 + $0xd60] sm:$0xff] %v913_v44  ;;  %v1041_v44 = vld [vmem:[%s13039_s4 + $0xf60] sm:$0xff] }
 0x1af   :  { %916 = vst [vmem:[#allocation2 + $0xd68] sm:$0xff] %v915_v45  ;;  %v1043_v45 = vld [vmem:[%s13039_s4 + $0xf68] sm:$0xff] }
 0x1b0   :  { %918 = vst [vmem:[#allocation2 + $0xd70] sm:$0xff] %v917_v46  ;;  %v1045_v46 = vld [vmem:[%s13039_s4 + $0xf70] sm:$0xff] }
 0x1b1   :  { %920 = vst [vmem:[#allocation2 + $0xd78] sm:$0xff] %v919_v47  ;;  %v1047_v47 = vld [vmem:[%s13039_s4 + $0xf78] sm:$0xff] }
 0x1b2   :  { %922 = vst [vmem:[#allocation2 + $0xd80] sm:$0xff] %v921_v48  ;;  %v1049_v48 = vld [vmem:[%s13039_s4 + $0xf80] sm:$0xff] }
 0x1b3   :  { %924 = vst [vmem:[#allocation2 + $0xd88] sm:$0xff] %v923_v49  ;;  %v1051_v49 = vld [vmem:[%s13039_s4 + $0xf88] sm:$0xff] }
 0x1b4   :  { %926 = vst [vmem:[#allocation2 + $0xd90] sm:$0xff] %v925_v50  ;;  %v1053_v50 = vld [vmem:[%s13039_s4 + $0xf90] sm:$0xff] }
 0x1b5   :  { %928 = vst [vmem:[#allocation2 + $0xd98] sm:$0xff] %v927_v51  ;;  %v1055_v51 = vld [vmem:[%s13039_s4 + $0xf98] sm:$0xff] }
 0x1b6   :  { %930 = vst [vmem:[#allocation2 + $0xda0] sm:$0xff] %v929_v52  ;;  %v1057_v52 = vld [vmem:[%s13039_s4 + $0xfa0] sm:$0xff] }
 0x1b7   :  { %932 = vst [vmem:[#allocation2 + $0xda8] sm:$0xff] %v931_v53  ;;  %v1059_v53 = vld [vmem:[%s13039_s4 + $0xfa8] sm:$0xff] }
 0x1b8   :  { %934 = vst [vmem:[#allocation2 + $0xdb0] sm:$0xff] %v933_v54  ;;  %v1061_v54 = vld [vmem:[%s13039_s4 + $0xfb0] sm:$0xff] }
 0x1b9   :  { %936 = vst [vmem:[#allocation2 + $0xdb8] sm:$0xff] %v935_v55  ;;  %v1063_v55 = vld [vmem:[%s13039_s4 + $0xfb8] sm:$0xff] }
 0x1ba   :  { %938 = vst [vmem:[#allocation2 + $0xdc0] sm:$0xff] %v937_v56  ;;  %v1065_v56 = vld [vmem:[%s13039_s4 + $0xfc0] sm:$0xff] }
 0x1bb   :  { %940 = vst [vmem:[#allocation2 + $0xdc8] sm:$0xff] %v939_v57  ;;  %v1067_v57 = vld [vmem:[%s13039_s4 + $0xfc8] sm:$0xff] }
 0x1bc   :  { %942 = vst [vmem:[#allocation2 + $0xdd0] sm:$0xff] %v941_v58  ;;  %v1069_v58 = vld [vmem:[%s13039_s4 + $0xfd0] sm:$0xff] }
 0x1bd   :  { %944 = vst [vmem:[#allocation2 + $0xdd8] sm:$0xff] %v943_v59  ;;  %v1071_v59 = vld [vmem:[%s13039_s4 + $0xfd8] sm:$0xff] }
 0x1be   :  { %946 = vst [vmem:[#allocation2 + $0xde0] sm:$0xff] %v945_v60  ;;  %v1073_v60 = vld [vmem:[%s13039_s4 + $0xfe0] sm:$0xff] }
 0x1bf   :  { %948 = vst [vmem:[#allocation2 + $0xde8] sm:$0xff] %v947_v61  ;;  %v1075_v61 = vld [vmem:[%s13039_s4 + $0xfe8] sm:$0xff] }
 0x1c0   :  { %950 = vst [vmem:[#allocation2 + $0xdf0] sm:$0xff] %v949_v62  ;;  %v1077_v62 = vld [vmem:[%s13039_s4 + $0xff0] sm:$0xff] }
 0x1c1   :  { %952 = vst [vmem:[#allocation2 + $0xdf8] sm:$0xff] %v951_v63  ;;  %v1079_v63 = vld [vmem:[%s13039_s4 + $0xff8] sm:$0xff] }
 0x1c2   :  { %954 = vst [vmem:[#allocation2 + $0xe00] sm:$0xff] %v953_v0 }
 0x1c3   :  { %956 = vst [vmem:[#allocation2 + $0xe08] sm:$0xff] %v955_v1 }
 0x1c4   :  { %958 = vst [vmem:[#allocation2 + $0xe10] sm:$0xff] %v957_v2 }
 0x1c5   :  { %960 = vst [vmem:[#allocation2 + $0xe18] sm:$0xff] %v959_v3 }
 0x1c6   :  { %962 = vst [vmem:[#allocation2 + $0xe20] sm:$0xff] %v961_v4 }
 0x1c7   :  { %964 = vst [vmem:[#allocation2 + $0xe28] sm:$0xff] %v963_v5 }
 0x1c8   :  { %966 = vst [vmem:[#allocation2 + $0xe30] sm:$0xff] %v965_v6 }
 0x1c9   :  { %968 = vst [vmem:[#allocation2 + $0xe38] sm:$0xff] %v967_v7 }
 0x1ca   :  { %970 = vst [vmem:[#allocation2 + $0xe40] sm:$0xff] %v969_v8 }
 0x1cb   :  { %972 = vst [vmem:[#allocation2 + $0xe48] sm:$0xff] %v971_v9 }
 0x1cc   :  { %974 = vst [vmem:[#allocation2 + $0xe50] sm:$0xff] %v973_v10 }
 0x1cd   :  { %976 = vst [vmem:[#allocation2 + $0xe58] sm:$0xff] %v975_v11 }
 0x1ce   :  { %978 = vst [vmem:[#allocation2 + $0xe60] sm:$0xff] %v977_v12 }
 0x1cf   :  { %980 = vst [vmem:[#allocation2 + $0xe68] sm:$0xff] %v979_v13 }
 0x1d0   :  { %982 = vst [vmem:[#allocation2 + $0xe70] sm:$0xff] %v981_v14 }
 0x1d1   :  { %984 = vst [vmem:[#allocation2 + $0xe78] sm:$0xff] %v983_v15 }
 0x1d2   :  { %986 = vst [vmem:[#allocation2 + $0xe80] sm:$0xff] %v985_v16 }
 0x1d3   :  { %988 = vst [vmem:[#allocation2 + $0xe88] sm:$0xff] %v987_v17 }
 0x1d4   :  { %990 = vst [vmem:[#allocation2 + $0xe90] sm:$0xff] %v989_v18 }
 0x1d5   :  { %992 = vst [vmem:[#allocation2 + $0xe98] sm:$0xff] %v991_v19 }
 0x1d6   :  { %994 = vst [vmem:[#allocation2 + $0xea0] sm:$0xff] %v993_v20 }
 0x1d7   :  { %996 = vst [vmem:[#allocation2 + $0xea8] sm:$0xff] %v995_v21 }
 0x1d8   :  { %998 = vst [vmem:[#allocation2 + $0xeb0] sm:$0xff] %v997_v22 }
 0x1d9   :  { %1000 = vst [vmem:[#allocation2 + $0xeb8] sm:$0xff] %v999_v23 }
 0x1da   :  { %1002 = vst [vmem:[#allocation2 + $0xec0] sm:$0xff] %v1001_v24 }
 0x1db   :  { %1004 = vst [vmem:[#allocation2 + $0xec8] sm:$0xff] %v1003_v25 }
 0x1dc   :  { %1006 = vst [vmem:[#allocation2 + $0xed0] sm:$0xff] %v1005_v26 }
 0x1dd   :  { %1008 = vst [vmem:[#allocation2 + $0xed8] sm:$0xff] %v1007_v27 }
 0x1de   :  { %1010 = vst [vmem:[#allocation2 + $0xee0] sm:$0xff] %v1009_v28 }
 0x1df   :  { %1012 = vst [vmem:[#allocation2 + $0xee8] sm:$0xff] %v1011_v29 }
 0x1e0   :  { %1014 = vst [vmem:[#allocation2 + $0xef0] sm:$0xff] %v1013_v30 }
 0x1e1   :  { %1016 = vst [vmem:[#allocation2 + $0xef8] sm:$0xff] %v1015_v31 }
 0x1e2   :  { %1018 = vst [vmem:[#allocation2 + $0xf00] sm:$0xff] %v1017_v32 }
 0x1e3   :  { %1020 = vst [vmem:[#allocation2 + $0xf08] sm:$0xff] %v1019_v33 }
 0x1e4   :  { %1022 = vst [vmem:[#allocation2 + $0xf10] sm:$0xff] %v1021_v34 }
 0x1e5   :  { %1024 = vst [vmem:[#allocation2 + $0xf18] sm:$0xff] %v1023_v35 }
 0x1e6   :  { %1026 = vst [vmem:[#allocation2 + $0xf20] sm:$0xff] %v1025_v36 }
 0x1e7   :  { %1028 = vst [vmem:[#allocation2 + $0xf28] sm:$0xff] %v1027_v37 }
 0x1e8   :  { %1030 = vst [vmem:[#allocation2 + $0xf30] sm:$0xff] %v1029_v38 }
 0x1e9   :  { %1032 = vst [vmem:[#allocation2 + $0xf38] sm:$0xff] %v1031_v39 }
 0x1ea   :  { %1034 = vst [vmem:[#allocation2 + $0xf40] sm:$0xff] %v1033_v40 }
 0x1eb   :  { %1036 = vst [vmem:[#allocation2 + $0xf48] sm:$0xff] %v1035_v41 }
 0x1ec   :  { %1038 = vst [vmem:[#allocation2 + $0xf50] sm:$0xff] %v1037_v42 }
 0x1ed   :  { %1040 = vst [vmem:[#allocation2 + $0xf58] sm:$0xff] %v1039_v43 }
 0x1ee   :  { %1042 = vst [vmem:[#allocation2 + $0xf60] sm:$0xff] %v1041_v44 }
 0x1ef   :  { %1044 = vst [vmem:[#allocation2 + $0xf68] sm:$0xff] %v1043_v45 }
 0x1f0   :  { %1046 = vst [vmem:[#allocation2 + $0xf70] sm:$0xff] %v1045_v46 }
 0x1f1   :  { %1048 = vst [vmem:[#allocation2 + $0xf78] sm:$0xff] %v1047_v47 }
 0x1f2   :  { %1050 = vst [vmem:[#allocation2 + $0xf80] sm:$0xff] %v1049_v48 }
 0x1f3   :  { %1052 = vst [vmem:[#allocation2 + $0xf88] sm:$0xff] %v1051_v49 }
 0x1f4   :  { %1054 = vst [vmem:[#allocation2 + $0xf90] sm:$0xff] %v1053_v50 }
 0x1f5   :  { %1056 = vst [vmem:[#allocation2 + $0xf98] sm:$0xff] %v1055_v51 }
 0x1f6   :  { %1058 = vst [vmem:[#allocation2 + $0xfa0] sm:$0xff] %v1057_v52 }
 0x1f7   :  { %1060 = vst [vmem:[#allocation2 + $0xfa8] sm:$0xff] %v1059_v53 }
 0x1f8   :  { %1062 = vst [vmem:[#allocation2 + $0xfb0] sm:$0xff] %v1061_v54 }
 0x1f9   :  { %1064 = vst [vmem:[#allocation2 + $0xfb8] sm:$0xff] %v1063_v55 }
 0x1fa   :  { %1066 = vst [vmem:[#allocation2 + $0xfc0] sm:$0xff] %v1065_v56 }
 0x1fb   :  { %1068 = vst [vmem:[#allocation2 + $0xfc8] sm:$0xff] %v1067_v57 }
 0x1fc   :  { %1070 = vst [vmem:[#allocation2 + $0xfd0] sm:$0xff] %v1069_v58 }
 0x1fd   :  { %1072 = vst [vmem:[#allocation2 + $0xfd8] sm:$0xff] %v1071_v59 }
 0x1fe   :  { %1074 = vst [vmem:[#allocation2 + $0xfe0] sm:$0xff] %v1073_v60 }
 0x1ff   :  { %1076 = vst [vmem:[#allocation2 + $0xfe8] sm:$0xff] %v1075_v61 }
 0x200   :  { %1078 = vst [vmem:[#allocation2 + $0xff0] sm:$0xff] %v1077_v62 }
 0x201   :  { %1080 = vst [vmem:[#allocation2 + $0xff8] sm:$0xff] %v1079_v63 }
 0x202   :  { %1086 = vsyncadd [#allocation4], 65536  ;;  %v7026_v0 = vld [vmem:[%s13035_s0 + $0x1c0] sm:$0xf]  ;;  %v9408_v3 = vld [vmem:[%s13035_s0 + $0x1c4] sm:$0xf] }
 0x203   :  { %v9412_v1 = vld [vmem:[%s13035_s0 + $0x1dc] sm:$0xf0]  ;;  %v7028_v4 = vld [vmem:[%s13035_s0 + $0x1e0] sm:$0xf0]  ;;  %vm1750_vm0 = vcmask 1043456   ;;  %v1194_v63 = vld [vmem:[%s13035_s0 + $0x348] sm:$0xff] }
 0x204   :  { %v7027_v2 = vor.u32 %v9412_v1, %v7026_v0  ;;  %v1193_v5 = vld [vmem:[%s13035_s0 + $0x340] sm:$0xff]  ;;  %v7031_v6 = vor.u32 %v9408_v3, %v7028_v4  ;;  %v1524_v0 = vunpack.c.l.b16 %v1194_v63  ;;  %vm1746_vm1 = vcmask 719872  }
 0x205   :  { %v1522_v7 = vunpack.c.l.b16 %v1193_v5  ;;  %v1523_v8 = vunpack.c.h.b16 %v1193_v5  ;;  %v6994_v9 = vld [vmem:[%s13035_s0 + $0x180] sm:$0xf]  ;;  %v9400_v11 = vld [vmem:[%s13035_s0 + $0x184] sm:$0xf]  ;;  %vm2031_vm2 = vcmask 909312   ;;  %vm2039_vm5 = vcmask 1040384  }
 0x206   :  { %v9404_v10 = vld [vmem:[%s13035_s0 + $0x19c] sm:$0xf0]  ;;  %1775 = vmatpush.bf16.msra.mxu0 %v7027_v2  ;;  %v6996_v12 = vld [vmem:[%s13035_s0 + $0x1a0] sm:$0xf0]  ;;  %1803 = vmatpush.bf16.msra.mxu2 %v7031_v6  ;;  %vm2032_vm3 = vsmask.f32 256 }
 0x207   :  { %v7186_v13 = vld [vmem:[%s13035_s0 + $0x300] sm:$0xf]  ;;  %v1634_v15 = vpack.c.b16 %v1522_v7, %v1522_v7  ;;  %v1635_v16 = vpack.c.b16 %v1523_v8, %v1523_v8  ;;  %v6995_v17 = vor.u32 %v9404_v10, %v6994_v9  ;;  %v6999_v18 = vor.u32 %v9400_v11, %v6996_v12  ;;  %v9448_v19 = vld [vmem:[%s13035_s0 + $0x304] sm:$0xf]  ;;  %vm12387_vm4 = vmand %vm2031_vm2, %vm2032_vm3 }
 0x208   :  { %v9452_v14 = vld [vmem:[%s13035_s0 + $0x31c] sm:$0xf0]  ;;  %v7188_v20 = vld [vmem:[%s13035_s0 + $0x320] sm:$0xf0]  ;;  %vm2183_vm6 = vsmask.f32 7938 }
 0x209   :  { %v6962_v21 = vld [vmem:[%s13035_s0 + $0x140] sm:$0xf]  ;;  %v9392_v23 = vld [vmem:[%s13035_s0 + $0x144] sm:$0xf]  ;;  %v1752_v25 = vsel %vm1750_vm0, %v1634_v15, 0  ;;  %v1755_v26 = vsel %vm1750_vm0, %v1635_v16, 0  ;;  %v7187_v27 = vor.u32 %v9452_v14, %v7186_v13  ;;  %v7191_v28 = vor.u32 %v9448_v19, %v7188_v20  ;;  %vm12464_vm8 = vmand %vm2031_vm2, %vm2183_vm6 }
 0x20a   :  { %v9396_v22 = vld [vmem:[%s13035_s0 + $0x15c] sm:$0xf0]  ;;  %v6964_v24 = vld [vmem:[%s13035_s0 + $0x160] sm:$0xf0]  ;;  %1791 = vmatpush.bf16.msra.mxu1 %v1752_v25  ;;  %1819 = vmatpush.bf16.msra.mxu3 %v1755_v26  ;;  %v7034_v13 = vld [vmem:[%s13035_s0 + $0x1c8] sm:$0xf]  ;;  %v1636_v15 = vpack.c.b16 %v1524_v0, %v1524_v0  ;;  %v1525_v16 = vunpack.c.h.b16 %v1194_v63 }
 0x20b   :  { %v7154_v29 = vld [vmem:[%s13035_s0 + $0x2c0] sm:$0xf]  ;;  %1776 = vmatpush.bf16.msra.mxu0 %v6995_v17  ;;  %1804 = vmatpush.bf16.msra.mxu2 %v6999_v18  ;;  %v6963_v31 = vor.u32 %v9396_v22, %v6962_v21  ;;  %v6967_v32 = vor.u32 %v9392_v23, %v6964_v24  ;;  %v9440_v33 = vld [vmem:[%s13035_s0 + $0x2c4] sm:$0xf]  ;;  %v9413_v14 = vld [vmem:[%s13035_s0 + $0x1e4] sm:$0xf0] }
 0x20c   :  { %v9444_v30 = vld [vmem:[%s13035_s0 + $0x2dc] sm:$0xf0]  ;;  %v7156_v34 = vld [vmem:[%s13035_s0 + $0x2e0] sm:$0xf0]  ;;  %v6796_v20 = vld [vmem:[%s13036_s1 + $0x8] sm:$0xf0]  ;;  %v7035_v26 = vor.u32 %v9413_v14, %v7034_v13 }
 0x20d   :  { %v6930_v35 = vld [vmem:[%s13035_s0 + $0x100] sm:$0xf]  ;;  %v9384_v37 = vld [vmem:[%s13035_s0 + $0x104] sm:$0xf]  ;;  %v7155_v39 = vor.u32 %v9444_v30, %v7154_v29  ;;  %v7159_v40 = vor.u32 %v9440_v33, %v7156_v34  ;;  %v9405_v29 = vld [vmem:[%s13035_s0 + $0x1a4] sm:$0xf0]  ;;  %v1637_v33 = vpack.c.b16 %v1525_v16, %v1525_v16 }
 0x20e   :  { %v9388_v36 = vld [vmem:[%s13035_s0 + $0x11c] sm:$0xf0]  ;;  %v6932_v38 = vld [vmem:[%s13035_s0 + $0x120] sm:$0xf0]  ;;  %1792 = vmatpush.bf16.msra.mxu1 %v7187_v27  ;;  %1820 = vmatpush.bf16.msra.mxu3 %v7191_v28  ;;  %v7002_v28 = vld [vmem:[%s13035_s0 + $0x188] sm:$0xf] }
 0x20f   :  { %v7122_v41 = vld [vmem:[%s13035_s0 + $0x280] sm:$0xf]  ;;  %1777 = vmatpush.bf16.msra.mxu0 %v6963_v31  ;;  %1805 = vmatpush.bf16.msra.mxu2 %v6967_v32  ;;  %v6931_v43 = vor.u32 %v9388_v36, %v6930_v35  ;;  %v6935_v44 = vor.u32 %v9384_v37, %v6932_v38  ;;  %v9432_v45 = vld [vmem:[%s13035_s0 + $0x284] sm:$0xf]  ;;  %v1758_v30 = vsel %vm1750_vm0, %v1636_v15, 0  ;;  %vm2180_vm7 = vcmask 130048  }
 0x210   :  { %v9436_v42 = vld [vmem:[%s13035_s0 + $0x29c] sm:$0xf0]  ;;  %v7124_v46 = vld [vmem:[%s13035_s0 + $0x2a0] sm:$0xf0]  ;;  %v7194_v31 = vld [vmem:[%s13035_s0 + $0x308] sm:$0xf] }
 0x211   :  { %v6898_v47 = vld [vmem:[%s13035_s0 + $0xc0] sm:$0xf]  ;;  %v9376_v49 = vld [vmem:[%s13035_s0 + $0xc4] sm:$0xf]  ;;  %v7123_v51 = vor.u32 %v9436_v42, %v7122_v41  ;;  %v7127_v52 = vor.u32 %v9432_v45, %v7124_v46  ;;  %v9453_v32 = vld [vmem:[%s13035_s0 + $0x324] sm:$0xf0]  ;;  %v7003_v41 = vor.u32 %v9405_v29, %v7002_v28 }
 0x212   :  { %v9380_v48 = vld [vmem:[%s13035_s0 + $0xdc] sm:$0xf0]  ;;  %v6900_v50 = vld [vmem:[%s13035_s0 + $0xe0] sm:$0xf0]  ;;  %1793 = vmatpush.bf16.msra.mxu1 %v7155_v39  ;;  %1821 = vmatpush.bf16.msra.mxu3 %v7159_v40  ;;  %v9409_v35 = vld [vmem:[%s13035_s0 + $0x1cc] sm:$0xf]  ;;  %v7195_v42 = vor.u32 %v9453_v32, %v7194_v31 }
 0x213   :  { %v7090_v53 = vld [vmem:[%s13035_s0 + $0x240] sm:$0xf]  ;;  %v9424_v55 = vld [vmem:[%s13035_s0 + $0x244] sm:$0xf]  ;;  %1778 = vmatpush.bf16.msra.mxu0 %v6931_v43  ;;  %1806 = vmatpush.bf16.msra.mxu2 %v6935_v44  ;;  %v6899_v56 = vor.u32 %v9380_v48, %v6898_v47  ;;  %v6903_v57 = vor.u32 %v9376_v49, %v6900_v50  ;;  %v7036_v36 = vld [vmem:[%s13035_s0 + $0x1e8] sm:$0xf0] }
 0x214   :  { %v9428_v54 = vld [vmem:[%s13035_s0 + $0x25c] sm:$0xf0]  ;;  %v7092_v58 = vld [vmem:[%s13035_s0 + $0x260] sm:$0xf0]  ;;  %v9351_v40 = vld [vmem:[%s13036_s1 + $0x4] sm:$0xf0]  ;;  %v7039_v46 = vor.u32 %v9409_v35, %v7036_v36 }
 0x215   :  { %v6866_v59 = vld [vmem:[%s13035_s0 + $0x80] sm:$0xf]  ;;  %v9368_v61 = vld [vmem:[%s13035_s0 + $0x84] sm:$0xf]  ;;  %v7091_v1 = vor.u32 %v9428_v54, %v7090_v53  ;;  %v7095_v2 = vor.u32 %v9424_v55, %v7092_v58  ;;  %v6970_v43 = vld [vmem:[%s13035_s0 + $0x148] sm:$0xf] }
 0x216   :  { %v9372_v60 = vld [vmem:[%s13035_s0 + $0x9c] sm:$0xf0]  ;;  %v6868_v62 = vld [vmem:[%s13035_s0 + $0xa0] sm:$0xf0]  ;;  %1794 = vmatpush.bf16.msra.mxu1 %v7123_v51  ;;  %1822 = vmatpush.bf16.msra.mxu3 %v7127_v52  ;;  %v9397_v44 = vld [vmem:[%s13035_s0 + $0x164] sm:$0xf0] }
 0x217   :  { %v7058_v3 = vld [vmem:[%s13035_s0 + $0x200] sm:$0xf]  ;;  %1779 = vmatpush.bf16.msra.mxu0 %v6899_v56  ;;  %1807 = vmatpush.bf16.msra.mxu2 %v6903_v57  ;;  %v6867_v5 = vor.u32 %v9372_v60, %v6866_v59  ;;  %v6871_v6 = vor.u32 %v9368_v61, %v6868_v62  ;;  %v9416_v7 = vld [vmem:[%s13035_s0 + $0x204] sm:$0xf]  ;;  %v7162_v45 = vld [vmem:[%s13035_s0 + $0x2c8] sm:$0xf]  ;;  %v6971_v54 = vor.u32 %v9397_v44, %v6970_v43 }
 0x218   :  { %v9420_v4 = vld [vmem:[%s13035_s0 + $0x21c] sm:$0xf0]  ;;  %v7060_v8 = vld [vmem:[%s13035_s0 + $0x220] sm:$0xf0]  ;;  %v1761_v47 = vsel %vm1750_vm0, %v1637_v33, 0 }
 0x219   :  { %v6834_v9 = vld [vmem:[%s13035_s0 + $0x40] sm:$0xf]  ;;  %v9360_v11 = vld [vmem:[%s13035_s0 + $0x44] sm:$0xf]  ;;  %v7059_v17 = vor.u32 %v9420_v4, %v7058_v3  ;;  %v7063_v18 = vor.u32 %v9416_v7, %v7060_v8  ;;  %v9445_v48 = vld [vmem:[%s13035_s0 + $0x2e4] sm:$0xf0] }
 0x21a   :  { %v9364_v10 = vld [vmem:[%s13035_s0 + $0x5c] sm:$0xf0]  ;;  %v6836_v12 = vld [vmem:[%s13035_s0 + $0x60] sm:$0xf0]  ;;  %1795 = vmatpush.bf16.msra.mxu1 %v7091_v1  ;;  %1823 = vmatpush.bf16.msra.mxu3 %v7095_v2  ;;  %v9401_v49 = vld [vmem:[%s13035_s0 + $0x18c] sm:$0xf]  ;;  %v7163_v55 = vor.u32 %v9445_v48, %v7162_v45 }
 0x21b   :  { %v9350_v19 = vld [vmem:[%s13036_s1 + $0x4] sm:$0xf]  ;;  %1780 = vmatpush.bf16.msra.mxu0 %v6867_v5  ;;  %1808 = vmatpush.bf16.msra.mxu2 %v6871_v6  ;;  %v6835_v21 = vor.u32 %v9364_v10, %v6834_v9  ;;  %v6839_v22 = vor.u32 %v9360_v11, %v6836_v12  ;;  %v6802_v23 = vld [vmem:[%s13035_s0] sm:$0xf]  ;;  %v7004_v50 = vld [vmem:[%s13035_s0 + $0x1a8] sm:$0xf0] }
 0x21c   :  { %v9356_v24 = vld [vmem:[%s13035_s0 + $0x1c] sm:$0xf0]  ;;  %v9352_v25 = vld [vmem:[%s13035_s0 + $0x4] sm:$0xf]  ;;  %v11881_v34 = vor.u32 %v9350_v19, %v6796_v20  ;;  %v9449_v51 = vld [vmem:[%s13035_s0 + $0x30c] sm:$0xf]  ;;  %v7007_v58 = vor.u32 %v9401_v49, %v7004_v50 }
 0x21d   :  { %v6804_v27 = vld [vmem:[%s13035_s0 + $0x20] sm:$0xf0]  ;;  %v6803_v37 = vor.u32 %v9356_v24, %v6802_v23  ;;  %v6794_v39 = vld [vmem:[%s13036_s1] sm:$0xf]  ;;  %v7196_v52 = vld [vmem:[%s13035_s0 + $0x328] sm:$0xf0] }
 0x21e   :  { %1796 = vmatpush.bf16.msra.mxu1 %v7059_v17  ;;  %1824 = vmatpush.bf16.msra.mxu3 %v7063_v18  ;;  %v6807_v38 = vor.u32 %v9352_v25, %v6804_v27  ;;  %v11924_v53 = vor.u32 %v9351_v40, %v6794_v39  ;;  %v6938_v56 = vld [vmem:[%s13035_s0 + $0x108] sm:$0xf]  ;;  %v7199_v59 = vor.u32 %v9449_v51, %v7196_v52  ;;  %v9393_v62 = vld [vmem:[%s13035_s0 + $0x14c] sm:$0xf]  ;;  %v11985_v18 = vld [vmem:[%s13035_s0 + $0x350] sm:$0xff] }
 0x21f   :  { %1781 = vmatpush.bf16.msra.mxu0 %v6835_v21  ;;  %1809 = vmatpush.bf16.msra.mxu2 %v6839_v22  ;;  %v9389_v57 = vld [vmem:[%s13035_s0 + $0x124] sm:$0xf0]  ;;  %v6972_v63 = vld [vmem:[%s13035_s0 + $0x168] sm:$0xf0]  ;;  %v7042_v27 = vld [vmem:[%s13035_s0 + $0x1d0] sm:$0xf] }
 0x220   :  { %v7130_v60 = vld [vmem:[%s13035_s0 + $0x288] sm:$0xf]  ;;  %v9441_v0 = vld [vmem:[%s13035_s0 + $0x2cc] sm:$0xf]  ;;  %v6939_v2 = vor.u32 %v9389_v57, %v6938_v56  ;;  %v6975_v6 = vor.u32 %v9393_v62, %v6972_v63  ;;  %v9414_v28 = vld [vmem:[%s13035_s0 + $0x1ec] sm:$0xf0]  ;;  %v1527_v62 = vunpack.c.h.b16 %v11985_v18 }
 0x221   :  { %7217 = vmatmul.msk.bf16.vlgmr.msra.gmra.mxu3 %vm1746_vm1, %v11881_v34  ;;  %7216 = vmatmul.msk.bf16.vlgmr.msra.gmra.mxu1 %vm1746_vm1, %v11881_v34  ;;  %v9437_v61 = vld [vmem:[%s13035_s0 + $0x2a4] sm:$0xf0]  ;;  %v7164_v1 = vld [vmem:[%s13035_s0 + $0x2e8] sm:$0xf0]  ;;  %v7043_v39 = vor.u32 %v9414_v28, %v7042_v27  ;;  %v9406_v43 = vld [vmem:[%s13035_s0 + $0x1ac] sm:$0xf0] }
 0x222   :  { %1831 = vmatpush.bf16.msrb.mxu1 %v7035_v26  ;;  %1847 = vmatpush.bf16.msrb.mxu3 %v1758_v30  ;;  %v7131_v3 = vor.u32 %v9437_v61, %v7130_v60  ;;  %v6906_v4 = vld [vmem:[%s13035_s0 + $0xc8] sm:$0xf]  ;;  %v7167_v7 = vor.u32 %v9441_v0, %v7164_v1  ;;  %v9385_v10 = vld [vmem:[%s13035_s0 + $0x10c] sm:$0xf]  ;;  %v9410_v44 = vld [vmem:[%s13035_s0 + $0x1d4] sm:$0xf] }
 0x223   :  { %1782 = vmatpush.bf16.msra.mxu0 %v6803_v37  ;;  %1810 = vmatpush.bf16.msra.mxu2 %v6807_v38  ;;  %v9381_v5 = vld [vmem:[%s13035_s0 + $0xe4] sm:$0xf0]  ;;  %v6940_v11 = vld [vmem:[%s13035_s0 + $0x128] sm:$0xf0]  ;;  %v1526_v38 = vunpack.c.l.b16 %v11985_v18  ;;  %v7044_v45 = vld [vmem:[%s13035_s0 + $0x1f0] sm:$0xf0] }
 0x224   :  { %v7098_v8 = vld [vmem:[%s13035_s0 + $0x248] sm:$0xf]  ;;  %v9433_v12 = vld [vmem:[%s13035_s0 + $0x28c] sm:$0xf]  ;;  %v6907_v14 = vor.u32 %v9381_v5, %v6906_v4  ;;  %v6943_v19 = vor.u32 %v9385_v10, %v6940_v11  ;;  %v6978_v57 = vld [vmem:[%s13035_s0 + $0x150] sm:$0xf]  ;;  %v1639_v11 = vpack.c.b16 %v1527_v62, %v1527_v62 }
 0x225   :  { %v9429_v9 = vld [vmem:[%s13035_s0 + $0x264] sm:$0xf0]  ;;  %v7132_v13 = vld [vmem:[%s13035_s0 + $0x2a8] sm:$0xf0]  ;;  %v1638_v51 = vpack.c.b16 %v1526_v38, %v1526_v38  ;;  %v7012_v60 = vld [vmem:[%s13035_s0 + $0x1b0] sm:$0xf0] }
 0x226   :  { %1832 = vmatpush.bf16.msrb.mxu1 %v7003_v41  ;;  %1848 = vmatpush.bf16.msrb.mxu3 %v7195_v42  ;;  %v7099_v15 = vor.u32 %v9429_v9, %v7098_v8  ;;  %v6874_v16 = vld [vmem:[%s13035_s0 + $0x88] sm:$0xf]  ;;  %v7135_v20 = vor.u32 %v9433_v12, %v7132_v13  ;;  %v9377_v23 = vld [vmem:[%s13035_s0 + $0xcc] sm:$0xf]  ;;  %v7010_v42 = vld [vmem:[%s13035_s0 + $0x190] sm:$0xf] }
 0x227   :  { %1859 = vmatpush.bf16.msrb.mxu0 %v7039_v46  ;;  %1875 = vmatpush.bf16.msrb.mxu2 %v1761_v47  ;;  %v9373_v17 = vld [vmem:[%s13035_s0 + $0xa4] sm:$0xf0]  ;;  %v6908_v24 = vld [vmem:[%s13035_s0 + $0xe8] sm:$0xf0]  ;;  %v7011_v52 = vor.u32 %v9406_v43, %v7010_v42  ;;  %v1764_v0 = vsel %vm1750_vm0, %v1638_v51, 0 }
 0x228   :  { %1811 = vmatmul.bf16.vlgmr.msra.gmra.mxu2 %v11924_v53  ;;  %1783 = vmatmul.bf16.vlgmr.msra.gmra.mxu0 %v11924_v53  ;;  %v7066_v21 = vld [vmem:[%s13035_s0 + $0x208] sm:$0xf]  ;;  %v9425_v25 = vld [vmem:[%s13035_s0 + $0x24c] sm:$0xf]  ;;  %v6875_v29 = vor.u32 %v9373_v17, %v6874_v16  ;;  %v6911_v32 = vor.u32 %v9377_v23, %v6908_v24  ;;  %v6946_v5 = vld [vmem:[%s13035_s0 + $0x110] sm:$0xf] }
 0x229   :  { %v9421_v22 = vld [vmem:[%s13035_s0 + $0x224] sm:$0xf0]  ;;  %v7100_v26 = vld [vmem:[%s13035_s0 + $0x268] sm:$0xf0]  ;;  %v9390_v8 = vld [vmem:[%s13035_s0 + $0x12c] sm:$0xf0] }
 0x22a   :  { %1833 = vmatpush.bf16.msrb.mxu1 %v6971_v54  ;;  %1849 = vmatpush.bf16.msrb.mxu3 %v7163_v55  ;;  %v7067_v30 = vor.u32 %v9421_v22, %v7066_v21  ;;  %v6842_v31 = vld [vmem:[%s13035_s0 + $0x48] sm:$0xf]  ;;  %v7103_v33 = vor.u32 %v9425_v25, %v7100_v26  ;;  %v9369_v36 = vld [vmem:[%s13035_s0 + $0x8c] sm:$0xf]  ;;  %v7047_v54 = vor.u32 %v9410_v44, %v7044_v45  ;;  %v9394_v9 = vld [vmem:[%s13035_s0 + $0x154] sm:$0xf] }
 0x22b   :  { %1860 = vmatpush.bf16.msrb.mxu0 %v7007_v58  ;;  %1876 = vmatpush.bf16.msrb.mxu2 %v7199_v59  ;;  %v9365_v35 = vld [vmem:[%s13035_s0 + $0x64] sm:$0xf0]  ;;  %v6876_v37 = vld [vmem:[%s13035_s0 + $0xa8] sm:$0xf0]  ;;  %v9398_v58 = vld [vmem:[%s13035_s0 + $0x16c] sm:$0xf0] }
 0x22c   :  { %v9417_v40 = vld [vmem:[%s13035_s0 + $0x20c] sm:$0xf]  ;;  %v6843_v46 = vor.u32 %v9365_v35, %v6842_v31  ;;  %v6879_v47 = vor.u32 %v9369_v36, %v6876_v37  ;;  %v6810_v49 = vld [vmem:[%s13035_s0 + $0x8] sm:$0xf]  ;;  %v9402_v59 = vld [vmem:[%s13035_s0 + $0x194] sm:$0xf] }
 0x22d   :  { %v7068_v41 = vld [vmem:[%s13035_s0 + $0x228] sm:$0xf0]  ;;  %v9357_v50 = vld [vmem:[%s13035_s0 + $0x24] sm:$0xf0]  ;;  %v7015_v4 = vor.u32 %v9402_v59, %v7012_v60  ;;  %v6980_v10 = vld [vmem:[%s13035_s0 + $0x170] sm:$0xf0] }
 0x22e   :  { %1834 = vmatpush.bf16.msrb.mxu1 %v6939_v2  ;;  %1850 = vmatpush.bf16.msrb.mxu3 %v7131_v3  ;;  %v7071_v48 = vor.u32 %v9417_v40, %v7068_v41  ;;  %v9361_v55 = vld [vmem:[%s13035_s0 + $0x4c] sm:$0xf]  ;;  %v6811_v61 = vor.u32 %v9357_v50, %v6810_v49  ;;  %v6979_v3 = vor.u32 %v9398_v58, %v6978_v57  ;;  %v6914_v16 = vld [vmem:[%s13035_s0 + $0xd0] sm:$0xf]  ;;  %v6948_v21 = vld [vmem:[%s13035_s0 + $0x130] sm:$0xf0] }
 0x22f   :  { %1861 = vmatpush.bf16.msrb.mxu0 %v6975_v6  ;;  %1877 = vmatpush.bf16.msrb.mxu2 %v7167_v7  ;;  %v6844_v56 = vld [vmem:[%s13035_s0 + $0x68] sm:$0xf0]  ;;  %v7202_v6 = vld [vmem:[%s13035_s0 + $0x310] sm:$0xf]  ;;  %v1767_v22 = vsel %vm1750_vm0, %v1639_v11, 0  ;;  %v1196_v44 = vld [vmem:[%s13035_s0 + $0x358] sm:$0xff] }
 0x230   :  { %v6847_v63 = vor.u32 %v9361_v55, %v6844_v56  ;;  %v9353_v1 = vld [vmem:[%s13035_s0 + $0xc] sm:$0xf]  ;;  %v9454_v7 = vld [vmem:[%s13035_s0 + $0x32c] sm:$0xf0]  ;;  %v9450_v23 = vld [vmem:[%s13035_s0 + $0x314] sm:$0xf] }
 0x231   :  { %v6812_v2 = vld [vmem:[%s13035_s0 + $0x28] sm:$0xf0]  ;;  %v7203_v13 = vor.u32 %v9454_v7, %v7202_v6  ;;  %v7170_v17 = vld [vmem:[%s13035_s0 + $0x2d0] sm:$0xf]  ;;  %v7204_v24 = vld [vmem:[%s13035_s0 + $0x330] sm:$0xf0] }
 0x232   :  { %1835 = vmatpush.bf16.msrb.mxu1 %v6907_v14  ;;  %1851 = vmatpush.bf16.msrb.mxu3 %v7099_v15  ;;  %v6815_v12 = vor.u32 %v9353_v1, %v6812_v2  ;;  %v6947_v14 = vor.u32 %v9390_v8, %v6946_v5  ;;  %v6983_v15 = vor.u32 %v9394_v9, %v6980_v10  ;;  %v9446_v18 = vld [vmem:[%s13035_s0 + $0x2ec] sm:$0xf0]  ;;  %v6916_v35 = vld [vmem:[%s13035_s0 + $0xf0] sm:$0xf0]  ;;  %v7050_v1 = vld [vmem:[%s13035_s0 + $0x1d8] sm:$0xf]  ;;  %v1529_v9 = vunpack.c.h.b16 %v1196_v44 }
 0x233   :  { %1862 = vmatpush.bf16.msrb.mxu0 %v6943_v19  ;;  %1878 = vmatpush.bf16.msrb.mxu2 %v7135_v20  ;;  %v9382_v19 = vld [vmem:[%s13035_s0 + $0xec] sm:$0xf0]  ;;  %v9386_v20 = vld [vmem:[%s13035_s0 + $0x114] sm:$0xf]  ;;  %v7171_v25 = vor.u32 %v9446_v18, %v7170_v17  ;;  %v7207_v31 = vor.u32 %v9450_v23, %v7204_v24  ;;  %v9415_v2 = vld [vmem:[%s13035_s0 + $0x1f4] sm:$0xf0] }
 0x234   :  { %v6915_v26 = vor.u32 %v9382_v19, %v6914_v16  ;;  %v6951_v27 = vor.u32 %v9386_v20, %v6948_v21  ;;  %v6882_v28 = vld [vmem:[%s13035_s0 + $0x90] sm:$0xf]  ;;  %v9442_v36 = vld [vmem:[%s13035_s0 + $0x2d4] sm:$0xf]  ;;  %v7051_v11 = vor.u32 %v9415_v2, %v7050_v1  ;;  %v7210_v16 = vld [vmem:[%s13035_s0 + $0x318] sm:$0xf] }
 0x235   :  { %v7172_v37 = vld [vmem:[%s13035_s0 + $0x2f0] sm:$0xf0]  ;;  %v7106_v42 = vld [vmem:[%s13035_s0 + $0x250] sm:$0xf]  ;;  %v9455_v17 = vld [vmem:[%s13035_s0 + $0x334] sm:$0xf0] }
 0x236   :  { %1836 = vmatpush.bf16.msrb.mxu1 %v6875_v29  ;;  %1852 = vmatpush.bf16.msrb.mxu3 %v7067_v30  ;;  %v7138_v29 = vld [vmem:[%s13035_s0 + $0x290] sm:$0xf]  ;;  %v7175_v45 = vor.u32 %v9442_v36, %v7172_v37  ;;  %v9434_v49 = vld [vmem:[%s13035_s0 + $0x294] sm:$0xf]  ;;  %v9411_v19 = vld [vmem:[%s13035_s0 + $0x1dc] sm:$0xf] }
 0x237   :  { %1863 = vmatpush.bf16.msrb.mxu0 %v6911_v32  ;;  %1879 = vmatpush.bf16.msrb.mxu2 %v7103_v33  ;;  %v9438_v30 = vld [vmem:[%s13035_s0 + $0x2ac] sm:$0xf0]  ;;  %v9378_v33 = vld [vmem:[%s13035_s0 + $0xd4] sm:$0xf]  ;;  %v7052_v20 = vld [vmem:[%s13035_s0 + $0x1f8] sm:$0xf0] }
 0x238   :  { %v9374_v32 = vld [vmem:[%s13035_s0 + $0xac] sm:$0xf0]  ;;  %v7139_v38 = vor.u32 %v9438_v30, %v7138_v29  ;;  %v6919_v41 = vor.u32 %v9378_v33, %v6916_v35  ;;  %v7140_v50 = vld [vmem:[%s13035_s0 + $0x2b0] sm:$0xf0]  ;;  %v7178_v29 = vld [vmem:[%s13035_s0 + $0x2d8] sm:$0xf] }
 0x239   :  { %7218 = vmatmul.msk.bf16.vlgmr.msrb.gmra.mxu3 %vm1746_vm1, %v11881_v34  ;;  %v6883_v40 = vor.u32 %v9374_v32, %v6882_v28  ;;  %v9430_v43 = vld [vmem:[%s13035_s0 + $0x26c] sm:$0xf0]  ;;  %v7143_v60 = vor.u32 %v9434_v49, %v7140_v50  ;;  %v6852_v62 = vld [vmem:[%s13035_s0 + $0x70] sm:$0xf0]  ;;  %v9399_v28 = vld [vmem:[%s13035_s0 + $0x174] sm:$0xf0] }
 0x23a   :  { %1887 = vmatpush.bf16.msra.mxu3 %v7043_v39  ;;  %1837 = vmatpush.bf16.msrb.mxu1 %v6843_v46  ;;  %v6850_v39 = vld [vmem:[%s13035_s0 + $0x50] sm:$0xf]  ;;  %v7107_v51 = vor.u32 %v9430_v43, %v7106_v42  ;;  %v9354_v7 = vld [vmem:[%s13035_s0 + $0x14] sm:$0xf]  ;;  %v9447_v30 = vld [vmem:[%s13035_s0 + $0x2f4] sm:$0xf0] }
 0x23b   :  { %1864 = vmatpush.bf16.msrb.mxu0 %v6879_v47  ;;  %1880 = vmatpush.bf16.msrb.mxu2 %v7071_v48  ;;  %v9366_v46 = vld [vmem:[%s13035_s0 + $0x6c] sm:$0xf0]  ;;  %v9370_v47 = vld [vmem:[%s13035_s0 + $0x94] sm:$0xf]  ;;  %v7020_v32 = vld [vmem:[%s13035_s0 + $0x1b8] sm:$0xf0] }
 0x23c   :  { %v6884_v48 = vld [vmem:[%s13035_s0 + $0xb0] sm:$0xf0]  ;;  %v6851_v55 = vor.u32 %v9366_v46, %v6850_v39  ;;  %v9358_v57 = vld [vmem:[%s13035_s0 + $0x2c] sm:$0xf0]  ;;  %v9451_v35 = vld [vmem:[%s13035_s0 + $0x31c] sm:$0xf] }
 0x23d   :  { %v6887_v56 = vor.u32 %v9370_v47, %v6884_v48  ;;  %v7074_v58 = vld [vmem:[%s13035_s0 + $0x210] sm:$0xf]  ;;  %v6820_v8 = vld [vmem:[%s13035_s0 + $0x30] sm:$0xf0]  ;;  %v7212_v36 = vld [vmem:[%s13035_s0 + $0x338] sm:$0xf0] }
 0x23e   :  { %1888 = vmatpush.bf16.msra.mxu3 %v7011_v52  ;;  %1838 = vmatpush.bf16.msrb.mxu1 %v6811_v61  ;;  %v6818_v52 = vld [vmem:[%s13035_s0 + $0x10] sm:$0xf]  ;;  %v9362_v61 = vld [vmem:[%s13035_s0 + $0x54] sm:$0xf]  ;;  %v6823_v21 = vor.u32 %v9354_v7, %v6820_v8  ;;  %v9391_v39 = vld [vmem:[%s13035_s0 + $0x134] sm:$0xf0]  ;;  %v7215_v46 = vor.u32 %v9451_v35, %v7212_v36 }
 0x23f   :  { %1915 = vmatpush.bf16.msra.mxu2 %v7047_v54  ;;  %1865 = vmatpush.bf16.msrb.mxu0 %v6847_v63  ;;  %v1528_v54 = vunpack.c.l.b16 %v1196_v44  ;;  %v9422_v59 = vld [vmem:[%s13035_s0 + $0x22c] sm:$0xf0]  ;;  %v9426_v63 = vld [vmem:[%s13035_s0 + $0x254] sm:$0xf]  ;;  %v6819_v5 = vor.u32 %v9358_v57, %v6818_v52  ;;  %v6855_v6 = vor.u32 %v9362_v61, %v6852_v62  ;;  %v7146_v42 = vld [vmem:[%s13035_s0 + $0x298] sm:$0xf] }
 0x240   :  { %7219 = vmatmul.msk.bf16.vlgmr.msrb.gmra.mxu2 %vm1746_vm1, %v11881_v34  ;;  %v9439_v43 = vld [vmem:[%s13035_s0 + $0x2b4] sm:$0xf0]  ;;  %v10077_v44 = vmov 0   ;;  %v9395_v47 = vld [vmem:[%s13035_s0 + $0x15c] sm:$0xf] }
 0x241   :  { %1839 = vmatmul.bf16.vlgmr.msrb.gmra.mxu1 %v11924_v53  ;;  %2029 = vst [vmem:[#allocation3] sm:$0xff] %v10077_v44  ;;  %v6988_v48 = vld [vmem:[%s13035_s0 + $0x178] sm:$0xf0]  ;;  %9972 = vset.pattern.permute.xlu0 %v10077_v44  ;;  %v7147_v52 = vor.u32 %v9439_v43, %v7146_v42  ;;  %v7114_v57 = vld [vmem:[%s13035_s0 + $0x258] sm:$0xf] }
 0x242   :  { %1903 = vmatpush.bf16.msra.mxu1 %v1764_v0  ;;  %1889 = vmatpush.bf16.msra.mxu3 %v6979_v3  ;;  %v7108_v0 = vld [vmem:[%s13035_s0 + $0x270] sm:$0xf0]  ;;  %v7075_v3 = vor.u32 %v9422_v59, %v7074_v58  ;;  %2030 = vst [vmem:[#allocation3 + $0x8] sm:$0xff] %v10077_v44  ;;  %v9443_v49 = vld [vmem:[%s13035_s0 + $0x2dc] sm:$0xf] }
 0x243   :  { %1916 = vmatpush.bf16.msra.mxu2 %v7015_v4  ;;  %1866 = vmatpush.bf16.msrb.mxu0 %v6815_v12  ;;  %v1640_v4 = vpack.c.b16 %v1528_v54, %v1528_v54  ;;  %v7111_v10 = vor.u32 %v9426_v63, %v7108_v0  ;;  %v9418_v12 = vld [vmem:[%s13035_s0 + $0x214] sm:$0xf]  ;;  %v7180_v50 = vld [vmem:[%s13035_s0 + $0x2f8] sm:$0xf0]  ;;  %v6991_v54 = vor.u32 %v9395_v47, %v6988_v48  ;;  %v9431_v59 = vld [vmem:[%s13035_s0 + $0x274] sm:$0xf0] }
 0x244   :  { %v7183_v58 = vor.u32 %v9443_v49, %v7180_v50  ;;  %v6956_v61 = vld [vmem:[%s13035_s0 + $0x138] sm:$0xf0]  ;;  %v6890_v1 = vld [vmem:[%s13035_s0 + $0x98] sm:$0xf]  ;;  %v7115_v2 = vor.u32 %v9431_v59, %v7114_v57 }
 0x245   :  { %v1770_v18 = vsel %vm1750_vm0, %v1640_v4, 0  ;;  %v9435_v62 = vld [vmem:[%s13035_s0 + $0x29c] sm:$0xf]  ;;  %v9375_v4 = vld [vmem:[%s13035_s0 + $0xb4] sm:$0xf0] }
 0x246   :  { %1904 = vmatpush.bf16.msra.mxu1 %v7203_v13  ;;  %1890 = vmatpush.bf16.msra.mxu3 %v6947_v14  ;;  %v7076_v13 = vld [vmem:[%s13035_s0 + $0x230] sm:$0xf0]  ;;  %v7018_v14 = vld [vmem:[%s13035_s0 + $0x198] sm:$0xf]  ;;  %v7148_v63 = vld [vmem:[%s13035_s0 + $0x2b8] sm:$0xf0] }
 0x247   :  { %1917 = vmatpush.bf16.msra.mxu2 %v6983_v15  ;;  %1931 = vmatpush.bf16.msra.mxu0 %v1767_v22  ;;  %v9407_v15 = vld [vmem:[%s13035_s0 + $0x1b4] sm:$0xf0]  ;;  %v1641_v22 = vpack.c.b16 %v1529_v9, %v1529_v9  ;;  %v7079_v23 = vor.u32 %v9418_v12, %v7076_v13  ;;  %v7151_v7 = vor.u32 %v9435_v62, %v7148_v63  ;;  %v9379_v9 = vld [vmem:[%s13035_s0 + $0xdc] sm:$0xf] }
 0x248   :  { %1867 = vmatmul.bf16.vlgmr.msrb.gmra.mxu0 %v11924_v53  ;;  %v7019_v24 = vor.u32 %v9407_v15, %v7018_v14  ;;  %v9423_v8 = vld [vmem:[%s13035_s0 + $0x234] sm:$0xf0]  ;;  %v7116_v12 = vld [vmem:[%s13035_s0 + $0x278] sm:$0xf0]  ;;  %v6891_v13 = vor.u32 %v9375_v4, %v6890_v1 }
 0x249   :  { %v1773_v33 = vsel %vm1750_vm0, %v1641_v22, 0  ;;  %v7084_v22 = vld [vmem:[%s13035_s0 + $0x238] sm:$0xf0] }
 0x24a   :  { %1905 = vmatpush.bf16.msra.mxu1 %v7171_v25  ;;  %1891 = vmatpush.bf16.msra.mxu3 %v6915_v26  ;;  %v7211_v25 = vor.u32 %v9455_v17, %v7210_v16  ;;  %v7055_v26 = vor.u32 %v9411_v19, %v7052_v20  ;;  %v6858_v16 = vld [vmem:[%s13035_s0 + $0x58] sm:$0xf]  ;;  %v9371_v19 = vld [vmem:[%s13035_s0 + $0x9c] sm:$0xf] }
 0x24b   :  { %1918 = vmatpush.bf16.msra.mxu2 %v6951_v27  ;;  %1932 = vmatpush.bf16.msra.mxu0 %v7207_v31  ;;  %v6986_v27 = vld [vmem:[%s13035_s0 + $0x158] sm:$0xf]  ;;  %v9403_v31 = vld [vmem:[%s13035_s0 + $0x19c] sm:$0xf] }
 0x24c   :  { %v6987_v37 = vor.u32 %v9399_v28, %v6986_v27  ;;  %v9367_v17 = vld [vmem:[%s13035_s0 + $0x74] sm:$0xf0]  ;;  %v6892_v20 = vld [vmem:[%s13035_s0 + $0xb8] sm:$0xf0] }
 0x24d   :  { %v9363_v28 = vld [vmem:[%s13035_s0 + $0x5c] sm:$0xf] }
 0x24e   :  { %1906 = vmatpush.bf16.msra.mxu1 %v7139_v38  ;;  %1892 = vmatpush.bf16.msra.mxu3 %v6883_v40  ;;  %v6954_v38 = vld [vmem:[%s13035_s0 + $0x118] sm:$0xf]  ;;  %v7179_v40 = vor.u32 %v9447_v30, %v7178_v29  ;;  %v6860_v29 = vld [vmem:[%s13035_s0 + $0x78] sm:$0xf0] }
 0x24f   :  { %1919 = vmatpush.bf16.msra.mxu2 %v6919_v41  ;;  %1933 = vmatpush.bf16.msra.mxu0 %v7175_v45  ;;  %v7023_v41 = vor.u32 %v9403_v31, %v7020_v32  ;;  %v2011_v45 = vld [vmem:[%s13037_s2] sm:$0xff]  ;;  %v6863_v31 = vor.u32 %v9363_v28, %v6860_v29  ;;  %v9355_v32 = vld [vmem:[%s13035_s0 + $0x1c] sm:$0xf]  ;;  %v2034_v28 = vld [vmem:[#allocation3] sm:$0x1] }
 0x250   :  { %2015 = vperm.xlu0 %9972, %v2011_v45  }
 0x252   :  { %1907 = vmatpush.bf16.msra.mxu1 %v7107_v51  ;;  %1893 = vmatpush.bf16.msra.mxu3 %v6851_v55  ;;  %v6955_v51 = vor.u32 %v9391_v39, %v6954_v38  ;;  %v6922_v55 = vld [vmem:[%s13035_s0 + $0xd8] sm:$0xf] }
 0x253   :  { %1920 = vmatpush.bf16.msra.mxu2 %v6887_v56  ;;  %1934 = vmatpush.bf16.msra.mxu0 %v7143_v60  ;;  %v9383_v56 = vld [vmem:[%s13035_s0 + $0xf4] sm:$0xf0]  ;;  %v9387_v60 = vld [vmem:[%s13035_s0 + $0x11c] sm:$0xf] }
 0x254   :  { %v6923_v0 = vor.u32 %v9383_v56, %v6922_v55 }
 0x256   :  { %1908 = vmatpush.bf16.msra.mxu1 %v7075_v3  ;;  %1894 = vmatpush.bf16.msra.mxu3 %v6819_v5  ;;  %v6959_v3 = vor.u32 %v9387_v60, %v6956_v61  ;;  %v7082_v5 = vld [vmem:[%s13035_s0 + $0x218] sm:$0xf] }
 0x257   :  { %1921 = vmatpush.bf16.msra.mxu2 %v6855_v6  ;;  %1935 = vmatpush.bf16.msra.mxu0 %v7111_v10  ;;  %v2012_v6 = vld [vmem:[%s13037_s2 + $0x8] sm:$0xff]  ;;  %v6924_v10 = vld [vmem:[%s13035_s0 + $0xf8] sm:$0xf0]  ;;  %v7083_v14 = vor.u32 %v9423_v8, %v7082_v5 }
 0x258   :  { %2020 = vperm.xlu0 %9972, %v2012_v6   ;;  %v6927_v15 = vor.u32 %v9379_v9, %v6924_v10 }
 0x259   :  { %7220 = vmatmul.msk.bf16.vlgmr.msra.gmra.mxu1 %vm1746_vm1, %v11881_v34  ;;  %1895 = vmatmul.bf16.vlgmr.msra.gmra.mxu3 %v11924_v53 }
 0x25a   :  { %1943 = vmatpush.bf16.msrb.mxu1 %v7051_v11  ;;  %1959 = vmatpush.bf16.msrb.mxu3 %v1770_v18  ;;  %v9427_v11 = vld [vmem:[%s13035_s0 + $0x25c] sm:$0xf] }
 0x25b   :  { %1922 = vmatpush.bf16.msra.mxu2 %v6823_v21  ;;  %1936 = vmatpush.bf16.msra.mxu0 %v7079_v23  ;;  %v7119_v18 = vor.u32 %v9427_v11, %v7116_v12  ;;  %v9419_v21 = vld [vmem:[%s13035_s0 + $0x21c] sm:$0xf]  ;;  %v6859_v23 = vor.u32 %v9367_v17, %v6858_v16 }
 0x25c   :  { %v7087_v27 = vor.u32 %v9419_v21, %v7084_v22 }
 0x25e   :  { %1944 = vmatpush.bf16.msrb.mxu1 %v7019_v24  ;;  %1960 = vmatpush.bf16.msrb.mxu3 %v7211_v25  ;;  %v6895_v24 = vor.u32 %v9371_v19, %v6892_v20  ;;  %v6826_v25 = vld [vmem:[%s13035_s0 + $0x18] sm:$0xf] }
 0x25f   :  { %1971 = vmatpush.bf16.msrb.mxu0 %v7055_v26  ;;  %1987 = vmatpush.bf16.msrb.mxu2 %v1773_v33  ;;  %v9359_v26 = vld [vmem:[%s13035_s0 + $0x34] sm:$0xf0]  ;;  %v6828_v33 = vld [vmem:[%s13035_s0 + $0x38] sm:$0xf0]  ;;  %s10078_s0 = smov 16  }
 0x260   :  { %1923 = vmatmul.bf16.vlgmr.msra.gmra.mxu2 %v11924_v53  ;;  %7221 = vmatmul.msk.bf16.vlgmr.msra.gmra.mxu0 %vm1746_vm1, %v11881_v34  ;;  %v6827_v30 = vor.u32 %v9359_v26, %v6826_v25  ;;  %v6831_v35 = vor.u32 %v9355_v32, %v6828_v33 }
 0x262   :  { %1945 = vmatpush.bf16.msrb.mxu1 %v6987_v37  ;;  %1961 = vmatpush.bf16.msrb.mxu3 %v7179_v40 }
 0x263   :  { %1972 = vmatpush.bf16.msrb.mxu0 %v7023_v41  ;;  %1988 = vmatpush.bf16.msrb.mxu2 %v7215_v46 }
 0x266   :  { %1946 = vmatpush.bf16.msrb.mxu1 %v6955_v51  ;;  %1962 = vmatpush.bf16.msrb.mxu3 %v7147_v52 }
 0x267   :  { %1973 = vmatpush.bf16.msrb.mxu0 %v6991_v54  ;;  %1989 = vmatpush.bf16.msrb.mxu2 %v7183_v58 }
 0x26a   :  { %1947 = vmatpush.bf16.msrb.mxu1 %v6923_v0  ;;  %1963 = vmatpush.bf16.msrb.mxu3 %v7115_v2 }
 0x26b   :  { %1974 = vmatpush.bf16.msrb.mxu0 %v6959_v3  ;;  %1990 = vmatpush.bf16.msrb.mxu2 %v7151_v7 }
 0x26e   :  { %1948 = vmatpush.bf16.msrb.mxu1 %v6891_v13  ;;  %1964 = vmatpush.bf16.msrb.mxu3 %v7083_v14 }
 0x26f   :  { %1975 = vmatpush.bf16.msrb.mxu0 %v6927_v15  ;;  %1991 = vmatpush.bf16.msrb.mxu2 %v7119_v18 }
 0x271   :  { %7222 = vmatmul.msk.bf16.vlgmr.msrb.gmra.mxu3 %vm1746_vm1, %v11881_v34 }
 0x272   :  { %1949 = vmatpush.bf16.msrb.mxu1 %v6859_v23 }
 0x273   :  { %1976 = vmatpush.bf16.msrb.mxu0 %v6895_v24  ;;  %1992 = vmatpush.bf16.msrb.mxu2 %v7087_v27 }
 0x276   :  { %1950 = vmatpush.bf16.msrb.mxu1 %v6827_v30  ;;  %7223 = vmatmul.msk.bf16.vlgmr.msrb.gmra.mxu2 %vm1746_vm1, %v11881_v34 }
 0x277   :  { %1977 = vmatpush.bf16.msrb.mxu0 %v6863_v31 }
 0x279   :  { %1951 = vmatmul.bf16.vlgmr.msrb.gmra.mxu1 %v11924_v53 }
 0x27b   :  { %1978 = vmatpush.bf16.msrb.mxu0 %v6831_v35 }
 0x27e   :  { %1979 = vmatmul.bf16.vlgmr.msrb.gmra.mxu0 %v11924_v53 }
 0x29e   :  { %v1798_v37 = vpop.f32.mrf.mxu1 }
 0x2a4   :  { %v1826_v36 = vpop.f32.mrf.mxu3 }
 0x2a5   :  { %v1784_v39 = vpop.f32.mrf.mxu0 }
 0x2a6   :  { %v1800_v41 = vpop.f32.mrf.mxu1  ;;  %v1799_v62 = vadd.f32 %v1798_v37, %v1784_v39 }
 0x2ab   :  { %v1812_v38 = vpop.f32.mrf.mxu2 }
 0x2ac   :  { %v1828_v40 = vpop.f32.mrf.mxu3  ;;  %v1827_v5 = vadd.f32 %v1826_v36, %v1812_v38 }
 0x2ad   :  { %v1786_v43 = vpop.f32.mrf.mxu0 }
 0x2ae   :  { %v1801_v20 = vadd.f32 %v1800_v41, %v1786_v43  ;;  %v2048_v41 = vld [vmem:[#allocation3 + $0x1] sm:$0x1] }
 0x2b3   :  { %v1814_v42 = vpop.f32.mrf.mxu2 }
 0x2b4   :  { %v1829_v24 = vadd.f32 %v1828_v40, %v1814_v42 }
 0x2bc   :  { %v1854_v44 = vpop.f32.mrf.mxu3 }
 0x2be   :  { %v1840_v45 = vpop.f32.mrf.mxu1 }
 0x2bf   :  { %v1855_v63 = vadd.f32 %v1854_v44, %v1840_v45 }
 0x2c1   :  { %v1999_v6 = vmax.f32 %v1799_v62, %v1855_v63 }
 0x2c2   :  { %v2016_v15 = vpop.permute.xlu0 %2015 }
 0x2c3   :  { %v1882_v46 = vpop.f32.mrf.mxu2 }
 0x2c4   :  { %v1856_v34 = vpop.f32.mrf.mxu3 }
 0x2c5   :  { %v1868_v47 = vpop.f32.mrf.mxu0 }
 0x2c6   :  { %v1842_v48 = vpop.f32.mrf.mxu1  ;;  %v1883_v1 = vadd.f32 %v1882_v46, %v1868_v47  ;;  %v2055_v47 = vld [vmem:[#allocation3 + $0x2] sm:$0x1] }
 0x2c7   :  { %v1857_v14 = vadd.f32 %v1856_v34, %v1842_v48  ;;  %v2105_v34 = vld [vmem:[#allocation3 + $0x8] sm:$0x1] }
 0x2c8   :  { %v2000_v9 = vmax.f32 %v1827_v5, %v1883_v1  ;;  %v2084_v1 = vld [vmem:[#allocation3 + $0x5] sm:$0x1] }
 0x2c9   :  { %v2001_v29 = vmax.f32 %v1801_v20, %v1857_v14 }
 0x2ca   :  { %v2021_v42 = vpop.permute.xlu0 %2020 }
 0x2cb   :  { %v1884_v49 = vpop.f32.mrf.mxu2 }
 0x2cd   :  { %v1870_v50 = vpop.f32.mrf.mxu0 }
 0x2ce   :  { %v1885_v19 = vadd.f32 %v1884_v49, %v1870_v50 }
 0x2d0   :  { %v2002_v33 = vmax.f32 %v1829_v24, %v1885_v19 }
 0x2d6   :  { %v1910_v52 = vpop.f32.mrf.mxu1 }
 0x2dc   :  { %v1896_v51 = vpop.f32.mrf.mxu3 }
 0x2dd   :  { %v1938_v53 = vpop.f32.mrf.mxu0  ;;  %v1911_v0 = vadd.f32 %v1910_v52, %v1896_v51 }
 0x2de   :  { %v1912_v56 = vpop.f32.mrf.mxu1 }
 0x2e3   :  { %v1924_v54 = vpop.f32.mrf.mxu2 }
 0x2e4   :  { %v1898_v55 = vpop.f32.mrf.mxu3  ;;  %v1939_v7 = vadd.f32 %v1938_v53, %v1924_v54  ;;  %v2118_v53 = vld [vmem:[#allocation3 + $0x9] sm:$0x1] }
 0x2e5   :  { %v1940_v58 = vpop.f32.mrf.mxu0  ;;  %v1913_v17 = vadd.f32 %v1912_v56, %v1898_v55 }
 0x2eb   :  { %v1926_v57 = vpop.f32.mrf.mxu2 }
 0x2ec   :  { %v1941_v30 = vadd.f32 %v1940_v58, %v1926_v57  ;;  %v2066_v58 = vld [vmem:[#allocation3 + $0x3] sm:$0x1] }
 0x2f4   :  { %v1966_v59 = vpop.f32.mrf.mxu3 }
 0x2f6   :  { %v1952_v60 = vpop.f32.mrf.mxu1 }
 0x2f7   :  { %v1967_v61 = vadd.f32 %v1966_v59, %v1952_v60 }
 0x2f9   :  { %v2003_v2 = vmax.f32 %v1911_v0, %v1967_v61  ;;  %v1994_v3 = vpop.f32.mrf.mxu2  ;;  %v2073_v61 = vld [vmem:[#allocation3 + $0x4] sm:$0x1] }
 0x2fb   :  { %v1980_v4 = vpop.f32.mrf.mxu0  ;;  %v2007_v10 = vmax.f32 %v1999_v6, %v2003_v2 }
 0x2fc   :  { %v1995_v8 = vadd.f32 %v1994_v3, %v1980_v4  ;;  %v1968_v12 = vpop.f32.mrf.mxu3  ;;  %v2091_v4 = vld [vmem:[#allocation3 + $0x6] sm:$0x1] }
 0x2fd   :  { %v2023_v21 = vadd.f32 %v2016_v15, %v2007_v10 }
 0x2fe   :  { %v2004_v11 = vmax.f32 %v1939_v7, %v1995_v8  ;;  %v1954_v13 = vpop.f32.mrf.mxu1  ;;  %v2102_v8 = vld [vmem:[#allocation3 + $0x7] sm:$0x1] }
 0x2ff   :  { %v1969_v16 = vadd.f32 %v1968_v12, %v1954_v13 }
 0x300   :  { %v2008_v18 = vmax.f32 %v2000_v9, %v2004_v11  ;;  %v2125_v11 = vld [vmem:[#allocation3 + $0xa] sm:$0x1] }
 0x301   :  { %v2005_v23 = vmax.f32 %v1913_v17, %v1969_v16  ;;  %v1996_v25 = vpop.f32.mrf.mxu2 }
 0x302   :  { %v2024_v22 = vadd.f32 %v2016_v15, %v2008_v18  ;;  %v2136_v15 = vld [vmem:[#allocation3 + $0xb] sm:$0x1]  ;;  %v2143_v18 = vld [vmem:[#allocation3 + $0xc] sm:$0x1] }
 0x303   :  { %v1982_v26 = vpop.f32.mrf.mxu0  ;;  %v2009_v35 = vmax.f32 %v2001_v29, %v2005_v23 }
 0x304   :  { %v12391_v31 = vpack.c.bf16 %v2024_v22, %v2023_v21  ;;  %v1997_v32 = vadd.f32 %v1996_v25, %v1982_v26  ;;  %v2154_v22 = vld [vmem:[#allocation3 + $0xd] sm:$0x1]  ;;  %v2161_v25 = vld [vmem:[#allocation3 + $0xe] sm:$0x1] }
 0x305   :  { %v2025_v44 = vadd.f32 %v2021_v42, %v2009_v35 }
 0x306   :  { %2051 = vst [vmem:[#allocation1] sm:$0xff] %v12391_v31  ;;  %v2006_v36 = vmax.f32 %v1941_v30, %v1997_v32  ;;  %v2038_v37 = vrot.slane %v12391_v31, 3  ;;  %v2035_v38 = vsel %vm12387_vm4, %v12391_v31, %v2034_v28  ;;  %v2172_v30 = vld [vmem:[#allocation3 + $0xf] sm:$0x1] }
 0x307   :  { %2036 = vst [vmem:[#allocation3] sm:$0x1] %v2035_v38 }
 0x308   :  { %v2010_v39 = vmax.f32 %v2002_v33, %v2006_v36  ;;  %v12400_v40 = vsel %vm2039_vm5, %v12391_v31, %v2038_v37 }
 0x309   :  { %2189 = vrot.lane.b32.xlu1 %v12400_v40, %s10078_s0  ;;  %v2043_v43 = vshrl.u32 %v12400_v40, 16  ;;  %v2175_v36 = vshll.u32 %v12400_v40, 16 }
 0x30a   :  { %v2026_v45 = vadd.f32 %v2021_v42, %v2010_v39 }
 0x30b   :  { %v2049_v46 = vsel %vm12387_vm4, %v2043_v43, %v2048_v41 }
 0x30c   :  { %v12407_v48 = vpack.c.bf16 %v2026_v45, %v2025_v44  ;;  %2050 = vst [vmem:[#allocation3 + $0x1] sm:$0x1] %v2049_v46 }
 0x30d   :  { %v2053_v49 = vld [vmem:[#allocation1 + $0x1] ss:$4 sm:$0xff] }
 0x30e   :  { %2058 = vst [vmem:[#allocation1] sm:$0xff] %v12391_v31  ;;  %v2109_v50 = vrot.slane %v12407_v48, 3  ;;  %v2056_v51 = vsel %vm12387_vm4, %v2053_v49, %v2055_v47  ;;  %v2106_v52 = vsel %vm12387_vm4, %v12407_v48, %v2105_v34 }
 0x30f   :  { %2057 = vst [vmem:[#allocation3 + $0x2] sm:$0x1] %v2056_v51 }
 0x310   :  { %v12418_v54 = vsel %vm2039_vm5, %v12407_v48, %v2109_v50  ;;  %2107 = vst [vmem:[#allocation3 + $0x8] sm:$0x1] %v2106_v52 }
 0x311   :  { %2283 = vrot.lane.b32.xlu0 %v12418_v54, %s10078_s0  ;;  %v2113_v55 = vshrl.u32 %v12418_v54, 16 }
 0x313   :  { %v2119_v56 = vsel %vm12387_vm4, %v2113_v55, %v2118_v53  ;;  %v2194_v44 = vld [vmem:[#allocation3 + $0x1] sm:$0x1] }
 0x314   :  { %2120 = vst [vmem:[#allocation3 + $0x9] sm:$0x1] %v2119_v56 }
 0x315   :  { %v2060_v57 = vld [vmem:[#allocation1 + $0x1] ss:$4 sm:$0xff] }
 0x316   :  { %2069 = vst [vmem:[#allocation1] sm:$0xff] %v12391_v31  ;;  %v2061_v59 = vshrl.u32 %v2060_v57, 16 }
 0x318   :  { %v2067_v60 = vsel %vm12387_vm4, %v2061_v59, %v2066_v58  ;;  %v2272_v59 = vshll.u32 %v12418_v54, 16 }
 0x319   :  { %2068 = vst [vmem:[#allocation3 + $0x3] sm:$0x1] %v2067_v60 }
 0x31b   :  { %v2288_v50 = vld [vmem:[#allocation3 + $0x9] sm:$0x1] }
 0x31d   :  { %v2071_v62 = vld [vmem:[#allocation1 + $0x2] ss:$4 sm:$0xff] }
 0x31e   :  { %2076 = vst [vmem:[#allocation1] sm:$0xff] %v12391_v31  ;;  %v2074_v63 = vsel %vm12387_vm4, %v2071_v62, %v2073_v61 }
 0x31f   :  { %2075 = vst [vmem:[#allocation3 + $0x4] sm:$0x1] %v2074_v63 }
 0x325   :  { %v2078_v0 = vld [vmem:[#allocation1 + $0x2] ss:$4 sm:$0xff] }
 0x326   :  { %2087 = vst [vmem:[#allocation1] sm:$0xff] %v12391_v31  ;;  %v2079_v2 = vshrl.u32 %v2078_v0, 16 }
 0x328   :  { %v2085_v3 = vsel %vm12387_vm4, %v2079_v2, %v2084_v1 }
 0x329   :  { %2086 = vst [vmem:[#allocation3 + $0x5] sm:$0x1] %v2085_v3 }
 0x32d   :  { %v2089_v5 = vld [vmem:[#allocation1 + $0x3] ss:$4 sm:$0xff] }
 0x32e   :  { %2094 = vst [vmem:[#allocation1] sm:$0xff] %v12391_v31  ;;  %v2092_v6 = vsel %vm12387_vm4, %v2089_v5, %v2091_v4 }
 0x32f   :  { %2093 = vst [vmem:[#allocation3 + $0x6] sm:$0x1] %v2092_v6 }
 0x335   :  { %v2096_v7 = vld [vmem:[#allocation1 + $0x3] ss:$4 sm:$0xff] }
 0x336   :  { %2121 = vst [vmem:[#allocation1] sm:$0xff] %v12407_v48  ;;  %v2097_v9 = vshrl.u32 %v2096_v7, 16  ;;  %v2219_v7 = vld [vmem:[#allocation3 + $0x3] sm:$0x1] }
 0x338   :  { %v2103_v10 = vsel %vm12387_vm4, %v2097_v9, %v2102_v8 }
 0x339   :  { %2104 = vst [vmem:[#allocation3 + $0x7] sm:$0x1] %v2103_v10 }
 0x33d   :  { %v2123_v12 = vld [vmem:[#allocation1 + $0x1] ss:$4 sm:$0xff] }
 0x33e   :  { %2128 = vst [vmem:[#allocation1] sm:$0xff] %v12407_v48  ;;  %v2126_v13 = vsel %vm12387_vm4, %v2123_v12, %v2125_v11 }
 0x33f   :  { %2127 = vst [vmem:[#allocation3 + $0xa] sm:$0x1] %v2126_v13  ;;  %v2207_v13 = vld [vmem:[#allocation3 + $0x2] sm:$0x1] }
 0x345   :  { %v2130_v14 = vld [vmem:[#allocation1 + $0x1] ss:$4 sm:$0xff] }
 0x346   :  { %2139 = vst [vmem:[#allocation1] sm:$0xff] %v12407_v48  ;;  %v2131_v16 = vshrl.u32 %v2130_v14, 16 }
 0x348   :  { %v2137_v17 = vsel %vm12387_vm4, %v2131_v16, %v2136_v15  ;;  %v2185_v16 = vld [vmem:[#allocation3] sm:$0x1] }
 0x349   :  { %2138 = vst [vmem:[#allocation3 + $0xb] sm:$0x1] %v2137_v17 }
 0x34d   :  { %v2141_v19 = vld [vmem:[#allocation1 + $0x2] ss:$4 sm:$0xff] }
 0x34e   :  { %2146 = vst [vmem:[#allocation1] sm:$0xff] %v12407_v48  ;;  %v2144_v20 = vsel %vm12387_vm4, %v2141_v19, %v2143_v18 }
 0x34f   :  { %2145 = vst [vmem:[#allocation3 + $0xc] sm:$0x1] %v2144_v20 }
 0x355   :  { %v2148_v21 = vld [vmem:[#allocation1 + $0x2] ss:$4 sm:$0xff] }
 0x356   :  { %2157 = vst [vmem:[#allocation1] sm:$0xff] %v12407_v48  ;;  %v2149_v23 = vshrl.u32 %v2148_v21, 16 }
 0x358   :  { %v2155_v24 = vsel %vm12387_vm4, %v2149_v23, %v2154_v22 }
 0x359   :  { %2156 = vst [vmem:[#allocation3 + $0xd] sm:$0x1] %v2155_v24 }
 0x35d   :  { %v2159_v26 = vld [vmem:[#allocation1 + $0x3] ss:$4 sm:$0xff] }
 0x35e   :  { %2164 = vst [vmem:[#allocation1] sm:$0xff] %v12407_v48  ;;  %v2162_v28 = vsel %vm12387_vm4, %v2159_v26, %v2161_v25  ;;  %v2232_v26 = vld [vmem:[#allocation3 + $0x4] sm:$0x1] }
 0x35f   :  { %2163 = vst [vmem:[#allocation3 + $0xe] sm:$0x1] %v2162_v28  ;;  %v2257_v28 = vld [vmem:[#allocation3 + $0x6] sm:$0x1] }
 0x365   :  { %v2166_v29 = vld [vmem:[#allocation1 + $0x3] ss:$4 sm:$0xff] }
 0x366   :  { %2197 = vst [vmem:[#allocation1] sm:$0xff] %v12391_v31  ;;  %v2167_v32 = vshrl.u32 %v2166_v29, 16 }
 0x368   :  { %v2173_v33 = vsel %vm12387_vm4, %v2167_v32, %v2172_v30 }
 0x369   :  { %2174 = vst [vmem:[#allocation3 + $0xf] sm:$0x1] %v2173_v33 }
 0x36d   :  { %v2199_v35 = vld [vmem:[#allocation1 + $0x1] ss:$4 sm:$0xff] }
 0x36e   :  { %v2200_v37 = vshll.u32 %v2199_v35, 16  ;;  %2210 = vst [vmem:[#allocation1] sm:$0xff] %v12391_v31 }
 0x370   :  { %v9973_v38 = vpack.i.bf16 %v2200_v37, %v2175_v36  ;;  %v2244_v36 = vld [vmem:[#allocation3 + $0x5] sm:$0x1] }
 0x372   :  { %9974 = vrot.lane.b32.xlu1 %v9973_v38, %s10078_s0 }
 0x375   :  { %v2212_v39 = vld [vmem:[#allocation1 + $0x1] ss:$4 sm:$0xff] }
 0x376   :  { %2214 = vrot.lane.b32.xlu2 %v2212_v39, %s10078_s0  ;;  %2222 = vst [vmem:[#allocation1] sm:$0xff] %v12391_v31 }
 0x37b   :  { %v2190_v41 = vpop.permute.xlu1 %2189 }
 0x37c   :  { %v2191_v40 = vrot.slane %v2190_v41, 1 }
 0x37d   :  { %v2224_v42 = vld [vmem:[#allocation1 + $0x2] ss:$4 sm:$0xff] }
 0x37e   :  { %v2192_v43 = vsel %vm2180_vm7, %v2190_v41, %v2191_v40  ;;  %2235 = vst [vmem:[#allocation1] sm:$0xff] %v12391_v31  ;;  %v2225_v53 = vshll.u32 %v2224_v42, 16 }
 0x37f   :  { %v2195_v45 = vsel %vm12464_vm8, %v2192_v43, %v2194_v44  ;;  %v2279_v43 = vld [vmem:[#allocation3 + $0x8] sm:$0x1] }
 0x380   :  { %2196 = vst [vmem:[#allocation3 + $0x1] sm:$0x1] %v2195_v45 }
 0x383   :  { %v2284_v46 = vpop.permute.xlu0 %2283 }
 0x384   :  { %v2285_v47 = vrot.slane %v2284_v46, 1 }
 0x385   :  { %v2237_v34 = vld [vmem:[#allocation1 + $0x2] ss:$4 sm:$0xff] }
 0x386   :  { %v2286_v49 = vsel %vm2180_vm7, %v2284_v46, %v2285_v47  ;;  %2239 = vrot.lane.b32.xlu0 %v2237_v34, %s10078_s0  ;;  %2247 = vst [vmem:[#allocation1] sm:$0xff] %v12391_v31  ;;  %v2301_v46 = vld [vmem:[#allocation3 + $0xa] sm:$0x1] }
 0x387   :  { %v2289_v51 = vsel %vm12464_vm8, %v2286_v49, %v2288_v50 }
 0x388   :  { %2290 = vst [vmem:[#allocation3 + $0x9] sm:$0x1] %v2289_v51  ;;  %v2269_v51 = vld [vmem:[#allocation3 + $0x7] sm:$0x1] }
 0x38d   :  { %v2249_v52 = vld [vmem:[#allocation1 + $0x3] ss:$4 sm:$0xff] }
 0x38e   :  { %v2250_v55 = vshll.u32 %v2249_v52, 16  ;;  %2260 = vst [vmem:[#allocation1] sm:$0xff] %v12391_v31 }
 0x390   :  { %v9978_v56 = vpack.i.bf16 %v2250_v55, %v2225_v53 }
 0x392   :  { %9979 = vrot.lane.b32.xlu2 %v9978_v56, %s10078_s0 }
 0x395   :  { %v2262_v57 = vld [vmem:[#allocation1 + $0x3] ss:$4 sm:$0xff] }
 0x396   :  { %2264 = vrot.lane.b32.xlu1 %v2262_v57, %s10078_s0  ;;  %2291 = vst [vmem:[#allocation1] sm:$0xff] %v12407_v48  ;;  %v2313_v57 = vld [vmem:[#allocation3 + $0xb] sm:$0x1] }
 0x39d   :  { %v2293_v58 = vld [vmem:[#allocation1 + $0x1] ss:$4 sm:$0xff] }
 0x39e   :  { %v2294_v60 = vshll.u32 %v2293_v58, 16  ;;  %2304 = vst [vmem:[#allocation1] sm:$0xff] %v12407_v48 }
 0x3a0   :  { %v9983_v61 = vpack.i.bf16 %v2294_v60, %v2272_v59 }
 0x3a2   :  { %9984 = vrot.lane.b32.xlu2 %v9983_v61, %s10078_s0 }
 0x3a5   :  { %v2306_v62 = vld [vmem:[#allocation1 + $0x1] ss:$4 sm:$0xff] }
 0x3a6   :  { %2316 = vst [vmem:[#allocation1] sm:$0xff] %v12407_v48  ;;  %2308 = vrot.lane.b32.xlu1 %v2306_v62, %s10078_s0 }
 0x3ad   :  { %v2318_v31 = vld [vmem:[#allocation1 + $0x2] ss:$4 sm:$0xff] }
 0x3ae   :  { %2329 = vst [vmem:[#allocation1] sm:$0xff] %v12407_v48  ;;  %v2319_v0 = vshll.u32 %v2318_v31, 16 }
 0x3b5   :  { %v2331_v63 = vld [vmem:[#allocation1 + $0x2] ss:$4 sm:$0xff] }
 0x3b6   :  { %2333 = vrot.lane.b32.xlu0 %v2331_v63, %s10078_s0  ;;  %2341 = vst [vmem:[#allocation1] sm:$0xff] %v12407_v48 }
 0x3bd   :  { %v2343_v54 = vld [vmem:[#allocation1 + $0x3] ss:$4 sm:$0xff] }
 0x3be   :  { %v2344_v1 = vshll.u32 %v2343_v54, 16  ;;  %2354 = vst [vmem:[#allocation1] sm:$0xff] %v12407_v48 }
 0x3c0   :  { %v9988_v2 = vpack.i.bf16 %v2344_v1, %v2319_v0  ;;  %v2326_v1 = vld [vmem:[#allocation3 + $0xc] sm:$0x1] }
 0x3c2   :  { %9989 = vrot.lane.b32.xlu2 %v9988_v2, %s10078_s0  ;;  %v2351_v2 = vld [vmem:[#allocation3 + $0xe] sm:$0x1] }
 0x3c5   :  { %v2356_v3 = vld [vmem:[#allocation1 + $0x3] ss:$4 sm:$0xff] }
 0x3c6   :  { %2358 = vrot.lane.b32.xlu1 %v2356_v3, %s10078_s0 }
 0x3d0   :  { %v2215_v4 = vpop.permute.xlu2 %2214 }
 0x3d1   :  { %v2216_v5 = vrot.slane %v2215_v4, 1 }
 0x3d3   :  { %v2217_v6 = vsel %vm2180_vm7, %v2215_v4, %v2216_v5 }
 0x3d4   :  { %v2220_v8 = vsel %vm12464_vm8, %v2217_v6, %v2219_v7 }
 0x3d5   :  { %2221 = vst [vmem:[#allocation3 + $0x3] sm:$0x1] %v2220_v8  ;;  %v2338_v8 = vld [vmem:[#allocation3 + $0xd] sm:$0x1] }
 0x3e4   :  { %v9975_v9 = vpop.permute.xlu1 %9974 }
 0x3e5   :  { %v9977_v10 = vunpack.i.h.bf16 %v9975_v9  ;;  %v9976_v11 = vunpack.i.l.bf16 %v9975_v9 }
 0x3e7   :  { %v2204_v12 = vrot.slane %v9977_v10, 1  ;;  %v2179_v48 = vrot.slane %v9976_v11, 1 }
 0x3e9   :  { %v2205_v14 = vsel %vm2180_vm7, %v9977_v10, %v2204_v12  ;;  %v2181_v15 = vsel %vm2180_vm7, %v9976_v11, %v2179_v48  ;;  %v2363_v12 = vld [vmem:[#allocation3 + $0xf] sm:$0x1] }
 0x3ea   :  { %v2208_v17 = vsel %vm12464_vm8, %v2205_v14, %v2207_v13  ;;  %v2186_v18 = vsel %vm12464_vm8, %v2181_v15, %v2185_v16 }
 0x3eb   :  { %2209 = vst [vmem:[#allocation3 + $0x2] sm:$0x1] %v2208_v17 }
 0x3ec   :  { %2187 = vst [vmem:[#allocation3] sm:$0x1] %v2186_v18  ;;  %v9980_v19 = vpop.permute.xlu2 %9979 }
 0x3ed   :  { %v9982_v20 = vunpack.i.h.bf16 %v9980_v19  ;;  %v9981_v21 = vunpack.i.l.bf16 %v9980_v19 }
 0x3ef   :  { %v2254_v22 = vrot.slane %v9982_v20, 1  ;;  %v2229_v23 = vrot.slane %v9981_v21, 1 }
 0x3f1   :  { %v2255_v24 = vsel %vm2180_vm7, %v9982_v20, %v2254_v22  ;;  %v2230_v25 = vsel %vm2180_vm7, %v9981_v21, %v2229_v23 }
 0x3f2   :  { %v2233_v29 = vsel %vm12464_vm8, %v2230_v25, %v2232_v26  ;;  %v2258_v30 = vsel %vm12464_vm8, %v2255_v24, %v2257_v28 }
 0x3f3   :  { %2234 = vst [vmem:[#allocation3 + $0x4] sm:$0x1] %v2233_v29 }
 0x3f4   :  { %2259 = vst [vmem:[#allocation3 + $0x6] sm:$0x1] %v2258_v30 }
 0x3f8   :  { %v2240_v32 = vpop.permute.xlu0 %2239 }
 0x3f9   :  { %v2241_v33 = vrot.slane %v2240_v32, 1 }
 0x3fb   :  { %v2242_v35 = vsel %vm2180_vm7, %v2240_v32, %v2241_v33 }
 0x3fc   :  { %v2245_v37 = vsel %vm12464_vm8, %v2242_v35, %v2244_v36  ;;  %v9985_v38 = vpop.permute.xlu2 %9984 }
 0x3fd   :  { %2246 = vst [vmem:[#allocation3 + $0x5] sm:$0x1] %v2245_v37  ;;  %v9987_v39 = vunpack.i.h.bf16 %v9985_v38  ;;  %v9986_v41 = vunpack.i.l.bf16 %v9985_v38 }
 0x3ff   :  { %v2298_v40 = vrot.slane %v9987_v39, 1  ;;  %v2276_v42 = vrot.slane %v9986_v41, 1 }
 0x401   :  { %v2299_v44 = vsel %vm2180_vm7, %v9987_v39, %v2298_v40  ;;  %v2277_v45 = vsel %vm2180_vm7, %v9986_v41, %v2276_v42 }
 0x402   :  { %v2280_v47 = vsel %vm12464_vm8, %v2277_v45, %v2279_v43  ;;  %v2302_v34 = vsel %vm12464_vm8, %v2299_v44, %v2301_v46 }
 0x403   :  { %2281 = vst [vmem:[#allocation3 + $0x8] sm:$0x1] %v2280_v47 }
 0x404   :  { %2303 = vst [vmem:[#allocation3 + $0xa] sm:$0x1] %v2302_v34 }
 0x408   :  { %v2265_v49 = vpop.permute.xlu1 %2264 }
 0x409   :  { %v2266_v50 = vrot.slane %v2265_v49, 1 }
 0x40b   :  { %v2267_v52 = vsel %vm2180_vm7, %v2265_v49, %v2266_v50 }
 0x40c   :  { %v2270_v53 = vsel %vm12464_vm8, %v2267_v52, %v2269_v51 }
 0x40d   :  { %2271 = vst [vmem:[#allocation3 + $0x7] sm:$0x1] %v2270_v53 }
 0x418   :  { %v2309_v55 = vpop.permute.xlu1 %2308 }
 0x419   :  { %v2310_v56 = vrot.slane %v2309_v55, 1 }
 0x41b   :  { %v2311_v58 = vsel %vm2180_vm7, %v2309_v55, %v2310_v56 }
 0x41c   :  { %v2314_v59 = vsel %vm12464_vm8, %v2311_v58, %v2313_v57  ;;  %v9990_v60 = vpop.permute.xlu2 %9989 }
 0x41d   :  { %2315 = vst [vmem:[#allocation3 + $0xb] sm:$0x1] %v2314_v59  ;;  %v9992_v61 = vunpack.i.h.bf16 %v9990_v60  ;;  %v9991_v62 = vunpack.i.l.bf16 %v9990_v60 }
 0x41f   :  { %v2348_v31 = vrot.slane %v9992_v61, 1  ;;  %v2323_v63 = vrot.slane %v9991_v62, 1 }
 0x421   :  { %v2349_v54 = vsel %vm2180_vm7, %v9992_v61, %v2348_v31  ;;  %v2324_v0 = vsel %vm2180_vm7, %v9991_v62, %v2323_v63 }
 0x422   :  { %v2327_v3 = vsel %vm12464_vm8, %v2324_v0, %v2326_v1  ;;  %v2352_v4 = vsel %vm12464_vm8, %v2349_v54, %v2351_v2 }
 0x423   :  { %2328 = vst [vmem:[#allocation3 + $0xc] sm:$0x1] %v2327_v3 }
 0x424   :  { %2353 = vst [vmem:[#allocation3 + $0xe] sm:$0x1] %v2352_v4 }
 0x428   :  { %v2334_v5 = vpop.permute.xlu0 %2333 }
 0x429   :  { %v2335_v6 = vrot.slane %v2334_v5, 1 }
 0x42b   :  { %v2336_v7 = vsel %vm2180_vm7, %v2334_v5, %v2335_v6 }
 0x42c   :  { %v2339_v9 = vsel %vm12464_vm8, %v2336_v7, %v2338_v8 }
 0x42d   :  { %2340 = vst [vmem:[#allocation3 + $0xd] sm:$0x1] %v2339_v9 }
 0x438   :  { %v2359_v10 = vpop.permute.xlu1 %2358 }
 0x439   :  { %v2360_v11 = vrot.slane %v2359_v10, 1 }
 0x43b   :  { %v2361_v48 = vsel %vm2180_vm7, %v2359_v10, %v2360_v11 }
 0x43c   :  { %v2364_v13 = vsel %vm12464_vm8, %v2361_v48, %v2363_v12 }
 0x43d   :  { %2365 = vst [vmem:[#allocation3 + $0xf] sm:$0x1] %v2364_v13 }
 0x43e   :  { %10071 = dma.done.wait [#allocation4], 65536 }
 0x43f   :  { %10072 = vsyncadd [#allocation4], 4294901760  ;;  %v7354_v14 = vld [vmem:[#allocation2 + $0xe0] sm:$0xf]  ;;  %v9486_v15 = vld [vmem:[#allocation2 + $0xec] sm:$0xf0] }
 0x440   :  { %v7482_v16 = vld [vmem:[#allocation2 + $0x1e0] sm:$0xf]  ;;  %v7355_v17 = vor.u32 %v9486_v15, %v7354_v14  ;;  %v9518_v18 = vld [vmem:[#allocation2 + $0x1ec] sm:$0xf0]  ;;  %v2885_v24 = vld [vmem:[%s13040_s5] sm:$0xff]  ;;  %vm2896_vm9 = vcmask 31744  }
 0x441   :  { %v7338_v19 = vld [vmem:[#allocation2 + $0xc0] sm:$0xf]  ;;  %v9482_v20 = vld [vmem:[#allocation2 + $0xcc] sm:$0xf0]  ;;  %v7483_v21 = vor.u32 %v9518_v18, %v7482_v16  ;;  %2889 = vst [vmem:[#allocation1] ss:$2 sm:$0xff] %v2885_v24 }
 0x442   :  { %v7466_v22 = vld [vmem:[#allocation2 + $0x1c0] sm:$0xf]  ;;  %v9514_v23 = vld [vmem:[#allocation2 + $0x1cc] sm:$0xf0]  ;;  %5584 = vmatpush.bf16.msra.mxu0 %v7355_v17  ;;  %v7339_v27 = vor.u32 %v9482_v20, %v7338_v19  ;;  %v12543_v39 = vld [vmem:[%s13038_s3] sm:$0x3] }
 0x443   :  { %v2886_v25 = vld [vmem:[%s13040_s5 + $0x8] sm:$0xff]  ;;  %5597 = vmatpush.bf16.msra.mxu1 %v7483_v21  ;;  %v7467_v26 = vor.u32 %v9514_v23, %v7466_v22  ;;  %v9478_v29 = vld [vmem:[#allocation2 + $0xac] sm:$0xf0]  ;;  %vm6564_vm10 = vcmask 523264   ;;  %vm6588_vm11 = vcmask 25600   ;;  %s10080_s16 = smov [#allocation7]  }
 0x444   :  { %2891 = vst [vmem:[#allocation1 + $0x10] ss:$2 sm:$0xff] %v2886_v25  ;;  %v7322_v28 = vld [vmem:[#allocation2 + $0xa0] sm:$0xf]  ;;  %v9510_v32 = vld [vmem:[#allocation2 + $0x1ac] sm:$0xf0] }
 0x445   :  { %v7450_v30 = vld [vmem:[#allocation2 + $0x1a0] sm:$0xf]  ;;  %v9550_v35 = vld [vmem:[#allocation2 + $0x2ec] sm:$0xf0]  ;;  %v7323_v41 = vor.u32 %v9478_v29, %v7322_v28  ;;  %s6768_s18 = sshll.u32 %s13049_s14, 4  ;;  %s6769_s18 = int_to_ptr.hbm [resolvable:$true] %s6768_s18 }
 0x446   :  { %v7610_v33 = vld [vmem:[#allocation2 + $0x2e0] sm:$0xf]  ;;  %5585 = vmatpush.bf16.msra.mxu0 %v7339_v27  ;;  %v9582_v38 = vld [vmem:[#allocation2 + $0x3ec] sm:$0xf0]  ;;  %v7451_v44 = vor.u32 %v9510_v32, %v7450_v30 }
 0x447   :  { %v2370_v36 = vld [vmem:[#allocation3] sm:$0xff]  ;;  %5598 = vmatpush.bf16.msra.mxu1 %v7467_v26  ;;  %v9474_v42 = vld [vmem:[#allocation2 + $0x8c] sm:$0xf0]  ;;  %v7611_v50 = vor.u32 %v9550_v35, %v7610_v33 }
 0x448   :  { %v7738_v37 = vld [vmem:[#allocation2 + $0x3e0] sm:$0xf]  ;;  %v9506_v45 = vld [vmem:[#allocation2 + $0x18c] sm:$0xf0] }
 0x449   :  { %v7306_v40 = vld [vmem:[#allocation2 + $0x80] sm:$0xf]  ;;  %v9546_v47 = vld [vmem:[#allocation2 + $0x2cc] sm:$0xf0]  ;;  %v7739_v53 = vor.u32 %v9582_v38, %v7738_v37 }
 0x44a   :  { %v7434_v43 = vld [vmem:[#allocation2 + $0x180] sm:$0xf]  ;;  %v2892_v49 = vld.sshfl [vmem:[#allocation1] sm:$0xff pattern:$0x75316420]  ;;  %5586 = vmatpush.bf16.msra.mxu0 %v7323_v41  ;;  %v7307_v55 = vor.u32 %v9474_v42, %v7306_v40 }
 0x44b   :  { %v7594_v46 = vld [vmem:[#allocation2 + $0x2c0] sm:$0xf]  ;;  %v2894_v51 = vld.sshfl [vmem:[#allocation1 + $0x10] sm:$0xff pattern:$0x75316420]  ;;  %7232 = vmatpush.msk.msra.mxu3 %vm1750_vm0, %v2892_v49  ;;  %5599 = vmatpush.bf16.msra.mxu1 %v7451_v44  ;;  %v7435_v57 = vor.u32 %v9506_v45, %v7434_v43 }
 0x44c   :  { %v2893_v34 = vld.sshfl [vmem:[#allocation1 + $0x8] sm:$0xff pattern:$0x75316420]  ;;  %v2895_v52 = vld.sshfl [vmem:[#allocation1 + $0x18] sm:$0xff pattern:$0x75316420]  ;;  %v7595_v61 = vor.u32 %v9546_v47, %v7594_v46  ;;  %7233 = vmatmul.msk.f32.vlgmr.msra.gmra.mxu3 %vm2896_vm9, %v12543_v39 }
 0x44d   :  { %7234 = vmatpush.msk.msra.mxu2 %vm1750_vm0, %v2893_v34  ;;  %2989 = vst [vmem:[#allocation1] ss:$9 sm:$0xff] %v2370_v36  ;;  %v7722_v56 = vld [vmem:[#allocation2 + $0x3c0] sm:$0xf]  ;;  %v9578_v58 = vld [vmem:[#allocation2 + $0x3cc] sm:$0xf0]  ;;  %7238 = vmatpush.msk.msrb.mxu3 %vm1750_vm0, %v2895_v52 }
 0x44e   :  { %7235 = vmatmul.msk.f32.vlgmr.msra.gmra.mxu2 %vm2896_vm9, %v12543_v39  ;;  %v7290_v59 = vld [vmem:[#allocation2 + $0x60] sm:$0xf]  ;;  %v9470_v60 = vld [vmem:[#allocation2 + $0x6c] sm:$0xf0]  ;;  %5587 = vmatpush.bf16.msra.mxu0 %v7307_v55  ;;  %v7723_v0 = vor.u32 %v9578_v58, %v7722_v56 }
 0x44f   :  { %7236 = vmatpush.msk.msrb.mxu2 %vm1750_vm0, %v2894_v51  ;;  %v7418_v62 = vld [vmem:[#allocation2 + $0x160] sm:$0xf]  ;;  %v9502_v31 = vld [vmem:[#allocation2 + $0x16c] sm:$0xf0]  ;;  %5623 = vmatpush.bf16.msra.mxu3 %v7739_v53  ;;  %v7291_v1 = vor.u32 %v9470_v60, %v7290_v59 }
 0x450   :  { %v7578_v63 = vld [vmem:[#allocation2 + $0x2a0] sm:$0xf]  ;;  %v9542_v54 = vld [vmem:[#allocation2 + $0x2ac] sm:$0xf0]  ;;  %5600 = vmatpush.bf16.msra.mxu1 %v7435_v57  ;;  %v7419_v3 = vor.u32 %v9502_v31, %v7418_v62 }
 0x451   :  { %5610 = vmatpush.bf16.msra.mxu2 %v7611_v50  ;;  %v7706_v2 = vld [vmem:[#allocation2 + $0x3a0] sm:$0xf]  ;;  %v9574_v4 = vld [vmem:[#allocation2 + $0x3ac] sm:$0xf0]  ;;  %v7579_v7 = vor.u32 %v9542_v54, %v7578_v63 }
 0x452   :  { %v7274_v5 = vld [vmem:[#allocation2 + $0x40] sm:$0xf]  ;;  %v9466_v6 = vld [vmem:[#allocation2 + $0x4c] sm:$0xf0]  ;;  %5588 = vmatpush.bf16.msra.mxu0 %v7291_v1  ;;  %v7707_v12 = vor.u32 %v9574_v4, %v7706_v2 }
 0x453   :  { %v7402_v8 = vld [vmem:[#allocation2 + $0x140] sm:$0xf]  ;;  %v9498_v9 = vld [vmem:[#allocation2 + $0x14c] sm:$0xf0]  ;;  %5624 = vmatpush.bf16.msra.mxu3 %v7723_v0  ;;  %v7275_v48 = vor.u32 %v9466_v6, %v7274_v5 }
 0x454   :  { %v7562_v10 = vld [vmem:[#allocation2 + $0x280] sm:$0xf]  ;;  %v9538_v11 = vld [vmem:[#allocation2 + $0x28c] sm:$0xf0]  ;;  %5601 = vmatpush.bf16.msra.mxu1 %v7419_v3  ;;  %v7403_v14 = vor.u32 %v9498_v9, %v7402_v8  ;;  %7239 = vmatmul.msk.f32.vlgmr.msrb.gmra.mxu3 %vm2896_vm9, %v12543_v39 }
 0x455   :  { %5611 = vmatpush.bf16.msra.mxu2 %v7595_v61  ;;  %v7690_v13 = vld [vmem:[#allocation2 + $0x380] sm:$0xf]  ;;  %v9570_v15 = vld [vmem:[#allocation2 + $0x38c] sm:$0xf0]  ;;  %v7563_v18 = vor.u32 %v9538_v11, %v7562_v10 }
 0x456   :  { %v7258_v16 = vld [vmem:[#allocation2 + $0x20] sm:$0xf]  ;;  %v9462_v17 = vld [vmem:[#allocation2 + $0x2c] sm:$0xf0]  ;;  %7237 = vmatmul.msk.f32.vlgmr.msrb.gmra.mxu2 %vm2896_vm9, %v12543_v39  ;;  %5589 = vmatpush.bf16.msra.mxu0 %v7275_v48  ;;  %v7691_v23 = vor.u32 %v9570_v15, %v7690_v13  ;;  %v12557_v13 = vld [vmem:[#allocation1] sm:$0xff] }
 0x457   :  { %v7386_v19 = vld [vmem:[#allocation2 + $0x120] sm:$0xf]  ;;  %v9494_v20 = vld [vmem:[#allocation2 + $0x12c] sm:$0xf0]  ;;  %5625 = vmatpush.bf16.msra.mxu3 %v7707_v12  ;;  %v7259_v24 = vor.u32 %v9462_v17, %v7258_v16 }
 0x458   :  { %v7546_v21 = vld [vmem:[#allocation2 + $0x260] sm:$0xf]  ;;  %v9534_v22 = vld [vmem:[#allocation2 + $0x26c] sm:$0xf0]  ;;  %5602 = vmatpush.bf16.msra.mxu1 %v7403_v14  ;;  %v7387_v28 = vor.u32 %v9494_v20, %v7386_v19 }
 0x459   :  { %5612 = vmatpush.bf16.msra.mxu2 %v7579_v7  ;;  %v7674_v27 = vld [vmem:[#allocation2 + $0x360] sm:$0xf]  ;;  %v9566_v25 = vld [vmem:[#allocation2 + $0x36c] sm:$0xf0]  ;;  %v7547_v33 = vor.u32 %v9534_v22, %v7546_v21 }
 0x45a   :  { %v7242_v26 = vld [vmem:[#allocation2] sm:$0xf]  ;;  %v9458_v29 = vld [vmem:[#allocation2 + $0xc] sm:$0xf0]  ;;  %5590 = vmatpush.bf16.msra.mxu0 %v7259_v24  ;;  %v7675_v40 = vor.u32 %v9566_v25, %v7674_v27 }
 0x45b   :  { %v7370_v30 = vld [vmem:[#allocation2 + $0x100] sm:$0xf]  ;;  %v9490_v32 = vld [vmem:[#allocation2 + $0x10c] sm:$0xf0]  ;;  %5626 = vmatpush.bf16.msra.mxu3 %v7691_v23  ;;  %v7243_v42 = vor.u32 %v9458_v29, %v7242_v26 }
 0x45c   :  { %v7530_v35 = vld [vmem:[#allocation2 + $0x240] sm:$0xf]  ;;  %v9614_v37 = vld [vmem:[#allocation2 + $0x4ec] sm:$0xf0]  ;;  %5603 = vmatpush.bf16.msra.mxu1 %v7387_v28  ;;  %v7371_v43 = vor.u32 %v9490_v32, %v7370_v30 }
 0x45d   :  { %5613 = vmatpush.bf16.msra.mxu2 %v7563_v18  ;;  %v7866_v36 = vld [vmem:[#allocation2 + $0x4e0] sm:$0xf]  ;;  %v9530_v38 = vld [vmem:[#allocation2 + $0x24c] sm:$0xf0] }
 0x45e   :  { %v7994_v41 = vld [vmem:[#allocation2 + $0x5e0] sm:$0xf]  ;;  %v9646_v39 = vld [vmem:[#allocation2 + $0x5ec] sm:$0xf0]  ;;  %v7867_v44 = vor.u32 %v9614_v37, %v7866_v36  ;;  %v7531_v47 = vor.u32 %v9530_v38, %v7530_v35  ;;  %5591 = vmatpush.bf16.msra.mxu0 %v7243_v42 }
 0x45f   :  { %v7658_v45 = vld [vmem:[#allocation2 + $0x340] sm:$0xf]  ;;  %v9562_v46 = vld [vmem:[#allocation2 + $0x34c] sm:$0xf0]  ;;  %v7995_v34 = vor.u32 %v9646_v39, %v7994_v41  ;;  %5627 = vmatpush.bf16.msra.mxu3 %v7675_v40 }
 0x460   :  { %v7514_v49 = vld [vmem:[#allocation2 + $0x220] sm:$0xf]  ;;  %v9610_v51 = vld [vmem:[#allocation2 + $0x4cc] sm:$0xf0]  ;;  %v7659_v56 = vor.u32 %v9562_v46, %v7658_v45  ;;  %5604 = vmatpush.bf16.msra.mxu1 %v7371_v43 }
 0x461   :  { %5614 = vmatpush.bf16.msra.mxu2 %v7547_v33  ;;  %v7850_v50 = vld [vmem:[#allocation2 + $0x4c0] sm:$0xf]  ;;  %v9526_v52 = vld [vmem:[#allocation2 + $0x22c] sm:$0xf0]  ;;  %5592 = vmatmul.bf16.vlgmr.msra.gmra.mxu0 %v12557_v13 }
 0x462   :  { %v7978_v53 = vld [vmem:[#allocation2 + $0x5c0] sm:$0xf]  ;;  %v9642_v55 = vld [vmem:[#allocation2 + $0x5cc] sm:$0xf0]  ;;  %5636 = vmatpush.bf16.msrb.mxu0 %v7867_v44  ;;  %v7851_v57 = vor.u32 %v9610_v51, %v7850_v50  ;;  %v7515_v60 = vor.u32 %v9526_v52, %v7514_v49 }
 0x463   :  { %v7642_v58 = vld [vmem:[#allocation2 + $0x320] sm:$0xf]  ;;  %v9558_v59 = vld [vmem:[#allocation2 + $0x32c] sm:$0xf0]  ;;  %v7979_v61 = vor.u32 %v9642_v55, %v7978_v53  ;;  %5628 = vmatpush.bf16.msra.mxu3 %v7659_v56 }
 0x464   :  { %5649 = vmatpush.bf16.msrb.mxu1 %v7995_v34  ;;  %v7498_v62 = vld [vmem:[#allocation2 + $0x200] sm:$0xf]  ;;  %v9606_v63 = vld [vmem:[#allocation2 + $0x4ac] sm:$0xf0]  ;;  %v7643_v2 = vor.u32 %v9558_v59, %v7642_v58 }
 0x465   :  { %5615 = vmatpush.bf16.msra.mxu2 %v7531_v47  ;;  %v7834_v31 = vld [vmem:[#allocation2 + $0x4a0] sm:$0xf]  ;;  %v9522_v54 = vld [vmem:[#allocation2 + $0x20c] sm:$0xf0] }
 0x466   :  { %v7962_v0 = vld [vmem:[#allocation2 + $0x5a0] sm:$0xf]  ;;  %v9638_v1 = vld [vmem:[#allocation2 + $0x5ac] sm:$0xf0]  ;;  %5637 = vmatpush.bf16.msrb.mxu0 %v7851_v57  ;;  %v7835_v6 = vor.u32 %v9606_v63, %v7834_v31  ;;  %v7499_v10 = vor.u32 %v9522_v54, %v7498_v62 }
 0x467   :  { %v8122_v3 = vld [vmem:[#allocation2 + $0x6e0] sm:$0xf]  ;;  %v9678_v4 = vld [vmem:[#allocation2 + $0x6ec] sm:$0xf0]  ;;  %v7963_v11 = vor.u32 %v9638_v1, %v7962_v0  ;;  %5629 = vmatpush.bf16.msra.mxu3 %v7643_v2 }
 0x468   :  { %v7626_v5 = vld [vmem:[#allocation2 + $0x300] sm:$0xf]  ;;  %v9554_v7 = vld [vmem:[#allocation2 + $0x30c] sm:$0xf0]  ;;  %5650 = vmatpush.bf16.msrb.mxu1 %v7979_v61  ;;  %v8123_v14 = vor.u32 %v9678_v4, %v8122_v3 }
 0x469   :  { %v8250_v8 = vld [vmem:[#allocation2 + $0x7e0] sm:$0xf]  ;;  %v9710_v9 = vld [vmem:[#allocation2 + $0x7ec] sm:$0xf0]  ;;  %5616 = vmatpush.bf16.msra.mxu2 %v7515_v60  ;;  %v7627_v18 = vor.u32 %v9554_v7, %v7626_v5 }
 0x46a   :  { %v7818_v12 = vld [vmem:[#allocation2 + $0x480] sm:$0xf]  ;;  %v9602_v48 = vld [vmem:[#allocation2 + $0x48c] sm:$0xf0]  ;;  %5638 = vmatpush.bf16.msrb.mxu0 %v7835_v6  ;;  %v8251_v21 = vor.u32 %v9710_v9, %v8250_v8 }
 0x46b   :  { %v7946_v15 = vld [vmem:[#allocation2 + $0x580] sm:$0xf]  ;;  %v9634_v16 = vld [vmem:[#allocation2 + $0x58c] sm:$0xf0]  ;;  %v7819_v22 = vor.u32 %v9602_v48, %v7818_v12  ;;  %5630 = vmatpush.bf16.msra.mxu3 %v7627_v18 }
 0x46c   :  { %v12560_v17 = vld [vmem:[#allocation1 + $0x9] sm:$0xff]  ;;  %v9674_v20 = vld [vmem:[#allocation2 + $0x6cc] sm:$0xf0]  ;;  %5651 = vmatpush.bf16.msrb.mxu1 %v7963_v11  ;;  %v7947_v24 = vor.u32 %v9634_v16, %v7946_v15 }
 0x46d   :  { %v8106_v19 = vld [vmem:[#allocation2 + $0x6c0] sm:$0xf]  ;;  %5605 = vmatmul.bf16.vlgmr.msra.gmra.mxu1 %v12560_v17  ;;  %5617 = vmatpush.bf16.msra.mxu2 %v7499_v10  ;;  %v9706_v27 = vld [vmem:[#allocation2 + $0x7cc] sm:$0xf0] }
 0x46e   :  { %v8234_v23 = vld [vmem:[#allocation2 + $0x7c0] sm:$0xf]  ;;  %v9598_v26 = vld [vmem:[#allocation2 + $0x46c] sm:$0xf0]  ;;  %v8107_v28 = vor.u32 %v9674_v20, %v8106_v19  ;;  %5639 = vmatpush.bf16.msrb.mxu0 %v7819_v22 }
 0x46f   :  { %v7802_v25 = vld [vmem:[#allocation2 + $0x460] sm:$0xf]  ;;  %v9630_v30 = vld [vmem:[#allocation2 + $0x56c] sm:$0xf0]  ;;  %5675 = vmatpush.bf16.msrb.mxu3 %v8251_v21  ;;  %v8235_v37 = vor.u32 %v9706_v27, %v8234_v23 }
 0x470   :  { %v7930_v29 = vld [vmem:[#allocation2 + $0x560] sm:$0xf]  ;;  %v12563_v32 = vld [vmem:[#allocation1 + $0x12] sm:$0xff]  ;;  %v12565_v36 = vld [vmem:[#allocation1 + $0x1b] sm:$0xff]  ;;  %v7803_v38 = vor.u32 %v9598_v26, %v7802_v25  ;;  %5652 = vmatpush.bf16.msrb.mxu1 %v7947_v24 }
 0x471   :  { %5662 = vmatpush.bf16.msrb.mxu2 %v8123_v14  ;;  %v8090_v33 = vld [vmem:[#allocation2 + $0x6a0] sm:$0xf]  ;;  %v9670_v35 = vld [vmem:[#allocation2 + $0x6ac] sm:$0xf0]  ;;  %v7931_v39 = vor.u32 %v9630_v30, %v7930_v29  ;;  %5631 = vmatmul.bf16.vlgmr.msra.gmra.mxu3 %v12565_v36 }
 0x472   :  { %v8218_v41 = vld [vmem:[#allocation2 + $0x7a0] sm:$0xf]  ;;  %v9702_v40 = vld [vmem:[#allocation2 + $0x7ac] sm:$0xf0]  ;;  %5618 = vmatmul.bf16.vlgmr.msra.gmra.mxu2 %v12563_v32  ;;  %v8091_v44 = vor.u32 %v9670_v35, %v8090_v33  ;;  %5640 = vmatpush.bf16.msrb.mxu0 %v7803_v38  ;;  %v12571_v35 = vld [vmem:[#allocation1 + $0x2d] sm:$0xff] }
 0x473   :  { %v7786_v42 = vld [vmem:[#allocation2 + $0x440] sm:$0xf]  ;;  %v9594_v43 = vld [vmem:[#allocation2 + $0x44c] sm:$0xf0]  ;;  %5676 = vmatpush.bf16.msrb.mxu3 %v8235_v37  ;;  %v8219_v49 = vor.u32 %v9702_v40, %v8218_v41 }
 0x474   :  { %v7914_v45 = vld [vmem:[#allocation2 + $0x540] sm:$0xf]  ;;  %v9626_v46 = vld [vmem:[#allocation2 + $0x54c] sm:$0xf0]  ;;  %v7787_v50 = vor.u32 %v9594_v43, %v7786_v42  ;;  %5653 = vmatpush.bf16.msrb.mxu1 %v7931_v39 }
 0x475   :  { %5663 = vmatpush.bf16.msrb.mxu2 %v8107_v28  ;;  %v8074_v47 = vld [vmem:[#allocation2 + $0x680] sm:$0xf]  ;;  %v9666_v34 = vld [vmem:[#allocation2 + $0x68c] sm:$0xf0]  ;;  %v7915_v52 = vor.u32 %v9626_v46, %v7914_v45 }
 0x476   :  { %v8202_v51 = vld [vmem:[#allocation2 + $0x780] sm:$0xf]  ;;  %v9698_v53 = vld [vmem:[#allocation2 + $0x78c] sm:$0xf0]  ;;  %v8075_v57 = vor.u32 %v9666_v34, %v8074_v47  ;;  %5641 = vmatpush.bf16.msrb.mxu0 %v7787_v50 }
 0x477   :  { %v7770_v55 = vld [vmem:[#allocation2 + $0x420] sm:$0xf]  ;;  %v9590_v56 = vld [vmem:[#allocation2 + $0x42c] sm:$0xf0]  ;;  %5677 = vmatpush.bf16.msrb.mxu3 %v8219_v49  ;;  %v8203_v62 = vor.u32 %v9698_v53, %v8202_v51 }
 0x478   :  { %v7898_v58 = vld [vmem:[#allocation2 + $0x520] sm:$0xf]  ;;  %v9622_v59 = vld [vmem:[#allocation2 + $0x52c] sm:$0xf0]  ;;  %v7771_v31 = vor.u32 %v9590_v56, %v7770_v55  ;;  %5654 = vmatpush.bf16.msrb.mxu1 %v7915_v52 }
 0x479   :  { %5664 = vmatpush.bf16.msrb.mxu2 %v8091_v44  ;;  %v8058_v60 = vld [vmem:[#allocation2 + $0x660] sm:$0xf]  ;;  %v9662_v61 = vld [vmem:[#allocation2 + $0x66c] sm:$0xf0]  ;;  %v7899_v1 = vor.u32 %v9622_v59, %v7898_v58 }
 0x47a   :  { %v8186_v63 = vld [vmem:[#allocation2 + $0x760] sm:$0xf]  ;;  %v9694_v54 = vld [vmem:[#allocation2 + $0x76c] sm:$0xf0]  ;;  %v8059_v5 = vor.u32 %v9662_v61, %v8058_v60  ;;  %5642 = vmatpush.bf16.msrb.mxu0 %v7771_v31 }
 0x47b   :  { %v7754_v0 = vld [vmem:[#allocation2 + $0x400] sm:$0xf]  ;;  %v9586_v2 = vld [vmem:[#allocation2 + $0x40c] sm:$0xf0]  ;;  %5678 = vmatpush.bf16.msrb.mxu3 %v8203_v62  ;;  %v8187_v12 = vor.u32 %v9694_v54, %v8186_v63 }
 0x47c   :  { %v7882_v3 = vld [vmem:[#allocation2 + $0x500] sm:$0xf]  ;;  %v9618_v4 = vld [vmem:[#allocation2 + $0x50c] sm:$0xf0]  ;;  %v7755_v48 = vor.u32 %v9586_v2, %v7754_v0  ;;  %5655 = vmatpush.bf16.msrb.mxu1 %v7899_v1  ;;  %v2371_v0 = vld [vmem:[#allocation3 + $0x8] sm:$0xff] }
 0x47d   :  { %5665 = vmatpush.bf16.msrb.mxu2 %v8075_v57  ;;  %v8042_v6 = vld [vmem:[#allocation2 + $0x640] sm:$0xf]  ;;  %v9742_v8 = vld [vmem:[#allocation2 + $0x8ec] sm:$0xf0]  ;;  %v7883_v14 = vor.u32 %v9618_v4, %v7882_v3  ;;  %v12577_v57 = vld [vmem:[#allocation1 + $0x3f] sm:$0xff] }
 0x47e   :  { %v8378_v7 = vld [vmem:[#allocation2 + $0x8e0] sm:$0xf]  ;;  %v9658_v9 = vld [vmem:[#allocation2 + $0x64c] sm:$0xf0]  ;;  %5643 = vmatpush.bf16.msrb.mxu0 %v7755_v48 }
 0x47f   :  { %v8506_v10 = vld [vmem:[#allocation2 + $0x9e0] sm:$0xf]  ;;  %v9774_v11 = vld [vmem:[#allocation2 + $0x9ec] sm:$0xf0]  ;;  %v8379_v15 = vor.u32 %v9742_v8, %v8378_v7  ;;  %v8043_v19 = vor.u32 %v9658_v9, %v8042_v6  ;;  %5679 = vmatpush.bf16.msrb.mxu3 %v8187_v12 }
 0x480   :  { %v8170_v16 = vld [vmem:[#allocation2 + $0x740] sm:$0xf]  ;;  %v9690_v18 = vld [vmem:[#allocation2 + $0x74c] sm:$0xf0]  ;;  %v8507_v20 = vor.u32 %v9774_v11, %v8506_v10  ;;  %5656 = vmatpush.bf16.msrb.mxu1 %v7883_v14 }
 0x481   :  { %5666 = vmatpush.bf16.msrb.mxu2 %v8059_v5  ;;  %v8026_v21 = vld [vmem:[#allocation2 + $0x620] sm:$0xf]  ;;  %v9738_v23 = vld [vmem:[#allocation2 + $0x8cc] sm:$0xf0]  ;;  %v8171_v26 = vor.u32 %v9690_v18, %v8170_v16 }
 0x482   :  { %v8362_v22 = vld [vmem:[#allocation2 + $0x8c0] sm:$0xf]  ;;  %v9654_v24 = vld [vmem:[#allocation2 + $0x62c] sm:$0xf0]  ;;  %5688 = vmatpush.bf16.msra.mxu0 %v8379_v15 }
 0x483   :  { %v8490_v27 = vld [vmem:[#allocation2 + $0x9c0] sm:$0xf]  ;;  %v9770_v25 = vld [vmem:[#allocation2 + $0x9cc] sm:$0xf0]  ;;  %v8363_v29 = vor.u32 %v9738_v23, %v8362_v22  ;;  %v8027_v37 = vor.u32 %v9654_v24, %v8026_v21  ;;  %5680 = vmatpush.bf16.msrb.mxu3 %v8171_v26  ;;  %5657 = vmatmul.bf16.vlgmr.msrb.gmra.mxu1 %v12571_v35 }
 0x484   :  { %v12569_v28 = vld [vmem:[#allocation1 + $0x24] sm:$0xff]  ;;  %v9686_v33 = vld [vmem:[#allocation2 + $0x72c] sm:$0xf0]  ;;  %5701 = vmatpush.bf16.msra.mxu1 %v8507_v20  ;;  %v8491_v38 = vor.u32 %v9770_v25, %v8490_v27 }
 0x485   :  { %v8154_v30 = vld [vmem:[#allocation2 + $0x720] sm:$0xf]  ;;  %5667 = vmatpush.bf16.msrb.mxu2 %v8043_v19  ;;  %v9734_v40 = vld [vmem:[#allocation2 + $0x8ac] sm:$0xf0]  ;;  %5644 = vmatmul.bf16.vlgmr.msrb.gmra.mxu0 %v12569_v28 }
 0x486   :  { %v8010_v41 = vld [vmem:[#allocation2 + $0x600] sm:$0xf]  ;;  %v9650_v42 = vld [vmem:[#allocation2 + $0x60c] sm:$0xf0]  ;;  %v8155_v45 = vor.u32 %v9686_v33, %v8154_v30  ;;  %5689 = vmatpush.bf16.msra.mxu0 %v8363_v29 }
 0x487   :  { %v8346_v39 = vld [vmem:[#allocation2 + $0x8a0] sm:$0xf]  ;;  %v9766_v44 = vld [vmem:[#allocation2 + $0x9ac] sm:$0xf0]  ;;  %v8011_v52 = vor.u32 %v9650_v42, %v8010_v41 }
 0x488   :  { %v8474_v43 = vld [vmem:[#allocation2 + $0x9a0] sm:$0xf]  ;;  %v9806_v47 = vld [vmem:[#allocation2 + $0xaec] sm:$0xf0]  ;;  %v8347_v34 = vor.u32 %v9734_v40, %v8346_v39  ;;  %5702 = vmatpush.bf16.msra.mxu1 %v8491_v38  ;;  %5681 = vmatpush.bf16.msrb.mxu3 %v8155_v45 }
 0x489   :  { %v8634_v46 = vld [vmem:[#allocation2 + $0xae0] sm:$0xf]  ;;  %v9682_v50 = vld [vmem:[#allocation2 + $0x70c] sm:$0xf0]  ;;  %5668 = vmatpush.bf16.msrb.mxu2 %v8027_v37  ;;  %v8475_v53 = vor.u32 %v9766_v44, %v8474_v43 }
 0x48a   :  { %v8138_v49 = vld [vmem:[#allocation2 + $0x700] sm:$0xf]  ;;  %v12575_v55 = vld [vmem:[#allocation1 + $0x36] sm:$0xff]  ;;  %v8635_v59 = vor.u32 %v9806_v47, %v8634_v46  ;;  %5690 = vmatpush.bf16.msra.mxu0 %v8347_v34 }
 0x48b   :  { %v8762_v51 = vld [vmem:[#allocation2 + $0xbe0] sm:$0xf]  ;;  %v9838_v56 = vld [vmem:[#allocation2 + $0xbec] sm:$0xf0]  ;;  %v8139_v31 = vor.u32 %v9682_v50, %v8138_v49  ;;  %2999 = vst [vmem:[#allocation1] ss:$9 sm:$0xff] %v2371_v0 }
 0x48c   :  { %v8330_v58 = vld [vmem:[#allocation2 + $0x880] sm:$0xf]  ;;  %v9730_v60 = vld [vmem:[#allocation2 + $0x88c] sm:$0xf0]  ;;  %v8763_v1 = vor.u32 %v9838_v56, %v8762_v51  ;;  %5703 = vmatpush.bf16.msra.mxu1 %v8475_v53 }
 0x48d   :  { %v8458_v61 = vld [vmem:[#allocation2 + $0x980] sm:$0xf]  ;;  %v9762_v62 = vld [vmem:[#allocation2 + $0x98c] sm:$0xf0]  ;;  %5669 = vmatpush.bf16.msrb.mxu2 %v8011_v52  ;;  %v8331_v2 = vor.u32 %v9730_v60, %v8330_v58  ;;  %5682 = vmatpush.bf16.msrb.mxu3 %v8139_v31 }
 0x48e   :  { %v8618_v63 = vld [vmem:[#allocation2 + $0xac0] sm:$0xf]  ;;  %v9802_v54 = vld [vmem:[#allocation2 + $0xacc] sm:$0xf0]  ;;  %v8459_v3 = vor.u32 %v9762_v62, %v8458_v61 }
 0x48f   :  { %v8746_v4 = vld [vmem:[#allocation2 + $0xbc0] sm:$0xf]  ;;  %v9834_v5 = vld [vmem:[#allocation2 + $0xbcc] sm:$0xf0]  ;;  %v8619_v7 = vor.u32 %v9802_v54, %v8618_v63  ;;  %5691 = vmatpush.bf16.msra.mxu0 %v8331_v2 }
 0x490   :  { %v8314_v6 = vld [vmem:[#allocation2 + $0x860] sm:$0xf]  ;;  %v9726_v8 = vld [vmem:[#allocation2 + $0x86c] sm:$0xf0]  ;;  %5670 = vmatmul.bf16.vlgmr.msrb.gmra.mxu2 %v12575_v55  ;;  %v8747_v48 = vor.u32 %v9834_v5, %v8746_v4  ;;  %5704 = vmatpush.bf16.msra.mxu1 %v8459_v3 }
 0x491   :  { %5714 = vmatpush.bf16.msra.mxu2 %v8635_v59  ;;  %v8442_v9 = vld [vmem:[#allocation2 + $0x960] sm:$0xf]  ;;  %v9758_v10 = vld [vmem:[#allocation2 + $0x96c] sm:$0xf0]  ;;  %5727 = vmatpush.bf16.msra.mxu3 %v8763_v1  ;;  %v8315_v14 = vor.u32 %v9726_v8, %v8314_v6 }
 0x492   :  { %v8602_v11 = vld [vmem:[#allocation2 + $0xaa0] sm:$0xf]  ;;  %v9798_v12 = vld [vmem:[#allocation2 + $0xaac] sm:$0xf0]  ;;  %v8443_v15 = vor.u32 %v9758_v10, %v8442_v9  ;;  %5683 = vmatmul.bf16.vlgmr.msrb.gmra.mxu3 %v12577_v57 }
 0x493   :  { %v8730_v16 = vld [vmem:[#allocation2 + $0xba0] sm:$0xf]  ;;  %v9830_v18 = vld [vmem:[#allocation2 + $0xbac] sm:$0xf0]  ;;  %v8603_v20 = vor.u32 %v9798_v12, %v8602_v11  ;;  %5692 = vmatpush.bf16.msra.mxu0 %v8315_v14  ;;  %v3000_v12 = vld [vmem:[#allocation1] sm:$0xff] }
 0x494   :  { %v8298_v19 = vld [vmem:[#allocation2 + $0x840] sm:$0xf]  ;;  %v9722_v21 = vld [vmem:[#allocation2 + $0x84c] sm:$0xf0]  ;;  %v8731_v25 = vor.u32 %v9830_v18, %v8730_v16  ;;  %5705 = vmatpush.bf16.msra.mxu1 %v8443_v15 }
 0x495   :  { %5715 = vmatpush.bf16.msra.mxu2 %v8619_v7  ;;  %v8426_v22 = vld [vmem:[#allocation2 + $0x940] sm:$0xf]  ;;  %v9754_v23 = vld [vmem:[#allocation2 + $0x94c] sm:$0xf0]  ;;  %5728 = vmatpush.bf16.msra.mxu3 %v8747_v48  ;;  %v8299_v26 = vor.u32 %v9722_v21, %v8298_v19 }
 0x496   :  { %v8586_v24 = vld [vmem:[#allocation2 + $0xa80] sm:$0xf]  ;;  %v9794_v27 = vld [vmem:[#allocation2 + $0xa8c] sm:$0xf0]  ;;  %v8427_v29 = vor.u32 %v9754_v23, %v8426_v22 }
 0x497   :  { %v8714_v30 = vld [vmem:[#allocation2 + $0xb80] sm:$0xf]  ;;  %v9826_v33 = vld [vmem:[#allocation2 + $0xb8c] sm:$0xf0]  ;;  %v8587_v38 = vor.u32 %v9794_v27, %v8586_v24  ;;  %5693 = vmatpush.bf16.msra.mxu0 %v8299_v26 }
 0x498   :  { %v8282_v37 = vld [vmem:[#allocation2 + $0x820] sm:$0xf]  ;;  %v9718_v41 = vld [vmem:[#allocation2 + $0x82c] sm:$0xf0]  ;;  %v8715_v44 = vor.u32 %v9826_v33, %v8714_v30  ;;  %5706 = vmatpush.bf16.msra.mxu1 %v8427_v29 }
 0x499   :  { %5716 = vmatpush.bf16.msra.mxu2 %v8603_v20  ;;  %v8410_v39 = vld [vmem:[#allocation2 + $0x920] sm:$0xf]  ;;  %v9750_v40 = vld [vmem:[#allocation2 + $0x92c] sm:$0xf0]  ;;  %5729 = vmatpush.bf16.msra.mxu3 %v8731_v25  ;;  %v8283_v46 = vor.u32 %v9718_v41, %v8282_v37 }
 0x49a   :  { %v8570_v42 = vld [vmem:[#allocation2 + $0xa60] sm:$0xf]  ;;  %v9790_v43 = vld [vmem:[#allocation2 + $0xa6c] sm:$0xf0]  ;;  %v8411_v47 = vor.u32 %v9750_v40, %v8410_v39 }
 0x49b   :  { %v8698_v45 = vld [vmem:[#allocation2 + $0xb60] sm:$0xf]  ;;  %v9822_v34 = vld [vmem:[#allocation2 + $0xb6c] sm:$0xf0]  ;;  %v8571_v51 = vor.u32 %v9790_v43, %v8570_v42  ;;  %5694 = vmatpush.bf16.msra.mxu0 %v8283_v46 }
 0x49c   :  { %v8266_v49 = vld [vmem:[#allocation2 + $0x800] sm:$0xf]  ;;  %v9714_v50 = vld [vmem:[#allocation2 + $0x80c] sm:$0xf0]  ;;  %v8699_v61 = vor.u32 %v9822_v34, %v8698_v45  ;;  %5707 = vmatpush.bf16.msra.mxu1 %v8411_v47 }
 0x49d   :  { %5717 = vmatpush.bf16.msra.mxu2 %v8587_v38  ;;  %v8394_v52 = vld [vmem:[#allocation2 + $0x900] sm:$0xf]  ;;  %v9746_v53 = vld [vmem:[#allocation2 + $0x90c] sm:$0xf0]  ;;  %5730 = vmatpush.bf16.msra.mxu3 %v8715_v44  ;;  %v8267_v63 = vor.u32 %v9714_v50, %v8266_v49 }
 0x49e   :  { %v8554_v56 = vld [vmem:[#allocation2 + $0xa40] sm:$0xf]  ;;  %v9786_v58 = vld [vmem:[#allocation2 + $0xa4c] sm:$0xf0]  ;;  %v8395_v54 = vor.u32 %v9746_v53, %v8394_v52 }
 0x49f   :  { %v8890_v59 = vld [vmem:[#allocation2 + $0xce0] sm:$0xf]  ;;  %v9870_v60 = vld [vmem:[#allocation2 + $0xcec] sm:$0xf0]  ;;  %v8555_v2 = vor.u32 %v9786_v58, %v8554_v56  ;;  %5695 = vmatpush.bf16.msra.mxu0 %v8267_v63 }
 0x4a0   :  { %v9018_v62 = vld [vmem:[#allocation2 + $0xde0] sm:$0xf]  ;;  %v9902_v31 = vld [vmem:[#allocation2 + $0xdec] sm:$0xf0]  ;;  %v8891_v3 = vor.u32 %v9870_v60, %v8890_v59  ;;  %5708 = vmatpush.bf16.msra.mxu1 %v8395_v54 }
 0x4a1   :  { %v8682_v0 = vld [vmem:[#allocation2 + $0xb40] sm:$0xf]  ;;  %v9818_v1 = vld [vmem:[#allocation2 + $0xb4c] sm:$0xf0]  ;;  %5718 = vmatpush.bf16.msra.mxu2 %v8571_v51  ;;  %v9019_v5 = vor.u32 %v9902_v31, %v9018_v62  ;;  %5731 = vmatpush.bf16.msra.mxu3 %v8699_v61 }
 0x4a2   :  { %v8538_v4 = vld [vmem:[#allocation2 + $0xa20] sm:$0xf]  ;;  %v9782_v6 = vld [vmem:[#allocation2 + $0xa2c] sm:$0xf0]  ;;  %v8683_v9 = vor.u32 %v9818_v1, %v8682_v0  ;;  %5696 = vmatmul.bf16.vlgmr.msra.gmra.mxu0 %v3000_v12 }
 0x4a3   :  { %v8874_v7 = vld [vmem:[#allocation2 + $0xcc0] sm:$0xf]  ;;  %v9866_v8 = vld [vmem:[#allocation2 + $0xccc] sm:$0xf0]  ;;  %5740 = vmatpush.bf16.msrb.mxu0 %v8891_v3  ;;  %v8539_v15 = vor.u32 %v9782_v6, %v8538_v4 }
 0x4a4   :  { %v9002_v10 = vld [vmem:[#allocation2 + $0xdc0] sm:$0xf]  ;;  %v9898_v11 = vld [vmem:[#allocation2 + $0xdcc] sm:$0xf0]  ;;  %v8875_v18 = vor.u32 %v9866_v8, %v8874_v7  ;;  %5753 = vmatpush.bf16.msrb.mxu1 %v9019_v5 }
 0x4a5   :  { %v8666_v48 = vld [vmem:[#allocation2 + $0xb20] sm:$0xf]  ;;  %v9814_v14 = vld [vmem:[#allocation2 + $0xb2c] sm:$0xf0]  ;;  %5719 = vmatpush.bf16.msra.mxu2 %v8555_v2  ;;  %v9003_v21 = vor.u32 %v9898_v11, %v9002_v10  ;;  %5732 = vmatpush.bf16.msra.mxu3 %v8683_v9 }
 0x4a6   :  { %v3001_v16 = vld [vmem:[#allocation1 + $0x9] sm:$0xff]  ;;  %v9778_v20 = vld [vmem:[#allocation2 + $0xa0c] sm:$0xf0]  ;;  %v8667_v27 = vor.u32 %v9814_v14, %v8666_v48 }
 0x4a7   :  { %v8522_v19 = vld [vmem:[#allocation2 + $0xa00] sm:$0xf]  ;;  %v9862_v23 = vld [vmem:[#allocation2 + $0xcac] sm:$0xf0]  ;;  %5709 = vmatmul.bf16.vlgmr.msra.gmra.mxu1 %v3001_v16  ;;  %5741 = vmatpush.bf16.msrb.mxu0 %v8875_v18 }
 0x4a8   :  { %v8858_v22 = vld [vmem:[#allocation2 + $0xca0] sm:$0xf]  ;;  %v9894_v25 = vld [vmem:[#allocation2 + $0xdac] sm:$0xf0]  ;;  %v8523_v37 = vor.u32 %v9778_v20, %v8522_v19  ;;  %5754 = vmatpush.bf16.msrb.mxu1 %v9003_v21 }
 0x4a9   :  { %v8986_v24 = vld [vmem:[#allocation2 + $0xda0] sm:$0xf]  ;;  %v9934_v29 = vld [vmem:[#allocation2 + $0xeec] sm:$0xf0]  ;;  %5720 = vmatpush.bf16.msra.mxu2 %v8539_v15  ;;  %v8859_v38 = vor.u32 %v9862_v23, %v8858_v22  ;;  %5733 = vmatpush.bf16.msra.mxu3 %v8667_v27 }
 0x4aa   :  { %v9146_v26 = vld [vmem:[#allocation2 + $0xee0] sm:$0xf]  ;;  %v9810_v33 = vld [vmem:[#allocation2 + $0xb0c] sm:$0xf0]  ;;  %v8987_v40 = vor.u32 %v9894_v25, %v8986_v24 }
 0x4ab   :  { %v8650_v30 = vld [vmem:[#allocation2 + $0xb00] sm:$0xf]  ;;  %v9966_v39 = vld [vmem:[#allocation2 + $0xfec] sm:$0xf0]  ;;  %v9147_v42 = vor.u32 %v9934_v29, %v9146_v26  ;;  %5742 = vmatpush.bf16.msrb.mxu0 %v8859_v38 }
 0x4ac   :  { %v9274_v41 = vld [vmem:[#allocation2 + $0xfe0] sm:$0xf]  ;;  %v9858_v44 = vld [vmem:[#allocation2 + $0xc8c] sm:$0xf0]  ;;  %v8651_v45 = vor.u32 %v9810_v33, %v8650_v30  ;;  %5755 = vmatpush.bf16.msrb.mxu1 %v8987_v40 }
 0x4ad   :  { %v8842_v43 = vld [vmem:[#allocation2 + $0xc80] sm:$0xf]  ;;  %v9890_v47 = vld [vmem:[#allocation2 + $0xd8c] sm:$0xf0]  ;;  %v9275_v34 = vor.u32 %v9966_v39, %v9274_v41  ;;  %5721 = vmatpush.bf16.msra.mxu2 %v8523_v37 }
 0x4ae   :  { %v8970_v46 = vld [vmem:[#allocation2 + $0xd80] sm:$0xf]  ;;  %v9930_v50 = vld [vmem:[#allocation2 + $0xecc] sm:$0xf0]  ;;  %v8843_v52 = vor.u32 %v9858_v44, %v8842_v43  ;;  %5734 = vmatpush.bf16.msra.mxu3 %v8651_v45  ;;  %v9484_v43 = vld [vmem:[#allocation2 + $0xe4] sm:$0xf] }
 0x4af   :  { %v9130_v49 = vld [vmem:[#allocation2 + $0xec0] sm:$0xf]  ;;  %v3002_v51 = vld [vmem:[#allocation1 + $0x12] sm:$0xff]  ;;  %v3003_v58 = vld [vmem:[#allocation1 + $0x1b] sm:$0xff]  ;;  %v8971_v59 = vor.u32 %v9890_v47, %v8970_v46 }
 0x4b0   :  { %v9258_v53 = vld [vmem:[#allocation2 + $0xfc0] sm:$0xf]  ;;  %v9962_v56 = vld [vmem:[#allocation2 + $0xfcc] sm:$0xf0]  ;;  %v9131_v62 = vor.u32 %v9930_v50, %v9130_v49  ;;  %5722 = vmatmul.bf16.vlgmr.msra.gmra.mxu2 %v3002_v51  ;;  %5743 = vmatpush.bf16.msrb.mxu0 %v8843_v52  ;;  %v7356_v44 = vld [vmem:[#allocation2 + $0xf0] sm:$0xf0] }
 0x4b1   :  { %5766 = vmatpush.bf16.msrb.mxu2 %v9147_v42  ;;  %v8826_v60 = vld [vmem:[#allocation2 + $0xc60] sm:$0xf]  ;;  %v9854_v61 = vld [vmem:[#allocation2 + $0xc6c] sm:$0xf0]  ;;  %v9259_v0 = vor.u32 %v9962_v56, %v9258_v53  ;;  %5735 = vmatmul.bf16.vlgmr.msra.gmra.mxu3 %v3003_v58  ;;  %v9516_v47 = vld [vmem:[#allocation2 + $0x1e4] sm:$0xf]  ;;  %v7359_v53 = vor.u32 %v9484_v43, %v7356_v44 }
 0x4b2   :  { %v8954_v31 = vld [vmem:[#allocation2 + $0xd60] sm:$0xf]  ;;  %v9886_v63 = vld [vmem:[#allocation2 + $0xd6c] sm:$0xf0]  ;;  %5779 = vmatpush.bf16.msrb.mxu3 %v9275_v34  ;;  %v8827_v2 = vor.u32 %v9854_v61, %v8826_v60  ;;  %5756 = vmatpush.bf16.msrb.mxu1 %v8971_v59  ;;  %v7484_v34 = vld [vmem:[#allocation2 + $0x1f0] sm:$0xf0] }
 0x4b3   :  { %v9114_v54 = vld [vmem:[#allocation2 + $0xea0] sm:$0xf]  ;;  %v9926_v1 = vld [vmem:[#allocation2 + $0xeac] sm:$0xf0]  ;;  %v8955_v6 = vor.u32 %v9886_v63, %v8954_v31  ;;  %v7487_v58 = vor.u32 %v9516_v47, %v7484_v34  ;;  %v9480_v60 = vld [vmem:[#allocation2 + $0xc4] sm:$0xf] }
 0x4b4   :  { %v9242_v3 = vld [vmem:[#allocation2 + $0xfa0] sm:$0xf]  ;;  %v9958_v4 = vld [vmem:[#allocation2 + $0xfac] sm:$0xf0]  ;;  %v9115_v10 = vor.u32 %v9926_v1, %v9114_v54  ;;  %5744 = vmatpush.bf16.msrb.mxu0 %v8827_v2  ;;  %v7340_v61 = vld [vmem:[#allocation2 + $0xd0] sm:$0xf0] }
 0x4b5   :  { %v8810_v5 = vld [vmem:[#allocation2 + $0xc40] sm:$0xf]  ;;  %v9850_v7 = vld [vmem:[#allocation2 + $0xc4c] sm:$0xf0]  ;;  %5767 = vmatpush.bf16.msrb.mxu2 %v9131_v62  ;;  %v9243_v48 = vor.u32 %v9958_v4, %v9242_v3  ;;  %v9512_v63 = vld [vmem:[#allocation2 + $0x1c4] sm:$0xf]  ;;  %v7343_v4 = vor.u32 %v9480_v60, %v7340_v61 }
 0x4b6   :  { %v8938_v8 = vld [vmem:[#allocation2 + $0xd40] sm:$0xf]  ;;  %v9882_v9 = vld [vmem:[#allocation2 + $0xd4c] sm:$0xf0]  ;;  %5780 = vmatpush.bf16.msrb.mxu3 %v9259_v0  ;;  %v8811_v14 = vor.u32 %v9850_v7, %v8810_v5  ;;  %5757 = vmatpush.bf16.msrb.mxu1 %v8955_v6  ;;  %v7468_v54 = vld [vmem:[#allocation2 + $0x1d0] sm:$0xf0] }
 0x4b7   :  { %v9098_v11 = vld [vmem:[#allocation2 + $0xe80] sm:$0xf]  ;;  %v9922_v12 = vld [vmem:[#allocation2 + $0xe8c] sm:$0xf0]  ;;  %v8939_v18 = vor.u32 %v9882_v9, %v8938_v8  ;;  %v3005_v3 = vld [vmem:[#allocation1 + $0x2d] sm:$0xff]  ;;  %v7471_v7 = vor.u32 %v9512_v63, %v7468_v54 }
 0x4b8   :  { %v9226_v15 = vld [vmem:[#allocation2 + $0xf80] sm:$0xf]  ;;  %v9954_v16 = vld [vmem:[#allocation2 + $0xf8c] sm:$0xf0]  ;;  %v9099_v21 = vor.u32 %v9922_v12, %v9098_v11  ;;  %5745 = vmatpush.bf16.msrb.mxu0 %v8811_v14  ;;  %v9476_v9 = vld [vmem:[#allocation2 + $0xa4] sm:$0xf] }
 0x4b9   :  { %v8794_v19 = vld [vmem:[#allocation2 + $0xc20] sm:$0xf]  ;;  %v9846_v20 = vld [vmem:[#allocation2 + $0xc2c] sm:$0xf0]  ;;  %5768 = vmatpush.bf16.msrb.mxu2 %v9115_v10  ;;  %v9227_v24 = vor.u32 %v9954_v16, %v9226_v15  ;;  %v7324_v10 = vld [vmem:[#allocation2 + $0xb0] sm:$0xf0] }
 0x4ba   :  { %v8922_v22 = vld [vmem:[#allocation2 + $0xd20] sm:$0xf]  ;;  %v9878_v23 = vld [vmem:[#allocation2 + $0xd2c] sm:$0xf0]  ;;  %5781 = vmatpush.bf16.msrb.mxu3 %v9243_v48  ;;  %v8795_v26 = vor.u32 %v9846_v20, %v8794_v19  ;;  %5758 = vmatpush.bf16.msrb.mxu1 %v8939_v18  ;;  %v9508_v12 = vld [vmem:[#allocation2 + $0x1a4] sm:$0xf]  ;;  %v7327_v19 = vor.u32 %v9476_v9, %v7324_v10 }
 0x4bb   :  { %v9082_v27 = vld [vmem:[#allocation2 + $0xe60] sm:$0xf]  ;;  %v9918_v25 = vld [vmem:[#allocation2 + $0xe6c] sm:$0xf0]  ;;  %v8923_v37 = vor.u32 %v9878_v23, %v8922_v22  ;;  %v7452_v48 = vld [vmem:[#allocation2 + $0x1b0] sm:$0xf0] }
 0x4bc   :  { %v9210_v29 = vld [vmem:[#allocation2 + $0xf60] sm:$0xf]  ;;  %v9950_v30 = vld [vmem:[#allocation2 + $0xf6c] sm:$0xf0]  ;;  %v9083_v40 = vor.u32 %v9918_v25, %v9082_v27  ;;  %5746 = vmatpush.bf16.msrb.mxu0 %v8795_v26  ;;  %v9548_v14 = vld [vmem:[#allocation2 + $0x2e4] sm:$0xf]  ;;  %v7455_v23 = vor.u32 %v9508_v12, %v7452_v48 }
 0x4bd   :  { %v8778_v33 = vld [vmem:[#allocation2 + $0xc00] sm:$0xf]  ;;  %v9842_v38 = vld [vmem:[#allocation2 + $0xc0c] sm:$0xf0]  ;;  %5769 = vmatpush.bf16.msrb.mxu2 %v9099_v21  ;;  %v9211_v45 = vor.u32 %v9950_v30, %v9210_v29  ;;  %v7612_v15 = vld [vmem:[#allocation2 + $0x2f0] sm:$0xf0] }
 0x4be   :  { %v8906_v41 = vld [vmem:[#allocation2 + $0xd00] sm:$0xf]  ;;  %v9874_v39 = vld [vmem:[#allocation2 + $0xd0c] sm:$0xf0]  ;;  %5782 = vmatpush.bf16.msrb.mxu3 %v9227_v24  ;;  %v8779_v49 = vor.u32 %v9842_v38, %v8778_v33  ;;  %5759 = vmatpush.bf16.msrb.mxu1 %v8923_v37  ;;  %v9580_v20 = vld [vmem:[#allocation2 + $0x3e4] sm:$0xf]  ;;  %v7615_v25 = vor.u32 %v9548_v14, %v7612_v15 }
 0x4bf   :  { %v9066_v42 = vld [vmem:[#allocation2 + $0xe40] sm:$0xf]  ;;  %v9914_v46 = vld [vmem:[#allocation2 + $0xe4c] sm:$0xf0]  ;;  %v8907_v52 = vor.u32 %v9874_v39, %v8906_v41  ;;  %v7740_v21 = vld [vmem:[#allocation2 + $0x3f0] sm:$0xf0] }
 0x4c0   :  { %v9194_v50 = vld [vmem:[#allocation2 + $0xf40] sm:$0xf]  ;;  %v9946_v51 = vld [vmem:[#allocation2 + $0xf4c] sm:$0xf0]  ;;  %v9067_v56 = vor.u32 %v9914_v46, %v9066_v42  ;;  %5747 = vmatpush.bf16.msrb.mxu0 %v8779_v49  ;;  %v9472_v24 = vld [vmem:[#allocation2 + $0x84] sm:$0xf]  ;;  %v7743_v33 = vor.u32 %v9580_v20, %v7740_v21 }
 0x4c1   :  { %5770 = vmatpush.bf16.msrb.mxu2 %v9083_v40  ;;  %v9050_v59 = vld [vmem:[#allocation2 + $0xe20] sm:$0xf]  ;;  %v9195_v62 = vor.u32 %v9946_v51, %v9194_v50  ;;  %v9910_v31 = vld [vmem:[#allocation2 + $0xe2c] sm:$0xf0]  ;;  %v7308_v27 = vld [vmem:[#allocation2 + $0x90] sm:$0xf0] }
 0x4c2   :  { %5783 = vmatpush.bf16.msrb.mxu3 %v9211_v45  ;;  %v3004_v0 = vld [vmem:[#allocation1 + $0x24] sm:$0xff]  ;;  %v9942_v2 = vld [vmem:[#allocation2 + $0xf2c] sm:$0xf0]  ;;  %5760 = vmatpush.bf16.msrb.mxu1 %v8907_v52  ;;  %v9051_v6 = vor.u32 %v9910_v31, %v9050_v59  ;;  %v9504_v29 = vld [vmem:[#allocation2 + $0x184] sm:$0xf]  ;;  %v7311_v41 = vor.u32 %v9472_v24, %v7308_v27 }
 0x4c3   :  { %v9178_v1 = vld [vmem:[#allocation2 + $0xf20] sm:$0xf]  ;;  %v9906_v8 = vld [vmem:[#allocation2 + $0xe0c] sm:$0xf0]  ;;  %5748 = vmatmul.bf16.vlgmr.msrb.gmra.mxu0 %v3004_v0  ;;  %v7436_v30 = vld [vmem:[#allocation2 + $0x190] sm:$0xf0] }
 0x4c4   :  { %5792 = vmatpush.bf16.msra.mxu0 %v7359_v53  ;;  %v9034_v5 = vld [vmem:[#allocation2 + $0xe00] sm:$0xf]  ;;  %v9179_v11 = vor.u32 %v9942_v2, %v9178_v1  ;;  %v9938_v18 = vld [vmem:[#allocation2 + $0xf0c] sm:$0xf0]  ;;  %v9544_v37 = vld [vmem:[#allocation2 + $0x2c4] sm:$0xf]  ;;  %v7439_v43 = vor.u32 %v9504_v29, %v7436_v30 }
 0x4c5   :  { %5771 = vmatpush.bf16.msrb.mxu2 %v9067_v56  ;;  %5761 = vmatmul.bf16.vlgmr.msrb.gmra.mxu1 %v3005_v3  ;;  %v9162_v16 = vld [vmem:[#allocation2 + $0xf00] sm:$0xf]  ;;  %v9035_v22 = vor.u32 %v9906_v8, %v9034_v5  ;;  %v7596_v38 = vld [vmem:[#allocation2 + $0x2d0] sm:$0xf0]  ;;  %v9576_v39 = vld [vmem:[#allocation2 + $0x3c4] sm:$0xf] }
 0x4c6   :  { %5805 = vmatpush.bf16.msra.mxu1 %v7487_v58  ;;  %5784 = vmatpush.bf16.msrb.mxu3 %v9195_v62  ;;  %v9163_v26 = vor.u32 %v9938_v18, %v9162_v16  ;;  %v7724_v40 = vld [vmem:[#allocation2 + $0x3d0] sm:$0xf0]  ;;  %v9468_v44 = vld [vmem:[#allocation2 + $0x64] sm:$0xf]  ;;  %v7599_v47 = vor.u32 %v9544_v37, %v7596_v38 }
 0x4c7   :  { %v3006_v42 = vld [vmem:[#allocation1 + $0x36] sm:$0xff]  ;;  %v3007_v46 = vld [vmem:[#allocation1 + $0x3f] sm:$0xff]  ;;  %v9500_v34 = vld [vmem:[#allocation2 + $0x164] sm:$0xf]  ;;  %v7727_v50 = vor.u32 %v9576_v39, %v7724_v40 }
 0x4c8   :  { %5793 = vmatpush.bf16.msra.mxu0 %v7343_v4  ;;  %v7292_v45 = vld [vmem:[#allocation2 + $0x70] sm:$0xf0]  ;;  %v9540_v51 = vld [vmem:[#allocation2 + $0x2a4] sm:$0xf] }
 0x4c9   :  { %5772 = vmatpush.bf16.msrb.mxu2 %v9051_v6  ;;  %v7420_v49 = vld [vmem:[#allocation2 + $0x170] sm:$0xf0]  ;;  %v7295_v53 = vor.u32 %v9468_v44, %v7292_v45  ;;  %v9572_v56 = vld [vmem:[#allocation2 + $0x3a4] sm:$0xf] }
 0x4ca   :  { %5806 = vmatpush.bf16.msra.mxu1 %v7471_v7  ;;  %5785 = vmatpush.bf16.msrb.mxu3 %v9179_v11  ;;  %v7580_v52 = vld [vmem:[#allocation2 + $0x2b0] sm:$0xf0]  ;;  %v7423_v59 = vor.u32 %v9500_v34, %v7420_v49  ;;  %v9464_v60 = vld [vmem:[#allocation2 + $0x44] sm:$0xf] }
 0x4cb   :  { %v7708_v58 = vld [vmem:[#allocation2 + $0x3b0] sm:$0xf0]  ;;  %v7583_v62 = vor.u32 %v9540_v51, %v7580_v52  ;;  %v9496_v31 = vld [vmem:[#allocation2 + $0x144] sm:$0xf] }
 0x4cc   :  { %5794 = vmatpush.bf16.msra.mxu0 %v7327_v19  ;;  %v7276_v61 = vld [vmem:[#allocation2 + $0x50] sm:$0xf0]  ;;  %v7711_v54 = vor.u32 %v9572_v56, %v7708_v58  ;;  %v9536_v0 = vld [vmem:[#allocation2 + $0x284] sm:$0xf] }
 0x4cd   :  { %5773 = vmatpush.bf16.msrb.mxu2 %v9035_v22  ;;  %v7404_v63 = vld [vmem:[#allocation2 + $0x150] sm:$0xf0]  ;;  %v7279_v2 = vor.u32 %v9464_v60, %v7276_v61  ;;  %v9568_v3 = vld [vmem:[#allocation2 + $0x384] sm:$0xf] }
 0x4ce   :  { %5807 = vmatpush.bf16.msra.mxu1 %v7455_v23  ;;  %5786 = vmatpush.bf16.msrb.mxu3 %v9163_v26  ;;  %v7564_v1 = vld [vmem:[#allocation2 + $0x290] sm:$0xf0]  ;;  %v7407_v5 = vor.u32 %v9496_v31, %v7404_v63  ;;  %v9460_v6 = vld [vmem:[#allocation2 + $0x24] sm:$0xf] }
 0x4cf   :  { %v7692_v4 = vld [vmem:[#allocation2 + $0x390] sm:$0xf0]  ;;  %v7567_v8 = vor.u32 %v9536_v0, %v7564_v1  ;;  %v9492_v9 = vld [vmem:[#allocation2 + $0x124] sm:$0xf] }
 0x4d0   :  { %5774 = vmatmul.bf16.vlgmr.msrb.gmra.mxu2 %v3006_v42  ;;  %5795 = vmatpush.bf16.msra.mxu0 %v7311_v41  ;;  %v7260_v7 = vld [vmem:[#allocation2 + $0x30] sm:$0xf0]  ;;  %v7695_v11 = vor.u32 %v9568_v3, %v7692_v4  ;;  %v9532_v12 = vld [vmem:[#allocation2 + $0x264] sm:$0xf] }
 0x4d1   :  { %5818 = vmatpush.bf16.msra.mxu2 %v7615_v25  ;;  %5787 = vmatmul.bf16.vlgmr.msrb.gmra.mxu3 %v3007_v46  ;;  %v7388_v10 = vld [vmem:[#allocation2 + $0x130] sm:$0xf0]  ;;  %v7263_v14 = vor.u32 %v9460_v6, %v7260_v7  ;;  %v9564_v15 = vld [vmem:[#allocation2 + $0x364] sm:$0xf] }
 0x4d2   :  { %5831 = vmatpush.bf16.msra.mxu3 %v7743_v33  ;;  %5808 = vmatpush.bf16.msra.mxu1 %v7439_v43  ;;  %v7548_v48 = vld [vmem:[#allocation2 + $0x270] sm:$0xf0]  ;;  %v9456_v18 = vld [vmem:[#allocation2 + $0x4] sm:$0xf]  ;;  %v7391_v19 = vor.u32 %v9492_v9, %v7388_v10 }
 0x4d3   :  { %v7676_v16 = vld [vmem:[#allocation2 + $0x370] sm:$0xf0]  ;;  %v9488_v21 = vld [vmem:[#allocation2 + $0x104] sm:$0xf]  ;;  %v7551_v23 = vor.u32 %v9532_v12, %v7548_v48 }
 0x4d4   :  { %5796 = vmatpush.bf16.msra.mxu0 %v7295_v53  ;;  %v7244_v20 = vld [vmem:[#allocation2 + $0x10] sm:$0xf0]  ;;  %v9528_v24 = vld [vmem:[#allocation2 + $0x244] sm:$0xf]  ;;  %v7679_v26 = vor.u32 %v9564_v15, %v7676_v16 }
 0x4d5   :  { %5819 = vmatpush.bf16.msra.mxu2 %v7599_v47  ;;  %v7372_v22 = vld [vmem:[#allocation2 + $0x110] sm:$0xf0]  ;;  %v9612_v27 = vld [vmem:[#allocation2 + $0x4e4] sm:$0xf]  ;;  %v7247_v37 = vor.u32 %v9456_v18, %v7244_v20 }
 0x4d6   :  { %5832 = vmatpush.bf16.msra.mxu3 %v7727_v50  ;;  %5809 = vmatpush.bf16.msra.mxu1 %v7423_v59  ;;  %v7868_v25 = vld [vmem:[#allocation2 + $0x4f0] sm:$0xf0]  ;;  %v9644_v30 = vld [vmem:[#allocation2 + $0x5e4] sm:$0xf]  ;;  %v7375_v39 = vor.u32 %v9488_v21, %v7372_v22 }
 0x4d7   :  { %v7532_v29 = vld [vmem:[#allocation2 + $0x250] sm:$0xf0]  ;;  %v9560_v38 = vld [vmem:[#allocation2 + $0x344] sm:$0xf]  ;;  %v7871_v40 = vor.u32 %v9612_v27, %v7868_v25 }
 0x4d8   :  { %5797 = vmatpush.bf16.msra.mxu0 %v7279_v2  ;;  %v7996_v33 = vld [vmem:[#allocation2 + $0x5f0] sm:$0xf0]  ;;  %v7535_v42 = vor.u32 %v9528_v24, %v7532_v29  ;;  %v9524_v44 = vld [vmem:[#allocation2 + $0x224] sm:$0xf] }
 0x4d9   :  { %5820 = vmatpush.bf16.msra.mxu2 %v7583_v62  ;;  %v7660_v41 = vld [vmem:[#allocation2 + $0x350] sm:$0xf0]  ;;  %v7999_v43 = vor.u32 %v9644_v30, %v7996_v33  ;;  %v9608_v45 = vld [vmem:[#allocation2 + $0x4c4] sm:$0xf] }
 0x4da   :  { %5833 = vmatpush.bf16.msra.mxu3 %v7711_v54  ;;  %5810 = vmatpush.bf16.msra.mxu1 %v7407_v5  ;;  %v7852_v46 = vld [vmem:[#allocation2 + $0x4d0] sm:$0xf0]  ;;  %v7663_v47 = vor.u32 %v9560_v38, %v7660_v41  ;;  %v9640_v49 = vld [vmem:[#allocation2 + $0x5c4] sm:$0xf] }
 0x4db   :  { %v7516_v34 = vld [vmem:[#allocation2 + $0x230] sm:$0xf0]  ;;  %v9556_v51 = vld [vmem:[#allocation2 + $0x324] sm:$0xf]  ;;  %v7855_v53 = vor.u32 %v9608_v45, %v7852_v46 }
 0x4dc   :  { %5798 = vmatpush.bf16.msra.mxu0 %v7263_v14  ;;  %v7980_v50 = vld [vmem:[#allocation2 + $0x5d0] sm:$0xf0]  ;;  %v9520_v56 = vld [vmem:[#allocation2 + $0x204] sm:$0xf]  ;;  %v7519_v58 = vor.u32 %v9524_v44, %v7516_v34 }
 0x4dd   :  { %5821 = vmatpush.bf16.msra.mxu2 %v7567_v8  ;;  %v7644_v52 = vld [vmem:[#allocation2 + $0x330] sm:$0xf0]  ;;  %v7983_v59 = vor.u32 %v9640_v49, %v7980_v50  ;;  %v9604_v61 = vld [vmem:[#allocation2 + $0x4a4] sm:$0xf] }
 0x4de   :  { %5834 = vmatpush.bf16.msra.mxu3 %v7695_v11  ;;  %5811 = vmatpush.bf16.msra.mxu1 %v7391_v19  ;;  %v7500_v60 = vld [vmem:[#allocation2 + $0x210] sm:$0xf0]  ;;  %v7647_v31 = vor.u32 %v9556_v51, %v7644_v52  ;;  %v9636_v63 = vld [vmem:[#allocation2 + $0x5a4] sm:$0xf]  ;;  %v12583_v19 = vpop.f32.mrf.mxu2  ;;  %v5593_v34 = vpop.f32.mrf.mxu0 }
 0x4df   :  { %v7836_v62 = vld [vmem:[#allocation2 + $0x4b0] sm:$0xf0]  ;;  %v9676_v0 = vld [vmem:[#allocation2 + $0x6e4] sm:$0xf]  ;;  %v7503_v7 = vor.u32 %v9520_v56, %v7500_v60 }
 0x4e0   :  { %5799 = vmatpush.bf16.msra.mxu0 %v7247_v37  ;;  %v7964_v54 = vld [vmem:[#allocation2 + $0x5b0] sm:$0xf0]  ;;  %v9552_v2 = vld [vmem:[#allocation2 + $0x304] sm:$0xf]  ;;  %v7839_v4 = vor.u32 %v9604_v61, %v7836_v62 }
 0x4e1   :  { %5822 = vmatpush.bf16.msra.mxu2 %v7551_v23  ;;  %v8124_v1 = vld [vmem:[#allocation2 + $0x6f0] sm:$0xf0]  ;;  %v9708_v5 = vld [vmem:[#allocation2 + $0x7e4] sm:$0xf]  ;;  %v7967_v8 = vor.u32 %v9636_v63, %v7964_v54  ;;  %v2925_v23 = vpop.f32.mrf.mxu3 }
 0x4e2   :  { %5835 = vmatpush.bf16.msra.mxu3 %v7679_v26  ;;  %5812 = vmatpush.bf16.msra.mxu1 %v7375_v39  ;;  %v7628_v3 = vld [vmem:[#allocation2 + $0x310] sm:$0xf0]  ;;  %v9600_v9 = vld [vmem:[#allocation2 + $0x484] sm:$0xf]  ;;  %v8127_v11 = vor.u32 %v9676_v0, %v8124_v1  ;;  %v5594_v52 = vadd.f32 %v5593_v34, %v2925_v23 }
 0x4e3   :  { %5800 = vmatmul.bf16.vlgmr.msra.gmra.mxu0 %v12557_v13  ;;  %v8252_v6 = vld [vmem:[#allocation2 + $0x7f0] sm:$0xf0]  ;;  %v7631_v12 = vor.u32 %v9552_v2, %v7628_v3  ;;  %v9632_v48 = vld [vmem:[#allocation2 + $0x584] sm:$0xf] }
 0x4e4   :  { %5844 = vmatpush.bf16.msrb.mxu0 %v7871_v40  ;;  %v7820_v10 = vld [vmem:[#allocation2 + $0x490] sm:$0xf0]  ;;  %v8255_v15 = vor.u32 %v9708_v5, %v8252_v6  ;;  %v9672_v16 = vld [vmem:[#allocation2 + $0x6c4] sm:$0xf] }
 0x4e5   :  { %5823 = vmatpush.bf16.msra.mxu2 %v7535_v42  ;;  %5813 = vmatmul.bf16.vlgmr.msra.gmra.mxu1 %v12560_v17  ;;  %v7948_v14 = vld [vmem:[#allocation2 + $0x590] sm:$0xf0]  ;;  %v7823_v20 = vor.u32 %v9600_v9, %v7820_v10  ;;  %v9704_v21 = vld [vmem:[#allocation2 + $0x7c4] sm:$0xf] }
 0x4e6   :  { %5857 = vmatpush.bf16.msrb.mxu1 %v7999_v43  ;;  %5836 = vmatpush.bf16.msra.mxu3 %v7663_v47  ;;  %v8108_v18 = vld [vmem:[#allocation2 + $0x6d0] sm:$0xf0]  ;;  %v7951_v24 = vor.u32 %v9632_v48, %v7948_v14  ;;  %v9596_v27 = vld [vmem:[#allocation2 + $0x464] sm:$0xf] }
 0x4e7   :  { %v8236_v22 = vld [vmem:[#allocation2 + $0x7d0] sm:$0xf0]  ;;  %v8111_v26 = vor.u32 %v9672_v16, %v8108_v18  ;;  %v9628_v29 = vld [vmem:[#allocation2 + $0x564] sm:$0xf] }
 0x4e8   :  { %5845 = vmatpush.bf16.msrb.mxu0 %v7855_v53  ;;  %v7804_v25 = vld [vmem:[#allocation2 + $0x470] sm:$0xf0]  ;;  %v8239_v33 = vor.u32 %v9704_v21, %v8236_v22  ;;  %v9668_v37 = vld [vmem:[#allocation2 + $0x6a4] sm:$0xf] }
 0x4e9   :  { %5824 = vmatpush.bf16.msra.mxu2 %v7519_v58  ;;  %v7932_v30 = vld [vmem:[#allocation2 + $0x570] sm:$0xf0]  ;;  %v7807_v41 = vor.u32 %v9596_v27, %v7804_v25  ;;  %v9700_v39 = vld [vmem:[#allocation2 + $0x7a4] sm:$0xf]  ;;  %v12589_v2 = vpop.f32.mrf.mxu3 }
 0x4ea   :  { %5858 = vmatpush.bf16.msrb.mxu1 %v7983_v59  ;;  %5837 = vmatpush.bf16.msra.mxu3 %v7647_v31  ;;  %v8092_v38 = vld [vmem:[#allocation2 + $0x6b0] sm:$0xf0]  ;;  %v7935_v42 = vor.u32 %v9628_v29, %v7932_v30  ;;  %v9592_v43 = vld [vmem:[#allocation2 + $0x444] sm:$0xf]  ;;  %v5606_v53 = vpop.f32.mrf.mxu1  ;;  %v12587_v31 = vpop.f32.mrf.mxu2 }
 0x4eb   :  { %v8220_v40 = vld [vmem:[#allocation2 + $0x7b0] sm:$0xf0]  ;;  %v8095_v45 = vor.u32 %v9668_v37, %v8092_v38  ;;  %v9624_v46 = vld [vmem:[#allocation2 + $0x544] sm:$0xf]  ;;  %v5607_v63 = vadd.f32 %v5606_v53, %v5594_v52 }
 0x4ec   :  { %5846 = vmatpush.bf16.msrb.mxu0 %v7839_v4  ;;  %v7788_v44 = vld [vmem:[#allocation2 + $0x450] sm:$0xf0]  ;;  %v8223_v49 = vor.u32 %v9700_v39, %v8220_v40  ;;  %v9664_v50 = vld [vmem:[#allocation2 + $0x684] sm:$0xf] }
 0x4ed   :  { %5825 = vmatpush.bf16.msra.mxu2 %v7503_v7  ;;  %v7916_v47 = vld [vmem:[#allocation2 + $0x550] sm:$0xf0]  ;;  %v7791_v56 = vor.u32 %v9592_v43, %v7788_v44  ;;  %v9696_v58 = vld [vmem:[#allocation2 + $0x784] sm:$0xf] }
 0x4ee   :  { %5859 = vmatpush.bf16.msrb.mxu1 %v7967_v8  ;;  %5838 = vmatpush.bf16.msra.mxu3 %v7631_v12  ;;  %v8076_v51 = vld [vmem:[#allocation2 + $0x690] sm:$0xf0]  ;;  %v7919_v60 = vor.u32 %v9624_v46, %v7916_v47  ;;  %v9588_v61 = vld [vmem:[#allocation2 + $0x424] sm:$0xf] }
 0x4ef   :  { %v8204_v59 = vld [vmem:[#allocation2 + $0x790] sm:$0xf0]  ;;  %v8079_v54 = vor.u32 %v9664_v50, %v8076_v51  ;;  %v9620_v0 = vld [vmem:[#allocation2 + $0x524] sm:$0xf] }
 0x4f0   :  { %5826 = vmatmul.bf16.vlgmr.msra.gmra.mxu2 %v12563_v32  ;;  %5847 = vmatpush.bf16.msrb.mxu0 %v7823_v20  ;;  %v7772_v62 = vld [vmem:[#allocation2 + $0x430] sm:$0xf0]  ;;  %v8207_v3 = vor.u32 %v9696_v58, %v8204_v59  ;;  %v9660_v4 = vld [vmem:[#allocation2 + $0x664] sm:$0xf]  ;;  %v5595_v20 = vpop.f32.mrf.mxu0 }
 0x4f1   :  { %5870 = vmatpush.bf16.msrb.mxu2 %v8127_v11  ;;  %5839 = vmatmul.bf16.vlgmr.msra.gmra.mxu3 %v12565_v36  ;;  %v7900_v1 = vld [vmem:[#allocation2 + $0x530] sm:$0xf0]  ;;  %v7775_v6 = vor.u32 %v9588_v61, %v7772_v62  ;;  %v9692_v7 = vld [vmem:[#allocation2 + $0x764] sm:$0xf] }
 0x4f2   :  { %5883 = vmatpush.bf16.msrb.mxu3 %v8255_v15  ;;  %5860 = vmatpush.bf16.msrb.mxu1 %v7951_v24  ;;  %v8060_v5 = vld [vmem:[#allocation2 + $0x670] sm:$0xf0]  ;;  %v9584_v9 = vld [vmem:[#allocation2 + $0x404] sm:$0xf]  ;;  %v7903_v10 = vor.u32 %v9620_v0, %v7900_v1  ;;  %v5608_v27 = vpop.f32.mrf.mxu1 }
 0x4f3   :  { %v8188_v8 = vld [vmem:[#allocation2 + $0x770] sm:$0xf0]  ;;  %v9616_v12 = vld [vmem:[#allocation2 + $0x504] sm:$0xf]  ;;  %v8063_v14 = vor.u32 %v9660_v4, %v8060_v5 }
 0x4f4   :  { %5848 = vmatpush.bf16.msrb.mxu0 %v7807_v41  ;;  %v7756_v11 = vld [vmem:[#allocation2 + $0x410] sm:$0xf0]  ;;  %v9656_v15 = vld [vmem:[#allocation2 + $0x644] sm:$0xf]  ;;  %v8191_v21 = vor.u32 %v9692_v7, %v8188_v8  ;;  %v5632_v50 = vpop.f32.mrf.mxu3 }
 0x4f5   :  { %5871 = vmatpush.bf16.msrb.mxu2 %v8111_v26  ;;  %v7884_v48 = vld [vmem:[#allocation2 + $0x510] sm:$0xf0]  ;;  %v9740_v16 = vld [vmem:[#allocation2 + $0x8e4] sm:$0xf]  ;;  %v7759_v25 = vor.u32 %v9584_v9, %v7756_v11  ;;  %v5619_v46 = vpop.f32.mrf.mxu2 }
 0x4f6   :  { %5884 = vmatpush.bf16.msrb.mxu3 %v8239_v33  ;;  %5861 = vmatpush.bf16.msrb.mxu1 %v7935_v42  ;;  %v8380_v18 = vld [vmem:[#allocation2 + $0x8f0] sm:$0xf0]  ;;  %v9772_v23 = vld [vmem:[#allocation2 + $0x9e4] sm:$0xf]  ;;  %v7887_v30 = vor.u32 %v9616_v12, %v7884_v48 }
 0x4f7   :  { %v8044_v22 = vld [vmem:[#allocation2 + $0x650] sm:$0xf0]  ;;  %v9688_v26 = vld [vmem:[#allocation2 + $0x744] sm:$0xf]  ;;  %v8383_v33 = vor.u32 %v9740_v16, %v8380_v18 }
 0x4f8   :  { %5849 = vmatpush.bf16.msrb.mxu0 %v7791_v56  ;;  %v8508_v24 = vld [vmem:[#allocation2 + $0x9f0] sm:$0xf0]  ;;  %v8047_v37 = vor.u32 %v9656_v15, %v8044_v22  ;;  %v9652_v41 = vld [vmem:[#allocation2 + $0x624] sm:$0xf] }
 0x4f9   :  { %5872 = vmatpush.bf16.msrb.mxu2 %v8095_v45  ;;  %v8172_v29 = vld [vmem:[#allocation2 + $0x750] sm:$0xf0]  ;;  %v8511_v38 = vor.u32 %v9772_v23, %v8508_v24  ;;  %v9736_v39 = vld [vmem:[#allocation2 + $0x8c4] sm:$0xf] }
 0x4fa   :  { %5885 = vmatpush.bf16.msrb.mxu3 %v8223_v49  ;;  %5862 = vmatpush.bf16.msrb.mxu1 %v7919_v60  ;;  %v8364_v40 = vld [vmem:[#allocation2 + $0x8d0] sm:$0xf0]  ;;  %v8175_v42 = vor.u32 %v9688_v26, %v8172_v29  ;;  %v9768_v44 = vld [vmem:[#allocation2 + $0x9c4] sm:$0xf]  ;;  %v5620_v49 = vadd.f32 %v5619_v46, %v5607_v63 }
 0x4fb   :  { %v8028_v43 = vld [vmem:[#allocation2 + $0x630] sm:$0xf0]  ;;  %v9684_v47 = vld [vmem:[#allocation2 + $0x724] sm:$0xf]  ;;  %v8367_v51 = vor.u32 %v9736_v39, %v8364_v40 }
 0x4fc   :  { %5850 = vmatpush.bf16.msrb.mxu0 %v7775_v6  ;;  %v8492_v45 = vld [vmem:[#allocation2 + $0x9d0] sm:$0xf0]  ;;  %v9648_v52 = vld [vmem:[#allocation2 + $0x604] sm:$0xf]  ;;  %v8031_v53 = vor.u32 %v9652_v41, %v8028_v43  ;;  %v5633_v61 = vadd.f32 %v5632_v50, %v5620_v49  ;;  %v5634_v22 = vpop.f32.mrf.mxu3 }
 0x4fd   :  { %5873 = vmatpush.bf16.msrb.mxu2 %v8079_v54  ;;  %v8156_v34 = vld [vmem:[#allocation2 + $0x730] sm:$0xf0]  ;;  %v8495_v56 = vor.u32 %v9768_v44, %v8492_v45  ;;  %v9732_v59 = vld [vmem:[#allocation2 + $0x8a4] sm:$0xf]  ;;  %v5621_v16 = vpop.f32.mrf.mxu2 }
 0x4fe   :  { %5886 = vmatpush.bf16.msrb.mxu3 %v8207_v3  ;;  %5863 = vmatpush.bf16.msrb.mxu1 %v7903_v10  ;;  %v8012_v58 = vld [vmem:[#allocation2 + $0x610] sm:$0xf0]  ;;  %v8159_v62 = vor.u32 %v9684_v47, %v8156_v34  ;;  %v9764_v54 = vld [vmem:[#allocation2 + $0x9a4] sm:$0xf] }
 0x4ff   :  { %v8348_v60 = vld [vmem:[#allocation2 + $0x8b0] sm:$0xf0]  ;;  %v9804_v63 = vld [vmem:[#allocation2 + $0xae4] sm:$0xf]  ;;  %v8015_v8 = vor.u32 %v9648_v52, %v8012_v58 }
 0x500   :  { %5851 = vmatpush.bf16.msrb.mxu0 %v7759_v25  ;;  %v8476_v0 = vld [vmem:[#allocation2 + $0x9b0] sm:$0xf0]  ;;  %v9680_v3 = vld [vmem:[#allocation2 + $0x704] sm:$0xf]  ;;  %v8351_v5 = vor.u32 %v9732_v59, %v8348_v60  ;;  %v5658_v43 = vpop.f32.mrf.mxu1 }
 0x501   :  { %5874 = vmatpush.bf16.msrb.mxu2 %v8063_v14  ;;  %v8636_v1 = vld [vmem:[#allocation2 + $0xaf0] sm:$0xf0]  ;;  %v9836_v6 = vld [vmem:[#allocation2 + $0xbe4] sm:$0xf]  ;;  %v8479_v9 = vor.u32 %v9764_v54, %v8476_v0 }
 0x502   :  { %5887 = vmatpush.bf16.msrb.mxu3 %v8191_v21  ;;  %5864 = vmatpush.bf16.msrb.mxu1 %v7887_v30  ;;  %v8140_v4 = vld [vmem:[#allocation2 + $0x710] sm:$0xf0]  ;;  %v9728_v10 = vld [vmem:[#allocation2 + $0x884] sm:$0xf]  ;;  %v8639_v12 = vor.u32 %v9804_v63, %v8636_v1 }
 0x503   :  { %5852 = vmatmul.bf16.vlgmr.msrb.gmra.mxu0 %v12569_v28  ;;  %v8764_v7 = vld [vmem:[#allocation2 + $0xbf0] sm:$0xf0]  ;;  %v8143_v48 = vor.u32 %v9680_v3, %v8140_v4  ;;  %v9760_v14 = vld [vmem:[#allocation2 + $0x984] sm:$0xf] }
 0x504   :  { %5896 = vmatpush.bf16.msra.mxu0 %v8383_v33  ;;  %v8332_v11 = vld [vmem:[#allocation2 + $0x890] sm:$0xf0]  ;;  %v8767_v18 = vor.u32 %v9836_v6, %v8764_v7  ;;  %v9800_v20 = vld [vmem:[#allocation2 + $0xac4] sm:$0xf] }
 0x505   :  { %5875 = vmatpush.bf16.msrb.mxu2 %v8047_v37  ;;  %5865 = vmatmul.bf16.vlgmr.msrb.gmra.mxu1 %v12571_v35  ;;  %v8460_v15 = vld [vmem:[#allocation2 + $0x990] sm:$0xf0]  ;;  %v8335_v23 = vor.u32 %v9728_v10, %v8332_v11  ;;  %v9832_v24 = vld [vmem:[#allocation2 + $0xbc4] sm:$0xf] }
 0x506   :  { %5909 = vmatpush.bf16.msra.mxu1 %v8511_v38  ;;  %5888 = vmatpush.bf16.msrb.mxu3 %v8175_v42  ;;  %v8620_v21 = vld [vmem:[#allocation2 + $0xad0] sm:$0xf0]  ;;  %v8463_v25 = vor.u32 %v9760_v14, %v8460_v15  ;;  %v9724_v26 = vld [vmem:[#allocation2 + $0x864] sm:$0xf]  ;;  %v5645_v38 = vpop.f32.mrf.mxu0 }
 0x507   :  { %v8748_v27 = vld [vmem:[#allocation2 + $0xbd0] sm:$0xf0]  ;;  %v8623_v30 = vor.u32 %v9800_v20, %v8620_v21  ;;  %v9756_v33 = vld [vmem:[#allocation2 + $0x964] sm:$0xf]  ;;  %v5646_v42 = vadd.f32 %v5645_v38, %v5633_v61 }
 0x508   :  { %5897 = vmatpush.bf16.msra.mxu0 %v8367_v51  ;;  %v8316_v29 = vld [vmem:[#allocation2 + $0x870] sm:$0xf0]  ;;  %v8751_v41 = vor.u32 %v9832_v24, %v8748_v27  ;;  %v9796_v39 = vld [vmem:[#allocation2 + $0xaa4] sm:$0xf] }
 0x509   :  { %5876 = vmatpush.bf16.msrb.mxu2 %v8031_v53  ;;  %v8444_v37 = vld [vmem:[#allocation2 + $0x970] sm:$0xf0]  ;;  %v8319_v44 = vor.u32 %v9724_v26, %v8316_v29  ;;  %v9828_v45 = vld [vmem:[#allocation2 + $0xba4] sm:$0xf]  ;;  %v12595_v34 = vadd.f32 %v5658_v43, %v5646_v42 }
 0x50a   :  { %5910 = vmatpush.bf16.msra.mxu1 %v8495_v56  ;;  %5889 = vmatpush.bf16.msrb.mxu3 %v8159_v62  ;;  %v8604_v40 = vld [vmem:[#allocation2 + $0xab0] sm:$0xf0]  ;;  %v8447_v47 = vor.u32 %v9756_v33, %v8444_v37  ;;  %v9720_v49 = vld [vmem:[#allocation2 + $0x844] sm:$0xf] }
 0x50b   :  { %v8732_v46 = vld [vmem:[#allocation2 + $0xbb0] sm:$0xf0]  ;;  %v8607_v51 = vor.u32 %v9796_v39, %v8604_v40  ;;  %v9752_v52 = vld [vmem:[#allocation2 + $0x944] sm:$0xf] }
 0x50c   :  { %5898 = vmatpush.bf16.msra.mxu0 %v8351_v5  ;;  %v8300_v50 = vld [vmem:[#allocation2 + $0x850] sm:$0xf0]  ;;  %v8735_v56 = vor.u32 %v9828_v45, %v8732_v46  ;;  %v9792_v58 = vld [vmem:[#allocation2 + $0xa84] sm:$0xf] }
 0x50d   :  { %5877 = vmatpush.bf16.msrb.mxu2 %v8015_v8  ;;  %v8428_v53 = vld [vmem:[#allocation2 + $0x950] sm:$0xf0]  ;;  %v8303_v60 = vor.u32 %v9720_v49, %v8300_v50  ;;  %v9824_v61 = vld [vmem:[#allocation2 + $0xb84] sm:$0xf] }
 0x50e   :  { %5911 = vmatpush.bf16.msra.mxu1 %v8479_v9  ;;  %5890 = vmatpush.bf16.msrb.mxu3 %v8143_v48  ;;  %v8588_v59 = vld [vmem:[#allocation2 + $0xa90] sm:$0xf0]  ;;  %v8431_v54 = vor.u32 %v9752_v52, %v8428_v53  ;;  %v9716_v0 = vld [vmem:[#allocation2 + $0x824] sm:$0xf]  ;;  %v5647_v5 = vpop.f32.mrf.mxu0  ;;  %v5660_v9 = vpop.f32.mrf.mxu1 }
 0x50f   :  { %v8716_v62 = vld [vmem:[#allocation2 + $0xb90] sm:$0xf0]  ;;  %v8591_v1 = vor.u32 %v9792_v58, %v8588_v59  ;;  %v9748_v3 = vld [vmem:[#allocation2 + $0x924] sm:$0xf] }
 0x510   :  { %5878 = vmatmul.bf16.vlgmr.msrb.gmra.mxu2 %v12575_v55  ;;  %5899 = vmatpush.bf16.msra.mxu0 %v8335_v23  ;;  %v8284_v63 = vld [vmem:[#allocation2 + $0x830] sm:$0xf0]  ;;  %v8719_v6 = vor.u32 %v9824_v61, %v8716_v62  ;;  %v9788_v7 = vld [vmem:[#allocation2 + $0xa64] sm:$0xf] }
 0x511   :  { %5922 = vmatpush.bf16.msra.mxu2 %v8639_v12  ;;  %5891 = vmatmul.bf16.vlgmr.msrb.gmra.mxu3 %v12577_v57  ;;  %v8412_v4 = vld [vmem:[#allocation2 + $0x930] sm:$0xf0]  ;;  %v8287_v10 = vor.u32 %v9716_v0, %v8284_v63  ;;  %v9820_v11 = vld [vmem:[#allocation2 + $0xb64] sm:$0xf]  ;;  %v9999_v0 = vld [vmem:[#allocation1] sm:$0xff] }
 0x512   :  { %5935 = vmatpush.bf16.msra.mxu3 %v8767_v18  ;;  %5912 = vmatpush.bf16.msra.mxu1 %v8463_v25  ;;  %v8572_v8 = vld [vmem:[#allocation2 + $0xa70] sm:$0xf0]  ;;  %v9712_v48 = vld [vmem:[#allocation2 + $0x804] sm:$0xf]  ;;  %v8415_v14 = vor.u32 %v9748_v3, %v8412_v4 }
 0x513   :  { %v8700_v12 = vld [vmem:[#allocation2 + $0xb70] sm:$0xf0]  ;;  %v9744_v16 = vld [vmem:[#allocation2 + $0x904] sm:$0xf]  ;;  %v8575_v20 = vor.u32 %v9788_v7, %v8572_v8 }
 0x514   :  { %5900 = vmatpush.bf16.msra.mxu0 %v8319_v44  ;;  %v8268_v15 = vld [vmem:[#allocation2 + $0x810] sm:$0xf0]  ;;  %v9784_v21 = vld [vmem:[#allocation2 + $0xa44] sm:$0xf]  ;;  %v8703_v24 = vor.u32 %v9820_v11, %v8700_v12 }
 0x515   :  { %5923 = vmatpush.bf16.msra.mxu2 %v8623_v30  ;;  %v8396_v18 = vld [vmem:[#allocation2 + $0x910] sm:$0xf0]  ;;  %v9868_v22 = vld [vmem:[#allocation2 + $0xce4] sm:$0xf]  ;;  %v8271_v29 = vor.u32 %v9712_v48, %v8268_v15 }
 0x516   :  { %5936 = vmatpush.bf16.msra.mxu3 %v8751_v41  ;;  %5913 = vmatpush.bf16.msra.mxu1 %v8447_v47  ;;  %v8892_v23 = vld [vmem:[#allocation2 + $0xcf0] sm:$0xf0]  ;;  %v9900_v25 = vld [vmem:[#allocation2 + $0xde4] sm:$0xf]  ;;  %v8399_v37 = vor.u32 %v9744_v16, %v8396_v18  ;;  %v5671_v41 = vpop.f32.mrf.mxu2 }
 0x517   :  { %v8556_v27 = vld [vmem:[#allocation2 + $0xa50] sm:$0xf0]  ;;  %v9816_v30 = vld [vmem:[#allocation2 + $0xb44] sm:$0xf]  ;;  %v8895_v38 = vor.u32 %v9868_v22, %v8892_v23  ;;  %v5672_v45 = vadd.f32 %v5671_v41, %v12595_v34 }
 0x518   :  { %5901 = vmatpush.bf16.msra.mxu0 %v8303_v60  ;;  %v9020_v26 = vld [vmem:[#allocation2 + $0xdf0] sm:$0xf0]  ;;  %v8559_v39 = vor.u32 %v9784_v21, %v8556_v27  ;;  %v9780_v42 = vld [vmem:[#allocation2 + $0xa24] sm:$0xf] }
 0x519   :  { %5924 = vmatpush.bf16.msra.mxu2 %v8607_v51  ;;  %v8684_v33 = vld [vmem:[#allocation2 + $0xb50] sm:$0xf0]  ;;  %v9023_v40 = vor.u32 %v9900_v25, %v9020_v26  ;;  %v9864_v43 = vld [vmem:[#allocation2 + $0xcc4] sm:$0xf]  ;;  %v5684_v51 = vpop.f32.mrf.mxu3 }
 0x51a   :  { %5937 = vmatpush.bf16.msra.mxu3 %v8735_v56  ;;  %5914 = vmatpush.bf16.msra.mxu1 %v8431_v54  ;;  %v8876_v44 = vld [vmem:[#allocation2 + $0xcd0] sm:$0xf0]  ;;  %v8687_v46 = vor.u32 %v9816_v30, %v8684_v33  ;;  %v9896_v49 = vld [vmem:[#allocation2 + $0xdc4] sm:$0xf]  ;;  %v12598_v56 = vadd.f32 %v5684_v51, %v5672_v45 }
 0x51b   :  { %v8540_v47 = vld [vmem:[#allocation2 + $0xa30] sm:$0xf0]  ;;  %v9812_v52 = vld [vmem:[#allocation2 + $0xb24] sm:$0xf]  ;;  %v8879_v58 = vor.u32 %v9864_v43, %v8876_v44 }
 0x51c   :  { %5902 = vmatpush.bf16.msra.mxu0 %v8287_v10  ;;  %v9004_v50 = vld [vmem:[#allocation2 + $0xdd0] sm:$0xf0]  ;;  %v9776_v59 = vld [vmem:[#allocation2 + $0xa04] sm:$0xf]  ;;  %v8543_v60 = vor.u32 %v9780_v42, %v8540_v47 }
 0x51d   :  { %5925 = vmatpush.bf16.msra.mxu2 %v8591_v1  ;;  %v8668_v53 = vld [vmem:[#allocation2 + $0xb30] sm:$0xf0]  ;;  %v9007_v61 = vor.u32 %v9896_v49, %v9004_v50  ;;  %v9860_v62 = vld [vmem:[#allocation2 + $0xca4] sm:$0xf] }
 0x51e   :  { %5938 = vmatpush.bf16.msra.mxu3 %v8719_v6  ;;  %5915 = vmatpush.bf16.msra.mxu1 %v8415_v14  ;;  %v8524_v34 = vld [vmem:[#allocation2 + $0xa10] sm:$0xf0]  ;;  %v8671_v63 = vor.u32 %v9812_v52, %v8668_v53  ;;  %v9892_v1 = vld [vmem:[#allocation2 + $0xda4] sm:$0xf]  ;;  %v5673_v16 = vpop.f32.mrf.mxu2 }
 0x51f   :  { %v8860_v54 = vld [vmem:[#allocation2 + $0xcb0] sm:$0xf0]  ;;  %v9932_v4 = vld [vmem:[#allocation2 + $0xee4] sm:$0xf]  ;;  %v8527_v12 = vor.u32 %v9776_v59, %v8524_v34  ;;  %v5697_v42 = vpop.f32.mrf.mxu0 }
 0x520   :  { %5903 = vmatpush.bf16.msra.mxu0 %v8271_v29  ;;  %v8988_v3 = vld [vmem:[#allocation2 + $0xdb0] sm:$0xf0]  ;;  %v10000_v5 = vld [vmem:[#allocation1 + $0x9] sm:$0xff]  ;;  %v8863_v9 = vor.u32 %v9860_v62, %v8860_v54  ;;  %v5698_v47 = vadd.f32 %v5697_v42, %v12598_v56 }
 0x521   :  { %5926 = vmatpush.bf16.msra.mxu2 %v8575_v20  ;;  %v9148_v6 = vld [vmem:[#allocation2 + $0xef0] sm:$0xf0]  ;;  %v9808_v7 = vld [vmem:[#allocation2 + $0xb04] sm:$0xf]  ;;  %v8991_v48 = vor.u32 %v9892_v1, %v8988_v3  ;;  %v5686_v25 = vpop.f32.mrf.mxu3 }
 0x522   :  { %5939 = vmatpush.bf16.msra.mxu3 %v8703_v24  ;;  %5916 = vmatpush.bf16.msra.mxu1 %v8399_v37  ;;  %v8652_v8 = vld [vmem:[#allocation2 + $0xb10] sm:$0xf0]  ;;  %v9964_v10 = vld [vmem:[#allocation2 + $0xfe4] sm:$0xf]  ;;  %v9151_v18 = vor.u32 %v9932_v4, %v9148_v6 }
 0x523   :  { %5904 = vmatmul.bf16.vlgmr.msra.gmra.mxu0 %v9999_v0  ;;  %v9276_v11 = vld [vmem:[#allocation2 + $0xff0] sm:$0xf0]  ;;  %v9856_v14 = vld [vmem:[#allocation2 + $0xc84] sm:$0xf]  ;;  %v8655_v20 = vor.u32 %v9808_v7, %v8652_v8 }
 0x524   :  { %5948 = vmatpush.bf16.msrb.mxu0 %v8895_v38  ;;  %v8844_v15 = vld [vmem:[#allocation2 + $0xc90] sm:$0xf0]  ;;  %v9888_v21 = vld [vmem:[#allocation2 + $0xd84] sm:$0xf]  ;;  %v9279_v23 = vor.u32 %v9964_v10, %v9276_v11  ;;  %v5710_v49 = vpop.f32.mrf.mxu1 }
 0x525   :  { %5927 = vmatpush.bf16.msra.mxu2 %v8559_v39  ;;  %5917 = vmatmul.bf16.vlgmr.msra.gmra.mxu1 %v10000_v5  ;;  %v8972_v22 = vld [vmem:[#allocation2 + $0xd90] sm:$0xf0]  ;;  %v9928_v24 = vld [vmem:[#allocation2 + $0xec4] sm:$0xf]  ;;  %v8847_v26 = vor.u32 %v9856_v14, %v8844_v15 }
 0x526   :  { %5961 = vmatpush.bf16.msrb.mxu1 %v9023_v40  ;;  %5940 = vmatpush.bf16.msra.mxu3 %v8687_v46  ;;  %v9132_v27 = vld [vmem:[#allocation2 + $0xed0] sm:$0xf0]  ;;  %v9960_v29 = vld [vmem:[#allocation2 + $0xfc4] sm:$0xf]  ;;  %v8975_v33 = vor.u32 %v9888_v21, %v8972_v22  ;;  %v10001_v46 = vld [vmem:[#allocation1 + $0x12] sm:$0xff] }
 0x527   :  { %v9260_v30 = vld [vmem:[#allocation2 + $0xfd0] sm:$0xf0]  ;;  %v9852_v37 = vld [vmem:[#allocation2 + $0xc64] sm:$0xf]  ;;  %v9135_v41 = vor.u32 %v9928_v24, %v9132_v27  ;;  %v5699_v14 = vpop.f32.mrf.mxu0 }
 0x528   :  { %5949 = vmatpush.bf16.msrb.mxu0 %v8879_v58  ;;  %v8828_v38 = vld [vmem:[#allocation2 + $0xc70] sm:$0xf0]  ;;  %v9884_v39 = vld [vmem:[#allocation2 + $0xd64] sm:$0xf]  ;;  %v9263_v43 = vor.u32 %v9960_v29, %v9260_v30  ;;  %v7362_v29 = vld [vmem:[#allocation2 + $0xe8] sm:$0xf] }
 0x529   :  { %5928 = vmatpush.bf16.msra.mxu2 %v8543_v60  ;;  %v8956_v40 = vld [vmem:[#allocation2 + $0xd70] sm:$0xf0]  ;;  %v9924_v44 = vld [vmem:[#allocation2 + $0xea4] sm:$0xf]  ;;  %v8831_v50 = vor.u32 %v9852_v37, %v8828_v38  ;;  %v9487_v30 = vld [vmem:[#allocation2 + $0xf4] sm:$0xf0] }
 0x52a   :  { %5962 = vmatpush.bf16.msrb.mxu1 %v9007_v61  ;;  %5941 = vmatpush.bf16.msra.mxu3 %v8671_v63  ;;  %v9116_v45 = vld [vmem:[#allocation2 + $0xeb0] sm:$0xf0]  ;;  %v9956_v51 = vld [vmem:[#allocation2 + $0xfa4] sm:$0xf]  ;;  %v8959_v58 = vor.u32 %v9884_v39, %v8956_v40  ;;  %v5711_v61 = vadd.f32 %v5710_v49, %v5698_v47  ;;  %v7490_v38 = vld [vmem:[#allocation2 + $0x1e8] sm:$0xf] }
 0x52b   :  { %v9244_v52 = vld [vmem:[#allocation2 + $0xfb0] sm:$0xf0]  ;;  %v9848_v59 = vld [vmem:[#allocation2 + $0xc44] sm:$0xf]  ;;  %v9119_v34 = vor.u32 %v9924_v44, %v9116_v45  ;;  %v7363_v44 = vor.u32 %v9487_v30, %v7362_v29  ;;  %v9507_v29 = vld [vmem:[#allocation2 + $0x194] sm:$0xf0] }
 0x52c   :  { %5950 = vmatpush.bf16.msrb.mxu0 %v8863_v9  ;;  %v10002_v53 = vld [vmem:[#allocation1 + $0x1b] sm:$0xff]  ;;  %v9880_v62 = vld [vmem:[#allocation2 + $0xd44] sm:$0xf]  ;;  %v9247_v0 = vor.u32 %v9956_v51, %v9244_v52  ;;  %v5712_v21 = vpop.f32.mrf.mxu1 }
 0x52d   :  { %5929 = vmatpush.bf16.msra.mxu2 %v8527_v12  ;;  %v8812_v60 = vld [vmem:[#allocation2 + $0xc50] sm:$0xf0]  ;;  %v9920_v63 = vld [vmem:[#allocation2 + $0xe84] sm:$0xf]  ;;  %v9483_v51 = vld [vmem:[#allocation2 + $0xd4] sm:$0xf0] }
 0x52e   :  { %5963 = vmatpush.bf16.msrb.mxu1 %v8991_v48  ;;  %5942 = vmatpush.bf16.msra.mxu3 %v8655_v20  ;;  %v8940_v54 = vld [vmem:[#allocation2 + $0xd50] sm:$0xf0]  ;;  %v8815_v1 = vor.u32 %v9848_v59, %v8812_v60  ;;  %v9952_v3 = vld [vmem:[#allocation2 + $0xf84] sm:$0xf]  ;;  %v7474_v59 = vld [vmem:[#allocation2 + $0x1c8] sm:$0xf] }
 0x52f   :  { %v9100_v56 = vld [vmem:[#allocation2 + $0xe90] sm:$0xf0]  ;;  %v8943_v5 = vor.u32 %v9880_v62, %v8940_v54  ;;  %v9844_v6 = vld [vmem:[#allocation2 + $0xc24] sm:$0xf]  ;;  %v9515_v60 = vld [vmem:[#allocation2 + $0x1d4] sm:$0xf0] }
 0x530   :  { %5930 = vmatmul.bf16.vlgmr.msra.gmra.mxu2 %v10001_v46  ;;  %5951 = vmatpush.bf16.msrb.mxu0 %v8847_v26  ;;  %v9228_v4 = vld [vmem:[#allocation2 + $0xf90] sm:$0xf0]  ;;  %v9103_v8 = vor.u32 %v9920_v63, %v9100_v56  ;;  %v9876_v9 = vld [vmem:[#allocation2 + $0xd24] sm:$0xf] }
 0x531   :  { %5974 = vmatpush.bf16.msrb.mxu2 %v9151_v18  ;;  %5943 = vmatmul.bf16.vlgmr.msra.gmra.mxu3 %v10002_v53  ;;  %v8796_v7 = vld [vmem:[#allocation2 + $0xc30] sm:$0xf0]  ;;  %v9231_v11 = vor.u32 %v9952_v3, %v9228_v4  ;;  %v9916_v12 = vld [vmem:[#allocation2 + $0xe64] sm:$0xf]  ;;  %v7475_v3 = vor.u32 %v9515_v60, %v7474_v59  ;;  %v7330_v4 = vld [vmem:[#allocation2 + $0xa8] sm:$0xf] }
 0x532   :  { %5987 = vmatpush.bf16.msrb.mxu3 %v9279_v23  ;;  %5964 = vmatpush.bf16.msrb.mxu1 %v8975_v33  ;;  %v8924_v10 = vld [vmem:[#allocation2 + $0xd30] sm:$0xf0]  ;;  %v8799_v15 = vor.u32 %v9844_v6, %v8796_v7  ;;  %v9948_v16 = vld [vmem:[#allocation2 + $0xf64] sm:$0xf]  ;;  %v10003_v6 = vld [vmem:[#allocation1 + $0x24] sm:$0xff] }
 0x533   :  { %v9084_v48 = vld [vmem:[#allocation2 + $0xe70] sm:$0xf0]  ;;  %v9840_v20 = vld [vmem:[#allocation2 + $0xc04] sm:$0xf]  ;;  %v8927_v22 = vor.u32 %v9876_v9, %v8924_v10  ;;  %v5723_v45 = vpop.f32.mrf.mxu2  ;;  %v9511_v9 = vld [vmem:[#allocation2 + $0x1b4] sm:$0xf0] }
 0x534   :  { %5952 = vmatpush.bf16.msrb.mxu0 %v8831_v50  ;;  %v9212_v18 = vld [vmem:[#allocation2 + $0xf70] sm:$0xf0]  ;;  %v9872_v24 = vld [vmem:[#allocation2 + $0xd04] sm:$0xf]  ;;  %v9087_v25 = vor.u32 %v9916_v12, %v9084_v48  ;;  %v7346_v50 = vld [vmem:[#allocation2 + $0xc8] sm:$0xf]  ;;  %v5724_v52 = vadd.f32 %v5723_v45, %v5711_v61 }
 0x535   :  { %5975 = vmatpush.bf16.msrb.mxu2 %v9135_v41  ;;  %v8780_v23 = vld [vmem:[#allocation2 + $0xc10] sm:$0xf0]  ;;  %v9912_v26 = vld [vmem:[#allocation2 + $0xe44] sm:$0xf]  ;;  %v9215_v33 = vor.u32 %v9948_v16, %v9212_v18  ;;  %v9519_v41 = vld [vmem:[#allocation2 + $0x1f4] sm:$0xf0]  ;;  %v7347_v63 = vor.u32 %v9483_v51, %v7346_v50 }
 0x536   :  { %5988 = vmatpush.bf16.msrb.mxu3 %v9263_v43  ;;  %5965 = vmatpush.bf16.msrb.mxu1 %v8959_v58  ;;  %v8908_v27 = vld [vmem:[#allocation2 + $0xd10] sm:$0xf0]  ;;  %v8783_v39 = vor.u32 %v9840_v20, %v8780_v23  ;;  %v9944_v40 = vld [vmem:[#allocation2 + $0xf44] sm:$0xf]  ;;  %v7491_v47 = vor.u32 %v9519_v41, %v7490_v38  ;;  %v7618_v10 = vld [vmem:[#allocation2 + $0x2e8] sm:$0xf] }
 0x537   :  { %v9068_v37 = vld [vmem:[#allocation2 + $0xe50] sm:$0xf0]  ;;  %v8911_v43 = vor.u32 %v9872_v24, %v8908_v27  ;;  %v9908_v49 = vld [vmem:[#allocation2 + $0xe24] sm:$0xf]  ;;  %v9551_v12 = vld [vmem:[#allocation2 + $0x2f4] sm:$0xf0] }
 0x538   :  { %5953 = vmatpush.bf16.msrb.mxu0 %v8815_v1  ;;  %v9196_v42 = vld [vmem:[#allocation2 + $0xf50] sm:$0xf0]  ;;  %v9071_v46 = vor.u32 %v9912_v26, %v9068_v37  ;;  %v9940_v62 = vld [vmem:[#allocation2 + $0xf24] sm:$0xf]  ;;  %v7746_v16 = vld [vmem:[#allocation2 + $0x3e8] sm:$0xf]  ;;  %v7619_v27 = vor.u32 %v9551_v12, %v7618_v10 }
 0x539   :  { %5976 = vmatpush.bf16.msrb.mxu2 %v9119_v34  ;;  %v9199_v53 = vor.u32 %v9944_v40, %v9196_v42  ;;  %v9052_v58 = vld [vmem:[#allocation2 + $0xe30] sm:$0xf0]  ;;  %v5736_v34 = vpop.f32.mrf.mxu3  ;;  %v9904_v56 = vld [vmem:[#allocation2 + $0xe04] sm:$0xf]  ;;  %v9583_v18 = vld [vmem:[#allocation2 + $0x3f4] sm:$0xf0] }
 0x53a   :  { %5989 = vmatpush.bf16.msrb.mxu3 %v9247_v0  ;;  %5966 = vmatpush.bf16.msrb.mxu1 %v8943_v5  ;;  %v9180_v54 = vld [vmem:[#allocation2 + $0xf30] sm:$0xf0]  ;;  %v12601_v0 = vadd.f32 %v5736_v34, %v5724_v52  ;;  %v9055_v1 = vor.u32 %v9908_v49, %v9052_v58  ;;  %v9479_v5 = vld [vmem:[#allocation2 + $0xb4] sm:$0xf0]  ;;  %v9936_v48 = vld [vmem:[#allocation2 + $0xf04] sm:$0xf]  ;;  %v7747_v30 = vor.u32 %v9583_v18, %v7746_v16 }
 0x53b   :  { %v9036_v61 = vld [vmem:[#allocation2 + $0xe10] sm:$0xf0]  ;;  %v9183_v7 = vor.u32 %v9940_v62, %v9180_v54  ;;  %v9475_v23 = vld [vmem:[#allocation2 + $0x94] sm:$0xf0]  ;;  %v5725_v24 = vpop.f32.mrf.mxu2  ;;  %v7442_v26 = vld [vmem:[#allocation2 + $0x188] sm:$0xf] }
 0x53c   :  { %5954 = vmatpush.bf16.msrb.mxu0 %v8799_v15  ;;  %v9164_v14 = vld [vmem:[#allocation2 + $0xf10] sm:$0xf0]  ;;  %v7331_v15 = vor.u32 %v9479_v5, %v7330_v4  ;;  %v9039_v20 = vor.u32 %v9904_v56, %v9036_v61  ;;  %v9547_v37 = vld [vmem:[#allocation2 + $0x2d4] sm:$0xf0]  ;;  %v7443_v42 = vor.u32 %v9507_v29, %v7442_v26  ;;  %v7586_v51 = vld [vmem:[#allocation2 + $0x2a8] sm:$0xf] }
 0x53d   :  { %5977 = vmatpush.bf16.msrb.mxu2 %v9103_v8  ;;  %v7458_v8 = vld [vmem:[#allocation2 + $0x1a8] sm:$0xf]  ;;  %v9579_v40 = vld [vmem:[#allocation2 + $0x3d4] sm:$0xf0] }
 0x53e   :  { %5990 = vmatpush.bf16.msrb.mxu3 %v9231_v11  ;;  %5967 = vmatpush.bf16.msrb.mxu1 %v8927_v22  ;;  %v10004_v11 = vld [vmem:[#allocation1 + $0x2d] sm:$0xff]  ;;  %v7459_v21 = vor.u32 %v9511_v9, %v7458_v8  ;;  %v9543_v52 = vld [vmem:[#allocation2 + $0x2b4] sm:$0xf0] }
 0x53f   :  { %v7314_v22 = vld [vmem:[#allocation2 + $0x88] sm:$0xf]  ;;  %v9575_v62 = vld [vmem:[#allocation2 + $0x3b4] sm:$0xf0]  ;;  %v7587_v61 = vor.u32 %v9543_v52, %v7586_v51 }
 0x540   :  { %5955 = vmatpush.bf16.msrb.mxu0 %v8783_v39  ;;  %v7315_v41 = vor.u32 %v9475_v23, %v7314_v22  ;;  %v7730_v39 = vld [vmem:[#allocation2 + $0x3c8] sm:$0xf]  ;;  %v5749_v49 = vpop.f32.mrf.mxu0  ;;  %v10006_v54 = vld [vmem:[#allocation1 + $0x3f] sm:$0xff] }
 0x541   :  { %5978 = vmatpush.bf16.msrb.mxu2 %v9087_v25  ;;  %v9167_v25 = vor.u32 %v9936_v48, %v9164_v14  ;;  %v5738_v38 = vpop.f32.mrf.mxu3  ;;  %v7731_v50 = vor.u32 %v9579_v40, %v7730_v39  ;;  %v5750_v58 = vadd.f32 %v5749_v49, %v12601_v0  ;;  %v7714_v34 = vld [vmem:[#allocation2 + $0x3a8] sm:$0xf]  ;;  %v9499_v5 = vld [vmem:[#allocation2 + $0x154] sm:$0xf0] }
 0x542   :  { %5991 = vmatpush.bf16.msrb.mxu3 %v9215_v33  ;;  %5968 = vmatpush.bf16.msrb.mxu1 %v8911_v43  ;;  %v7602_v33 = vld [vmem:[#allocation2 + $0x2c8] sm:$0xf]  ;;  %v5762_v59 = vpop.f32.mrf.mxu1  ;;  %v9571_v10 = vld [vmem:[#allocation2 + $0x394] sm:$0xf0] }
 0x543   :  { %5956 = vmatmul.bf16.vlgmr.msrb.gmra.mxu0 %v10003_v6  ;;  %v7298_v43 = vld [vmem:[#allocation2 + $0x68] sm:$0xf]  ;;  %v7603_v45 = vor.u32 %v9547_v37, %v7602_v33  ;;  %v7715_v6 = vor.u32 %v9575_v62, %v7714_v34  ;;  %v9463_v48 = vld [vmem:[#allocation2 + $0x34] sm:$0xf0] }
 0x544   :  { %6000 = vmatpush.bf16.msra.mxu0 %v7363_v44  ;;  %v9471_v44 = vld [vmem:[#allocation2 + $0x74] sm:$0xf0]  ;;  %v7282_v56 = vld [vmem:[#allocation2 + $0x48] sm:$0xf] }
 0x545   :  { %5979 = vmatpush.bf16.msrb.mxu2 %v9071_v46  ;;  %5969 = vmatmul.bf16.vlgmr.msrb.gmra.mxu1 %v10004_v11  ;;  %v7426_v46 = vld [vmem:[#allocation2 + $0x168] sm:$0xf]  ;;  %v7299_v60 = vor.u32 %v9471_v44, %v7298_v43  ;;  %v9495_v16 = vld [vmem:[#allocation2 + $0x134] sm:$0xf0] }
 0x546   :  { %6013 = vmatpush.bf16.msra.mxu1 %v7491_v47  ;;  %5992 = vmatpush.bf16.msrb.mxu3 %v9199_v53  ;;  %v9503_v47 = vld [vmem:[#allocation2 + $0x174] sm:$0xf0]  ;;  %v10005_v53 = vld [vmem:[#allocation1 + $0x36] sm:$0xff]  ;;  %v7410_v4 = vld [vmem:[#allocation2 + $0x148] sm:$0xf] }
 0x547   :  { %v7570_v0 = vld [vmem:[#allocation2 + $0x288] sm:$0xf]  ;;  %v7411_v11 = vor.u32 %v9499_v5, %v7410_v4  ;;  %v9491_v37 = vld [vmem:[#allocation2 + $0x114] sm:$0xf0] }
 0x548   :  { %6001 = vmatpush.bf16.msra.mxu0 %v7347_v63  ;;  %v7427_v63 = vor.u32 %v9503_v47, %v7426_v46  ;;  %v7698_v9 = vld [vmem:[#allocation2 + $0x388] sm:$0xf]  ;;  %v5751_v22 = vpop.f32.mrf.mxu0  ;;  %v9615_v40 = vld [vmem:[#allocation2 + $0x4f4] sm:$0xf0] }
 0x549   :  { %5980 = vmatpush.bf16.msrb.mxu2 %v9055_v1  ;;  %v9467_v1 = vld [vmem:[#allocation2 + $0x54] sm:$0xf0]  ;;  %v7266_v12 = vld [vmem:[#allocation2 + $0x28] sm:$0xf]  ;;  %v7699_v18 = vor.u32 %v9571_v10, %v7698_v9 }
 0x54a   :  { %6014 = vmatpush.bf16.msra.mxu1 %v7475_v3  ;;  %5993 = vmatpush.bf16.msrb.mxu3 %v9183_v7  ;;  %v12604_v3 = vadd.f32 %v5762_v59, %v5750_v58  ;;  %v9539_v7 = vld [vmem:[#allocation2 + $0x294] sm:$0xf0]  ;;  %v7283_v8 = vor.u32 %v9467_v1, %v7282_v56  ;;  %v7267_v23 = vor.u32 %v9463_v48, %v7266_v12  ;;  %v7682_v24 = vld [vmem:[#allocation2 + $0x368] sm:$0xf]  ;;  %v5764_v26 = vpop.f32.mrf.mxu1 }
 0x54b   :  { %v7571_v14 = vor.u32 %v9539_v7, %v7570_v0  ;;  %v7378_v33 = vld [vmem:[#allocation2 + $0x108] sm:$0xf]  ;;  %v9531_v43 = vld [vmem:[#allocation2 + $0x254] sm:$0xf0] }
 0x54c   :  { %6002 = vmatpush.bf16.msra.mxu0 %v7331_v15  ;;  %v7394_v15 = vld [vmem:[#allocation2 + $0x128] sm:$0xf]  ;;  %v9563_v49 = vld [vmem:[#allocation2 + $0x354] sm:$0xf0] }
 0x54d   :  { %5981 = vmatpush.bf16.msrb.mxu2 %v9039_v20  ;;  %v7554_v20 = vld [vmem:[#allocation2 + $0x268] sm:$0xf]  ;;  %v7395_v29 = vor.u32 %v9495_v16, %v7394_v15  ;;  %v9643_v56 = vld [vmem:[#allocation2 + $0x5d4] sm:$0xf0] }
 0x54e   :  { %6015 = vmatpush.bf16.msra.mxu1 %v7459_v21  ;;  %5994 = vmatpush.bf16.msrb.mxu3 %v9167_v25  ;;  %v9535_v21 = vld [vmem:[#allocation2 + $0x274] sm:$0xf0]  ;;  %v7250_v25 = vld [vmem:[#allocation2 + $0x8] sm:$0xf] }
 0x54f   :  { %v7555_v38 = vor.u32 %v9535_v21, %v7554_v20  ;;  %v7874_v39 = vld [vmem:[#allocation2 + $0x4e8] sm:$0xf]  ;;  %v9559_v5 = vld [vmem:[#allocation2 + $0x334] sm:$0xf0] }
 0x550   :  { %5982 = vmatmul.bf16.vlgmr.msrb.gmra.mxu2 %v10005_v53  ;;  %6003 = vmatpush.bf16.msra.mxu0 %v7315_v41  ;;  %v7538_v41 = vld [vmem:[#allocation2 + $0x248] sm:$0xf]  ;;  %v7875_v51 = vor.u32 %v9615_v40, %v7874_v39  ;;  %v9523_v10 = vld [vmem:[#allocation2 + $0x214] sm:$0xf0] }
 0x551   :  { %6026 = vmatpush.bf16.msra.mxu2 %v7619_v27  ;;  %5995 = vmatmul.bf16.vlgmr.msrb.gmra.mxu3 %v10006_v54  ;;  %v9567_v27 = vld [vmem:[#allocation2 + $0x374] sm:$0xf0]  ;;  %v8002_v44 = vld [vmem:[#allocation2 + $0x5e8] sm:$0xf]  ;;  %v7539_v52 = vor.u32 %v9531_v43, %v7538_v41 }
 0x552   :  { %6039 = vmatpush.bf16.msra.mxu3 %v7747_v30  ;;  %6016 = vmatpush.bf16.msra.mxu1 %v7443_v42  ;;  %v9459_v30 = vld [vmem:[#allocation2 + $0x14] sm:$0xf0]  ;;  %v7683_v42 = vor.u32 %v9567_v27, %v7682_v24  ;;  %v7666_v47 = vld [vmem:[#allocation2 + $0x348] sm:$0xf] }
 0x553   :  { %v7251_v46 = vor.u32 %v9459_v30, %v7250_v25  ;;  %v7522_v58 = vld [vmem:[#allocation2 + $0x228] sm:$0xf]  ;;  %v5775_v34 = vpop.f32.mrf.mxu2  ;;  %v7667_v62 = vor.u32 %v9563_v49, %v7666_v47  ;;  %v9527_v54 = vld [vmem:[#allocation2 + $0x234] sm:$0xf0] }
 0x554   :  { %6004 = vmatpush.bf16.msra.mxu0 %v7299_v60  ;;  %v7858_v59 = vld [vmem:[#allocation2 + $0x4c8] sm:$0xf]  ;;  %v9611_v60 = vld [vmem:[#allocation2 + $0x4d4] sm:$0xf0]  ;;  %v5776_v1 = vadd.f32 %v5775_v34, %v12604_v3 }
 0x555   :  { %6027 = vmatpush.bf16.msra.mxu2 %v7603_v45  ;;  %v9647_v45 = vld [vmem:[#allocation2 + $0x5f4] sm:$0xf0]  ;;  %v7650_v4 = vld [vmem:[#allocation2 + $0x328] sm:$0xf] }
 0x556   :  { %6040 = vmatpush.bf16.msra.mxu3 %v7731_v50  ;;  %6017 = vmatpush.bf16.msra.mxu1 %v7427_v63  ;;  %v7379_v50 = vor.u32 %v9491_v37, %v7378_v33  ;;  %v8003_v53 = vor.u32 %v9647_v45, %v8002_v44  ;;  %v7986_v63 = vld [vmem:[#allocation2 + $0x5c8] sm:$0xf]  ;;  %v9607_v12 = vld [vmem:[#allocation2 + $0x4b4] sm:$0xf0]  ;;  %v7651_v3 = vor.u32 %v9559_v5, %v7650_v4 }
 0x557   :  { %v7506_v0 = vld [vmem:[#allocation2 + $0x208] sm:$0xf]  ;;  %v7987_v9 = vor.u32 %v9643_v56, %v7986_v63  ;;  %v9679_v16 = vld [vmem:[#allocation2 + $0x6f4] sm:$0xf0] }
 0x558   :  { %6005 = vmatpush.bf16.msra.mxu0 %v7283_v8  ;;  %v7523_v8 = vor.u32 %v9527_v54, %v7522_v58  ;;  %v7970_v48 = vld [vmem:[#allocation2 + $0x5a8] sm:$0xf]  ;;  %v9555_v20 = vld [vmem:[#allocation2 + $0x314] sm:$0xf0]  ;;  %v7507_v24 = vor.u32 %v9523_v10, %v7506_v0 }
 0x559   :  { %6028 = vmatpush.bf16.msra.mxu2 %v7587_v61  ;;  %v5788_v61 = vpop.f32.mrf.mxu3  ;;  %v8130_v15 = vld [vmem:[#allocation2 + $0x6e8] sm:$0xf]  ;;  %v9603_v26 = vld [vmem:[#allocation2 + $0x494] sm:$0xf0] }
 0x55a   :  { %6041 = vmatpush.bf16.msra.mxu3 %v7715_v6  ;;  %6018 = vmatpush.bf16.msra.mxu1 %v7411_v11  ;;  %v7859_v6 = vor.u32 %v9611_v60, %v7858_v59  ;;  %v12607_v7 = vadd.f32 %v5788_v61, %v5776_v1  ;;  %v7842_v11 = vld [vmem:[#allocation2 + $0x4a8] sm:$0xf]  ;;  %v9635_v37 = vld [vmem:[#allocation2 + $0x594] sm:$0xf0] }
 0x55b   :  { %v7843_v21 = vor.u32 %v9607_v12, %v7842_v11  ;;  %v8258_v22 = vld [vmem:[#allocation2 + $0x7e8] sm:$0xf]  ;;  %v9675_v40 = vld [vmem:[#allocation2 + $0x6d4] sm:$0xf0] }
 0x55c   :  { %6006 = vmatpush.bf16.msra.mxu0 %v7267_v23  ;;  %v9711_v23 = vld [vmem:[#allocation2 + $0x7f4] sm:$0xf0]  ;;  %v7826_v25 = vld [vmem:[#allocation2 + $0x488] sm:$0xf] }
 0x55d   :  { %6029 = vmatpush.bf16.msra.mxu2 %v7571_v14  ;;  %v9639_v14 = vld [vmem:[#allocation2 + $0x5b4] sm:$0xf0]  ;;  %v7954_v33 = vld [vmem:[#allocation2 + $0x588] sm:$0xf]  ;;  %v8259_v41 = vor.u32 %v9711_v23, %v8258_v22  ;;  %v7827_v43 = vor.u32 %v9603_v26, %v7826_v25 }
 0x55e   :  { %6042 = vmatpush.bf16.msra.mxu3 %v7699_v18  ;;  %6019 = vmatpush.bf16.msra.mxu1 %v7395_v29  ;;  %v7634_v18 = vld [vmem:[#allocation2 + $0x308] sm:$0xf]  ;;  %v7971_v27 = vor.u32 %v9639_v14, %v7970_v48  ;;  %v8131_v29 = vor.u32 %v9679_v16, %v8130_v15  ;;  %v9707_v45 = vld [vmem:[#allocation2 + $0x7d4] sm:$0xf0] }
 0x55f   :  { %v7635_v30 = vor.u32 %v9555_v20, %v7634_v18  ;;  %v8114_v39 = vld [vmem:[#allocation2 + $0x6c8] sm:$0xf]  ;;  %v9599_v49 = vld [vmem:[#allocation2 + $0x474] sm:$0xf0] }
 0x560   :  { %6007 = vmatpush.bf16.msra.mxu0 %v7251_v46  ;;  %v8242_v44 = vld [vmem:[#allocation2 + $0x7c8] sm:$0xf]  ;;  %v7955_v46 = vor.u32 %v9635_v37, %v7954_v33  ;;  %v9671_v60 = vld [vmem:[#allocation2 + $0x6b4] sm:$0xf0] }
 0x561   :  { %6030 = vmatpush.bf16.msra.mxu2 %v7555_v38  ;;  %v5777_v38 = vpop.f32.mrf.mxu2  ;;  %v7810_v47 = vld [vmem:[#allocation2 + $0x468] sm:$0xf]  ;;  %v8243_v58 = vor.u32 %v9707_v45, %v8242_v44  ;;  %v9703_v63 = vld [vmem:[#allocation2 + $0x7b4] sm:$0xf0] }
 0x562   :  { %6043 = vmatpush.bf16.msra.mxu3 %v7683_v42  ;;  %6020 = vmatpush.bf16.msra.mxu1 %v7379_v50  ;;  %v5790_v42 = vpop.f32.mrf.mxu3  ;;  %v8115_v50 = vor.u32 %v9675_v40, %v8114_v39  ;;  %v8098_v59 = vld [vmem:[#allocation2 + $0x6a8] sm:$0xf]  ;;  %v12614_v34 = vpop.f32.mrf.mxu1  ;;  %v9595_v61 = vld [vmem:[#allocation2 + $0x454] sm:$0xf0] }
 0x563   :  { %6008 = vmatmul.bf16.vlgmr.msra.gmra.mxu0 %v12557_v13  ;;  %v8226_v54 = vld [vmem:[#allocation2 + $0x7a8] sm:$0xf]  ;;  %v8099_v4 = vor.u32 %v9671_v60, %v8098_v59  ;;  %v9699_v12 = vld [vmem:[#allocation2 + $0x794] sm:$0xf0] }
 0x564   :  { %6052 = vmatpush.bf16.msrb.mxu0 %v7875_v51  ;;  %v7938_v51 = vld [vmem:[#allocation2 + $0x568] sm:$0xf]  ;;  %v8227_v0 = vor.u32 %v9703_v63, %v8226_v54  ;;  %v9591_v14 = vld [vmem:[#allocation2 + $0x434] sm:$0xf0] }
 0x565   :  { %6031 = vmatpush.bf16.msra.mxu2 %v7539_v52  ;;  %6021 = vmatmul.bf16.vlgmr.msra.gmra.mxu1 %v12560_v17  ;;  %v9631_v52 = vld [vmem:[#allocation2 + $0x574] sm:$0xf0]  ;;  %v7794_v1 = vld [vmem:[#allocation2 + $0x448] sm:$0xf] }
 0x566   :  { %6065 = vmatpush.bf16.msrb.mxu1 %v8003_v53  ;;  %6044 = vmatpush.bf16.msra.mxu3 %v7667_v62  ;;  %v12611_v53 = vpop.f32.mrf.mxu0  ;;  %v7811_v62 = vor.u32 %v9599_v49, %v7810_v47  ;;  %v7939_v56 = vor.u32 %v9631_v52, %v7938_v51  ;;  %v7922_v5 = vld [vmem:[#allocation2 + $0x548] sm:$0xf]  ;;  %v7795_v10 = vor.u32 %v9595_v61, %v7794_v1  ;;  %v9623_v18 = vld [vmem:[#allocation2 + $0x534] sm:$0xf0] }
 0x567   :  { %v8210_v11 = vld [vmem:[#allocation2 + $0x788] sm:$0xf]  ;;  %v9663_v22 = vld [vmem:[#allocation2 + $0x674] sm:$0xf0] }
 0x568   :  { %6053 = vmatpush.bf16.msrb.mxu0 %v7859_v6  ;;  %v9627_v6 = vld [vmem:[#allocation2 + $0x554] sm:$0xf0]  ;;  %v7778_v48 = vld [vmem:[#allocation2 + $0x428] sm:$0xf]  ;;  %v8211_v20 = vor.u32 %v9699_v12, %v8210_v11 }
 0x569   :  { %6032 = vmatpush.bf16.msra.mxu2 %v7523_v8  ;;  %v8082_v8 = vld [vmem:[#allocation2 + $0x688] sm:$0xf]  ;;  %v9695_v25 = vld [vmem:[#allocation2 + $0x774] sm:$0xf0] }
 0x56a   :  { %6066 = vmatpush.bf16.msrb.mxu1 %v7987_v9  ;;  %6045 = vmatpush.bf16.msra.mxu3 %v7651_v3  ;;  %v9667_v9 = vld [vmem:[#allocation2 + $0x694] sm:$0xf0]  ;;  %v7923_v3 = vor.u32 %v9627_v6, %v7922_v5  ;;  %v7906_v16 = vld [vmem:[#allocation2 + $0x528] sm:$0xf] }
 0x56b   :  { %v8083_v15 = vor.u32 %v9667_v9, %v8082_v8  ;;  %v7762_v26 = vld [vmem:[#allocation2 + $0x408] sm:$0xf]  ;;  %v9587_v33 = vld [vmem:[#allocation2 + $0x414] sm:$0xf0]  ;;  %v5802_v8 = vadd.f32 %v12611_v53, %v12583_v19 }
 0x56c   :  { %6054 = vmatpush.bf16.msrb.mxu0 %v7843_v21  ;;  %v8066_v21 = vld [vmem:[#allocation2 + $0x668] sm:$0xf]  ;;  %v9619_v38 = vld [vmem:[#allocation2 + $0x514] sm:$0xf0]  ;;  %v7763_v47 = vor.u32 %v9587_v33, %v7762_v26 }
 0x56d   :  { %6033 = vmatpush.bf16.msra.mxu2 %v7507_v24  ;;  %v7779_v24 = vor.u32 %v9591_v14, %v7778_v48  ;;  %v7890_v37 = vld [vmem:[#allocation2 + $0x508] sm:$0xf]  ;;  %v9743_v42 = vld [vmem:[#allocation2 + $0x8f4] sm:$0xf0] }
 0x56e   :  { %6067 = vmatpush.bf16.msrb.mxu1 %v7971_v27  ;;  %6046 = vmatpush.bf16.msra.mxu3 %v7635_v30  ;;  %v5803_v23 = vpop.f32.mrf.mxu0  ;;  %v8194_v27 = vld [vmem:[#allocation2 + $0x768] sm:$0xf]  ;;  %v7907_v30 = vor.u32 %v9623_v18, %v7906_v16  ;;  %v9659_v44 = vld [vmem:[#allocation2 + $0x654] sm:$0xf0]  ;;  %v7891_v51 = vor.u32 %v9619_v38, %v7890_v37 }
 0x56f   :  { %v8050_v39 = vld [vmem:[#allocation2 + $0x648] sm:$0xf]  ;;  %v9739_v54 = vld [vmem:[#allocation2 + $0x8d4] sm:$0xf0] }
 0x570   :  { %6034 = vmatmul.bf16.vlgmr.msra.gmra.mxu2 %v12563_v32  ;;  %6055 = vmatpush.bf16.msrb.mxu0 %v7827_v43  ;;  %v8386_v40 = vld [vmem:[#allocation2 + $0x8e8] sm:$0xf]  ;;  %v8195_v43 = vor.u32 %v9695_v25, %v8194_v27  ;;  %v9655_v1 = vld [vmem:[#allocation2 + $0x634] sm:$0xf0] }
 0x571   :  { %6078 = vmatpush.bf16.msrb.mxu2 %v8131_v29  ;;  %6047 = vmatmul.bf16.vlgmr.msra.gmra.mxu3 %v12565_v36  ;;  %v5816_v29 = vpop.f32.mrf.mxu1  ;;  %v8514_v45 = vld [vmem:[#allocation2 + $0x9e8] sm:$0xf]  ;;  %v8387_v52 = vor.u32 %v9743_v42, %v8386_v40  ;;  %v9735_v14 = vld [vmem:[#allocation2 + $0x8b4] sm:$0xf0] }
 0x572   :  { %6091 = vmatpush.bf16.msrb.mxu3 %v8259_v41  ;;  %6068 = vmatpush.bf16.msrb.mxu1 %v7955_v46  ;;  %v8067_v41 = vor.u32 %v9663_v22, %v8066_v21  ;;  %v9775_v46 = vld [vmem:[#allocation2 + $0x9f4] sm:$0xf0]  ;;  %v8178_v49 = vld [vmem:[#allocation2 + $0x748] sm:$0xf]  ;;  %v5815_v22 = vadd.f32 %v12614_v34, %v5802_v8 }
 0x573   :  { %v8515_v59 = vor.u32 %v9775_v46, %v8514_v45  ;;  %v8034_v60 = vld [vmem:[#allocation2 + $0x628] sm:$0xf]  ;;  %v5827_v63 = vpop.f32.mrf.mxu2  ;;  %v9767_v18 = vld [vmem:[#allocation2 + $0x9b4] sm:$0xf0] }
 0x574   :  { %6056 = vmatpush.bf16.msrb.mxu0 %v7811_v62  ;;  %v8370_v62 = vld [vmem:[#allocation2 + $0x8c8] sm:$0xf]  ;;  %v5840_v5 = vpop.f32.mrf.mxu3  ;;  %v8035_v11 = vor.u32 %v9655_v1, %v8034_v60  ;;  %v9807_v19 = vld [vmem:[#allocation2 + $0xaf4] sm:$0xf0]  ;;  %v5828_v33 = vadd.f32 %v5827_v63, %v5815_v22 }
 0x575   :  { %6079 = vmatpush.bf16.msrb.mxu2 %v8115_v50  ;;  %v9691_v50 = vld [vmem:[#allocation2 + $0x754] sm:$0xf0]  ;;  %v8498_v61 = vld [vmem:[#allocation2 + $0x9c8] sm:$0xf]  ;;  %v8371_v9 = vor.u32 %v9739_v54, %v8370_v62 }
 0x576   :  { %6092 = vmatpush.bf16.msrb.mxu3 %v8243_v58  ;;  %6069 = vmatpush.bf16.msrb.mxu1 %v7939_v56  ;;  %v8051_v58 = vor.u32 %v9659_v44, %v8050_v39  ;;  %v8179_v56 = vor.u32 %v9691_v50, %v8178_v49  ;;  %v8162_v6 = vld [vmem:[#allocation2 + $0x728] sm:$0xf]  ;;  %v9683_v21 = vld [vmem:[#allocation2 + $0x714] sm:$0xf0] }
 0x577   :  { %v8354_v48 = vld [vmem:[#allocation2 + $0x8a8] sm:$0xf]  ;;  %v9839_v27 = vld [vmem:[#allocation2 + $0xbf4] sm:$0xf0] }
 0x578   :  { %6057 = vmatpush.bf16.msrb.mxu0 %v7795_v10  ;;  %v8018_v10 = vld [vmem:[#allocation2 + $0x608] sm:$0xf]  ;;  %v8355_v23 = vor.u32 %v9735_v14, %v8354_v48  ;;  %v9763_v39 = vld [vmem:[#allocation2 + $0x994] sm:$0xf0] }
 0x579   :  { %6080 = vmatpush.bf16.msrb.mxu2 %v8099_v4  ;;  %v9771_v4 = vld [vmem:[#allocation2 + $0x9d4] sm:$0xf0]  ;;  %v8482_v16 = vld [vmem:[#allocation2 + $0x9a8] sm:$0xf] }
 0x57a   :  { %6093 = vmatpush.bf16.msrb.mxu3 %v8227_v0  ;;  %6070 = vmatpush.bf16.msrb.mxu1 %v7923_v3  ;;  %v9687_v0 = vld [vmem:[#allocation2 + $0x734] sm:$0xf0]  ;;  %v8499_v12 = vor.u32 %v9771_v4, %v8498_v61  ;;  %v8146_v53 = vld [vmem:[#allocation2 + $0x708] sm:$0xf]  ;;  %v8483_v26 = vor.u32 %v9767_v18, %v8482_v16 }
 0x57b   :  { %v9651_v3 = vld [vmem:[#allocation2 + $0x614] sm:$0xf0]  ;;  %v8338_v29 = vld [vmem:[#allocation2 + $0x888] sm:$0xf]  ;;  %v8147_v38 = vor.u32 %v9683_v21, %v8146_v53  ;;  %v5829_v40 = vpop.f32.mrf.mxu2 }
 0x57c   :  { %6058 = vmatpush.bf16.msrb.mxu0 %v7779_v24  ;;  %v8770_v24 = vld [vmem:[#allocation2 + $0xbe8] sm:$0xf]  ;;  %v8019_v25 = vor.u32 %v9651_v3, %v8018_v10  ;;  %v9803_v34 = vld [vmem:[#allocation2 + $0xad4] sm:$0xf0]  ;;  %v5842_v44 = vpop.f32.mrf.mxu3 }
 0x57d   :  { %6081 = vmatpush.bf16.msrb.mxu2 %v8083_v15  ;;  %v8163_v15 = vor.u32 %v9687_v0, %v8162_v6  ;;  %v8771_v42 = vor.u32 %v9839_v27, %v8770_v24  ;;  %v8754_v46 = vld [vmem:[#allocation2 + $0xbc8] sm:$0xf]  ;;  %v9759_v60 = vld [vmem:[#allocation2 + $0x974] sm:$0xf0] }
 0x57e   :  { %6094 = vmatpush.bf16.msrb.mxu3 %v8211_v20  ;;  %6071 = vmatpush.bf16.msrb.mxu1 %v7907_v30  ;;  %v8642_v20 = vld [vmem:[#allocation2 + $0xae8] sm:$0xf]  ;;  %v9731_v30 = vld [vmem:[#allocation2 + $0x894] sm:$0xf0] }
 0x57f   :  { %v8643_v37 = vor.u32 %v9807_v19, %v8642_v20  ;;  %v8339_v45 = vor.u32 %v9731_v30, %v8338_v29  ;;  %v8322_v50 = vld [vmem:[#allocation2 + $0x868] sm:$0xf]  ;;  %v9831_v0 = vld [vmem:[#allocation2 + $0xbb4] sm:$0xf0] }
 0x580   :  { %6059 = vmatpush.bf16.msrb.mxu0 %v7763_v47  ;;  %v9835_v47 = vld [vmem:[#allocation2 + $0xbd4] sm:$0xf0]  ;;  %v5853_v62 = vpop.f32.mrf.mxu0  ;;  %v8610_v63 = vld [vmem:[#allocation2 + $0xaa8] sm:$0xf] }
 0x581   :  { %6082 = vmatpush.bf16.msrb.mxu2 %v8067_v41  ;;  %v8466_v41 = vld [vmem:[#allocation2 + $0x988] sm:$0xf]  ;;  %v8755_v54 = vor.u32 %v9835_v47, %v8754_v46  ;;  %v9755_v3 = vld [vmem:[#allocation2 + $0x954] sm:$0xf0] }
 0x582   :  { %6095 = vmatpush.bf16.msrb.mxu3 %v8195_v43  ;;  %6072 = vmatpush.bf16.msrb.mxu1 %v7891_v51  ;;  %v8626_v43 = vld [vmem:[#allocation2 + $0xac8] sm:$0xf]  ;;  %v8467_v49 = vor.u32 %v9763_v39, %v8466_v41  ;;  %v9727_v51 = vld [vmem:[#allocation2 + $0x874] sm:$0xf0]  ;;  %v5866_v61 = vpop.f32.mrf.mxu1 }
 0x583   :  { %6060 = vmatmul.bf16.vlgmr.msrb.gmra.mxu0 %v12569_v28  ;;  %v8323_v4 = vor.u32 %v9727_v51, %v8322_v50  ;;  %v8738_v6 = vld [vmem:[#allocation2 + $0xba8] sm:$0xf]  ;;  %v9827_v20 = vld [vmem:[#allocation2 + $0xb94] sm:$0xf0] }
 0x584   :  { %6104 = vmatpush.bf16.msra.mxu0 %v8387_v52  ;;  %v5841_v52 = vadd.f32 %v5840_v5, %v5828_v33  ;;  %v8306_v8 = vld [vmem:[#allocation2 + $0x848] sm:$0xf]  ;;  %v8739_v48 = vor.u32 %v9831_v0, %v8738_v6  ;;  %v9719_v21 = vld [vmem:[#allocation2 + $0x834] sm:$0xf0] }
 0x585   :  { %6083 = vmatpush.bf16.msrb.mxu2 %v8051_v58  ;;  %6073 = vmatmul.bf16.vlgmr.msrb.gmra.mxu1 %v12571_v35  ;;  %v8627_v58 = vor.u32 %v9803_v34, %v8626_v43  ;;  %v8594_v14 = vld [vmem:[#allocation2 + $0xa88] sm:$0xf]  ;;  %v9751_v24 = vld [vmem:[#allocation2 + $0x934] sm:$0xf0] }
 0x586   :  { %6117 = vmatpush.bf16.msra.mxu1 %v8515_v59  ;;  %6096 = vmatpush.bf16.msrb.mxu3 %v8179_v56  ;;  %v8450_v59 = vld [vmem:[#allocation2 + $0x968] sm:$0xf]  ;;  %v9799_v56 = vld [vmem:[#allocation2 + $0xab4] sm:$0xf0]  ;;  %v5854_v1 = vadd.f32 %v5853_v62, %v5841_v52 }
 0x587   :  { %v8451_v5 = vor.u32 %v9759_v60, %v8450_v59  ;;  %v8722_v18 = vld [vmem:[#allocation2 + $0xb88] sm:$0xf]  ;;  %v9715_v40 = vld [vmem:[#allocation2 + $0x814] sm:$0xf0] }
 0x588   :  { %6105 = vmatpush.bf16.msra.mxu0 %v8371_v9  ;;  %v9723_v9 = vld [vmem:[#allocation2 + $0x854] sm:$0xf0]  ;;  %v12624_v10 = vadd.f32 %v5866_v61, %v5854_v1  ;;  %v8290_v53 = vld [vmem:[#allocation2 + $0x828] sm:$0xf]  ;;  %v8723_v27 = vor.u32 %v9827_v20, %v8722_v18  ;;  %v5855_v29 = vpop.f32.mrf.mxu0 }
 0x589   :  { %6084 = vmatpush.bf16.msrb.mxu2 %v8035_v11  ;;  %v8611_v11 = vor.u32 %v9799_v56, %v8610_v63  ;;  %v8307_v16 = vor.u32 %v9723_v9, %v8306_v8  ;;  %v8291_v30 = vor.u32 %v9719_v21, %v8290_v53  ;;  %v8706_v33 = vld [vmem:[#allocation2 + $0xb68] sm:$0xf]  ;;  %v9747_v43 = vld [vmem:[#allocation2 + $0x914] sm:$0xf0] }
 0x58a   :  { %6118 = vmatpush.bf16.msra.mxu1 %v8499_v12  ;;  %6097 = vmatpush.bf16.msrb.mxu3 %v8163_v15  ;;  %v8434_v12 = vld [vmem:[#allocation2 + $0x948] sm:$0xf]  ;;  %v9795_v15 = vld [vmem:[#allocation2 + $0xa94] sm:$0xf0]  ;;  %v5868_v41 = vpop.f32.mrf.mxu1 }
 0x58b   :  { %v8435_v19 = vor.u32 %v9755_v3, %v8434_v12  ;;  %v8595_v22 = vor.u32 %v9795_v15, %v8594_v14  ;;  %v8562_v44 = vld [vmem:[#allocation2 + $0xa48] sm:$0xf]  ;;  %v9871_v46 = vld [vmem:[#allocation2 + $0xcf4] sm:$0xf0] }
 0x58c   :  { %6106 = vmatpush.bf16.msra.mxu0 %v8355_v23  ;;  %v8418_v23 = vld [vmem:[#allocation2 + $0x928] sm:$0xf]  ;;  %v9903_v51 = vld [vmem:[#allocation2 + $0xdf4] sm:$0xf0] }
 0x58d   :  { %6085 = vmatpush.bf16.msrb.mxu2 %v8019_v25  ;;  %v8578_v25 = vld [vmem:[#allocation2 + $0xa68] sm:$0xf]  ;;  %v8419_v39 = vor.u32 %v9751_v24, %v8418_v23  ;;  %v9819_v59 = vld [vmem:[#allocation2 + $0xb54] sm:$0xf0] }
 0x58e   :  { %6119 = vmatpush.bf16.msra.mxu1 %v8483_v26  ;;  %6098 = vmatpush.bf16.msrb.mxu3 %v8147_v38  ;;  %v9791_v26 = vld [vmem:[#allocation2 + $0xa74] sm:$0xf0]  ;;  %v8274_v38 = vld [vmem:[#allocation2 + $0x808] sm:$0xf] }
 0x58f   :  { %v8579_v34 = vor.u32 %v9791_v26, %v8578_v25  ;;  %v9026_v50 = vld [vmem:[#allocation2 + $0xde8] sm:$0xf]  ;;  %v8275_v52 = vor.u32 %v9715_v40, %v8274_v38  ;;  %v9867_v61 = vld [vmem:[#allocation2 + $0xcd4] sm:$0xf0] }
 0x590   :  { %6086 = vmatmul.bf16.vlgmr.msrb.gmra.mxu2 %v12575_v55  ;;  %6107 = vmatpush.bf16.msra.mxu0 %v8339_v45  ;;  %v8898_v45 = vld [vmem:[#allocation2 + $0xce8] sm:$0xf]  ;;  %v9027_v63 = vor.u32 %v9903_v51, %v9026_v50  ;;  %v9783_v0 = vld [vmem:[#allocation2 + $0xa34] sm:$0xf0] }
 0x591   :  { %6130 = vmatpush.bf16.msra.mxu2 %v8643_v37  ;;  %6099 = vmatmul.bf16.vlgmr.msrb.gmra.mxu3 %v12577_v57  ;;  %v9823_v37 = vld [vmem:[#allocation2 + $0xb74] sm:$0xf0]  ;;  %v8899_v62 = vor.u32 %v9871_v46, %v8898_v45  ;;  %v8546_v56 = vld [vmem:[#allocation2 + $0xa28] sm:$0xf] }
 0x592   :  { %6143 = vmatpush.bf16.msra.mxu3 %v8771_v42  ;;  %6120 = vmatpush.bf16.msra.mxu1 %v8467_v49  ;;  %v8402_v42 = vld [vmem:[#allocation2 + $0x908] sm:$0xf]  ;;  %v8707_v47 = vor.u32 %v9823_v37, %v8706_v33  ;;  %v9787_v49 = vld [vmem:[#allocation2 + $0xa54] sm:$0xf0] }
 0x593   :  { %v8403_v60 = vor.u32 %v9747_v43, %v8402_v42  ;;  %v8882_v1 = vld [vmem:[#allocation2 + $0xcc8] sm:$0xf]  ;;  %v9899_v8 = vld [vmem:[#allocation2 + $0xdd4] sm:$0xf0] }
 0x594   :  { %6108 = vmatpush.bf16.msra.mxu0 %v8323_v4  ;;  %v5879_v4 = vpop.f32.mrf.mxu2  ;;  %v8674_v12 = vld [vmem:[#allocation2 + $0xb28] sm:$0xf]  ;;  %v9815_v3 = vld [vmem:[#allocation2 + $0xb34] sm:$0xf0] }
 0x595   :  { %6131 = vmatpush.bf16.msra.mxu2 %v8627_v58  ;;  %v8690_v58 = vld [vmem:[#allocation2 + $0xb48] sm:$0xf]  ;;  %v5880_v9 = vadd.f32 %v5879_v4, %v12624_v10  ;;  %v9779_v20 = vld [vmem:[#allocation2 + $0xa14] sm:$0xf0]  ;;  %v8675_v10 = vor.u32 %v9815_v3, %v8674_v12 }
 0x596   :  { %6144 = vmatpush.bf16.msra.mxu3 %v8755_v54  ;;  %6121 = vmatpush.bf16.msra.mxu1 %v8451_v5  ;;  %v8563_v54 = vor.u32 %v9787_v49, %v8562_v44  ;;  %v8691_v6 = vor.u32 %v9819_v59, %v8690_v58  ;;  %v9010_v5 = vld [vmem:[#allocation2 + $0xdc8] sm:$0xf]  ;;  %v9863_v53 = vld [vmem:[#allocation2 + $0xcb4] sm:$0xf0] }
 0x597   :  { %v8530_v14 = vld [vmem:[#allocation2 + $0xa08] sm:$0xf]  ;;  %v9011_v18 = vor.u32 %v9899_v8, %v9010_v5  ;;  %v10007_v21 = vld [vmem:[#allocation1] sm:$0xff] }
 0x598   :  { %6109 = vmatpush.bf16.msra.mxu0 %v8307_v16  ;;  %v8547_v16 = vor.u32 %v9783_v0, %v8546_v56  ;;  %v9895_v23 = vld [vmem:[#allocation2 + $0xdb4] sm:$0xf0]  ;;  %v9154_v24 = vld [vmem:[#allocation2 + $0xee8] sm:$0xf]  ;;  %v8531_v38 = vor.u32 %v9779_v20, %v8530_v14 }
 0x599   :  { %6132 = vmatpush.bf16.msra.mxu2 %v8611_v11  ;;  %v5892_v11 = vpop.f32.mrf.mxu3  ;;  %v9935_v25 = vld [vmem:[#allocation2 + $0xef4] sm:$0xf0]  ;;  %v8658_v26 = vld [vmem:[#allocation2 + $0xb08] sm:$0xf] }
 0x59a   :  { %6145 = vmatpush.bf16.msra.mxu3 %v8739_v48  ;;  %6122 = vmatpush.bf16.msra.mxu1 %v8435_v19  ;;  %v8883_v48 = vor.u32 %v9867_v61, %v8882_v1  ;;  %v5893_v15 = vadd.f32 %v5892_v11, %v5880_v9  ;;  %v8866_v19 = vld [vmem:[#allocation2 + $0xca8] sm:$0xf]  ;;  %v9811_v29 = vld [vmem:[#allocation2 + $0xb14] sm:$0xf0]  ;;  %v9155_v42 = vor.u32 %v9935_v25, %v9154_v24 }
 0x59b   :  { %v9282_v33 = vld [vmem:[#allocation2 + $0xfe8] sm:$0xf]  ;;  %v9967_v37 = vld [vmem:[#allocation2 + $0xff4] sm:$0xf0]  ;;  %v8659_v43 = vor.u32 %v9811_v29, %v8658_v26 }
 0x59c   :  { %6110 = vmatpush.bf16.msra.mxu0 %v8291_v30  ;;  %v8867_v30 = vor.u32 %v9863_v53, %v8866_v19  ;;  %v9859_v40 = vld [vmem:[#allocation2 + $0xc94] sm:$0xf0]  ;;  %v5881_v45 = vpop.f32.mrf.mxu2  ;;  %v9283_v46 = vor.u32 %v9967_v37, %v9282_v33  ;;  %v9122_v4 = vld [vmem:[#allocation2 + $0xea8] sm:$0xf] }
 0x59d   :  { %6133 = vmatpush.bf16.msra.mxu2 %v8595_v22  ;;  %v8994_v22 = vld [vmem:[#allocation2 + $0xda8] sm:$0xf]  ;;  %v9891_v44 = vld [vmem:[#allocation2 + $0xd94] sm:$0xf0] }
 0x59e   :  { %6146 = vmatpush.bf16.msra.mxu3 %v8723_v27  ;;  %6123 = vmatpush.bf16.msra.mxu1 %v8419_v39  ;;  %v10008_v27 = vld [vmem:[#allocation1 + $0x9] sm:$0xff]  ;;  %v8995_v41 = vor.u32 %v9895_v23, %v8994_v22  ;;  %v9931_v49 = vld [vmem:[#allocation2 + $0xed4] sm:$0xf0]  ;;  %v10009_v0 = vld [vmem:[#allocation1 + $0x12] sm:$0xff] }
 0x59f   :  { %v8850_v39 = vld [vmem:[#allocation2 + $0xc88] sm:$0xf]  ;;  %v9963_v58 = vld [vmem:[#allocation2 + $0xfd4] sm:$0xf0] }
 0x5a0   :  { %6111 = vmatpush.bf16.msra.mxu0 %v8275_v52  ;;  %v8851_v51 = vor.u32 %v9859_v40, %v8850_v39  ;;  %v9266_v52 = vld [vmem:[#allocation2 + $0xfc8] sm:$0xf]  ;;  %v9887_v56 = vld [vmem:[#allocation2 + $0xd74] sm:$0xf0]  ;;  %v5905_v1 = vpop.f32.mrf.mxu0 }
 0x5a1   :  { %6134 = vmatpush.bf16.msra.mxu2 %v8579_v34  ;;  %v8978_v34 = vld [vmem:[#allocation2 + $0xd88] sm:$0xf]  ;;  %v5894_v50 = vpop.f32.mrf.mxu3  ;;  %v9267_v61 = vor.u32 %v9963_v58, %v9266_v52  ;;  %v5906_v5 = vadd.f32 %v5905_v1, %v5893_v15  ;;  %v9959_v12 = vld [vmem:[#allocation2 + $0xfb4] sm:$0xf0]  ;;  %v9485_v52 = vld [vmem:[#allocation2 + $0xec] sm:$0xf] }
 0x5a2   :  { %6147 = vmatpush.bf16.msra.mxu3 %v8707_v47  ;;  %6124 = vmatpush.bf16.msra.mxu1 %v8403_v60  ;;  %v9138_v47 = vld [vmem:[#allocation2 + $0xec8] sm:$0xf]  ;;  %v8979_v59 = vor.u32 %v9891_v44, %v8978_v34  ;;  %v5918_v8 = vpop.f32.mrf.mxu1  ;;  %v10010_v3 = vld [vmem:[#allocation1 + $0x1b] sm:$0xff]  ;;  %v7364_v58 = vld [vmem:[#allocation2 + $0xf8] sm:$0xf0] }
 0x5a3   :  { %6112 = vmatmul.bf16.vlgmr.msra.gmra.mxu0 %v10007_v21  ;;  %v8834_v60 = vld [vmem:[#allocation2 + $0xc68] sm:$0xf]  ;;  %v9883_v53 = vld [vmem:[#allocation2 + $0xd54] sm:$0xf0] }
 0x5a4   :  { %6156 = vmatpush.bf16.msrb.mxu0 %v8899_v62  ;;  %v9855_v62 = vld [vmem:[#allocation2 + $0xc74] sm:$0xf0]  ;;  %v9250_v11 = vld [vmem:[#allocation2 + $0xfa8] sm:$0xf] }
 0x5a5   :  { %6135 = vmatpush.bf16.msra.mxu2 %v8563_v54  ;;  %6125 = vmatmul.bf16.vlgmr.msra.gmra.mxu1 %v10008_v27  ;;  %v9139_v54 = vor.u32 %v9931_v49, %v9138_v47  ;;  %v8835_v9 = vor.u32 %v9855_v62, %v8834_v60  ;;  %v8818_v14 = vld [vmem:[#allocation2 + $0xc48] sm:$0xf]  ;;  %v9251_v21 = vor.u32 %v9959_v12, %v9250_v11  ;;  %v9955_v24 = vld [vmem:[#allocation2 + $0xf94] sm:$0xf0]  ;;  %v9517_v62 = vld [vmem:[#allocation2 + $0x1ec] sm:$0xf] }
 0x5a6   :  { %6169 = vmatpush.bf16.msrb.mxu1 %v9027_v63  ;;  %6148 = vmatpush.bf16.msra.mxu3 %v8691_v6  ;;  %v8962_v63 = vld [vmem:[#allocation2 + $0xd68] sm:$0xf]  ;;  %v9927_v6 = vld [vmem:[#allocation2 + $0xeb4] sm:$0xf0] }
 0x5a7   :  { %v9123_v20 = vor.u32 %v9927_v6, %v9122_v4  ;;  %v8946_v19 = vld [vmem:[#allocation2 + $0xd48] sm:$0xf]  ;;  %v9847_v26 = vld [vmem:[#allocation2 + $0xc34] sm:$0xf0]  ;;  %v7367_v4 = vor.u32 %v9485_v52, %v7364_v58 }
 0x5a8   :  { %6157 = vmatpush.bf16.msrb.mxu0 %v8883_v48  ;;  %v8963_v48 = vor.u32 %v9887_v56, %v8962_v63  ;;  %v9106_v15 = vld [vmem:[#allocation2 + $0xe88] sm:$0xf]  ;;  %v8947_v27 = vor.u32 %v9883_v53, %v8946_v19  ;;  %v9879_v33 = vld [vmem:[#allocation2 + $0xd34] sm:$0xf0]  ;;  %v5907_v39 = vpop.f32.mrf.mxu0 }
 0x5a9   :  { %6136 = vmatpush.bf16.msra.mxu2 %v8547_v16  ;;  %v9851_v16 = vld [vmem:[#allocation2 + $0xc54] sm:$0xf0]  ;;  %v9234_v23 = vld [vmem:[#allocation2 + $0xf88] sm:$0xf] }
 0x5aa   :  { %6170 = vmatpush.bf16.msrb.mxu1 %v9011_v18  ;;  %6149 = vmatpush.bf16.msra.mxu3 %v8675_v10  ;;  %v12627_v18 = vadd.f32 %v5918_v8, %v5906_v5  ;;  %v9923_v10 = vld [vmem:[#allocation2 + $0xe94] sm:$0xf0]  ;;  %v8819_v22 = vor.u32 %v9851_v16, %v8818_v14  ;;  %v8802_v25 = vld [vmem:[#allocation2 + $0xc28] sm:$0xf]  ;;  %v9235_v37 = vor.u32 %v9955_v24, %v9234_v23  ;;  %v5920_v44 = vpop.f32.mrf.mxu1  ;;  %v9481_v8 = vld [vmem:[#allocation2 + $0xcc] sm:$0xf] }
 0x5ab   :  { %v9107_v29 = vor.u32 %v9923_v10, %v9106_v15  ;;  %v8803_v40 = vor.u32 %v9847_v26, %v8802_v25  ;;  %v8786_v34 = vld [vmem:[#allocation2 + $0xc08] sm:$0xf]  ;;  %v9875_v49 = vld [vmem:[#allocation2 + $0xd14] sm:$0xf0]  ;;  %v7476_v14 = vld [vmem:[#allocation2 + $0x1d8] sm:$0xf0] }
 0x5ac   :  { %6158 = vmatpush.bf16.msrb.mxu0 %v8867_v30  ;;  %v8930_v30 = vld [vmem:[#allocation2 + $0xd28] sm:$0xf]  ;;  %v9915_v60 = vld [vmem:[#allocation2 + $0xe54] sm:$0xf0]  ;;  %v7332_v25 = vld [vmem:[#allocation2 + $0xb8] sm:$0xf0] }
 0x5ad   :  { %6137 = vmatpush.bf16.msra.mxu2 %v8531_v38  ;;  %v9090_v38 = vld [vmem:[#allocation2 + $0xe68] sm:$0xf]  ;;  %v8931_v45 = vor.u32 %v9879_v33, %v8930_v30  ;;  %v9947_v1 = vld [vmem:[#allocation2 + $0xf54] sm:$0xf0]  ;;  %v10011_v26 = vld [vmem:[#allocation1 + $0x24] sm:$0xff] }
 0x5ae   :  { %6171 = vmatpush.bf16.msrb.mxu1 %v8995_v41  ;;  %6150 = vmatpush.bf16.msra.mxu3 %v8659_v43  ;;  %v9919_v41 = vld [vmem:[#allocation2 + $0xe74] sm:$0xf0]  ;;  %v8914_v47 = vld [vmem:[#allocation2 + $0xd08] sm:$0xf]  ;;  %v7460_v30 = vld [vmem:[#allocation2 + $0x1b8] sm:$0xf0] }
 0x5af   :  { %v9951_v43 = vld [vmem:[#allocation2 + $0xf74] sm:$0xf0]  ;;  %v9091_v50 = vor.u32 %v9919_v41, %v9090_v38  ;;  %v9202_v56 = vld [vmem:[#allocation2 + $0xf48] sm:$0xf]  ;;  %v9549_v33 = vld [vmem:[#allocation2 + $0x2ec] sm:$0xf] }
 0x5b0   :  { %6138 = vmatmul.bf16.vlgmr.msra.gmra.mxu2 %v10009_v0  ;;  %6159 = vmatpush.bf16.msrb.mxu0 %v8851_v51  ;;  %v9074_v51 = vld [vmem:[#allocation2 + $0xe48] sm:$0xf]  ;;  %v9203_v12 = vor.u32 %v9947_v1, %v9202_v56  ;;  %v9943_v53 = vld [vmem:[#allocation2 + $0xf34] sm:$0xf0]  ;;  %v7620_v38 = vld [vmem:[#allocation2 + $0x2f8] sm:$0xf0] }
 0x5b1   :  { %6182 = vmatpush.bf16.msrb.mxu2 %v9155_v42  ;;  %6151 = vmatmul.bf16.vlgmr.msra.gmra.mxu3 %v10010_v3  ;;  %v9218_v42 = vld [vmem:[#allocation2 + $0xf68] sm:$0xf]  ;;  %v9075_v6 = vor.u32 %v9915_v60, %v9074_v51  ;;  %v9911_v3 = vld [vmem:[#allocation2 + $0xe34] sm:$0xf0]  ;;  %v7444_v51 = vld [vmem:[#allocation2 + $0x198] sm:$0xf0] }
 0x5b2   :  { %6195 = vmatpush.bf16.msrb.mxu3 %v9283_v46  ;;  %6172 = vmatpush.bf16.msrb.mxu1 %v8979_v59  ;;  %v9843_v46 = vld [vmem:[#allocation2 + $0xc14] sm:$0xf0]  ;;  %v9219_v59 = vor.u32 %v9951_v43, %v9218_v42  ;;  %v9058_v5 = vld [vmem:[#allocation2 + $0xe28] sm:$0xf]  ;;  %v9581_v42 = vld [vmem:[#allocation2 + $0x3ec] sm:$0xf] }
 0x5b3   :  { %v8787_v63 = vor.u32 %v9843_v46, %v8786_v34  ;;  %v5931_v11 = vpop.f32.mrf.mxu2  ;;  %v9186_v19 = vld [vmem:[#allocation2 + $0xf28] sm:$0xf]  ;;  %v9907_v24 = vld [vmem:[#allocation2 + $0xe14] sm:$0xf0]  ;;  %v7748_v43 = vld [vmem:[#allocation2 + $0x3f8] sm:$0xf0] }
 0x5b4   :  { %6160 = vmatpush.bf16.msrb.mxu0 %v8835_v9  ;;  %v7348_v9 = vld [vmem:[#allocation2 + $0xd8] sm:$0xf0]  ;;  %v5932_v16 = vadd.f32 %v5931_v11, %v12627_v18  ;;  %v9042_v15 = vld [vmem:[#allocation2 + $0xe08] sm:$0xf]  ;;  %v9187_v18 = vor.u32 %v9943_v53, %v9186_v19  ;;  %v9939_v39 = vld [vmem:[#allocation2 + $0xf14] sm:$0xf0]  ;;  %v7751_v58 = vor.u32 %v9581_v42, %v7748_v43 }
 0x5b5   :  { %6183 = vmatpush.bf16.msrb.mxu2 %v9139_v54  ;;  %v7492_v54 = vld [vmem:[#allocation2 + $0x1f8] sm:$0xf0]  ;;  %v9170_v41 = vld [vmem:[#allocation2 + $0xf08] sm:$0xf]  ;;  %v9043_v34 = vor.u32 %v9907_v24, %v9042_v15  ;;  %v9541_v11 = vld [vmem:[#allocation2 + $0x2ac] sm:$0xf] }
 0x5b6   :  { %6196 = vmatpush.bf16.msrb.mxu3 %v9267_v61  ;;  %6173 = vmatpush.bf16.msrb.mxu1 %v8963_v48  ;;  %v8915_v61 = vor.u32 %v9875_v49, %v8914_v47  ;;  %v7495_v0 = vor.u32 %v9517_v62, %v7492_v54  ;;  %v9513_v48 = vld [vmem:[#allocation2 + $0x1cc] sm:$0xf]  ;;  %v7316_v46 = vld [vmem:[#allocation2 + $0x98] sm:$0xf0]  ;;  %v7623_v47 = vor.u32 %v9549_v33, %v7620_v38 }
 0x5b7   :  { %v7479_v23 = vor.u32 %v9513_v48, %v7476_v14  ;;  %v9171_v49 = vor.u32 %v9939_v39, %v9170_v41  ;;  %v7604_v60 = vld [vmem:[#allocation2 + $0x2d8] sm:$0xf0]  ;;  %v9465_v15 = vld [vmem:[#allocation2 + $0x4c] sm:$0xf] }
 0x5b8   :  { %6161 = vmatpush.bf16.msrb.mxu0 %v8819_v22  ;;  %v9059_v22 = vor.u32 %v9911_v3, %v9058_v5  ;;  %v7732_v56 = vld [vmem:[#allocation2 + $0x3d8] sm:$0xf0]  ;;  %v10013_v3 = vld [vmem:[#allocation1 + $0x36] sm:$0xff] }
 0x5b9   :  { %6184 = vmatpush.bf16.msrb.mxu2 %v9123_v20  ;;  %v5944_v20 = vpop.f32.mrf.mxu3  ;;  %v7428_v5 = vld [vmem:[#allocation2 + $0x178] sm:$0xf0]  ;;  %v9461_v38 = vld [vmem:[#allocation2 + $0x2c] sm:$0xf] }
 0x5ba   :  { %6197 = vmatpush.bf16.msrb.mxu3 %v9251_v21  ;;  %6174 = vmatpush.bf16.msrb.mxu1 %v8947_v27  ;;  %v7351_v21 = vor.u32 %v9481_v8, %v7348_v9  ;;  %v5945_v10 = vadd.f32 %v5944_v20, %v5932_v16  ;;  %v9477_v27 = vld [vmem:[#allocation2 + $0xac] sm:$0xf]  ;;  %v7716_v19 = vld [vmem:[#allocation2 + $0x3b8] sm:$0xf0] }
 0x5bb   :  { %v5933_v52 = vpop.f32.mrf.mxu2  ;;  %v9573_v20 = vld [vmem:[#allocation2 + $0x3ac] sm:$0xf]  ;;  %v10014_v53 = vld [vmem:[#allocation1 + $0x3f] sm:$0xff] }
 0x5bc   :  { %6162 = vmatpush.bf16.msrb.mxu0 %v8803_v40  ;;  %v7335_v40 = vor.u32 %v9477_v27, %v7332_v25  ;;  %v9497_v27 = vld [vmem:[#allocation2 + $0x14c] sm:$0xf]  ;;  %v7412_v25 = vld [vmem:[#allocation2 + $0x158] sm:$0xf0] }
 0x5bd   :  { %6185 = vmatpush.bf16.msrb.mxu2 %v9107_v29  ;;  %v9509_v29 = vld [vmem:[#allocation2 + $0x1ac] sm:$0xf]  ;;  %v7700_v33 = vld [vmem:[#allocation2 + $0x398] sm:$0xf0] }
 0x5be   :  { %6198 = vmatpush.bf16.msrb.mxu3 %v9235_v37  ;;  %6175 = vmatpush.bf16.msrb.mxu1 %v8931_v45  ;;  %v10012_v37 = vld [vmem:[#allocation1 + $0x2d] sm:$0xff]  ;;  %v7463_v44 = vor.u32 %v9509_v29, %v7460_v30  ;;  %v7268_v41 = vld [vmem:[#allocation2 + $0x38] sm:$0xf0] }
 0x5bf   :  { %v9473_v45 = vld [vmem:[#allocation2 + $0x8c] sm:$0xf]  ;;  %v7396_v42 = vld [vmem:[#allocation2 + $0x138] sm:$0xf0] }
 0x5c0   :  { %6163 = vmatpush.bf16.msrb.mxu0 %v8787_v63  ;;  %v7319_v54 = vor.u32 %v9473_v45, %v7316_v46  ;;  %v9577_v63 = vld [vmem:[#allocation2 + $0x3cc] sm:$0xf]  ;;  %v5957_v8 = vpop.f32.mrf.mxu0  ;;  %v7271_v46 = vor.u32 %v9461_v38, %v7268_v41  ;;  %v7844_v38 = vld [vmem:[#allocation2 + $0x4b8] sm:$0xf0] }
 0x5c1   :  { %6186 = vmatpush.bf16.msrb.mxu2 %v9091_v50  ;;  %v9505_v50 = vld [vmem:[#allocation2 + $0x18c] sm:$0xf]  ;;  %v5946_v62 = vpop.f32.mrf.mxu3  ;;  %v7735_v9 = vor.u32 %v9577_v63, %v7732_v56  ;;  %v5958_v48 = vadd.f32 %v5957_v8, %v5945_v10  ;;  %v7876_v56 = vld [vmem:[#allocation2 + $0x4f8] sm:$0xf0] }
 0x5c2   :  { %6199 = vmatpush.bf16.msrb.mxu3 %v9219_v59  ;;  %6176 = vmatpush.bf16.msrb.mxu1 %v8915_v61  ;;  %v9545_v59 = vld [vmem:[#allocation2 + $0x2cc] sm:$0xf]  ;;  %v7447_v1 = vor.u32 %v9505_v50, %v7444_v51  ;;  %v5970_v14 = vpop.f32.mrf.mxu1  ;;  %v7668_v8 = vld [vmem:[#allocation2 + $0x358] sm:$0xf0] }
 0x5c3   :  { %6164 = vmatmul.bf16.vlgmr.msrb.gmra.mxu0 %v10011_v26  ;;  %v9469_v61 = vld [vmem:[#allocation2 + $0x6c] sm:$0xf]  ;;  %v7719_v26 = vor.u32 %v9573_v20, %v7716_v19 }
 0x5c4   :  { %6208 = vmatpush.bf16.msra.mxu0 %v7367_v4  ;;  %v7300_v4 = vld [vmem:[#allocation2 + $0x78] sm:$0xf0]  ;;  %v9537_v10 = vld [vmem:[#allocation2 + $0x28c] sm:$0xf] }
 0x5c5   :  { %6187 = vmatpush.bf16.msrb.mxu2 %v9075_v6  ;;  %6177 = vmatmul.bf16.vlgmr.msrb.gmra.mxu1 %v10012_v37  ;;  %v7607_v6 = vor.u32 %v9545_v59, %v7604_v60  ;;  %v7303_v16 = vor.u32 %v9469_v61, %v7300_v4  ;;  %v9569_v30 = vld [vmem:[#allocation2 + $0x38c] sm:$0xf]  ;;  %v7415_v37 = vor.u32 %v9497_v27, %v7412_v25  ;;  %v7380_v60 = vld [vmem:[#allocation2 + $0x118] sm:$0xf0] }
 0x5c6   :  { %6221 = vmatpush.bf16.msra.mxu1 %v7495_v0  ;;  %6200 = vmatpush.bf16.msrb.mxu3 %v9203_v12  ;;  %v9501_v0 = vld [vmem:[#allocation2 + $0x16c] sm:$0xf]  ;;  %v7588_v12 = vld [vmem:[#allocation2 + $0x2b8] sm:$0xf0]  ;;  %v7703_v43 = vor.u32 %v9569_v30, %v7700_v33 }
 0x5c7   :  { %v7591_v24 = vor.u32 %v9541_v11, %v7588_v12  ;;  %v9457_v50 = vld [vmem:[#allocation2 + $0xc] sm:$0xf]  ;;  %v7540_v61 = vld [vmem:[#allocation2 + $0x258] sm:$0xf0] }
 0x5c8   :  { %6209 = vmatpush.bf16.msra.mxu0 %v7351_v21  ;;  %v7431_v21 = vor.u32 %v9501_v0, %v7428_v5  ;;  %v5959_v45 = vpop.f32.mrf.mxu0  ;;  %v9489_v59 = vld [vmem:[#allocation2 + $0x10c] sm:$0xf]  ;;  %v7652_v25 = vld [vmem:[#allocation2 + $0x338] sm:$0xf0] }
 0x5c9   :  { %6188 = vmatpush.bf16.msrb.mxu2 %v9059_v22  ;;  %v7284_v22 = vld [vmem:[#allocation2 + $0x58] sm:$0xf0]  ;;  %v9613_v63 = vld [vmem:[#allocation2 + $0x4ec] sm:$0xf] }
 0x5ca   :  { %6222 = vmatpush.bf16.msra.mxu1 %v7479_v23  ;;  %6201 = vmatpush.bf16.msrb.mxu3 %v9187_v18  ;;  %v12630_v23 = vadd.f32 %v5970_v14, %v5958_v48  ;;  %v7572_v18 = vld [vmem:[#allocation2 + $0x298] sm:$0xf0]  ;;  %v7287_v29 = vor.u32 %v9465_v15, %v7284_v22  ;;  %v5972_v51 = vpop.f32.mrf.mxu1  ;;  %v9645_v4 = vld [vmem:[#allocation2 + $0x5ec] sm:$0xf]  ;;  %v7879_v11 = vor.u32 %v9613_v63, %v7876_v56 }
 0x5cb   :  { %v7575_v39 = vor.u32 %v9537_v10, %v7572_v18  ;;  %v9561_v5 = vld [vmem:[#allocation2 + $0x34c] sm:$0xf]  ;;  %v7988_v15 = vld [vmem:[#allocation2 + $0x5d8] sm:$0xf0] }
 0x5cc   :  { %6210 = vmatpush.bf16.msra.mxu0 %v7335_v40  ;;  %v9493_v40 = vld [vmem:[#allocation2 + $0x12c] sm:$0xf]  ;;  %v7671_v19 = vor.u32 %v9561_v5, %v7668_v8  ;;  %v7508_v33 = vld [vmem:[#allocation2 + $0x218] sm:$0xf0] }
 0x5cd   :  { %6189 = vmatpush.bf16.msrb.mxu2 %v9043_v34  ;;  %v9533_v34 = vld [vmem:[#allocation2 + $0x26c] sm:$0xf]  ;;  %v7399_v52 = vor.u32 %v9493_v40, %v7396_v42  ;;  %v8132_v42 = vld [vmem:[#allocation2 + $0x6f8] sm:$0xf0] }
 0x5ce   :  { %6223 = vmatpush.bf16.msra.mxu1 %v7463_v44  ;;  %6202 = vmatpush.bf16.msrb.mxu3 %v9171_v49  ;;  %v7556_v44 = vld [vmem:[#allocation2 + $0x278] sm:$0xf0]  ;;  %v9525_v48 = vld [vmem:[#allocation2 + $0x22c] sm:$0xf] }
 0x5cf   :  { %v7684_v49 = vld [vmem:[#allocation2 + $0x378] sm:$0xf0]  ;;  %v7559_v62 = vor.u32 %v9533_v34, %v7556_v44  ;;  %v9609_v14 = vld [vmem:[#allocation2 + $0x4cc] sm:$0xf] }
 0x5d0   :  { %6190 = vmatmul.bf16.vlgmr.msrb.gmra.mxu2 %v10013_v3  ;;  %6211 = vmatpush.bf16.msra.mxu0 %v7319_v54  ;;  %v9529_v54 = vld [vmem:[#allocation2 + $0x24c] sm:$0xf]  ;;  %v7636_v34 = vld [vmem:[#allocation2 + $0x318] sm:$0xf0] }
 0x5d1   :  { %6234 = vmatpush.bf16.msra.mxu2 %v7623_v47  ;;  %6203 = vmatmul.bf16.vlgmr.msrb.gmra.mxu3 %v10014_v53  ;;  %v9565_v47 = vld [vmem:[#allocation2 + $0x36c] sm:$0xf]  ;;  %v7543_v12 = vor.u32 %v9529_v54, %v7540_v61  ;;  %v7524_v53 = vld [vmem:[#allocation2 + $0x238] sm:$0xf0] }
 0x5d2   :  { %6247 = vmatpush.bf16.msra.mxu3 %v7751_v58  ;;  %6224 = vmatpush.bf16.msra.mxu1 %v7447_v1  ;;  %v7252_v58 = vld [vmem:[#allocation2 + $0x18] sm:$0xf0]  ;;  %v7687_v1 = vor.u32 %v9565_v47, %v7684_v49  ;;  %v9557_v27 = vld [vmem:[#allocation2 + $0x32c] sm:$0xf] }
 0x5d3   :  { %v7255_v0 = vor.u32 %v9457_v50, %v7252_v58  ;;  %v5983_v20 = vpop.f32.mrf.mxu2  ;;  %v9521_v10 = vld [vmem:[#allocation2 + $0x20c] sm:$0xf]  ;;  %v7828_v51 = vld [vmem:[#allocation2 + $0x498] sm:$0xf0] }
 0x5d4   :  { %6212 = vmatpush.bf16.msra.mxu0 %v7303_v16  ;;  %v7860_v16 = vld [vmem:[#allocation2 + $0x4d8] sm:$0xf0]  ;;  %v5984_v22 = vadd.f32 %v5983_v20, %v12630_v23  ;;  %v7655_v23 = vor.u32 %v9557_v27, %v7652_v25  ;;  %v9637_v41 = vld [vmem:[#allocation2 + $0x5ac] sm:$0xf]  ;;  %v7511_v47 = vor.u32 %v9521_v10, %v7508_v33 }
 0x5d5   :  { %6235 = vmatpush.bf16.msra.mxu2 %v7607_v6  ;;  %v8004_v6 = vld [vmem:[#allocation2 + $0x5f8] sm:$0xf0]  ;;  %v9677_v40 = vld [vmem:[#allocation2 + $0x6ec] sm:$0xf] }
 0x5d6   :  { %6248 = vmatpush.bf16.msra.mxu3 %v7735_v9  ;;  %6225 = vmatpush.bf16.msra.mxu1 %v7431_v21  ;;  %v7383_v9 = vor.u32 %v9489_v59, %v7380_v60  ;;  %v8007_v3 = vor.u32 %v9645_v4, %v8004_v6  ;;  %v9641_v21 = vld [vmem:[#allocation2 + $0x5cc] sm:$0xf]  ;;  %v7956_v59 = vld [vmem:[#allocation2 + $0x598] sm:$0xf0] }
 0x5d7   :  { %v7991_v30 = vor.u32 %v9641_v21, %v7988_v15  ;;  %v9709_v45 = vld [vmem:[#allocation2 + $0x7ec] sm:$0xf]  ;;  %v8116_v54 = vld [vmem:[#allocation2 + $0x6d8] sm:$0xf0] }
 0x5d8   :  { %6213 = vmatpush.bf16.msra.mxu0 %v7287_v29  ;;  %v7527_v29 = vor.u32 %v9525_v48, %v7524_v53  ;;  %v9601_v50 = vld [vmem:[#allocation2 + $0x48c] sm:$0xf]  ;;  %v8244_v61 = vld [vmem:[#allocation2 + $0x7d8] sm:$0xf0] }
 0x5d9   :  { %6236 = vmatpush.bf16.msra.mxu2 %v7591_v24  ;;  %v5996_v24 = vpop.f32.mrf.mxu3  ;;  %v9633_v58 = vld [vmem:[#allocation2 + $0x58c] sm:$0xf]  ;;  %v7831_v56 = vor.u32 %v9601_v50, %v7828_v51  ;;  %v8100_v48 = vld [vmem:[#allocation2 + $0x6b8] sm:$0xf0] }
 0x5da   :  { %6249 = vmatpush.bf16.msra.mxu3 %v7719_v26  ;;  %6226 = vmatpush.bf16.msra.mxu1 %v7415_v37  ;;  %v7863_v26 = vor.u32 %v9609_v14, %v7860_v16  ;;  %v12633_v18 = vadd.f32 %v5996_v24, %v5984_v22  ;;  %v9605_v37 = vld [vmem:[#allocation2 + $0x4ac] sm:$0xf]  ;;  %v7959_v4 = vor.u32 %v9633_v58, %v7956_v59  ;;  %v8228_v53 = vld [vmem:[#allocation2 + $0x7b8] sm:$0xf0] }
 0x5db   :  { %v7847_v44 = vor.u32 %v9605_v37, %v7844_v38  ;;  %v5985_v60 = vpop.f32.mrf.mxu2  ;;  %v9597_v6 = vld [vmem:[#allocation2 + $0x46c] sm:$0xf]  ;;  %v7796_v22 = vld [vmem:[#allocation2 + $0x458] sm:$0xf0] }
 0x5dc   :  { %6214 = vmatpush.bf16.msra.mxu0 %v7271_v46  ;;  %v8260_v46 = vld [vmem:[#allocation2 + $0x7f8] sm:$0xf0]  ;;  %v9629_v8 = vld [vmem:[#allocation2 + $0x56c] sm:$0xf] }
 0x5dd   :  { %6237 = vmatpush.bf16.msra.mxu2 %v7575_v39  ;;  %v7972_v39 = vld [vmem:[#allocation2 + $0x5b8] sm:$0xf0]  ;;  %v9593_v15 = vld [vmem:[#allocation2 + $0x44c] sm:$0xf] }
 0x5de   :  { %6250 = vmatpush.bf16.msra.mxu3 %v7703_v43  ;;  %6227 = vmatpush.bf16.msra.mxu1 %v7399_v52  ;;  %v9553_v43 = vld [vmem:[#allocation2 + $0x30c] sm:$0xf]  ;;  %v7975_v49 = vor.u32 %v9637_v41, %v7972_v39  ;;  %v8084_v10 = vld [vmem:[#allocation2 + $0x698] sm:$0xf0] }
 0x5df   :  { %v7639_v52 = vor.u32 %v9553_v43, %v7636_v34  ;;  %v9625_v25 = vld [vmem:[#allocation2 + $0x54c] sm:$0xf]  ;;  %v8212_v33 = vld [vmem:[#allocation2 + $0x798] sm:$0xf0] }
 0x5e0   :  { %6215 = vmatpush.bf16.msra.mxu0 %v7255_v0  ;;  %v7812_v0 = vld [vmem:[#allocation2 + $0x478] sm:$0xf0]  ;;  %v9589_v37 = vld [vmem:[#allocation2 + $0x42c] sm:$0xf] }
 0x5e1   :  { %6238 = vmatpush.bf16.msra.mxu2 %v7559_v62  ;;  %v9673_v62 = vld [vmem:[#allocation2 + $0x6cc] sm:$0xf]  ;;  %v5998_v63 = vpop.f32.mrf.mxu3  ;;  %v7815_v20 = vor.u32 %v9597_v6, %v7812_v0  ;;  %v7780_v38 = vld [vmem:[#allocation2 + $0x438] sm:$0xf0] }
 0x5e2   :  { %6251 = vmatpush.bf16.msra.mxu3 %v7687_v1  ;;  %6228 = vmatpush.bf16.msra.mxu1 %v7383_v9  ;;  %v9705_v1 = vld [vmem:[#allocation2 + $0x7cc] sm:$0xf]  ;;  %v8119_v5 = vor.u32 %v9673_v62, %v8116_v54  ;;  %v7940_v9 = vld [vmem:[#allocation2 + $0x578] sm:$0xf0]  ;;  %v6022_v16 = vpop.f32.mrf.mxu1 }
 0x5e3   :  { %6216 = vmatmul.bf16.vlgmr.msra.gmra.mxu0 %v12557_v13  ;;  %v8135_v13 = vor.u32 %v9677_v40, %v8132_v42  ;;  %v7943_v21 = vor.u32 %v9629_v8, %v7940_v9  ;;  %v9621_v41 = vld [vmem:[#allocation2 + $0x52c] sm:$0xf]  ;;  %v7908_v39 = vld [vmem:[#allocation2 + $0x538] sm:$0xf0] }
 0x5e4   :  { %6260 = vmatpush.bf16.msrb.mxu0 %v7879_v11  ;;  %v6009_v11 = vpop.f32.mrf.mxu0  ;;  %v9661_v42 = vld [vmem:[#allocation2 + $0x66c] sm:$0xf]  ;;  %v8068_v43 = vld [vmem:[#allocation2 + $0x678] sm:$0xf0]  ;;  %v7911_v50 = vor.u32 %v9621_v41, %v7908_v39 }
 0x5e5   :  { %6239 = vmatpush.bf16.msra.mxu2 %v7543_v12  ;;  %6229 = vmatmul.bf16.vlgmr.msra.gmra.mxu1 %v12560_v17  ;;  %v8263_v17 = vor.u32 %v9709_v45, %v8260_v46  ;;  %v8247_v12 = vor.u32 %v9705_v1, %v8244_v61  ;;  %v6010_v14 = vadd.f32 %v6009_v11, %v12587_v31  ;;  %v9665_v31 = vld [vmem:[#allocation2 + $0x68c] sm:$0xf]  ;;  %v8196_v46 = vld [vmem:[#allocation2 + $0x778] sm:$0xf0] }
 0x5e6   :  { %6273 = vmatpush.bf16.msrb.mxu1 %v8007_v3  ;;  %6252 = vmatpush.bf16.msra.mxu3 %v7671_v19  ;;  %v9669_v3 = vld [vmem:[#allocation2 + $0x6ac] sm:$0xf]  ;;  %v7764_v51 = vld [vmem:[#allocation2 + $0x418] sm:$0xf0]  ;;  %v8071_v58 = vor.u32 %v9661_v42, %v8068_v43 }
 0x5e7   :  { %v9701_v19 = vld [vmem:[#allocation2 + $0x7ac] sm:$0xf]  ;;  %v12640_v24 = vadd.f32 %v6022_v16, %v6010_v14  ;;  %v8103_v27 = vor.u32 %v9669_v3, %v8100_v48  ;;  %v8052_v54 = vld [vmem:[#allocation2 + $0x658] sm:$0xf0] }
 0x5e8   :  { %6261 = vmatpush.bf16.msrb.mxu0 %v7863_v26  ;;  %v7924_v26 = vld [vmem:[#allocation2 + $0x558] sm:$0xf0]  ;;  %v9693_v45 = vld [vmem:[#allocation2 + $0x76c] sm:$0xf] }
 0x5e9   :  { %6240 = vmatpush.bf16.msra.mxu2 %v7527_v29  ;;  %v7799_v29 = vor.u32 %v9593_v15, %v7796_v22  ;;  %v9657_v59 = vld [vmem:[#allocation2 + $0x64c] sm:$0xf]  ;;  %v8199_v62 = vor.u32 %v9693_v45, %v8196_v46  ;;  %v8036_v14 = vld [vmem:[#allocation2 + $0x638] sm:$0xf0] }
 0x5ea   :  { %6274 = vmatpush.bf16.msrb.mxu1 %v7991_v30  ;;  %6253 = vmatpush.bf16.msra.mxu3 %v7655_v23  ;;  %v9697_v30 = vld [vmem:[#allocation2 + $0x78c] sm:$0xf]  ;;  %v8087_v23 = vor.u32 %v9665_v31, %v8084_v10  ;;  %v8164_v15 = vld [vmem:[#allocation2 + $0x738] sm:$0xf0] }
 0x5eb   :  { %v8215_v40 = vor.u32 %v9697_v30, %v8212_v33  ;;  %v9741_v60 = vld [vmem:[#allocation2 + $0x8ec] sm:$0xf]  ;;  %v8020_v31 = vld [vmem:[#allocation2 + $0x618] sm:$0xf0] }
 0x5ec   :  { %6262 = vmatpush.bf16.msrb.mxu0 %v7847_v44  ;;  %v6011_v34 = vpop.f32.mrf.mxu0  ;;  %v7783_v44 = vor.u32 %v9589_v37, %v7780_v38  ;;  %v9773_v63 = vld [vmem:[#allocation2 + $0x9ec] sm:$0xf]  ;;  %v8484_v33 = vld [vmem:[#allocation2 + $0x9b8] sm:$0xf0] }
 0x5ed   :  { %6241 = vmatpush.bf16.msra.mxu2 %v7511_v47  ;;  %v9585_v47 = vld [vmem:[#allocation2 + $0x40c] sm:$0xf]  ;;  %v8644_v37 = vld [vmem:[#allocation2 + $0xaf8] sm:$0xf0] }
 0x5ee   :  { %6275 = vmatpush.bf16.msrb.mxu1 %v7975_v49  ;;  %6254 = vmatpush.bf16.msra.mxu3 %v7639_v52  ;;  %v6024_v49 = vpop.f32.mrf.mxu1  ;;  %v7892_v52 = vld [vmem:[#allocation2 + $0x518] sm:$0xf0]  ;;  %v7767_v1 = vor.u32 %v9585_v47, %v7764_v51  ;;  %v9689_v61 = vld [vmem:[#allocation2 + $0x74c] sm:$0xf] }
 0x5ef   :  { %v9653_v9 = vld [vmem:[#allocation2 + $0x62c] sm:$0xf]  ;;  %v8468_v47 = vld [vmem:[#allocation2 + $0x998] sm:$0xf0] }
 0x5f0   :  { %6242 = vmatmul.bf16.vlgmr.msra.gmra.mxu2 %v12563_v32  ;;  %6263 = vmatpush.bf16.msrb.mxu0 %v7831_v56  ;;  %v8231_v32 = vor.u32 %v9701_v19, %v8228_v53  ;;  %v8516_v56 = vld [vmem:[#allocation2 + $0x9f8] sm:$0xf0]  ;;  %v9737_v11 = vld [vmem:[#allocation2 + $0x8cc] sm:$0xf] }
 0x5f1   :  { %6286 = vmatpush.bf16.msrb.mxu2 %v8135_v13  ;;  %6255 = vmatmul.bf16.vlgmr.msra.gmra.mxu3 %v12565_v36  ;;  %v7927_v36 = vor.u32 %v9625_v25, %v7924_v26  ;;  %v9617_v13 = vld [vmem:[#allocation2 + $0x50c] sm:$0xf]  ;;  %v8519_v8 = vor.u32 %v9773_v63, %v8516_v56  ;;  %v8039_v26 = vor.u32 %v9653_v9, %v8036_v14  ;;  %v8628_v51 = vld [vmem:[#allocation2 + $0xad8] sm:$0xf0] }
 0x5f2   :  { %6299 = vmatpush.bf16.msrb.mxu3 %v8263_v17  ;;  %6276 = vmatpush.bf16.msrb.mxu1 %v7959_v4  ;;  %v8388_v17 = vld [vmem:[#allocation2 + $0x8f8] sm:$0xf0]  ;;  %v7895_v6 = vor.u32 %v9617_v13, %v7892_v52  ;;  %v9769_v16 = vld [vmem:[#allocation2 + $0x9cc] sm:$0xf] }
 0x5f3   :  { %v8180_v4 = vld [vmem:[#allocation2 + $0x758] sm:$0xf0]  ;;  %v8391_v0 = vor.u32 %v9741_v60, %v8388_v17  ;;  %v6035_v3 = vpop.f32.mrf.mxu2  ;;  %v9733_v10 = vld [vmem:[#allocation2 + $0x8ac] sm:$0xf] }
 0x5f4   :  { %6264 = vmatpush.bf16.msrb.mxu0 %v7815_v20  ;;  %v8183_v48 = vor.u32 %v9689_v61, %v8180_v4  ;;  %v8500_v20 = vld [vmem:[#allocation2 + $0x9d8] sm:$0xf0]  ;;  %v6036_v19 = vadd.f32 %v6035_v3, %v12640_v24  ;;  %v6048_v53 = vpop.f32.mrf.mxu3  ;;  %v9765_v30 = vld [vmem:[#allocation2 + $0x9ac] sm:$0xf] }
 0x5f5   :  { %6287 = vmatpush.bf16.msrb.mxu2 %v8119_v5  ;;  %v8055_v5 = vor.u32 %v9657_v59, %v8052_v54  ;;  %v9681_v38 = vld [vmem:[#allocation2 + $0x70c] sm:$0xf]  ;;  %v8487_v43 = vor.u32 %v9765_v30, %v8484_v33  ;;  %v8756_v59 = vld [vmem:[#allocation2 + $0xbd8] sm:$0xf0] }
 0x5f6   :  { %6300 = vmatpush.bf16.msrb.mxu3 %v8247_v12  ;;  %6277 = vmatpush.bf16.msrb.mxu1 %v7943_v21  ;;  %v8372_v12 = vld [vmem:[#allocation2 + $0x8d8] sm:$0xf0]  ;;  %v9685_v21 = vld [vmem:[#allocation2 + $0x72c] sm:$0xf]  ;;  %v6049_v25 = vadd.f32 %v6048_v53, %v6036_v19 }
 0x5f7   :  { %v8375_v22 = vor.u32 %v9737_v11, %v8372_v12  ;;  %v8167_v24 = vor.u32 %v9685_v21, %v8164_v15  ;;  %v9837_v39 = vld [vmem:[#allocation2 + $0xbec] sm:$0xf]  ;;  %v8452_v56 = vld [vmem:[#allocation2 + $0x978] sm:$0xf0] }
 0x5f8   :  { %6265 = vmatpush.bf16.msrb.mxu0 %v7799_v29  ;;  %v8356_v29 = vld [vmem:[#allocation2 + $0x8b8] sm:$0xf0]  ;;  %v9729_v34 = vld [vmem:[#allocation2 + $0x88c] sm:$0xf] }
 0x5f9   :  { %6288 = vmatpush.bf16.msrb.mxu2 %v8103_v27  ;;  %v9649_v27 = vld [vmem:[#allocation2 + $0x60c] sm:$0xf]  ;;  %v8359_v41 = vor.u32 %v9733_v10, %v8356_v29  ;;  %v8740_v11 = vld [vmem:[#allocation2 + $0xbb8] sm:$0xf0] }
 0x5fa   :  { %6301 = vmatpush.bf16.msrb.mxu3 %v8231_v32  ;;  %6278 = vmatpush.bf16.msrb.mxu1 %v7927_v36  ;;  %v8503_v32 = vor.u32 %v9769_v16, %v8500_v20  ;;  %v9805_v36 = vld [vmem:[#allocation2 + $0xaec] sm:$0xf]  ;;  %v8023_v42 = vor.u32 %v9649_v27, %v8020_v31  ;;  %v8436_v19 = vld [vmem:[#allocation2 + $0x958] sm:$0xf0] }
 0x5fb   :  { %v9761_v46 = vld [vmem:[#allocation2 + $0x98c] sm:$0xf]  ;;  %v6037_v49 = vpop.f32.mrf.mxu2  ;;  %v8596_v21 = vld [vmem:[#allocation2 + $0xa98] sm:$0xf0] }
 0x5fc   :  { %6266 = vmatpush.bf16.msrb.mxu0 %v7783_v44  ;;  %v8340_v44 = vld [vmem:[#allocation2 + $0x898] sm:$0xf0]  ;;  %v6050_v13 = vpop.f32.mrf.mxu3  ;;  %v8471_v60 = vor.u32 %v9761_v46, %v8468_v47  ;;  %v9725_v17 = vld [vmem:[#allocation2 + $0x86c] sm:$0xf] }
 0x5fd   :  { %6289 = vmatpush.bf16.msrb.mxu2 %v8087_v23  ;;  %v8148_v23 = vld [vmem:[#allocation2 + $0x718] sm:$0xf0]  ;;  %v8343_v52 = vor.u32 %v9729_v34, %v8340_v44  ;;  %v9757_v63 = vld [vmem:[#allocation2 + $0x96c] sm:$0xf] }
 0x5fe   :  { %6302 = vmatpush.bf16.msrb.mxu3 %v8215_v40  ;;  %6279 = vmatpush.bf16.msrb.mxu1 %v7911_v50  ;;  %v8772_v40 = vld [vmem:[#allocation2 + $0xbf8] sm:$0xf0]  ;;  %v8151_v45 = vor.u32 %v9681_v38, %v8148_v23  ;;  %v9801_v50 = vld [vmem:[#allocation2 + $0xacc] sm:$0xf]  ;;  %v8455_v12 = vor.u32 %v9757_v63, %v8452_v56 }
 0x5ff   :  { %v8631_v54 = vor.u32 %v9801_v50, %v8628_v51  ;;  %v9797_v4 = vld [vmem:[#allocation2 + $0xaac] sm:$0xf]  ;;  %v8724_v27 = vld [vmem:[#allocation2 + $0xb98] sm:$0xf0] }
 0x600   :  { %6267 = vmatpush.bf16.msrb.mxu0 %v7767_v1  ;;  %v6061_v1 = vpop.f32.mrf.mxu0  ;;  %v9829_v9 = vld [vmem:[#allocation2 + $0xbac] sm:$0xf]  ;;  %v8420_v10 = vld [vmem:[#allocation2 + $0x938] sm:$0xf0] }
 0x601   :  { %6290 = vmatpush.bf16.msrb.mxu2 %v8071_v58  ;;  %v9833_v58 = vld [vmem:[#allocation2 + $0xbcc] sm:$0xf]  ;;  %v8580_v30 = vld [vmem:[#allocation2 + $0xa78] sm:$0xf0] }
 0x602   :  { %6303 = vmatpush.bf16.msrb.mxu3 %v8199_v62  ;;  %6280 = vmatpush.bf16.msrb.mxu1 %v7895_v6  ;;  %v8324_v62 = vld [vmem:[#allocation2 + $0x878] sm:$0xf0]  ;;  %v8759_v61 = vor.u32 %v9833_v58, %v8756_v59  ;;  %v9721_v3 = vld [vmem:[#allocation2 + $0x84c] sm:$0xf] }
 0x603   :  { %6268 = vmatmul.bf16.vlgmr.msrb.gmra.mxu0 %v12569_v28  ;;  %v8647_v28 = vor.u32 %v9805_v36, %v8644_v37  ;;  %v8612_v6 = vld [vmem:[#allocation2 + $0xab8] sm:$0xf0]  ;;  %v9753_v20 = vld [vmem:[#allocation2 + $0x94c] sm:$0xf] }
 0x604   :  { %6312 = vmatpush.bf16.msra.mxu0 %v8391_v0  ;;  %v6062_v0 = vadd.f32 %v6061_v1, %v6049_v25  ;;  %v8615_v16 = vor.u32 %v9797_v4, %v8612_v6  ;;  %v9793_v53 = vld [vmem:[#allocation2 + $0xa8c] sm:$0xf]  ;;  %v8708_v38 = vld [vmem:[#allocation2 + $0xb78] sm:$0xf0] }
 0x605   :  { %6291 = vmatpush.bf16.msrb.mxu2 %v8055_v5  ;;  %6281 = vmatmul.bf16.vlgmr.msrb.gmra.mxu1 %v12571_v35  ;;  %v8775_v35 = vor.u32 %v9837_v39, %v8772_v40  ;;  %v6074_v5 = vpop.f32.mrf.mxu1  ;;  %v9717_v25 = vld [vmem:[#allocation2 + $0x82c] sm:$0xf]  ;;  %v8276_v40 = vld [vmem:[#allocation2 + $0x818] sm:$0xf0] }
 0x606   :  { %6325 = vmatpush.bf16.msra.mxu1 %v8519_v8  ;;  %6304 = vmatpush.bf16.msrb.mxu3 %v8183_v48  ;;  %v8327_v8 = vor.u32 %v9725_v17, %v8324_v62  ;;  %v8308_v48 = vld [vmem:[#allocation2 + $0x858] sm:$0xf0]  ;;  %v12647_v14 = vadd.f32 %v6074_v5, %v6062_v0  ;;  %v9749_v31 = vld [vmem:[#allocation2 + $0x92c] sm:$0xf] }
 0x607   :  { %v8311_v15 = vor.u32 %v9721_v3, %v8308_v48  ;;  %v9821_v37 = vld [vmem:[#allocation2 + $0xb6c] sm:$0xf]  ;;  %v8423_v39 = vor.u32 %v9749_v31, %v8420_v10  ;;  %v8564_v47 = vld [vmem:[#allocation2 + $0xa58] sm:$0xf0] }
 0x608   :  { %6313 = vmatpush.bf16.msra.mxu0 %v8375_v22  ;;  %v9825_v22 = vld [vmem:[#allocation2 + $0xb8c] sm:$0xf]  ;;  %v6063_v33 = vpop.f32.mrf.mxu0  ;;  %v8711_v46 = vor.u32 %v9821_v37, %v8708_v38  ;;  %v8692_v13 = vld [vmem:[#allocation2 + $0xb58] sm:$0xf0] }
 0x609   :  { %6292 = vmatpush.bf16.msrb.mxu2 %v8039_v26  ;;  %v8292_v26 = vld [vmem:[#allocation2 + $0x838] sm:$0xf0]  ;;  %v8727_v29 = vor.u32 %v9825_v22, %v8724_v27  ;;  %v9713_v23 = vld [vmem:[#allocation2 + $0x80c] sm:$0xf]  ;;  %v10016_v22 = vld [vmem:[#allocation1 + $0x9] sm:$0xff] }
 0x60a   :  { %6326 = vmatpush.bf16.msra.mxu1 %v8503_v32  ;;  %6305 = vmatpush.bf16.msrb.mxu3 %v8167_v24  ;;  %v8599_v32 = vor.u32 %v9793_v53, %v8596_v21  ;;  %v9789_v24 = vld [vmem:[#allocation2 + $0xa6c] sm:$0xf]  ;;  %v8295_v36 = vor.u32 %v9717_v25, %v8292_v26  ;;  %v8279_v50 = vor.u32 %v9713_v23, %v8276_v40  ;;  %v8548_v1 = vld [vmem:[#allocation2 + $0xa38] sm:$0xf0] }
 0x60b   :  { %v8583_v34 = vor.u32 %v9789_v24, %v8580_v30  ;;  %v9785_v44 = vld [vmem:[#allocation2 + $0xa4c] sm:$0xf]  ;;  %v9012_v4 = vld [vmem:[#allocation2 + $0xdd8] sm:$0xf0] }
 0x60c   :  { %6314 = vmatpush.bf16.msra.mxu0 %v8359_v41  ;;  %v9901_v49 = vld [vmem:[#allocation2 + $0xdec] sm:$0xf]  ;;  %v8567_v59 = vor.u32 %v9785_v44, %v8564_v47  ;;  %v8996_v21 = vld [vmem:[#allocation2 + $0xdb8] sm:$0xf0] }
 0x60d   :  { %6293 = vmatpush.bf16.msrb.mxu2 %v8023_v42  ;;  %v6076_v41 = vpop.f32.mrf.mxu1  ;;  %v9745_v42 = vld [vmem:[#allocation2 + $0x90c] sm:$0xf]  ;;  %v9156_v27 = vld [vmem:[#allocation2 + $0xef8] sm:$0xf0] }
 0x60e   :  { %6327 = vmatpush.bf16.msra.mxu1 %v8487_v43  ;;  %6306 = vmatpush.bf16.msrb.mxu3 %v8151_v45  ;;  %v8404_v43 = vld [vmem:[#allocation2 + $0x918] sm:$0xf0]  ;;  %v9817_v51 = vld [vmem:[#allocation2 + $0xb4c] sm:$0xf] }
 0x60f   :  { %v8900_v45 = vld [vmem:[#allocation2 + $0xcf8] sm:$0xf0]  ;;  %v9781_v17 = vld [vmem:[#allocation2 + $0xa2c] sm:$0xf]  ;;  %v8695_v56 = vor.u32 %v9817_v51, %v8692_v13 }
 0x610   :  { %6294 = vmatmul.bf16.vlgmr.msrb.gmra.mxu2 %v12575_v55  ;;  %6315 = vmatpush.bf16.msra.mxu0 %v8343_v52  ;;  %v8743_v55 = vor.u32 %v9829_v9, %v8740_v11  ;;  %v8407_v52 = vor.u32 %v9745_v42, %v8404_v43  ;;  %v9865_v62 = vld [vmem:[#allocation2 + $0xccc] sm:$0xf]  ;;  %v8551_v3 = vor.u32 %v9781_v17, %v8548_v1  ;;  %v8660_v25 = vld [vmem:[#allocation2 + $0xb18] sm:$0xf0] }
 0x611   :  { %6338 = vmatpush.bf16.msra.mxu2 %v8647_v28  ;;  %6307 = vmatmul.bf16.vlgmr.msrb.gmra.mxu3 %v12577_v57  ;;  %v8439_v57 = vor.u32 %v9753_v20, %v8436_v19  ;;  %v9869_v28 = vld [vmem:[#allocation2 + $0xcec] sm:$0xf]  ;;  %v8868_v19 = vld [vmem:[#allocation2 + $0xcb8] sm:$0xf0] }
 0x612   :  { %6351 = vmatpush.bf16.msra.mxu3 %v8775_v35  ;;  %6328 = vmatpush.bf16.msra.mxu1 %v8471_v60  ;;  %v9028_v35 = vld [vmem:[#allocation2 + $0xdf8] sm:$0xf0]  ;;  %v8903_v58 = vor.u32 %v9869_v28, %v8900_v45  ;;  %v9813_v5 = vld [vmem:[#allocation2 + $0xb2c] sm:$0xf] }
 0x613   :  { %v9031_v60 = vor.u32 %v9901_v49, %v9028_v35  ;;  %v6087_v63 = vpop.f32.mrf.mxu2  ;;  %v9777_v11 = vld [vmem:[#allocation2 + $0xa0c] sm:$0xf]  ;;  %v9284_v31 = vld [vmem:[#allocation2 + $0xff8] sm:$0xf0] }
 0x614   :  { %6316 = vmatpush.bf16.msra.mxu0 %v8327_v8  ;;  %v6088_v6 = vadd.f32 %v6087_v63, %v12647_v14  ;;  %v6100_v0 = vpop.f32.mrf.mxu3  ;;  %v8676_v8 = vld [vmem:[#allocation2 + $0xb38] sm:$0xf0]  ;;  %v9861_v20 = vld [vmem:[#allocation2 + $0xcac] sm:$0xf]  ;;  %v10018_v63 = vld [vmem:[#allocation1 + $0x1b] sm:$0xff] }
 0x615   :  { %6339 = vmatpush.bf16.msra.mxu2 %v8631_v54  ;;  %v8884_v54 = vld [vmem:[#allocation2 + $0xcd8] sm:$0xf0]  ;;  %v8679_v14 = vor.u32 %v9813_v5, %v8676_v8  ;;  %v9893_v53 = vld [vmem:[#allocation2 + $0xdac] sm:$0xf]  ;;  %v8871_v26 = vor.u32 %v9861_v20, %v8868_v19 }
 0x616   :  { %6352 = vmatpush.bf16.msra.mxu3 %v8759_v61  ;;  %6329 = vmatpush.bf16.msra.mxu1 %v8455_v12  ;;  %v9897_v61 = vld [vmem:[#allocation2 + $0xdcc] sm:$0xf]  ;;  %v8887_v9 = vor.u32 %v9865_v62, %v8884_v54  ;;  %v6101_v12 = vadd.f32 %v6100_v0, %v6088_v6  ;;  %v8852_v30 = vld [vmem:[#allocation2 + $0xc98] sm:$0xf0] }
 0x617   :  { %v9015_v48 = vor.u32 %v9897_v61, %v9012_v4  ;;  %v9857_v24 = vld [vmem:[#allocation2 + $0xc8c] sm:$0xf]  ;;  %v8980_v38 = vld [vmem:[#allocation2 + $0xd98] sm:$0xf0] }
 0x618   :  { %6317 = vmatpush.bf16.msra.mxu0 %v8311_v15  ;;  %v9933_v15 = vld [vmem:[#allocation2 + $0xeec] sm:$0xf]  ;;  %v9140_v40 = vld [vmem:[#allocation2 + $0xed8] sm:$0xf0]  ;;  %v8855_v43 = vor.u32 %v9857_v24, %v8852_v30 }
 0x619   :  { %6340 = vmatpush.bf16.msra.mxu2 %v8615_v16  ;;  %v8532_v16 = vld [vmem:[#allocation2 + $0xa18] sm:$0xf0]  ;;  %v9159_v33 = vor.u32 %v9933_v15, %v9156_v27  ;;  %v9889_v37 = vld [vmem:[#allocation2 + $0xd8c] sm:$0xf] }
 0x61a   :  { %6353 = vmatpush.bf16.msra.mxu3 %v8743_v55  ;;  %6330 = vmatpush.bf16.msra.mxu1 %v8439_v57  ;;  %v10015_v55 = vld [vmem:[#allocation1] sm:$0xff]  ;;  %v9809_v57 = vld [vmem:[#allocation2 + $0xb0c] sm:$0xf]  ;;  %v8535_v10 = vor.u32 %v9777_v11, %v8532_v16  ;;  %v8983_v28 = vor.u32 %v9889_v37, %v8980_v38 }
 0x61b   :  { %v6089_v23 = vpop.f32.mrf.mxu2  ;;  %v9268_v44 = vld [vmem:[#allocation2 + $0xfd8] sm:$0xf0]  ;;  %v9853_v45 = vld [vmem:[#allocation2 + $0xc6c] sm:$0xf] }
 0x61c   :  { %6318 = vmatpush.bf16.msra.mxu0 %v8295_v36  ;;  %v8663_v36 = vor.u32 %v9809_v57, %v8660_v25  ;;  %v6102_v42 = vpop.f32.mrf.mxu3  ;;  %v9885_v49 = vld [vmem:[#allocation2 + $0xd6c] sm:$0xf]  ;;  %v8964_v35 = vld [vmem:[#allocation2 + $0xd78] sm:$0xf0] }
 0x61d   :  { %6341 = vmatpush.bf16.msra.mxu2 %v8599_v32  ;;  %v9965_v32 = vld [vmem:[#allocation2 + $0xfec] sm:$0xf]  ;;  %v9252_v54 = vld [vmem:[#allocation2 + $0xfb8] sm:$0xf0] }
 0x61e   :  { %6354 = vmatpush.bf16.msra.mxu3 %v8727_v29  ;;  %6331 = vmatpush.bf16.msra.mxu1 %v8423_v39  ;;  %v8999_v29 = vor.u32 %v9893_v53, %v8996_v21  ;;  %v9287_v41 = vor.u32 %v9965_v32, %v9284_v31  ;;  %v9929_v39 = vld [vmem:[#allocation2 + $0xecc] sm:$0xf]  ;;  %v8820_v61 = vld [vmem:[#allocation2 + $0xc58] sm:$0xf0] }
 0x61f   :  { %v9143_v47 = vor.u32 %v9929_v39, %v9140_v40  ;;  %v9925_v13 = vld [vmem:[#allocation2 + $0xeac] sm:$0xf]  ;;  %v8948_v5 = vld [vmem:[#allocation2 + $0xd58] sm:$0xf0] }
 0x620   :  { %6319 = vmatpush.bf16.msra.mxu0 %v8279_v50  ;;  %v6113_v50 = vpop.f32.mrf.mxu0  ;;  %v9957_v62 = vld [vmem:[#allocation2 + $0xfac] sm:$0xf]  ;;  %v9108_v11 = vld [vmem:[#allocation2 + $0xe98] sm:$0xf0] }
 0x621   :  { %6342 = vmatpush.bf16.msra.mxu2 %v8583_v34  ;;  %v9961_v34 = vld [vmem:[#allocation2 + $0xfcc] sm:$0xf]  ;;  %v9255_v8 = vor.u32 %v9957_v62, %v9252_v54  ;;  %v8804_v19 = vld [vmem:[#allocation2 + $0xc38] sm:$0xf0] }
 0x622   :  { %6355 = vmatpush.bf16.msra.mxu3 %v8711_v46  ;;  %6332 = vmatpush.bf16.msra.mxu1 %v8407_v52  ;;  %v8836_v46 = vld [vmem:[#allocation2 + $0xc78] sm:$0xf0]  ;;  %v9271_v51 = vor.u32 %v9961_v34, %v9268_v44  ;;  %v9849_v1 = vld [vmem:[#allocation2 + $0xc4c] sm:$0xf]  ;;  %v6465_v44 = vld [vmem:[%s13042_s7 + $0xf8] sm:$0xff] }
 0x623   :  { %6320 = vmatmul.bf16.vlgmr.msra.gmra.mxu0 %v10015_v55  ;;  %v9124_v52 = vld [vmem:[#allocation2 + $0xeb8] sm:$0xf0]  ;;  %v8839_v17 = vor.u32 %v9853_v45, %v8836_v46  ;;  %v9881_v0 = vld [vmem:[#allocation2 + $0xd4c] sm:$0xf] }
 0x624   :  { %6364 = vmatpush.bf16.msrb.mxu0 %v8903_v58  ;;  %v10017_v58 = vld [vmem:[#allocation1 + $0x12] sm:$0xff]  ;;  %v9127_v6 = vor.u32 %v9925_v13, %v9124_v52  ;;  %v8951_v16 = vor.u32 %v9881_v0, %v8948_v5  ;;  %v8932_v53 = vld [vmem:[#allocation2 + $0xd38] sm:$0xf0] }
 0x625   :  { %6343 = vmatpush.bf16.msra.mxu2 %v8567_v59  ;;  %6333 = vmatmul.bf16.vlgmr.msra.gmra.mxu1 %v10016_v22  ;;  %v6114_v59 = vadd.f32 %v6113_v50, %v6101_v12  ;;  %v8823_v12 = vor.u32 %v9849_v1, %v8820_v61  ;;  %v9845_v20 = vld [vmem:[#allocation2 + $0xc2c] sm:$0xf]  ;;  %v9092_v22 = vld [vmem:[#allocation2 + $0xe78] sm:$0xf0]  ;;  %v6445_v5 = vld [vmem:[%s13042_s7 + $0x58] sm:$0xff] }
 0x626   :  { %6377 = vmatpush.bf16.msrb.mxu1 %v9031_v60  ;;  %6356 = vmatpush.bf16.msra.mxu3 %v8695_v56  ;;  %v6126_v60 = vpop.f32.mrf.mxu1  ;;  %v8967_v56 = vor.u32 %v9885_v49, %v8964_v35  ;;  %v9917_v15 = vld [vmem:[#allocation2 + $0xe6c] sm:$0xf]  ;;  %v8807_v57 = vor.u32 %v9845_v20, %v8804_v19  ;;  %v9076_v38 = vld [vmem:[#allocation2 + $0xe58] sm:$0xf0]  ;;  %v6459_v19 = vld [vmem:[%s13042_s7 + $0xc8] sm:$0xff] }
 0x627   :  { %v6127_v4 = vadd.f32 %v6126_v60, %v6114_v59  ;;  %v9949_v25 = vld [vmem:[#allocation2 + $0xf6c] sm:$0xf]  ;;  %v9095_v24 = vor.u32 %v9917_v15, %v9092_v22  ;;  %v9204_v39 = vld [vmem:[#allocation2 + $0xf58] sm:$0xf0]  ;;  %v6447_v60 = vld [vmem:[%s13042_s7 + $0x68] sm:$0xff] }
 0x628   :  { %6365 = vmatpush.bf16.msrb.mxu0 %v8887_v9  ;;  %v9921_v9 = vld [vmem:[#allocation2 + $0xe8c] sm:$0xf]  ;;  %v6115_v27 = vpop.f32.mrf.mxu0  ;;  %v9060_v46 = vld [vmem:[#allocation2 + $0xe38] sm:$0xf0] }
 0x629   :  { %6344 = vmatpush.bf16.msra.mxu2 %v8551_v3  ;;  %v9953_v3 = vld [vmem:[#allocation2 + $0xf8c] sm:$0xf]  ;;  %v9111_v55 = vor.u32 %v9921_v9, %v9108_v11  ;;  %v9188_v50 = vld [vmem:[#allocation2 + $0xf38] sm:$0xf0]  ;;  %v6461_v11 = vld [vmem:[%s13042_s7 + $0xd8] sm:$0xff] }
 0x62a   :  { %6378 = vmatpush.bf16.msrb.mxu1 %v9015_v48  ;;  %6357 = vmatpush.bf16.msra.mxu3 %v8679_v14  ;;  %v9236_v48 = vld [vmem:[#allocation2 + $0xf98] sm:$0xf0]  ;;  %v9877_v14 = vld [vmem:[#allocation2 + $0xd2c] sm:$0xf] }
 0x62b   :  { %v9239_v21 = vor.u32 %v9953_v3, %v9236_v48  ;;  %v8935_v31 = vor.u32 %v9877_v14, %v8932_v53  ;;  %v9873_v30 = vld [vmem:[#allocation2 + $0xd0c] sm:$0xf]  ;;  %v10019_v59 = vld [vmem:[#allocation1 + $0x24] sm:$0xff] }
 0x62c   :  { %6366 = vmatpush.bf16.msrb.mxu0 %v8871_v26  ;;  %v9220_v26 = vld [vmem:[#allocation2 + $0xf78] sm:$0xf0]  ;;  %v9913_v37 = vld [vmem:[#allocation2 + $0xe4c] sm:$0xf] }
 0x62d   :  { %6345 = vmatpush.bf16.msra.mxu2 %v8535_v10  ;;  %v9841_v10 = vld [vmem:[#allocation2 + $0xc0c] sm:$0xf]  ;;  %v9079_v42 = vor.u32 %v9913_v37, %v9076_v38  ;;  %v9044_v54 = vld [vmem:[#allocation2 + $0xe18] sm:$0xf0]  ;;  %v6437_v38 = vld [vmem:[%s13042_s7 + $0x18] sm:$0xff] }
 0x62e   :  { %6379 = vmatpush.bf16.msrb.mxu1 %v8999_v29  ;;  %6358 = vmatpush.bf16.msra.mxu3 %v8663_v36  ;;  %v6128_v32 = vpop.f32.mrf.mxu1  ;;  %v8788_v29 = vld [vmem:[#allocation2 + $0xc18] sm:$0xf0]  ;;  %v9223_v36 = vor.u32 %v9949_v25, %v9220_v26  ;;  %v9909_v45 = vld [vmem:[#allocation2 + $0xe2c] sm:$0xf]  ;;  %v6457_v25 = vld [vmem:[%s13042_s7 + $0xb8] sm:$0xff] }
 0x62f   :  { %v8791_v23 = vor.u32 %v9841_v10, %v8788_v29  ;;  %v9941_v35 = vld [vmem:[#allocation2 + $0xf2c] sm:$0xf]  ;;  %v9172_v1 = vld [vmem:[#allocation2 + $0xf18] sm:$0xf0]  ;;  %v12716_v10 = vld [vmem:[%s13041_s6] sm:$0xf] }
 0x630   :  { %6346 = vmatmul.bf16.vlgmr.msra.gmra.mxu2 %v10017_v58  ;;  %6367 = vmatpush.bf16.msrb.mxu0 %v8855_v43  ;;  %v6449_v43 = vld [vmem:[%s13042_s7 + $0x78] sm:$0xff]  ;;  %v6464_v13 = vld [vmem:[%s13042_s7 + $0xf0] sm:$0xff]  ;;  %v9063_v58 = vor.u32 %v9909_v45, %v9060_v46  ;;  %v6458_v22 = vld [vmem:[%s13042_s7 + $0xc0] sm:$0xff]  ;;  %v6418_v37 = vperm.slane %v12716_v10, 0  ;;  %s10079_s6 = smov [#allocation5]  }
 0x631   :  { %6390 = vmatpush.bf16.msrb.mxu2 %v9159_v33  ;;  %6359 = vmatmul.bf16.vlgmr.msra.gmra.mxu3 %v10018_v63  ;;  %v8916_v33 = vld [vmem:[#allocation2 + $0xd18] sm:$0xf0]  ;;  %v9905_v62 = vld [vmem:[#allocation2 + $0xe0c] sm:$0xf]  ;;  %v6463_v63 = vld [vmem:[%s13042_s7 + $0xe8] sm:$0xff]  ;;  %s6755_s1 = sshll.u32 %s10079_s6, 4  ;;  %s6756_s1 = int_to_ptr.vmem [resolvable:$true] %s6755_s1 }
 0x632   :  { %6403 = vmatpush.bf16.msrb.mxu3 %v9287_v41  ;;  %6380 = vmatpush.bf16.msrb.mxu1 %v8983_v28  ;;  %v9945_v41 = vld [vmem:[#allocation2 + $0xf4c] sm:$0xf]  ;;  %v8919_v40 = vor.u32 %v9873_v30, %v8916_v33  ;;  %v9047_v0 = vor.u32 %v9905_v62, %v9044_v54  ;;  %v10022_v15 = vld [vmem:[#allocation1 + $0x3f] sm:$0xff]  ;;  %v6455_v29 = vld [vmem:[%s13042_s7 + $0xa8] sm:$0xff] }
 0x633   :  { %v6139_v34 = vpop.f32.mrf.mxu2  ;;  %v9207_v28 = vor.u32 %v9945_v41, %v9204_v39  ;;  %v10020_v61 = vld [vmem:[#allocation1 + $0x2d] sm:$0xff]  ;;  %v6438_v30 = vld [vmem:[%s13042_s7 + $0x20] sm:$0xff]  ;;  %v6453_v41 = vld [vmem:[%s13042_s7 + $0x98] sm:$0xff] }
 0x634   :  { %6368 = vmatpush.bf16.msrb.mxu0 %v8839_v17  ;;  %v6152_v49 = vpop.f32.mrf.mxu3  ;;  %v9191_v17 = vor.u32 %v9941_v35, %v9188_v50  ;;  %v6444_v3 = vld [vmem:[%s13042_s7 + $0x50] sm:$0xff] }
 0x635   :  { %6391 = vmatpush.bf16.msrb.mxu2 %v9143_v47  ;;  %v6140_v47 = vadd.f32 %v6139_v34, %v6127_v4  ;;  %v6446_v4 = vld [vmem:[%s13042_s7 + $0x60] sm:$0xff]  ;;  %v6460_v48 = vld [vmem:[%s13042_s7 + $0xd0] sm:$0xff] }
 0x636   :  { %6404 = vmatpush.bf16.msrb.mxu3 %v9271_v51  ;;  %6381 = vmatpush.bf16.msrb.mxu1 %v8967_v56  ;;  %v6448_v51 = vld [vmem:[%s13042_s7 + $0x70] sm:$0xff] }
 0x637   :  { %v6153_v52 = vadd.f32 %v6152_v49, %v6140_v47  ;;  %v9937_v56 = vld [vmem:[#allocation2 + $0xf0c] sm:$0xf]  ;;  %v6450_v47 = vld [vmem:[%s13042_s7 + $0x80] sm:$0xff] }
 0x638   :  { %6369 = vmatpush.bf16.msrb.mxu0 %v8823_v12  ;;  %v6440_v26 = vld [vmem:[%s13042_s7 + $0x30] sm:$0xff] }
 0x639   :  { %6392 = vmatpush.bf16.msrb.mxu2 %v9127_v6  ;;  %v6462_v6 = vld [vmem:[%s13042_s7 + $0xe0] sm:$0xff]  ;;  %v6456_v32 = vld [vmem:[%s13042_s7 + $0xb0] sm:$0xff] }
 0x63a   :  { %6405 = vmatpush.bf16.msrb.mxu3 %v9255_v8  ;;  %6382 = vmatpush.bf16.msrb.mxu1 %v8951_v16  ;;  %v9175_v8 = vor.u32 %v9937_v56, %v9172_v1  ;;  %v6443_v16 = vld [vmem:[%s13042_s7 + $0x48] sm:$0xff]  ;;  %v6436_v39 = vld [vmem:[%s13042_s7 + $0x10] sm:$0xff] }
 0x63b   :  { %v6141_v9 = vpop.f32.mrf.mxu2 }
 0x63c   :  { %6370 = vmatpush.bf16.msrb.mxu0 %v8807_v57  ;;  %v6154_v12 = vpop.f32.mrf.mxu3  ;;  %v6441_v57 = vld [vmem:[%s13042_s7 + $0x38] sm:$0xff]  ;;  %v9319_v9 = vld [vmem:[%s13042_s7 + $0x1f0] sm:$0xff] }
 0x63d   :  { %6393 = vmatpush.bf16.msrb.mxu2 %v9111_v55  ;;  %v10021_v55 = vld [vmem:[#allocation1 + $0x36] sm:$0xff]  ;;  %v9318_v12 = vld [vmem:[%s13042_s7 + $0x1e8] sm:$0xff] }
 0x63e   :  { %6406 = vmatpush.bf16.msrb.mxu3 %v9239_v21  ;;  %6383 = vmatpush.bf16.msrb.mxu1 %v8935_v31  ;;  %v6442_v21 = vld [vmem:[%s13042_s7 + $0x40] sm:$0xff]  ;;  %v6439_v31 = vld [vmem:[%s13042_s7 + $0x28] sm:$0xff] }
 0x640   :  { %6371 = vmatpush.bf16.msrb.mxu0 %v8791_v23  ;;  %v6165_v20 = vpop.f32.mrf.mxu0  ;;  %v6419_v23 = vperm.slane %v12716_v10, 1 }
 0x641   :  { %6394 = vmatpush.bf16.msrb.mxu2 %v9095_v24  ;;  %v6166_v14 = vadd.f32 %v6165_v20, %v6153_v52  ;;  %v9316_v20 = vld [vmem:[%s13042_s7 + $0x1d8] sm:$0xff] }
 0x642   :  { %6407 = vmatpush.bf16.msrb.mxu3 %v9223_v36  ;;  %6384 = vmatpush.bf16.msrb.mxu1 %v8919_v40  ;;  %v6178_v53 = vpop.f32.mrf.mxu1  ;;  %v6454_v36 = vld [vmem:[%s13042_s7 + $0xa0] sm:$0xff]  ;;  %v6452_v40 = vld [vmem:[%s13042_s7 + $0x90] sm:$0xff]  ;;  %v6427_v34 = vadd.f32 %v6419_v23, %v12633_v18 }
 0x643   :  { %6372 = vmatmul.bf16.vlgmr.msrb.gmra.mxu0 %v10019_v59  ;;  %v6179_v27 = vadd.f32 %v6178_v53, %v6166_v14  ;;  %v9314_v14 = vld [vmem:[%s13042_s7 + $0x1c8] sm:$0xff]  ;;  %v6526_v53 = vld [vmem:[%s13044_s9 + $0x78] sm:$0xff] }
 0x644   :  { %6470 = vmatpush.msra.mxu0 %v6449_v43  ;;  %v6435_v43 = vld [vmem:[%s13042_s7 + $0x8] sm:$0xff]  ;;  %v6431_v35 = vmax.f32 %v6427_v34, 0.0 }
 0x645   :  { %6395 = vmatpush.bf16.msrb.mxu2 %v9079_v42  ;;  %6385 = vmatmul.bf16.vlgmr.msrb.gmra.mxu1 %v10020_v61  ;;  %v6426_v42 = vadd.f32 %v6418_v37, %v12607_v7  ;;  %v6434_v7 = vld [vmem:[%s13042_s7] sm:$0xff]  ;;  %v6520_v37 = vld [vmem:[%s13044_s9 + $0x48] sm:$0xff] }
 0x646   :  { %6490 = vmatpush.msra.mxu1 %v6465_v44  ;;  %6408 = vmatpush.bf16.msrb.mxu3 %v9207_v28  ;;  %v6451_v28 = vld [vmem:[%s13042_s7 + $0x88] sm:$0xff] }
 0x647   :  { %6471 = vmatpush.msra.mxu0 %v6448_v51  ;;  %v6430_v49 = vmax.f32 %v6426_v42, 0.0  ;;  %v9306_v42 = vld [vmem:[%s13042_s7 + $0x188] sm:$0xff] }
 0x648   :  { %6491 = vmatpush.msra.mxu1 %v6464_v13  ;;  %v6167_v24 = vpop.f32.mrf.mxu0 }
 0x649   :  { %6396 = vmatpush.bf16.msrb.mxu2 %v9063_v58  ;;  %6472 = vmatpush.msra.mxu0 %v6447_v60 }
 0x64a   :  { %6492 = vmatpush.msra.mxu1 %v6463_v63  ;;  %6409 = vmatpush.bf16.msrb.mxu3 %v9191_v17  ;;  %v6180_v33 = vpop.f32.mrf.mxu1 }
 0x64b   :  { %6473 = vmatpush.msra.mxu0 %v6446_v4  ;;  %v6521_v33 = vld [vmem:[%s13044_s9 + $0x50] sm:$0xff] }
 0x64c   :  { %6493 = vmatpush.msra.mxu1 %v6462_v6 }
 0x64d   :  { %6397 = vmatpush.bf16.msrb.mxu2 %v9047_v0  ;;  %6474 = vmatpush.msra.mxu0 %v6445_v5 }
 0x64e   :  { %6494 = vmatpush.msra.mxu1 %v6461_v11  ;;  %6410 = vmatpush.bf16.msrb.mxu3 %v9175_v8 }
 0x64f   :  { %6475 = vmatpush.msra.mxu0 %v6444_v3  ;;  %v9317_v3 = vld [vmem:[%s13042_s7 + $0x1e0] sm:$0xff] }
 0x650   :  { %6398 = vmatmul.bf16.vlgmr.msrb.gmra.mxu2 %v10021_v55  ;;  %6495 = vmatpush.msra.mxu1 %v6460_v48  ;;  %v9315_v55 = vld [vmem:[%s13042_s7 + $0x1d0] sm:$0xff] }
 0x651   :  { %6411 = vmatmul.bf16.vlgmr.msrb.gmra.mxu3 %v10022_v15  ;;  %6476 = vmatpush.msra.mxu0 %v6443_v16  ;;  %v6525_v15 = vld [vmem:[%s13044_s9 + $0x70] sm:$0xff] }
 0x652   :  { %6496 = vmatpush.msra.mxu1 %v6459_v19  ;;  %6531 = vmatpush.msra.mxu2 %v6526_v53 }
 0x653   :  { %6477 = vmatpush.msra.mxu0 %v6442_v21  ;;  %v6191_v44 = vpop.f32.mrf.mxu2 }
 0x654   :  { %6497 = vmatpush.msra.mxu1 %v6458_v22  ;;  %v6192_v45 = vadd.f32 %v6191_v44, %v6179_v27  ;;  %v6204_v46 = vpop.f32.mrf.mxu3  ;;  %v9313_v22 = vld [vmem:[%s13042_s7 + $0x1c0] sm:$0xff]  ;;  %v6524_v27 = vld [vmem:[%s13044_s9 + $0x68] sm:$0xff]  ;;  %6532 = vmatpush.msra.mxu2 %v6525_v15 }
 0x655   :  { %6478 = vmatpush.msra.mxu0 %v6441_v57  ;;  %v9312_v57 = vld [vmem:[%s13042_s7 + $0x1b8] sm:$0xff]  ;;  %v9305_v44 = vld [vmem:[%s13042_s7 + $0x180] sm:$0xff] }
 0x656   :  { %6498 = vmatpush.msra.mxu1 %v6457_v25  ;;  %v12755_v18 = vadd.f32 %v6204_v46, %v6192_v45  ;;  %v6523_v25 = vld [vmem:[%s13044_s9 + $0x60] sm:$0xff]  ;;  %6533 = vmatpush.msra.mxu2 %v6524_v27  ;;  %v6516_v46 = vld [vmem:[%s13044_s9 + $0x28] sm:$0xff] }
 0x657   :  { %6479 = vmatpush.msra.mxu0 %v6440_v26  ;;  %v9311_v26 = vld [vmem:[%s13042_s7 + $0x1b0] sm:$0xff] }
 0x658   :  { %6499 = vmatpush.msra.mxu1 %v6456_v32  ;;  %v6522_v32 = vld [vmem:[%s13044_s9 + $0x58] sm:$0xff]  ;;  %6534 = vmatpush.msra.mxu2 %v6523_v25 }
 0x659   :  { %6480 = vmatpush.msra.mxu0 %v6439_v31 }
 0x65a   :  { %6500 = vmatpush.msra.mxu1 %v6455_v29  ;;  %v9310_v29 = vld [vmem:[%s13042_s7 + $0x1a8] sm:$0xff]  ;;  %6535 = vmatpush.msra.mxu2 %v6522_v32  ;;  %v9303_v32 = vld [vmem:[%s13042_s7 + $0x170] sm:$0xff] }
 0x65b   :  { %6481 = vmatpush.msra.mxu0 %v6438_v30  ;;  %v6193_v50 = vpop.f32.mrf.mxu2  ;;  %v9309_v30 = vld [vmem:[%s13042_s7 + $0x1a0] sm:$0xff] }
 0x65c   :  { %6501 = vmatpush.msra.mxu1 %v6454_v36  ;;  %v6206_v51 = vpop.f32.mrf.mxu3  ;;  %6536 = vmatpush.msra.mxu2 %v6521_v33  ;;  %v9308_v36 = vld [vmem:[%s13042_s7 + $0x198] sm:$0xff]  ;;  %v9298_v33 = vld [vmem:[%s13042_s7 + $0x148] sm:$0xff] }
 0x65d   :  { %6482 = vmatpush.msra.mxu0 %v6437_v38  ;;  %v6514_v50 = vld [vmem:[%s13044_s9 + $0x18] sm:$0xff] }
 0x65e   :  { %6502 = vmatpush.msra.mxu1 %v6453_v41  ;;  %6537 = vmatpush.msra.mxu2 %v6520_v37  ;;  %v9307_v41 = vld [vmem:[%s13042_s7 + $0x190] sm:$0xff]  ;;  %v9296_v37 = vld [vmem:[%s13042_s7 + $0x138] sm:$0xff] }
 0x65f   :  { %6483 = vmatpush.msra.mxu0 %v6436_v39 }
 0x660   :  { %6503 = vmatpush.msra.mxu1 %v6452_v40  ;;  %v6217_v13 = vpop.f32.mrf.mxu0  ;;  %v6519_v40 = vld [vmem:[%s13044_s9 + $0x40] sm:$0xff] }
 0x661   :  { %6484 = vmatpush.msra.mxu0 %v6435_v43  ;;  %v6218_v52 = vadd.f32 %v6217_v13, %v12589_v2  ;;  %v9320_v2 = vld [vmem:[%s13042_s7 + $0x1f8] sm:$0xff]  ;;  %6538 = vmatpush.msra.mxu2 %v6519_v40  ;;  %v9291_v40 = vld [vmem:[%s13042_s7 + $0x110] sm:$0xff] }
 0x662   :  { %6504 = vmatpush.msra.mxu1 %v6451_v28  ;;  %v6230_v58 = vpop.f32.mrf.mxu1  ;;  %v6518_v43 = vld [vmem:[%s13044_s9 + $0x38] sm:$0xff]  ;;  %v6517_v28 = vld [vmem:[%s13044_s9 + $0x30] sm:$0xff] }
 0x663   :  { %6485 = vmatpush.msra.mxu0 %v6434_v7  ;;  %v6231_v59 = vadd.f32 %v6230_v58, %v6218_v52  ;;  %6539 = vmatpush.msra.mxu2 %v6518_v43  ;;  %v6515_v7 = vld [vmem:[%s13044_s9 + $0x20] sm:$0xff]  ;;  %v6513_v52 = vld [vmem:[%s13044_s9 + $0x10] sm:$0xff] }
 0x664   :  { %6505 = vmatpush.msra.mxu1 %v6450_v47  ;;  %6486 = vmatmul.f32.vlgmr.msra.gmra.mxu0 %v6430_v49  ;;  %v9289_v43 = vld [vmem:[%s13042_s7 + $0x100] sm:$0xff] }
 0x665   :  { %6506 = vmatmul.f32.vlgmr.msra.gmra.mxu1 %v6431_v35  ;;  %6648 = vmatpush.msrb.mxu0 %v9320_v2 }
 0x666   :  { %6540 = vmatpush.msra.mxu2 %v6517_v28  ;;  %v9335_v28 = vld [vmem:[%s13044_s9 + $0xe8] sm:$0xff] }
 0x667   :  { %6649 = vmatpush.msrb.mxu0 %v9319_v9  ;;  %v6553_v9 = vld [vmem:[%s13046_s11 + $0x8] sm:$0xff] }
 0x668   :  { %v6219_v60 = vpop.f32.mrf.mxu0  ;;  %6541 = vmatpush.msra.mxu2 %v6516_v46  ;;  %v9333_v46 = vld [vmem:[%s13044_s9 + $0xd8] sm:$0xff] }
 0x669   :  { %6650 = vmatpush.msrb.mxu0 %v9318_v12 }
 0x66a   :  { %v6232_v17 = vpop.f32.mrf.mxu1  ;;  %6542 = vmatpush.msra.mxu2 %v6515_v7  ;;  %v9332_v7 = vld [vmem:[%s13044_s9 + $0xd0] sm:$0xff] }
 0x66b   :  { %6651 = vmatpush.msrb.mxu0 %v9317_v3  ;;  %v6511_v17 = vld [vmem:[%s13044_s9] sm:$0xff] }
 0x66c   :  { %6543 = vmatpush.msra.mxu2 %v6514_v50 }
 0x66d   :  { %6652 = vmatpush.msrb.mxu0 %v9316_v20 }
 0x66e   :  { %6544 = vmatpush.msra.mxu2 %v6513_v52 }
 0x66f   :  { %6653 = vmatpush.msrb.mxu0 %v9315_v55 }
 0x671   :  { %6654 = vmatpush.msrb.mxu0 %v9314_v14 }
 0x673   :  { %v6243_v62 = vpop.f32.mrf.mxu2  ;;  %6655 = vmatpush.msrb.mxu0 %v9313_v22 }
 0x674   :  { %v6244_v54 = vadd.f32 %v6243_v62, %v6231_v59  ;;  %v6256_v63 = vpop.f32.mrf.mxu3  ;;  %v6512_v59 = vld [vmem:[%s13044_s9 + $0x8] sm:$0xff] }
 0x675   :  { %6656 = vmatpush.msrb.mxu0 %v9312_v57  ;;  %6545 = vmatpush.msra.mxu2 %v6512_v59 }
 0x676   :  { %v6257_v56 = vadd.f32 %v6256_v63, %v6244_v54  ;;  %v6559_v54 = vld [vmem:[%s13046_s11 + $0x38] sm:$0xff]  ;;  %v6558_v63 = vld [vmem:[%s13046_s11 + $0x30] sm:$0xff] }
 0x677   :  { %6657 = vmatpush.msrb.mxu0 %v9311_v26  ;;  %6546 = vmatpush.msra.mxu2 %v6511_v17  ;;  %v9304_v26 = vld [vmem:[%s13042_s7 + $0x178] sm:$0xff]  ;;  %v9328_v17 = vld [vmem:[%s13044_s9 + $0xb0] sm:$0xff] }
 0x678   :  { %6576 = vmatpush.msra.mxu3 %v6559_v54  ;;  %v9324_v54 = vld [vmem:[%s13044_s9 + $0x90] sm:$0xff] }
 0x679   :  { %6658 = vmatpush.msrb.mxu0 %v9310_v29  ;;  %v9301_v29 = vld [vmem:[%s13042_s7 + $0x160] sm:$0xff] }
 0x67a   :  { %6577 = vmatpush.msra.mxu3 %v6558_v63  ;;  %v9323_v63 = vld [vmem:[%s13044_s9 + $0x88] sm:$0xff] }
 0x67b   :  { %v6245_v1 = vpop.f32.mrf.mxu2  ;;  %6659 = vmatpush.msrb.mxu0 %v9309_v30  ;;  %v9299_v30 = vld [vmem:[%s13042_s7 + $0x150] sm:$0xff] }
 0x67c   :  { %v6258_v61 = vpop.f32.mrf.mxu3 }
 0x67d   :  { %6660 = vmatpush.msrb.mxu0 %v9308_v36  ;;  %v9297_v36 = vld [vmem:[%s13042_s7 + $0x140] sm:$0xff] }
 0x67f   :  { %6661 = vmatpush.msrb.mxu0 %v9307_v41  ;;  %v9293_v41 = vld [vmem:[%s13042_s7 + $0x120] sm:$0xff] }
 0x680   :  { %v6269_v4 = vpop.f32.mrf.mxu0 }
 0x681   :  { %v6270_v38 = vadd.f32 %v6269_v4, %v6257_v56  ;;  %6662 = vmatpush.msrb.mxu0 %v9306_v42  ;;  %v6557_v56 = vld [vmem:[%s13046_s11 + $0x28] sm:$0xff]  ;;  %v6556_v4 = vld [vmem:[%s13046_s11 + $0x20] sm:$0xff] }
 0x682   :  { %v6282_v6 = vpop.f32.mrf.mxu1  ;;  %6578 = vmatpush.msra.mxu3 %v6557_v56  ;;  %v9290_v42 = vld [vmem:[%s13042_s7 + $0x108] sm:$0xff]  ;;  %v9322_v56 = vld [vmem:[%s13044_s9 + $0x80] sm:$0xff] }
 0x683   :  { %v6283_v34 = vadd.f32 %v6282_v6, %v6270_v38  ;;  %6663 = vmatpush.msrb.mxu0 %v9305_v44  ;;  %v9295_v38 = vld [vmem:[%s13042_s7 + $0x130] sm:$0xff] }
 0x684   :  { %6579 = vmatpush.msra.mxu3 %v6556_v4  ;;  %v9336_v44 = vld [vmem:[%s13044_s9 + $0xf0] sm:$0xff]  ;;  %v9344_v4 = vld [vmem:[%s13046_s11 + $0x68] sm:$0xff] }
 0x688   :  { %v6271_v0 = vpop.f32.mrf.mxu0 }
 0x68a   :  { %v6284_v5 = vpop.f32.mrf.mxu1 }
 0x68b   :  { %v6555_v5 = vld [vmem:[%s13046_s11 + $0x18] sm:$0xff] }
 0x68c   :  { %6580 = vmatpush.msra.mxu3 %v6555_v5  ;;  %v9995_v5 = vld [vmem:[%s13047_s12] ss:$0 sm:$0xff] }
 0x693   :  { %v12758_v8 = vpop.f32.mrf.mxu2 }
 0x694   :  { %v12766_v11 = vpop.f32.mrf.mxu3  ;;  %v6296_v45 = vadd.f32 %v12758_v8, %v6283_v34  ;;  %v6554_v8 = vld [vmem:[%s13046_s11 + $0x10] sm:$0xff]  ;;  %v9337_v34 = vld [vmem:[%s13044_s9 + $0xf8] sm:$0xff] }
 0x695   :  { %6581 = vmatpush.msra.mxu3 %v6554_v8  ;;  %6691 = vmatpush.msrb.mxu1 %v9337_v34 }
 0x696   :  { %v6309_v35 = vadd.f32 %v12766_v11, %v6296_v45  ;;  %v9334_v45 = vld [vmem:[%s13044_s9 + $0xe0] sm:$0xff] }
 0x697   :  { %6582 = vmatpush.msra.mxu3 %v6553_v9  ;;  %6692 = vmatpush.msrb.mxu1 %v9336_v44  ;;  %v9996_v9 = vld [vmem:[%s13043_s8 + $0x1] ss:$0 sm:$0xff] }
 0x699   :  { %6693 = vmatpush.msrb.mxu1 %v9335_v28 }
 0x69b   :  { %v6297_v48 = vpop.f32.mrf.mxu2  ;;  %6694 = vmatpush.msrb.mxu1 %v9334_v45 }
 0x69c   :  { %v6310_v16 = vpop.f32.mrf.mxu3  ;;  %v6421_v48 = vperm.slane %v12716_v10, 3 }
 0x69d   :  { %v6552_v16 = vld [vmem:[%s13046_s11] sm:$0xff]  ;;  %6695 = vmatpush.msrb.mxu1 %v9333_v46 }
 0x69e   :  { %6583 = vmatpush.msra.mxu3 %v6552_v16 }
 0x69f   :  { %6696 = vmatpush.msrb.mxu1 %v9332_v7 }
 0x6a0   :  { %v6321_v19 = vpop.f32.mrf.mxu0  ;;  %6628 = vmatpush.msrb.mxu3 %v9304_v26 }
 0x6a1   :  { %v6322_v51 = vadd.f32 %v6321_v19, %v6309_v35  ;;  %v9994_v35 = vld [vmem:[%s13045_s10] ss:$0 sm:$0xff] }
 0x6a2   :  { %v6334_v21 = vpop.f32.mrf.mxu1  ;;  %6629 = vmatpush.msrb.mxu3 %v9303_v32 }
 0x6a3   :  { %v6335_v60 = vadd.f32 %v6334_v21, %v6322_v51  ;;  %v9993_v21 = vld [vmem:[%s13043_s8] ss:$0 sm:$0xff] }
 0x6a8   :  { %v6323_v31 = vpop.f32.mrf.mxu0 }
 0x6a9   :  { %v9302_v31 = vld [vmem:[%s13042_s7 + $0x168] sm:$0xff] }
 0x6aa   :  { %v6336_v24 = vpop.f32.mrf.mxu1  ;;  %6630 = vmatpush.msrb.mxu3 %v9302_v31 }
 0x6ab   :  { %v9300_v24 = vld [vmem:[%s13042_s7 + $0x158] sm:$0xff] }
 0x6ac   :  { %6631 = vmatpush.msrb.mxu3 %v9301_v29 }
 0x6ae   :  { %6632 = vmatpush.msrb.mxu3 %v9300_v24 }
 0x6b0   :  { %6633 = vmatpush.msrb.mxu3 %v9299_v30 }
 0x6b2   :  { %6634 = vmatpush.msrb.mxu3 %v9298_v33 }
 0x6b3   :  { %v6347_v23 = vpop.f32.mrf.mxu2 }
 0x6b4   :  { %v6360_v39 = vpop.f32.mrf.mxu3  ;;  %v6348_v62 = vadd.f32 %v6347_v23, %v6335_v60  ;;  %6635 = vmatpush.msrb.mxu3 %v9297_v36  ;;  %v9294_v23 = vld [vmem:[%s13042_s7 + $0x128] sm:$0xff]  ;;  %v9329_v60 = vld [vmem:[%s13044_s9 + $0xb8] sm:$0xff] }
 0x6b6   :  { %v6361_v61 = vadd.f32 %v6360_v39, %v6348_v62  ;;  %6636 = vmatpush.msrb.mxu3 %v9296_v37  ;;  %v9292_v39 = vld [vmem:[%s13042_s7 + $0x118] sm:$0xff]  ;;  %s6757_s7 = sshll.u32 %s13048_s13, 4  ;;  %s6758_s7 = int_to_ptr.hbm [resolvable:$true] %s6757_s7 }
 0x6b7   :  { %v9325_v62 = vld [vmem:[%s13044_s9 + $0x98] sm:$0xff] }
 0x6b8   :  { %6637 = vmatpush.msrb.mxu3 %v9295_v38 }
 0x6ba   :  { %6638 = vmatpush.msrb.mxu3 %v9294_v23 }
 0x6bb   :  { %v6349_v47 = vpop.f32.mrf.mxu2 }
 0x6bc   :  { %v6362_v49 = vpop.f32.mrf.mxu3  ;;  %6639 = vmatpush.msrb.mxu3 %v9293_v41  ;;  %v9331_v47 = vld [vmem:[%s13044_s9 + $0xc8] sm:$0xff] }
 0x6bd   :  { %v9330_v49 = vld [vmem:[%s13044_s9 + $0xc0] sm:$0xff]  ;;  %6697 = vmatpush.msrb.mxu1 %v9331_v47 }
 0x6be   :  { %6640 = vmatpush.msrb.mxu3 %v9292_v39 }
 0x6bf   :  { %6698 = vmatpush.msrb.mxu1 %v9330_v49 }
 0x6c0   :  { %v6373_v13 = vpop.f32.mrf.mxu0  ;;  %6641 = vmatpush.msrb.mxu3 %v9291_v40 }
 0x6c1   :  { %v6374_v0 = vadd.f32 %v6373_v13, %v6361_v61  ;;  %v6420_v13 = vperm.slane %v12716_v10, 2  ;;  %6699 = vmatpush.msrb.mxu1 %v9329_v60  ;;  %v9327_v10 = vld [vmem:[%s13044_s9 + $0xa8] sm:$0xff]  ;;  %v9345_v61 = vld [vmem:[%s13046_s11 + $0x70] sm:$0xff] }
 0x6c2   :  { %v6386_v58 = vpop.f32.mrf.mxu1  ;;  %6642 = vmatpush.msrb.mxu3 %v9290_v42 }
 0x6c3   :  { %v6387_v2 = vadd.f32 %v6386_v58, %v6374_v0  ;;  %v6428_v58 = vadd.f32 %v6420_v13, %v12755_v18  ;;  %6700 = vmatpush.msrb.mxu1 %v9328_v17  ;;  %v9326_v18 = vld [vmem:[%s13044_s9 + $0xa0] sm:$0xff]  ;;  %v9342_v0 = vld [vmem:[%s13046_s11 + $0x58] sm:$0xff] }
 0x6c4   :  { %6643 = vmatpush.msrb.mxu3 %v9289_v43 }
 0x6c5   :  { %v6432_v59 = vmax.f32 %v6428_v58, 0.0  ;;  %6701 = vmatpush.msrb.mxu1 %v9327_v10 }
 0x6c7   :  { %6702 = vmatpush.msrb.mxu1 %v9326_v18 }
 0x6c8   :  { %v6375_v1 = vpop.f32.mrf.mxu0 }
 0x6c9   :  { %6703 = vmatpush.msrb.mxu1 %v9325_v62  ;;  %v9346_v1 = vld [vmem:[%s13046_s11 + $0x78] sm:$0xff] }
 0x6ca   :  { %v6388_v6 = vpop.f32.mrf.mxu1  ;;  %6737 = vmatpush.msrb.mxu2 %v9346_v1 }
 0x6cb   :  { %6704 = vmatpush.msrb.mxu1 %v9324_v54  ;;  %v9343_v6 = vld [vmem:[%s13046_s11 + $0x60] sm:$0xff] }
 0x6cc   :  { %6738 = vmatpush.msrb.mxu2 %v9345_v61 }
 0x6cd   :  { %6705 = vmatpush.msrb.mxu1 %v9323_v63 }
 0x6ce   :  { %6739 = vmatpush.msrb.mxu2 %v9344_v4 }
 0x6cf   :  { %6706 = vmatpush.msrb.mxu1 %v9322_v56 }
 0x6d0   :  { %6740 = vmatpush.msrb.mxu2 %v9343_v6 }
 0x6d2   :  { %6741 = vmatpush.msrb.mxu2 %v9342_v0 }
 0x6d3   :  { %v6399_v11 = vpop.f32.mrf.mxu2 }
 0x6d4   :  { %v6400_v12 = vadd.f32 %v6399_v11, %v6387_v2  ;;  %v6412_v3 = vpop.f32.mrf.mxu3 }
 0x6d6   :  { %v6413_v20 = vadd.f32 %v6412_v3, %v6400_v12 }
 0x6d8   :  { %v6429_v19 = vadd.f32 %v6421_v48, %v6413_v20  ;;  %v9341_v20 = vld [vmem:[%s13046_s11 + $0x50] sm:$0xff] }
 0x6d9   :  { %6742 = vmatpush.msrb.mxu2 %v9341_v20 }
 0x6da   :  { %v6433_v55 = vmax.f32 %v6429_v19, 0.0  ;;  %v9340_v19 = vld [vmem:[%s13046_s11 + $0x48] sm:$0xff] }
 0x6db   :  { %v6401_v14 = vpop.f32.mrf.mxu2  ;;  %6743 = vmatpush.msrb.mxu2 %v9340_v19 }
 0x6dc   :  { %6664 = vmatmul.f32.vlgmr.msrb.gmra.mxu0 %v6433_v55  ;;  %v6414_v53 = vpop.f32.mrf.mxu3  ;;  %v9339_v55 = vld [vmem:[%s13046_s11 + $0x40] sm:$0xff] }
 0x6dd   :  { %6744 = vmatpush.msrb.mxu2 %v9339_v55  ;;  %v9997_v14 = vld [vmem:[%s13045_s10 + $0x1] ss:$0 sm:$0xff]  ;;  %s6766_s10 = sshll.u32 %s10080_s16, 4  ;;  %s6767_s10 = int_to_ptr.vmem [resolvable:$true] %s6766_s10 }
 0x6e1   :  { %v6487_v15 = vpop.f32.mrf.mxu0 }
 0x6e2   :  { %v6488_v22 = vadd.f32 %v9993_v21, %v6487_v15  ;;  %v6507_v27 = vpop.f32.mrf.mxu1 }
 0x6e4   :  { %v6508_v57 = vadd.f32 %v6507_v27, %v6488_v22  ;;  %v9998_v22 = vld [vmem:[%s13047_s12 + $0x1] ss:$0 sm:$0xff] }
 0x6e6   :  { %v6510_v25 = vmax.f32 %v6508_v57, 0.0 }
 0x6e8   :  { %6547 = vmatmul.f32.vlgmr.msra.gmra.mxu2 %v6510_v25 }
 0x759   :  { %v6665_v3 = vpop.f32.mrf.mxu0 }
 0x76b   :  { %v6548_v50 = vpop.f32.mrf.mxu2 }
 0x76c   :  { %v6549_v51 = vadd.f32 %v9994_v35, %v6548_v50 }
 0x76e   :  { %v6551_v52 = vmax.f32 %v6549_v51, 0.0 }
 0x770   :  { %9288 = vmatmul.msk.f32.vlgmr.msra.gmra.mxu3 %vm6564_vm10, %v6551_v52 }
 0x778   :  { %6644 = vmatmul.f32.vlgmr.msrb.gmra.mxu3 %v6432_v59 }
 0x7f3   :  { %v6585_v8 = vpop.f32.mrf.mxu3 }
 0x7f4   :  { %v6586_v2 = vadd.f32 %v9995_v5, %v6585_v8 }
 0x7f6   :  { %6589 = vst.msk [vmem:[#allocation5] sm:$0x3] %vm6588_vm11, %v6586_v2 }
 0x7f7   :  { %6760 = dma.vmem_to_hbm [thread:$0]  %s6756_s1, 32, %s6758_s7, [#allocation6]  }
 0x7fb   :  { %v6645_v11 = vpop.f32.mrf.mxu3 }
 0x7fc   :  { %v6646_v12 = vadd.f32 %v9996_v9, %v6645_v11 }
 0x7fe   :  { %v6666_v48 = vadd.f32 %v6665_v3, %v6646_v12 }
 0x800   :  { %v6668_v16 = vmax.f32 %v6666_v48, 0.0 }
 0x802   :  { %6707 = vmatmul.f32.vlgmr.msrb.gmra.mxu1 %v6668_v16 }
 0x87f   :  { %v6708_v53 = vpop.f32.mrf.mxu1 }
 0x880   :  { %v6709_v21 = vadd.f32 %v9997_v14, %v6708_v53 }
 0x882   :  { %v6711_v15 = vmax.f32 %v6709_v21, 0.0 }
 0x884   :  { %9348 = vmatmul.msk.f32.vlgmr.msrb.gmra.mxu2 %vm6564_vm10, %v6711_v15 }
 0x907   :  { %v6746_v27 = vpop.f32.mrf.mxu2 }
 0x908   :  { %v6747_v57 = vadd.f32 %v9998_v22, %v6746_v27 }
 0x90a   :  { %6749 = vst.msk [vmem:[#allocation7] sm:$0x3] %vm6588_vm11, %v6747_v57 }
 0x90b   :  { %6771 = dma.vmem_to_hbm [thread:$0]  %s6767_s10, 32, %s6769_s18, [#allocation8]  }
 0x90c   :  { %10073 = dma.done.wait [#allocation6], 32  }
 0x90d   :  { %10074 = vsyncadd [#allocation6], 4294967264 }
 0x90e   :  { %10075 = dma.done.wait [#allocation8], 32  }
 0x90f   :  { %10076 = vsyncadd [#allocation8], 4294967264 }
 0x910   :  { %6780 = vsyncpa [#allocation6], 1 }
 0x911   :  { %6781 = vsyncpa [#allocation8], 1 }
 0x912   :  { %6782 = vsyncmov [#allocation4] }
 0x915   :  { %s6783_s12 = vpop.sfrf %6782 }
 0x916   :  { %p9349_p0 = scmp.ne.s32.totalorder %s6783_s12, 0 }
 0x918   :  { %6787 = shalt.err (%p9349_p0)  }

</bundles_post_ra>
